<compile_context>
chip_gen: v5e
topology: v5e:2x2
jax: 0.10.0
libtpu: 0.0.40
codegen_flags: <defaults>
</compile_context>

<pallas_src>
import functools

import jax
import jax.numpy as jnp
import numpy as np
from jax import lax
from jax.experimental import pallas as pl
from jax.experimental.pallas import tpu as pltpu


# ----------------------------------------------------------------------------
# small helpers (wrapper side)
# ----------------------------------------------------------------------------
def _round_up(x, m):
    return ((x + m - 1) // m) * m


def _pad_to(a, shape):
    pads = [(0, int(s) - int(d)) for d, s in zip(a.shape, shape)]
    if any(p[1] for p in pads):
        return jnp.pad(a, pads)
    return a


def _pack_gate_cols(w_t, H, Hp):
    """Reorder gate columns (i,f,g,o) -> (i,f,o,g), pad each gate H->Hp.

    w_t: (in_dim, 4H)  ->  (in_dim, 4*Hp)
    """
    gi = _pad_to(w_t[:, 0 * H:1 * H], (w_t.shape[0], Hp))
    gf = _pad_to(w_t[:, 1 * H:2 * H], (w_t.shape[0], Hp))
    gg = _pad_to(w_t[:, 2 * H:3 * H], (w_t.shape[0], Hp))
    go = _pad_to(w_t[:, 3 * H:4 * H], (w_t.shape[0], Hp))
    return jnp.concatenate([gi, gf, go, gg], axis=1)


# ----------------------------------------------------------------------------
# Kernel: one block of conductors per grid step.
#   R  = conductors_per_block * batch      (rows per timestep, padded to Rp)
#   Hp = H padded to 128, Vp = V padded to 128
# ----------------------------------------------------------------------------
def decoder_kernel(*refs, num_layers, hidden_pad, seq_len, rows_pad,
                   proj_chunk_t, use_fori, fori_unroll):
    L, Hp, T, Rp = num_layers, hidden_pad, seq_len, rows_pad
    f32 = jnp.float32

    if L > 1:
        (tok_ref, cond_ref, w_toh_ref, b_toh_ref, w_c_ref, w_ih_ref,
         w_hh_ref, b_ref, pw_ref, pb_ref, out_ref,
         hseq_ref, cg_ref, xp_ref) = refs
    else:
        (tok_ref, cond_ref, w_toh_ref, b_toh_ref, w_c_ref,
         w_hh_ref, b_ref, pw_ref, pb_ref, out_ref,
         hseq_ref, cg_ref) = refs
        w_ih_ref = None
        xp_ref = None

    cdt = hseq_ref.dtype                       # matmul dtype; accumulate in f32
    align = Rp & -Rp                           # largest power of 2 dividing Rp

    def rows(t):
        if isinstance(t, int):                 # static unroll -> static slices
            return slice(t * Rp, (t + 1) * Rp)
        return pl.ds(pl.multiple_of(t * Rp, align), Rp)

    cond = cond_ref[...]                                               # (Rp, Hp)

    # to_h : Linear + Tanh -> per-layer initial hidden states (padded cols = 0)
    toh = jnp.tanh(jnp.dot(cond, w_toh_ref[...],
                           preferred_element_type=f32) + b_toh_ref[...])  # (Rp, L*Hp)

    # Layer-0 time-invariant conductor gate term (+ layer-0 bias), kept in VMEM.
    cg_ref[...] = (jnp.dot(cond, w_c_ref[...], preferred_element_type=f32)
                   + b_ref[0:1, :])                                     # (Rp, 4Hp)

    def run_layer(get_x, w_hh_l_ref, h0):
        """LSTM recurrence over time for one layer; writes hseq_ref."""
        c0 = jnp.zeros((Rp, Hp), f32)

        def step(t, h, c):
            g = get_x(t) + jnp.dot(h.astype(cdt), w_hh_l_ref[...],
                                   preferred_element_type=f32)          # (Rp, 4Hp)
            # gate order (i, f, o | g): one sigmoid over 3Hp lanes, one tanh
            # over Hp lanes; every slice lands on a 128-lane boundary.
            s = jax.nn.sigmoid(g[:, 0:3 * Hp])
            i_g = s[:, 0 * Hp:1 * Hp]
            f_g = s[:, 1 * Hp:2 * Hp]
            o_g = s[:, 2 * Hp:3 * Hp]
            g_g = jnp.tanh(g[:, 3 * Hp:4 * Hp])
            c = f_g * c + i_g * g_g
            h = o_g * jnp.tanh(c)
            hseq_ref[rows(t), :] = h.astype(cdt)
            return h, c

        if use_fori:
            def body(t, carry):
                return step(t, *carry)
            lax.fori_loop(0, T, body, (h0, c0),
                          unroll=max(1, min(fori_unroll, T)))
        else:
            h, c = h0, c0
            for t in range(T):
                h, c = step(t, h, c)

    # ---- layer 0: per-timestep token slice + hoisted conductor term ---------
    def x0(t):
        return tok_ref[rows(t), :].astype(f32) + cg_ref[...]
    run_layer(x0, w_hh_ref.at[0], toh[:, 0:Hp])

    # ---- layers 1..L-1: chunked batched input projection, then recurrence ---
    for l in range(1, L):
        for t0 in range(0, T, proj_chunk_t):
            t1 = min(t0 + proj_chunk_t, T)
            r = slice(t0 * Rp, t1 * Rp)
            xp_ref[r, :] = (jnp.dot(hseq_ref[r, :], w_ih_ref[l - 1],
                                    preferred_element_type=f32)
                            + b_ref[l:l + 1, :])

        def xl(t):
            return xp_ref[rows(t), :]
        run_layer(xl, w_hh_ref.at[l], toh[:, l * Hp:(l + 1) * Hp])

    # ---- prob projection: chunked rows, lane-dense (Vp) bulk stores ---------
    for t0 in range(0, T, proj_chunk_t):
        t1 = min(t0 + proj_chunk_t, T)
        r = slice(t0 * Rp, t1 * Rp)
        out_ref[r, :] = (jnp.dot(hseq_ref[r, :], pw_ref[...],
                                 preferred_element_type=f32)
                         + pb_ref[...]).astype(out_ref.dtype)


# ----------------------------------------------------------------------------
# Parameter construction (deterministic, PyTorch-default-style uniform init)
# ----------------------------------------------------------------------------
def init_params(key, hidden_size, num_layers, vocab_size):
    H, L, V = hidden_size, num_layers, vocab_size
    IN = H + V
    k_lstm = 1.0 / np.sqrt(H)

    keys = jax.random.split(key, 16)
    u = lambda kk, shape, b: jax.random.uniform(kk, shape, jnp.float32, -b, b)

    params = dict(hidden_size=H, num_layers=L, vocab_size=V)
    # nn.LSTM weights (gate order i, f, g, o)
    params["w_ih"] = [u(keys[0], (4 * H, IN), k_lstm)] + [
        u(jax.random.fold_in(keys[1], l), (4 * H, H), k_lstm) for l in range(1, L)]
    params["w_hh"] = [u(jax.random.fold_in(keys[2], l), (4 * H, H), k_lstm)
                      for l in range(L)]
    params["b_ih"] = [u(jax.random.fold_in(keys[3], l), (4 * H,), k_lstm)
                      for l in range(L)]
    params["b_hh"] = [u(jax.random.fold_in(keys[4], l), (4 * H,), k_lstm)
                      for l in range(L)]
    # to_h : Linear(H, L*H)
    k_lin = 1.0 / np.sqrt(H)
    params["w_toh"] = u(keys[5], (L * H, H), k_lin)
    params["b_toh"] = u(keys[6], (L * H,), k_lin)
    # init_step : Embedding(1, V)  (row 0 is the only one ever used)
    params["init_step"] = jax.random.normal(keys[7], (V,), jnp.float32)
    # prob : Linear(H, V)
    params["pw"] = u(keys[8], (V, H), k_lin)
    params["pb"] = u(keys[9], (V,), k_lin)
    return params


# ----------------------------------------------------------------------------
# Wrapper: glue (token gather, gate reorder, padding, weight packing) + call
# ----------------------------------------------------------------------------
def decoder_forward(x, conductors, params, *, conductors_per_block=None,
                    compute_dtype=jnp.bfloat16, time_loop="auto",
                    time_unroll_threshold=16, fori_unroll=4,
                    target_chunk_rows=512, min_grid_blocks=2):
    H = params["hidden_size"]
    L = params["num_layers"]
    V = params["vocab_size"]
    N, T, B = x.shape
    f32 = jnp.float32
    cdt = compute_dtype

    Hp = _round_up(H, 128)                       # lane-dense hidden / gate width
    Vp = _round_up(V, 128)                       # lane-dense vocab width

    # --- choose how many conductors fold into one grid step -------------------
    if conductors_per_block is None:
        # target R >= 128 rows per timestep while keeping >= 2 grid blocks
        # (v7x has 2 TensorCores; a 1-step grid would idle one of them).
        floor_blocks = min(min_grid_blocks, N)
        nc = 1
        while (nc < N and nc * B < 128
               and -(-N // (nc + 1)) >= floor_blocks):
            nc += 1
    else:
        nc = max(1, min(conductors_per_block, N))

    n_pad = (-N) % nc
    if n_pad:
        x = jnp.concatenate([x, jnp.zeros((n_pad, T, B), x.dtype)], axis=0)
        conductors = jnp.concatenate(
            [conductors, jnp.zeros((n_pad, B, H), conductors.dtype)], axis=0)
    NP = N + n_pad
    n_blocks = NP // nc
    R = nc * B                                   # real rows per timestep
    Rp = _round_up(R, 8)                         # padded (sublane multiple)

    proj_chunk_t = max(1, min(T, target_chunk_rows // Rp))
    use_fori = (time_loop == "fori") or (time_loop == "auto"
                                         and T > time_unroll_threshold)

    # --- split layer-0 input weight: token (one-hot) part vs conductor part ---
    w_ih0 = params["w_ih"][0]                                        # (4H, V+H)
    w_x_t = _pack_gate_cols(w_ih0[:, :V].T, H, Hp)                   # (V, 4Hp) f32
    w_c_t = _pad_to(_pack_gate_cols(w_ih0[:, V:].T, H, Hp),
                    (Hp, 4 * Hp)).astype(cdt)                        # (Hp, 4Hp)

    # --- token gate contribution: embedding gather instead of one-hot matmul --
    init_row = params["init_step"] @ w_x_t                           # (4Hp,)
    tok = jnp.take(w_x_t, x[:, :-1].reshape(-1), axis=0)
    tok = tok.reshape(NP, T - 1, B, 4 * Hp)
    tok = jnp.concatenate(
        [jnp.broadcast_to(init_row, (NP, 1, B, 4 * Hp)), tok], axis=1)  # (NP,T,B,4Hp)
    # fold conductors into batch; rows within a timestep ordered (c-in-block, b)
    tok = tok.reshape(n_blocks, nc, T, B, 4 * Hp).transpose(0, 2, 1, 3, 4)
    tok = tok.reshape(n_blocks, T, R, 4 * Hp)
    tok = _pad_to(tok, (n_blocks, T, Rp, 4 * Hp))
    tok = tok.reshape(n_blocks, T * Rp, 4 * Hp).astype(cdt)

    cond_blk = conductors.reshape(n_blocks, R, H)
    cond_blk = _pad_to(cond_blk, (n_blocks, Rp, Hp)).astype(cdt)

    # --- pre-transposed, lane-padded weight packing ----------------------------
    w_toh_t = jnp.concatenate(
        [_pad_to(params["w_toh"][l * H:(l + 1) * H, :].T, (Hp, Hp))
         for l in range(L)], axis=1).astype(cdt)                     # (Hp, L*Hp)
    b_toh = jnp.concatenate(
        [_pad_to(params["b_toh"][l * H:(l + 1) * H], (Hp,))
         for l in range(L)])[None, :].astype(f32)                    # (1, L*Hp)
    w_hh_t = jnp.stack(
        [_pad_to(_pack_gate_cols(params["w_hh"][l].T, H, Hp), (Hp, 4 * Hp))
         for l in range(L)], axis=0).astype(cdt)                     # (L, Hp, 4Hp)
    b_all = jnp.stack(
        [_pack_gate_cols((params["b_ih"][l] + params["b_hh"][l])[None, :], H, Hp)[0]
         for l in range(L)], axis=0).astype(f32)                     # (L, 4Hp)
    pw_t = _pad_to(params["pw"].T, (Hp, Vp)).astype(cdt)             # (Hp, Vp)
    pb = _pad_to(params["pb"], (Vp,))[None, :].astype(f32)           # (1, Vp)

    # --- in_specs / args (layer>0 weight stack + xp scratch only when needed) --
    args = [tok, cond_blk, w_toh_t, b_toh, w_c_t]
    in_specs = [
        pl.BlockSpec((None, T * Rp, 4 * Hp), lambda i: (i, 0, 0)),   # token gates
        pl.BlockSpec((None, Rp, Hp), lambda i: (i, 0, 0)),           # conductors
        pl.BlockSpec((Hp, L * Hp), lambda i: (0, 0)),                # W_toh^T
        pl.BlockSpec((1, L * Hp), lambda i: (0, 0)),                 # b_toh
        pl.BlockSpec((Hp, 4 * Hp), lambda i: (0, 0)),                # W_c^T
    ]
    if L > 1:
        w_ih_rest_t = jnp.stack(
            [_pad_to(_pack_gate_cols(params["w_ih"][l].T, H, Hp), (Hp, 4 * Hp))
             for l in range(1, L)], axis=0).astype(cdt)              # (L-1,Hp,4Hp)
        args.append(w_ih_rest_t)
        in_specs.append(pl.BlockSpec((L - 1, Hp, 4 * Hp), lambda i: (0, 0, 0)))
    args += [w_hh_t, b_all, pw_t, pb]
    in_specs += [
        pl.BlockSpec((L, Hp, 4 * Hp), lambda i: (0, 0, 0)),          # W_hh^T
        pl.BlockSpec((L, 4 * Hp), lambda i: (0, 0)),                 # b_ih + b_hh
        pl.BlockSpec((Hp, Vp), lambda i: (0, 0)),                    # prob W^T
        pl.BlockSpec((1, Vp), lambda i: (0, 0)),                     # prob b
    ]

    scratch_shapes = [
        pltpu.VMEM((T * Rp, Hp), cdt),            # per-layer hidden sequence
        pltpu.VMEM((Rp, 4 * Hp), f32),            # layer-0 conductor gate term
    ]
    if L > 1:
        scratch_shapes.append(pltpu.VMEM((T * Rp, 4 * Hp), f32))   # xp scratch

    # --- explicit scoped-VMEM budget from actual block sizes ------------------
    def nbytes(shape, dt):
        return int(np.prod(shape)) * jnp.dtype(dt).itemsize

    est = 0
    est += 2 * nbytes((T * Rp, 4 * Hp), cdt)          # tok (double-buffered)
    est += 2 * nbytes((Rp, Hp), cdt)                  # conductors
    est += 2 * nbytes((T * Rp, Vp), f32)              # output (double-buffered)
    est += nbytes((Hp, L * Hp), cdt) + nbytes((1, L * Hp), f32)
    est += nbytes((Hp, 4 * Hp), cdt)                  # W_c^T
    est += L * nbytes((Hp, 4 * Hp), cdt) + L * 4 * Hp * 4
    est += nbytes((Hp, Vp), cdt) + Vp * 4
    est += nbytes((T * Rp, Hp), cdt) + nbytes((Rp, 4 * Hp), f32)
    if L > 1:
        est += (L - 1) * nbytes((Hp, 4 * Hp), cdt)
        est += nbytes((T * Rp, 4 * Hp), f32)
    vmem_limit = int(min(max(est + est // 2 + (8 << 20), 32 << 20), 64 << 20))

    kernel = functools.partial(
        decoder_kernel, num_layers=L, hidden_pad=Hp, seq_len=T, rows_pad=Rp,
        proj_chunk_t=proj_chunk_t, use_fori=use_fori, fori_unroll=fori_unroll)

    out = pl.pallas_call(
        kernel,
        out_shape=jax.ShapeDtypeStruct((n_blocks, T * Rp, Vp), f32),
        grid_spec=pltpu.PrefetchScalarGridSpec(
            num_scalar_prefetch=0,
            grid=(n_blocks,),
            in_specs=in_specs,
            out_specs=pl.BlockSpec((None, T * Rp, Vp), lambda i: (i, 0, 0)),
            scratch_shapes=scratch_shapes),
        compiler_params=pltpu.CompilerParams(
            dimension_semantics=("parallel",),
            vmem_limit_bytes=vmem_limit),
    )(*args)

    # (n_blocks, T*Rp, Vp) -> strip padding -> (N, T, B, V) -> (B, V, N, T)
    out = out.reshape(n_blocks, T, Rp, Vp)[:, :, :R, :V]
    out = out.reshape(n_blocks, T, nc, B, V).transpose(0, 2, 1, 3, 4)
    out = out.reshape(NP, T, B, V)[:N]
    return jnp.transpose(out, (2, 3, 0, 1))


# ----------------------------------------------------------------------------
# Pure-JAX reference (mirrors the PyTorch forward, eval mode) for validation
# ----------------------------------------------------------------------------
def reference_forward(x, conductors, params):
    H, L, V = params["hidden_size"], params["num_layers"], params["vocab_size"]
    N, T, B = x.shape
    tracks = []
    for i in range(N):
        cond = conductors[i]
        toh = jnp.tanh(cond @ params["w_toh"].T + params["b_toh"])
        h = [toh[:, l * H:(l + 1) * H] for l in range(L)]
        c = [jnp.zeros((B, H), jnp.float32) for _ in range(L)]
        init = jnp.broadcast_to(params["init_step"][None, :], (B, V))
        oh = jax.nn.one_hot(x[i, :-1], V, dtype=jnp.float32)
        x_oh = jnp.concatenate([init[None], oh], axis=0)                 # (T, B, V)
        outs = []
        for t in range(T):
            layer_in = jnp.concatenate([x_oh[t], cond], axis=-1)
            for l in range(L):
                gates = (layer_in @ params["w_ih"][l].T + h[l] @ params["w_hh"][l].T
                         + params["b_ih"][l] + params["b_hh"][l])
                i_g = jax.nn.sigmoid(gates[:, 0 * H:1 * H])
                f_g = jax.nn.sigmoid(gates[:, 1 * H:2 * H])
                g_g = jnp.tanh(gates[:, 2 * H:3 * H])
                o_g = jax.nn.sigmoid(gates[:, 3 * H:4 * H])
                c[l] = f_g * c[l] + i_g * g_g
                h[l] = o_g * jnp.tanh(c[l])
                layer_in = h[l]
            outs.append(h[-1])
        tracks.append(jnp.stack(outs, axis=0))                           # (T, B, H)
    stacked = jnp.stack(tracks, axis=0)                                  # (N, T, B, H)
    logits = stacked @ params["pw"].T + params["pb"]                     # (N, T, B, V)
    return jnp.transpose(logits, (2, 3, 0, 1))                           # (B, V, N, T)


if __name__ == "__main__":
    hidden_size = 32
    num_layers = 2
    vocab_size = 16
    num_conductors = 2
    batch = 4
    seq_len = 8

    key = jax.random.PRNGKey(0)
    k_p, k_x, k_c, k_p1 = jax.random.split(key, 4)

    params = init_params(k_p, hidden_size, num_layers, vocab_size)
    x = jax.random.randint(k_x, (num_conductors, seq_len, batch), 0, vocab_size,
                           dtype=jnp.int32)
    conductors = jax.random.normal(k_c, (num_conductors, batch, hidden_size),
                                   jnp.float32)

    ref = jax.block_until_ready(reference_forward(x, conductors, params))

    # 1) f32, one conductor per block (2 grid steps -> both v7x TCs busy),
    #    statically unrolled time loop.
    out = jax.block_until_ready(decoder_forward(
        x, conductors, params, conductors_per_block=1,
        compute_dtype=jnp.float32, time_loop="unroll"))
    assert out.shape == (batch, vocab_size, num_conductors, seq_len)
    np.testing.assert_allclose(np.asarray(out), np.asarray(ref),
                               rtol=1e-3, atol=1e-3)

    # 2) f32, conductors folded into the batch + fori_loop time loop
    #    (dynamic pl.ds slicing path).
    out2 = jax.block_until_ready(decoder_forward(
        x, conductors, params, conductors_per_block=2,
        compute_dtype=jnp.float32, time_loop="fori", fori_unroll=2))
    np.testing.assert_allclose(np.asarray(out2), np.asarray(ref),
                               rtol=1e-3, atol=1e-3)

    # 3) default path: bf16 matmuls (v6e / v7x MXU), f32 accumulation,
    #    auto conductor-block choice. Looser tolerance for bf16.
    out3 = jax.block_until_ready(decoder_forward(x, conductors, params))
    np.testing.assert_allclose(np.asarray(out3), np.asarray(ref),
                               rtol=0.15, atol=0.15)

    # 4) single-layer model: exercises the no-w_ih-stack / no-xp-scratch path.
    params1 = init_params(k_p1, hidden_size, 1, vocab_size)
    ref1 = jax.block_until_ready(reference_forward(x, conductors, params1))
    out4 = jax.block_until_ready(decoder_forward(
        x, conductors, params1, compute_dtype=jnp.float32))
    np.testing.assert_allclose(np.asarray(out4), np.asarray(ref1),
                               rtol=1e-3, atol=1e-3)

    print("KERNEL_OK")
</pallas_src>

<mosaic_0001>
module attributes {stable_mosaic.version = 11 : i64} {
  func.func @decoder_kernel(%arg0: i32, %arg1: memref<1x64x512xf32, #tpu.memory_space<vmem>>, %arg2: memref<1x8x128xf32, #tpu.memory_space<vmem>>, %arg3: memref<128x256xf32, #tpu.memory_space<vmem>>, %arg4: memref<1x256xf32, #tpu.memory_space<vmem>>, %arg5: memref<128x512xf32, #tpu.memory_space<vmem>>, %arg6: memref<1x128x512xf32, #tpu.memory_space<vmem>>, %arg7: memref<2x128x512xf32, #tpu.memory_space<vmem>>, %arg8: memref<2x512xf32, #tpu.memory_space<vmem>>, %arg9: memref<128x128xf32, #tpu.memory_space<vmem>>, %arg10: memref<1x128xf32, #tpu.memory_space<vmem>>, %arg11: memref<1x64x128xf32, #tpu.memory_space<vmem>>, %arg12: memref<64x128xf32, #tpu.memory_space<vmem>>, %arg13: memref<8x512xf32, #tpu.memory_space<vmem>>, %arg14: memref<64x512xf32, #tpu.memory_space<vmem>>) attributes {dimension_semantics = [#tpu.dimension_semantics<parallel>], iteration_bounds = array<i64: 2>, scalar_prefetch = 0 : i64, scratch_operands = 3 : i64, tpu.core_type = #tpu.core_type<tc>, window_params = [{transform_indices = @transform_0, window_bounds = array<i64: 1, 64, 512>}, {transform_indices = @transform_1, window_bounds = array<i64: 1, 8, 128>}, {pipeline_mode = #tpu.pipeline_mode<synchronous>, transform_indices = @transform_2, window_bounds = array<i64: 128, 256>}, {pipeline_mode = #tpu.pipeline_mode<synchronous>, transform_indices = @transform_3, window_bounds = array<i64: 1, 256>}, {pipeline_mode = #tpu.pipeline_mode<synchronous>, transform_indices = @transform_4, window_bounds = array<i64: 128, 512>}, {pipeline_mode = #tpu.pipeline_mode<synchronous>, transform_indices = @transform_5, window_bounds = array<i64: 1, 128, 512>}, {pipeline_mode = #tpu.pipeline_mode<synchronous>, transform_indices = @transform_6, window_bounds = array<i64: 2, 128, 512>}, {pipeline_mode = #tpu.pipeline_mode<synchronous>, transform_indices = @transform_7, window_bounds = array<i64: 2, 512>}, {pipeline_mode = #tpu.pipeline_mode<synchronous>, transform_indices = @transform_8, window_bounds = array<i64: 128, 128>}, {pipeline_mode = #tpu.pipeline_mode<synchronous>, transform_indices = @transform_9, window_bounds = array<i64: 1, 128>}, {transform_indices = @transform_10, window_bounds = array<i64: 1, 64, 128>}]} {
    %c0 = arith.constant 0 : index
    %c0_0 = arith.constant 0 : index
    %c0_1 = arith.constant 0 : index
    %0 = vector.load %arg2[%c0, %c0_0, %c0_1] : memref<1x8x128xf32, #tpu.memory_space<vmem>>, vector<1x8x128xf32>
    %1 = vector.shape_cast %0 : vector<1x8x128xf32> to vector<8x128xf32>
    %c0_2 = arith.constant 0 : index
    %c0_3 = arith.constant 0 : index
    %2 = vector.load %arg3[%c0_2, %c0_3] : memref<128x256xf32, #tpu.memory_space<vmem>>, vector<128x256xf32>
    %cst = arith.constant dense<0.000000e+00> : vector<8x256xf32>
    %3 = tpu.matmul %1, %2, %cst {dimension_numbers = #tpu.dot_dimension_numbers<[1], [0], [0], [1], [0, 0, 1, 1], [], []>} : vector<8x128xf32>, vector<128x256xf32>, vector<8x256xf32> -> vector<8x256xf32>
    %c0_4 = arith.constant 0 : index
    %c0_5 = arith.constant 0 : index
    %4 = vector.load %arg4[%c0_4, %c0_5] : memref<1x256xf32, #tpu.memory_space<vmem>>, vector<1x256xf32>
    %5 = vector.broadcast %4 : vector<1x256xf32> to vector<8x256xf32>
    %6 = arith.addf %3, %5 : vector<8x256xf32>
    %7 = math.tanh %6 : vector<8x256xf32>
    %c0_6 = arith.constant 0 : index
    %c0_7 = arith.constant 0 : index
    %8 = vector.load %arg5[%c0_6, %c0_7] : memref<128x512xf32, #tpu.memory_space<vmem>>, vector<128x512xf32>
    %cst_8 = arith.constant dense<0.000000e+00> : vector<8x512xf32>
    %9 = tpu.matmul %1, %8, %cst_8 {dimension_numbers = #tpu.dot_dimension_numbers<[1], [0], [0], [1], [0, 0, 1, 1], [], []>} : vector<8x128xf32>, vector<128x512xf32>, vector<8x512xf32> -> vector<8x512xf32>
    %c0_9 = arith.constant 0 : index
    %c0_10 = arith.constant 0 : index
    %10 = vector.load %arg8[%c0_9, %c0_10] : memref<2x512xf32, #tpu.memory_space<vmem>>, vector<1x512xf32>
    %11 = vector.broadcast %10 : vector<1x512xf32> to vector<8x512xf32>
    %12 = arith.addf %9, %11 : vector<8x512xf32>
    %c0_11 = arith.constant 0 : index
    %c0_12 = arith.constant 0 : index
    %13 = vector.load %arg13[%c0_11, %c0_12] : memref<8x512xf32, #tpu.memory_space<vmem>>, vector<8x512xf32>
    tpu.vector_store %arg13[%c0_11, %c0_12], %12 {strides = array<i32>} : memref<8x512xf32, #tpu.memory_space<vmem>>, vector<8x512xf32>,
    %14 = vector.extract_strided_slice %7 {offsets = [0, 0], sizes = [8, 128], strides = [1, 1]} : vector<8x256xf32> to vector<8x128xf32>
    %cst_13 = arith.constant 0.000000e+00 : f32
    %15 = vector.broadcast %cst_13 : f32 to vector<8x128xf32>
    %c0_14 = arith.constant 0 : index
    %c0_15 = arith.constant 0 : index
    %c0_16 = arith.constant 0 : index
    %16 = vector.load %arg1[%c0_14, %c0_15, %c0_16] : memref<1x64x512xf32, #tpu.memory_space<vmem>>, vector<1x8x512xf32>
    %17 = vector.shape_cast %16 : vector<1x8x512xf32> to vector<8x512xf32>
    %c0_17 = arith.constant 0 : index
    %c0_18 = arith.constant 0 : index
    %18 = vector.load %arg13[%c0_17, %c0_18] : memref<8x512xf32, #tpu.memory_space<vmem>>, vector<8x512xf32>
    %19 = arith.addf %17, %18 : vector<8x512xf32>
    %c0_19 = arith.constant 0 : index
    %c0_20 = arith.constant 0 : index
    %c0_21 = arith.constant 0 : index
    %20 = vector.load %arg7[%c0_19, %c0_20, %c0_21] : memref<2x128x512xf32, #tpu.memory_space<vmem>>, vector<1x128x512xf32>
    %21 = vector.shape_cast %20 : vector<1x128x512xf32> to vector<128x512xf32>
    %cst_22 = arith.constant dense<0.000000e+00> : vector<8x512xf32>
    %22 = tpu.matmul %14, %21, %cst_22 {dimension_numbers = #tpu.dot_dimension_numbers<[1], [0], [0], [1], [0, 0, 1, 1], [], []>} : vector<8x128xf32>, vector<128x512xf32>, vector<8x512xf32> -> vector<8x512xf32>
    %23 = arith.addf %19, %22 : vector<8x512xf32>
    %24 = vector.extract_strided_slice %23 {offsets = [0, 0], sizes = [8, 384], strides = [1, 1]} : vector<8x512xf32> to vector<8x384xf32>
    %25 = arith.negf %24 : vector<8x384xf32>
    %26 = math.exp %25 : vector<8x384xf32>
    %cst_23 = arith.constant 1.000000e+00 : f32
    %27 = vector.broadcast %cst_23 : f32 to vector<8x384xf32>
    %28 = arith.addf %27, %26 : vector<8x384xf32>
    %29 = arith.divf %27, %28 : vector<8x384xf32>
    %30 = vector.extract_strided_slice %29 {offsets = [0, 0], sizes = [8, 128], strides = [1, 1]} : vector<8x384xf32> to vector<8x128xf32>
    %31 = vector.extract_strided_slice %29 {offsets = [0, 128], sizes = [8, 128], strides = [1, 1]} : vector<8x384xf32> to vector<8x128xf32>
    %32 = vector.extract_strided_slice %29 {offsets = [0, 256], sizes = [8, 128], strides = [1, 1]} : vector<8x384xf32> to vector<8x128xf32>
    %33 = vector.extract_strided_slice %23 {offsets = [0, 384], sizes = [8, 128], strides = [1, 1]} : vector<8x512xf32> to vector<8x128xf32>
    %34 = math.tanh %33 : vector<8x128xf32>
    %35 = arith.mulf %31, %15 : vector<8x128xf32>
    %36 = arith.mulf %30, %34 : vector<8x128xf32>
    %37 = arith.addf %35, %36 : vector<8x128xf32>
    %38 = math.tanh %37 : vector<8x128xf32>
    %39 = arith.mulf %32, %38 : vector<8x128xf32>
    %c0_24 = arith.constant 0 : index
    %c0_25 = arith.constant 0 : index
    %40 = vector.load %arg12[%c0_24, %c0_25] : memref<64x128xf32, #tpu.memory_space<vmem>>, vector<8x128xf32>
    tpu.vector_store %arg12[%c0_24, %c0_25], %39 {strides = array<i32>} : memref<64x128xf32, #tpu.memory_space<vmem>>, vector<8x128xf32>,
    %c0_26 = arith.constant 0 : index
    %c8 = arith.constant 8 : index
    %c0_27 = arith.constant 0 : index
    %41 = vector.load %arg1[%c0_26, %c8, %c0_27] : memref<1x64x512xf32, #tpu.memory_space<vmem>>, vector<1x8x512xf32>
    %42 = vector.shape_cast %41 : vector<1x8x512xf32> to vector<8x512xf32>
    %c0_28 = arith.constant 0 : index
    %c0_29 = arith.constant 0 : index
    %43 = vector.load %arg13[%c0_28, %c0_29] : memref<8x512xf32, #tpu.memory_space<vmem>>, vector<8x512xf32>
    %44 = arith.addf %42, %43 : vector<8x512xf32>
    %c0_30 = arith.constant 0 : index
    %c0_31 = arith.constant 0 : index
    %c0_32 = arith.constant 0 : index
    %45 = vector.load %arg7[%c0_30, %c0_31, %c0_32] : memref<2x128x512xf32, #tpu.memory_space<vmem>>, vector<1x128x512xf32>
    %46 = vector.shape_cast %45 : vector<1x128x512xf32> to vector<128x512xf32>
    %cst_33 = arith.constant dense<0.000000e+00> : vector<8x512xf32>
    %47 = tpu.matmul %39, %46, %cst_33 {dimension_numbers = #tpu.dot_dimension_numbers<[1], [0], [0], [1], [0, 0, 1, 1], [], []>} : vector<8x128xf32>, vector<128x512xf32>, vector<8x512xf32> -> vector<8x512xf32>
    %48 = arith.addf %44, %47 : vector<8x512xf32>
    %49 = vector.extract_strided_slice %48 {offsets = [0, 0], sizes = [8, 384], strides = [1, 1]} : vector<8x512xf32> to vector<8x384xf32>
    %50 = arith.negf %49 : vector<8x384xf32>
    %51 = math.exp %50 : vector<8x384xf32>
    %cst_34 = arith.constant 1.000000e+00 : f32
    %52 = vector.broadcast %cst_34 : f32 to vector<8x384xf32>
    %53 = arith.addf %52, %51 : vector<8x384xf32>
    %54 = arith.divf %52, %53 : vector<8x384xf32>
    %55 = vector.extract_strided_slice %54 {offsets = [0, 0], sizes = [8, 128], strides = [1, 1]} : vector<8x384xf32> to vector<8x128xf32>
    %56 = vector.extract_strided_slice %54 {offsets = [0, 128], sizes = [8, 128], strides = [1, 1]} : vector<8x384xf32> to vector<8x128xf32>
    %57 = vector.extract_strided_slice %54 {offsets = [0, 256], sizes = [8, 128], strides = [1, 1]} : vector<8x384xf32> to vector<8x128xf32>
    %58 = vector.extract_strided_slice %48 {offsets = [0, 384], sizes = [8, 128], strides = [1, 1]} : vector<8x512xf32> to vector<8x128xf32>
    %59 = math.tanh %58 : vector<8x128xf32>
    %60 = arith.mulf %56, %37 : vector<8x128xf32>
    %61 = arith.mulf %55, %59 : vector<8x128xf32>
    %62 = arith.addf %60, %61 : vector<8x128xf32>
    %63 = math.tanh %62 : vector<8x128xf32>
    %64 = arith.mulf %57, %63 : vector<8x128xf32>
    %c8_35 = arith.constant 8 : index
    %c0_36 = arith.constant 0 : index
    %65 = vector.load %arg12[%c8_35, %c0_36] : memref<64x128xf32, #tpu.memory_space<vmem>>, vector<8x128xf32>
    tpu.vector_store %arg12[%c8_35, %c0_36], %64 {strides = array<i32>} : memref<64x128xf32, #tpu.memory_space<vmem>>, vector<8x128xf32>,
    %c0_37 = arith.constant 0 : index
    %c16 = arith.constant 16 : index
    %c0_38 = arith.constant 0 : index
    %66 = vector.load %arg1[%c0_37, %c16, %c0_38] : memref<1x64x512xf32, #tpu.memory_space<vmem>>, vector<1x8x512xf32>
    %67 = vector.shape_cast %66 : vector<1x8x512xf32> to vector<8x512xf32>
    %c0_39 = arith.constant 0 : index
    %c0_40 = arith.constant 0 : index
    %68 = vector.load %arg13[%c0_39, %c0_40] : memref<8x512xf32, #tpu.memory_space<vmem>>, vector<8x512xf32>
    %69 = arith.addf %67, %68 : vector<8x512xf32>
    %c0_41 = arith.constant 0 : index
    %c0_42 = arith.constant 0 : index
    %c0_43 = arith.constant 0 : index
    %70 = vector.load %arg7[%c0_41, %c0_42, %c0_43] : memref<2x128x512xf32, #tpu.memory_space<vmem>>, vector<1x128x512xf32>
    %71 = vector.shape_cast %70 : vector<1x128x512xf32> to vector<128x512xf32>
    %cst_44 = arith.constant dense<0.000000e+00> : vector<8x512xf32>
    %72 = tpu.matmul %64, %71, %cst_44 {dimension_numbers = #tpu.dot_dimension_numbers<[1], [0], [0], [1], [0, 0, 1, 1], [], []>} : vector<8x128xf32>, vector<128x512xf32>, vector<8x512xf32> -> vector<8x512xf32>
    %73 = arith.addf %69, %72 : vector<8x512xf32>
    %74 = vector.extract_strided_slice %73 {offsets = [0, 0], sizes = [8, 384], strides = [1, 1]} : vector<8x512xf32> to vector<8x384xf32>
    %75 = arith.negf %74 : vector<8x384xf32>
    %76 = math.exp %75 : vector<8x384xf32>
    %cst_45 = arith.constant 1.000000e+00 : f32
    %77 = vector.broadcast %cst_45 : f32 to vector<8x384xf32>
    %78 = arith.addf %77, %76 : vector<8x384xf32>
    %79 = arith.divf %77, %78 : vector<8x384xf32>
    %80 = vector.extract_strided_slice %79 {offsets = [0, 0], sizes = [8, 128], strides = [1, 1]} : vector<8x384xf32> to vector<8x128xf32>
    %81 = vector.extract_strided_slice %79 {offsets = [0, 128], sizes = [8, 128], strides = [1, 1]} : vector<8x384xf32> to vector<8x128xf32>
    %82 = vector.extract_strided_slice %79 {offsets = [0, 256], sizes = [8, 128], strides = [1, 1]} : vector<8x384xf32> to vector<8x128xf32>
    %83 = vector.extract_strided_slice %73 {offsets = [0, 384], sizes = [8, 128], strides = [1, 1]} : vector<8x512xf32> to vector<8x128xf32>
    %84 = math.tanh %83 : vector<8x128xf32>
    %85 = arith.mulf %81, %62 : vector<8x128xf32>
    %86 = arith.mulf %80, %84 : vector<8x128xf32>
    %87 = arith.addf %85, %86 : vector<8x128xf32>
    %88 = math.tanh %87 : vector<8x128xf32>
    %89 = arith.mulf %82, %88 : vector<8x128xf32>
    %c16_46 = arith.constant 16 : index
    %c0_47 = arith.constant 0 : index
    %90 = vector.load %arg12[%c16_46, %c0_47] : memref<64x128xf32, #tpu.memory_space<vmem>>, vector<8x128xf32>
    tpu.vector_store %arg12[%c16_46, %c0_47], %89 {strides = array<i32>} : memref<64x128xf32, #tpu.memory_space<vmem>>, vector<8x128xf32>,
    %c0_48 = arith.constant 0 : index
    %c24 = arith.constant 24 : index
    %c0_49 = arith.constant 0 : index
    %91 = vector.load %arg1[%c0_48, %c24, %c0_49] : memref<1x64x512xf32, #tpu.memory_space<vmem>>, vector<1x8x512xf32>
    %92 = vector.shape_cast %91 : vector<1x8x512xf32> to vector<8x512xf32>
    %c0_50 = arith.constant 0 : index
    %c0_51 = arith.constant 0 : index
    %93 = vector.load %arg13[%c0_50, %c0_51] : memref<8x512xf32, #tpu.memory_space<vmem>>, vector<8x512xf32>
    %94 = arith.addf %92, %93 : vector<8x512xf32>
    %c0_52 = arith.constant 0 : index
    %c0_53 = arith.constant 0 : index
    %c0_54 = arith.constant 0 : index
    %95 = vector.load %arg7[%c0_52, %c0_53, %c0_54] : memref<2x128x512xf32, #tpu.memory_space<vmem>>, vector<1x128x512xf32>
    %96 = vector.shape_cast %95 : vector<1x128x512xf32> to vector<128x512xf32>
    %cst_55 = arith.constant dense<0.000000e+00> : vector<8x512xf32>
    %97 = tpu.matmul %89, %96, %cst_55 {dimension_numbers = #tpu.dot_dimension_numbers<[1], [0], [0], [1], [0, 0, 1, 1], [], []>} : vector<8x128xf32>, vector<128x512xf32>, vector<8x512xf32> -> vector<8x512xf32>
    %98 = arith.addf %94, %97 : vector<8x512xf32>
    %99 = vector.extract_strided_slice %98 {offsets = [0, 0], sizes = [8, 384], strides = [1, 1]} : vector<8x512xf32> to vector<8x384xf32>
    %100 = arith.negf %99 : vector<8x384xf32>
    %101 = math.exp %100 : vector<8x384xf32>
    %cst_56 = arith.constant 1.000000e+00 : f32
    %102 = vector.broadcast %cst_56 : f32 to vector<8x384xf32>
    %103 = arith.addf %102, %101 : vector<8x384xf32>
    %104 = arith.divf %102, %103 : vector<8x384xf32>
    %105 = vector.extract_strided_slice %104 {offsets = [0, 0], sizes = [8, 128], strides = [1, 1]} : vector<8x384xf32> to vector<8x128xf32>
    %106 = vector.extract_strided_slice %104 {offsets = [0, 128], sizes = [8, 128], strides = [1, 1]} : vector<8x384xf32> to vector<8x128xf32>
    %107 = vector.extract_strided_slice %104 {offsets = [0, 256], sizes = [8, 128], strides = [1, 1]} : vector<8x384xf32> to vector<8x128xf32>
    %108 = vector.extract_strided_slice %98 {offsets = [0, 384], sizes = [8, 128], strides = [1, 1]} : vector<8x512xf32> to vector<8x128xf32>
    %109 = math.tanh %108 : vector<8x128xf32>
    %110 = arith.mulf %106, %87 : vector<8x128xf32>
    %111 = arith.mulf %105, %109 : vector<8x128xf32>
    %112 = arith.addf %110, %111 : vector<8x128xf32>
    %113 = math.tanh %112 : vector<8x128xf32>
    %114 = arith.mulf %107, %113 : vector<8x128xf32>
    %c24_57 = arith.constant 24 : index
    %c0_58 = arith.constant 0 : index
    %115 = vector.load %arg12[%c24_57, %c0_58] : memref<64x128xf32, #tpu.memory_space<vmem>>, vector<8x128xf32>
    tpu.vector_store %arg12[%c24_57, %c0_58], %114 {strides = array<i32>} : memref<64x128xf32, #tpu.memory_space<vmem>>, vector<8x128xf32>,
    %c0_59 = arith.constant 0 : index
    %c32 = arith.constant 32 : index
    %c0_60 = arith.constant 0 : index
    %116 = vector.load %arg1[%c0_59, %c32, %c0_60] : memref<1x64x512xf32, #tpu.memory_space<vmem>>, vector<1x8x512xf32>
    %117 = vector.shape_cast %116 : vector<1x8x512xf32> to vector<8x512xf32>
    %c0_61 = arith.constant 0 : index
    %c0_62 = arith.constant 0 : index
    %118 = vector.load %arg13[%c0_61, %c0_62] : memref<8x512xf32, #tpu.memory_space<vmem>>, vector<8x512xf32>
    %119 = arith.addf %117, %118 : vector<8x512xf32>
    %c0_63 = arith.constant 0 : index
    %c0_64 = arith.constant 0 : index
    %c0_65 = arith.constant 0 : index
    %120 = vector.load %arg7[%c0_63, %c0_64, %c0_65] : memref<2x128x512xf32, #tpu.memory_space<vmem>>, vector<1x128x512xf32>
    %121 = vector.shape_cast %120 : vector<1x128x512xf32> to vector<128x512xf32>
    %cst_66 = arith.constant dense<0.000000e+00> : vector<8x512xf32>
    %122 = tpu.matmul %114, %121, %cst_66 {dimension_numbers = #tpu.dot_dimension_numbers<[1], [0], [0], [1], [0, 0, 1, 1], [], []>} : vector<8x128xf32>, vector<128x512xf32>, vector<8x512xf32> -> vector<8x512xf32>
    %123 = arith.addf %119, %122 : vector<8x512xf32>
    %124 = vector.extract_strided_slice %123 {offsets = [0, 0], sizes = [8, 384], strides = [1, 1]} : vector<8x512xf32> to vector<8x384xf32>
    %125 = arith.negf %124 : vector<8x384xf32>
    %126 = math.exp %125 : vector<8x384xf32>
    %cst_67 = arith.constant 1.000000e+00 : f32
    %127 = vector.broadcast %cst_67 : f32 to vector<8x384xf32>
    %128 = arith.addf %127, %126 : vector<8x384xf32>
    %129 = arith.divf %127, %128 : vector<8x384xf32>
    %130 = vector.extract_strided_slice %129 {offsets = [0, 0], sizes = [8, 128], strides = [1, 1]} : vector<8x384xf32> to vector<8x128xf32>
    %131 = vector.extract_strided_slice %129 {offsets = [0, 128], sizes = [8, 128], strides = [1, 1]} : vector<8x384xf32> to vector<8x128xf32>
    %132 = vector.extract_strided_slice %129 {offsets = [0, 256], sizes = [8, 128], strides = [1, 1]} : vector<8x384xf32> to vector<8x128xf32>
    %133 = vector.extract_strided_slice %123 {offsets = [0, 384], sizes = [8, 128], strides = [1, 1]} : vector<8x512xf32> to vector<8x128xf32>
    %134 = math.tanh %133 : vector<8x128xf32>
    %135 = arith.mulf %131, %112 : vector<8x128xf32>
    %136 = arith.mulf %130, %134 : vector<8x128xf32>
    %137 = arith.addf %135, %136 : vector<8x128xf32>
    %138 = math.tanh %137 : vector<8x128xf32>
    %139 = arith.mulf %132, %138 : vector<8x128xf32>
    %c32_68 = arith.constant 32 : index
    %c0_69 = arith.constant 0 : index
    %140 = vector.load %arg12[%c32_68, %c0_69] : memref<64x128xf32, #tpu.memory_space<vmem>>, vector<8x128xf32>
    tpu.vector_store %arg12[%c32_68, %c0_69], %139 {strides = array<i32>} : memref<64x128xf32, #tpu.memory_space<vmem>>, vector<8x128xf32>,
    %c0_70 = arith.constant 0 : index
    %c40 = arith.constant 40 : index
    %c0_71 = arith.constant 0 : index
    %141 = vector.load %arg1[%c0_70, %c40, %c0_71] : memref<1x64x512xf32, #tpu.memory_space<vmem>>, vector<1x8x512xf32>
    %142 = vector.shape_cast %141 : vector<1x8x512xf32> to vector<8x512xf32>
    %c0_72 = arith.constant 0 : index
    %c0_73 = arith.constant 0 : index
    %143 = vector.load %arg13[%c0_72, %c0_73] : memref<8x512xf32, #tpu.memory_space<vmem>>, vector<8x512xf32>
    %144 = arith.addf %142, %143 : vector<8x512xf32>
    %c0_74 = arith.constant 0 : index
    %c0_75 = arith.constant 0 : index
    %c0_76 = arith.constant 0 : index
    %145 = vector.load %arg7[%c0_74, %c0_75, %c0_76] : memref<2x128x512xf32, #tpu.memory_space<vmem>>, vector<1x128x512xf32>
    %146 = vector.shape_cast %145 : vector<1x128x512xf32> to vector<128x512xf32>
    %cst_77 = arith.constant dense<0.000000e+00> : vector<8x512xf32>
    %147 = tpu.matmul %139, %146, %cst_77 {dimension_numbers = #tpu.dot_dimension_numbers<[1], [0], [0], [1], [0, 0, 1, 1], [], []>} : vector<8x128xf32>, vector<128x512xf32>, vector<8x512xf32> -> vector<8x512xf32>
    %148 = arith.addf %144, %147 : vector<8x512xf32>
    %149 = vector.extract_strided_slice %148 {offsets = [0, 0], sizes = [8, 384], strides = [1, 1]} : vector<8x512xf32> to vector<8x384xf32>
    %150 = arith.negf %149 : vector<8x384xf32>
    %151 = math.exp %150 : vector<8x384xf32>
    %cst_78 = arith.constant 1.000000e+00 : f32
    %152 = vector.broadcast %cst_78 : f32 to vector<8x384xf32>
    %153 = arith.addf %152, %151 : vector<8x384xf32>
    %154 = arith.divf %152, %153 : vector<8x384xf32>
    %155 = vector.extract_strided_slice %154 {offsets = [0, 0], sizes = [8, 128], strides = [1, 1]} : vector<8x384xf32> to vector<8x128xf32>
    %156 = vector.extract_strided_slice %154 {offsets = [0, 128], sizes = [8, 128], strides = [1, 1]} : vector<8x384xf32> to vector<8x128xf32>
    %157 = vector.extract_strided_slice %154 {offsets = [0, 256], sizes = [8, 128], strides = [1, 1]} : vector<8x384xf32> to vector<8x128xf32>
    %158 = vector.extract_strided_slice %148 {offsets = [0, 384], sizes = [8, 128], strides = [1, 1]} : vector<8x512xf32> to vector<8x128xf32>
    %159 = math.tanh %158 : vector<8x128xf32>
    %160 = arith.mulf %156, %137 : vector<8x128xf32>
    %161 = arith.mulf %155, %159 : vector<8x128xf32>
    %162 = arith.addf %160, %161 : vector<8x128xf32>
    %163 = math.tanh %162 : vector<8x128xf32>
    %164 = arith.mulf %157, %163 : vector<8x128xf32>
    %c40_79 = arith.constant 40 : index
    %c0_80 = arith.constant 0 : index
    %165 = vector.load %arg12[%c40_79, %c0_80] : memref<64x128xf32, #tpu.memory_space<vmem>>, vector<8x128xf32>
    tpu.vector_store %arg12[%c40_79, %c0_80], %164 {strides = array<i32>} : memref<64x128xf32, #tpu.memory_space<vmem>>, vector<8x128xf32>,
    %c0_81 = arith.constant 0 : index
    %c48 = arith.constant 48 : index
    %c0_82 = arith.constant 0 : index
    %166 = vector.load %arg1[%c0_81, %c48, %c0_82] : memref<1x64x512xf32, #tpu.memory_space<vmem>>, vector<1x8x512xf32>
    %167 = vector.shape_cast %166 : vector<1x8x512xf32> to vector<8x512xf32>
    %c0_83 = arith.constant 0 : index
    %c0_84 = arith.constant 0 : index
    %168 = vector.load %arg13[%c0_83, %c0_84] : memref<8x512xf32, #tpu.memory_space<vmem>>, vector<8x512xf32>
    %169 = arith.addf %167, %168 : vector<8x512xf32>
    %c0_85 = arith.constant 0 : index
    %c0_86 = arith.constant 0 : index
    %c0_87 = arith.constant 0 : index
    %170 = vector.load %arg7[%c0_85, %c0_86, %c0_87] : memref<2x128x512xf32, #tpu.memory_space<vmem>>, vector<1x128x512xf32>
    %171 = vector.shape_cast %170 : vector<1x128x512xf32> to vector<128x512xf32>
    %cst_88 = arith.constant dense<0.000000e+00> : vector<8x512xf32>
    %172 = tpu.matmul %164, %171, %cst_88 {dimension_numbers = #tpu.dot_dimension_numbers<[1], [0], [0], [1], [0, 0, 1, 1], [], []>} : vector<8x128xf32>, vector<128x512xf32>, vector<8x512xf32> -> vector<8x512xf32>
    %173 = arith.addf %169, %172 : vector<8x512xf32>
    %174 = vector.extract_strided_slice %173 {offsets = [0, 0], sizes = [8, 384], strides = [1, 1]} : vector<8x512xf32> to vector<8x384xf32>
    %175 = arith.negf %174 : vector<8x384xf32>
    %176 = math.exp %175 : vector<8x384xf32>
    %cst_89 = arith.constant 1.000000e+00 : f32
    %177 = vector.broadcast %cst_89 : f32 to vector<8x384xf32>
    %178 = arith.addf %177, %176 : vector<8x384xf32>
    %179 = arith.divf %177, %178 : vector<8x384xf32>
    %180 = vector.extract_strided_slice %179 {offsets = [0, 0], sizes = [8, 128], strides = [1, 1]} : vector<8x384xf32> to vector<8x128xf32>
    %181 = vector.extract_strided_slice %179 {offsets = [0, 128], sizes = [8, 128], strides = [1, 1]} : vector<8x384xf32> to vector<8x128xf32>
    %182 = vector.extract_strided_slice %179 {offsets = [0, 256], sizes = [8, 128], strides = [1, 1]} : vector<8x384xf32> to vector<8x128xf32>
    %183 = vector.extract_strided_slice %173 {offsets = [0, 384], sizes = [8, 128], strides = [1, 1]} : vector<8x512xf32> to vector<8x128xf32>
    %184 = math.tanh %183 : vector<8x128xf32>
    %185 = arith.mulf %181, %162 : vector<8x128xf32>
    %186 = arith.mulf %180, %184 : vector<8x128xf32>
    %187 = arith.addf %185, %186 : vector<8x128xf32>
    %188 = math.tanh %187 : vector<8x128xf32>
    %189 = arith.mulf %182, %188 : vector<8x128xf32>
    %c48_90 = arith.constant 48 : index
    %c0_91 = arith.constant 0 : index
    %190 = vector.load %arg12[%c48_90, %c0_91] : memref<64x128xf32, #tpu.memory_space<vmem>>, vector<8x128xf32>
    tpu.vector_store %arg12[%c48_90, %c0_91], %189 {strides = array<i32>} : memref<64x128xf32, #tpu.memory_space<vmem>>, vector<8x128xf32>,
    %c0_92 = arith.constant 0 : index
    %c56 = arith.constant 56 : index
    %c0_93 = arith.constant 0 : index
    %191 = vector.load %arg1[%c0_92, %c56, %c0_93] : memref<1x64x512xf32, #tpu.memory_space<vmem>>, vector<1x8x512xf32>
    %192 = vector.shape_cast %191 : vector<1x8x512xf32> to vector<8x512xf32>
    %c0_94 = arith.constant 0 : index
    %c0_95 = arith.constant 0 : index
    %193 = vector.load %arg13[%c0_94, %c0_95] : memref<8x512xf32, #tpu.memory_space<vmem>>, vector<8x512xf32>
    %194 = arith.addf %192, %193 : vector<8x512xf32>
    %c0_96 = arith.constant 0 : index
    %c0_97 = arith.constant 0 : index
    %c0_98 = arith.constant 0 : index
    %195 = vector.load %arg7[%c0_96, %c0_97, %c0_98] : memref<2x128x512xf32, #tpu.memory_space<vmem>>, vector<1x128x512xf32>
    %196 = vector.shape_cast %195 : vector<1x128x512xf32> to vector<128x512xf32>
    %cst_99 = arith.constant dense<0.000000e+00> : vector<8x512xf32>
    %197 = tpu.matmul %189, %196, %cst_99 {dimension_numbers = #tpu.dot_dimension_numbers<[1], [0], [0], [1], [0, 0, 1, 1], [], []>} : vector<8x128xf32>, vector<128x512xf32>, vector<8x512xf32> -> vector<8x512xf32>
    %198 = arith.addf %194, %197 : vector<8x512xf32>
    %199 = vector.extract_strided_slice %198 {offsets = [0, 0], sizes = [8, 384], strides = [1, 1]} : vector<8x512xf32> to vector<8x384xf32>
    %200 = arith.negf %199 : vector<8x384xf32>
    %201 = math.exp %200 : vector<8x384xf32>
    %cst_100 = arith.constant 1.000000e+00 : f32
    %202 = vector.broadcast %cst_100 : f32 to vector<8x384xf32>
    %203 = arith.addf %202, %201 : vector<8x384xf32>
    %204 = arith.divf %202, %203 : vector<8x384xf32>
    %205 = vector.extract_strided_slice %204 {offsets = [0, 0], sizes = [8, 128], strides = [1, 1]} : vector<8x384xf32> to vector<8x128xf32>
    %206 = vector.extract_strided_slice %204 {offsets = [0, 128], sizes = [8, 128], strides = [1, 1]} : vector<8x384xf32> to vector<8x128xf32>
    %207 = vector.extract_strided_slice %204 {offsets = [0, 256], sizes = [8, 128], strides = [1, 1]} : vector<8x384xf32> to vector<8x128xf32>
    %208 = vector.extract_strided_slice %198 {offsets = [0, 384], sizes = [8, 128], strides = [1, 1]} : vector<8x512xf32> to vector<8x128xf32>
    %209 = math.tanh %208 : vector<8x128xf32>
    %210 = arith.mulf %206, %187 : vector<8x128xf32>
    %211 = arith.mulf %205, %209 : vector<8x128xf32>
    %212 = arith.addf %210, %211 : vector<8x128xf32>
    %213 = math.tanh %212 : vector<8x128xf32>
    %214 = arith.mulf %207, %213 : vector<8x128xf32>
    %c56_101 = arith.constant 56 : index
    %c0_102 = arith.constant 0 : index
    %215 = vector.load %arg12[%c56_101, %c0_102] : memref<64x128xf32, #tpu.memory_space<vmem>>, vector<8x128xf32>
    tpu.vector_store %arg12[%c56_101, %c0_102], %214 {strides = array<i32>} : memref<64x128xf32, #tpu.memory_space<vmem>>, vector<8x128xf32>,
    %c0_103 = arith.constant 0 : index
    %c0_104 = arith.constant 0 : index
    %216 = vector.load %arg12[%c0_103, %c0_104] : memref<64x128xf32, #tpu.memory_space<vmem>>, vector<64x128xf32>
    %c0_105 = arith.constant 0 : index
    %c0_106 = arith.constant 0 : index
    %c0_107 = arith.constant 0 : index
    %217 = vector.load %arg6[%c0_105, %c0_106, %c0_107] : memref<1x128x512xf32, #tpu.memory_space<vmem>>, vector<1x128x512xf32>
    %218 = vector.shape_cast %217 : vector<1x128x512xf32> to vector<128x512xf32>
    %cst_108 = arith.constant dense<0.000000e+00> : vector<64x512xf32>
    %219 = tpu.matmul %216, %218, %cst_108 {dimension_numbers = #tpu.dot_dimension_numbers<[1], [0], [0], [1], [0, 0, 1, 1], [], []>} : vector<64x128xf32>, vector<128x512xf32>, vector<64x512xf32> -> vector<64x512xf32>
    %c1 = arith.constant 1 : index
    %c0_109 = arith.constant 0 : index
    %220 = vector.load %arg8[%c1, %c0_109] : memref<2x512xf32, #tpu.memory_space<vmem>>, vector<1x512xf32>
    %221 = vector.broadcast %220 : vector<1x512xf32> to vector<64x512xf32>
    %222 = arith.addf %219, %221 : vector<64x512xf32>
    %c0_110 = arith.constant 0 : index
    %c0_111 = arith.constant 0 : index
    %223 = vector.load %arg14[%c0_110, %c0_111] : memref<64x512xf32, #tpu.memory_space<vmem>>, vector<64x512xf32>
    tpu.vector_store %arg14[%c0_110, %c0_111], %222 {strides = array<i32>} : memref<64x512xf32, #tpu.memory_space<vmem>>, vector<64x512xf32>,
    %224 = vector.extract_strided_slice %7 {offsets = [0, 128], sizes = [8, 128], strides = [1, 1]} : vector<8x256xf32> to vector<8x128xf32>
    %cst_112 = arith.constant 0.000000e+00 : f32
    %225 = vector.broadcast %cst_112 : f32 to vector<8x128xf32>
    %c0_113 = arith.constant 0 : index
    %c0_114 = arith.constant 0 : index
    %226 = vector.load %arg14[%c0_113, %c0_114] : memref<64x512xf32, #tpu.memory_space<vmem>>, vector<8x512xf32>
    %c1_115 = arith.constant 1 : index
    %c0_116 = arith.constant 0 : index
    %c0_117 = arith.constant 0 : index
    %227 = vector.load %arg7[%c1_115, %c0_116, %c0_117] : memref<2x128x512xf32, #tpu.memory_space<vmem>>, vector<1x128x512xf32>
    %228 = vector.shape_cast %227 : vector<1x128x512xf32> to vector<128x512xf32>
    %cst_118 = arith.constant dense<0.000000e+00> : vector<8x512xf32>
    %229 = tpu.matmul %224, %228, %cst_118 {dimension_numbers = #tpu.dot_dimension_numbers<[1], [0], [0], [1], [0, 0, 1, 1], [], []>} : vector<8x128xf32>, vector<128x512xf32>, vector<8x512xf32> -> vector<8x512xf32>
    %230 = arith.addf %226, %229 : vector<8x512xf32>
    %231 = vector.extract_strided_slice %230 {offsets = [0, 0], sizes = [8, 384], strides = [1, 1]} : vector<8x512xf32> to vector<8x384xf32>
    %232 = arith.negf %231 : vector<8x384xf32>
    %233 = math.exp %232 : vector<8x384xf32>
    %cst_119 = arith.constant 1.000000e+00 : f32
    %234 = vector.broadcast %cst_119 : f32 to vector<8x384xf32>
    %235 = arith.addf %234, %233 : vector<8x384xf32>
    %236 = arith.divf %234, %235 : vector<8x384xf32>
    %237 = vector.extract_strided_slice %236 {offsets = [0, 0], sizes = [8, 128], strides = [1, 1]} : vector<8x384xf32> to vector<8x128xf32>
    %238 = vector.extract_strided_slice %236 {offsets = [0, 128], sizes = [8, 128], strides = [1, 1]} : vector<8x384xf32> to vector<8x128xf32>
    %239 = vector.extract_strided_slice %236 {offsets = [0, 256], sizes = [8, 128], strides = [1, 1]} : vector<8x384xf32> to vector<8x128xf32>
    %240 = vector.extract_strided_slice %230 {offsets = [0, 384], sizes = [8, 128], strides = [1, 1]} : vector<8x512xf32> to vector<8x128xf32>
    %241 = math.tanh %240 : vector<8x128xf32>
    %242 = arith.mulf %238, %225 : vector<8x128xf32>
    %243 = arith.mulf %237, %241 : vector<8x128xf32>
    %244 = arith.addf %242, %243 : vector<8x128xf32>
    %245 = math.tanh %244 : vector<8x128xf32>
    %246 = arith.mulf %239, %245 : vector<8x128xf32>
    %c0_120 = arith.constant 0 : index
    %c0_121 = arith.constant 0 : index
    %247 = vector.load %arg12[%c0_120, %c0_121] : memref<64x128xf32, #tpu.memory_space<vmem>>, vector<8x128xf32>
    tpu.vector_store %arg12[%c0_120, %c0_121], %246 {strides = array<i32>} : memref<64x128xf32, #tpu.memory_space<vmem>>, vector<8x128xf32>,
    %c8_122 = arith.constant 8 : index
    %c0_123 = arith.constant 0 : index
    %248 = vector.load %arg14[%c8_122, %c0_123] : memref<64x512xf32, #tpu.memory_space<vmem>>, vector<8x512xf32>
    %c1_124 = arith.constant 1 : index
    %c0_125 = arith.constant 0 : index
    %c0_126 = arith.constant 0 : index
    %249 = vector.load %arg7[%c1_124, %c0_125, %c0_126] : memref<2x128x512xf32, #tpu.memory_space<vmem>>, vector<1x128x512xf32>
    %250 = vector.shape_cast %249 : vector<1x128x512xf32> to vector<128x512xf32>
    %cst_127 = arith.constant dense<0.000000e+00> : vector<8x512xf32>
    %251 = tpu.matmul %246, %250, %cst_127 {dimension_numbers = #tpu.dot_dimension_numbers<[1], [0], [0], [1], [0, 0, 1, 1], [], []>} : vector<8x128xf32>, vector<128x512xf32>, vector<8x512xf32> -> vector<8x512xf32>
    %252 = arith.addf %248, %251 : vector<8x512xf32>
    %253 = vector.extract_strided_slice %252 {offsets = [0, 0], sizes = [8, 384], strides = [1, 1]} : vector<8x512xf32> to vector<8x384xf32>
    %254 = arith.negf %253 : vector<8x384xf32>
    %255 = math.exp %254 : vector<8x384xf32>
    %cst_128 = arith.constant 1.000000e+00 : f32
    %256 = vector.broadcast %cst_128 : f32 to vector<8x384xf32>
    %257 = arith.addf %256, %255 : vector<8x384xf32>
    %258 = arith.divf %256, %257 : vector<8x384xf32>
    %259 = vector.extract_strided_slice %258 {offsets = [0, 0], sizes = [8, 128], strides = [1, 1]} : vector<8x384xf32> to vector<8x128xf32>
    %260 = vector.extract_strided_slice %258 {offsets = [0, 128], sizes = [8, 128], strides = [1, 1]} : vector<8x384xf32> to vector<8x128xf32>
    %261 = vector.extract_strided_slice %258 {offsets = [0, 256], sizes = [8, 128], strides = [1, 1]} : vector<8x384xf32> to vector<8x128xf32>
    %262 = vector.extract_strided_slice %252 {offsets = [0, 384], sizes = [8, 128], strides = [1, 1]} : vector<8x512xf32> to vector<8x128xf32>
    %263 = math.tanh %262 : vector<8x128xf32>
    %264 = arith.mulf %260, %244 : vector<8x128xf32>
    %265 = arith.mulf %259, %263 : vector<8x128xf32>
    %266 = arith.addf %264, %265 : vector<8x128xf32>
    %267 = math.tanh %266 : vector<8x128xf32>
    %268 = arith.mulf %261, %267 : vector<8x128xf32>
    %c8_129 = arith.constant 8 : index
    %c0_130 = arith.constant 0 : index
    %269 = vector.load %arg12[%c8_129, %c0_130] : memref<64x128xf32, #tpu.memory_space<vmem>>, vector<8x128xf32>
    tpu.vector_store %arg12[%c8_129, %c0_130], %268 {strides = array<i32>} : memref<64x128xf32, #tpu.memory_space<vmem>>, vector<8x128xf32>,
    %c16_131 = arith.constant 16 : index
    %c0_132 = arith.constant 0 : index
    %270 = vector.load %arg14[%c16_131, %c0_132] : memref<64x512xf32, #tpu.memory_space<vmem>>, vector<8x512xf32>
    %c1_133 = arith.constant 1 : index
    %c0_134 = arith.constant 0 : index
    %c0_135 = arith.constant 0 : index
    %271 = vector.load %arg7[%c1_133, %c0_134, %c0_135] : memref<2x128x512xf32, #tpu.memory_space<vmem>>, vector<1x128x512xf32>
    %272 = vector.shape_cast %271 : vector<1x128x512xf32> to vector<128x512xf32>
    %cst_136 = arith.constant dense<0.000000e+00> : vector<8x512xf32>
    %273 = tpu.matmul %268, %272, %cst_136 {dimension_numbers = #tpu.dot_dimension_numbers<[1], [0], [0], [1], [0, 0, 1, 1], [], []>} : vector<8x128xf32>, vector<128x512xf32>, vector<8x512xf32> -> vector<8x512xf32>
    %274 = arith.addf %270, %273 : vector<8x512xf32>
    %275 = vector.extract_strided_slice %274 {offsets = [0, 0], sizes = [8, 384], strides = [1, 1]} : vector<8x512xf32> to vector<8x384xf32>
    %276 = arith.negf %275 : vector<8x384xf32>
    %277 = math.exp %276 : vector<8x384xf32>
    %cst_137 = arith.constant 1.000000e+00 : f32
    %278 = vector.broadcast %cst_137 : f32 to vector<8x384xf32>
    %279 = arith.addf %278, %277 : vector<8x384xf32>
    %280 = arith.divf %278, %279 : vector<8x384xf32>
    %281 = vector.extract_strided_slice %280 {offsets = [0, 0], sizes = [8, 128], strides = [1, 1]} : vector<8x384xf32> to vector<8x128xf32>
    %282 = vector.extract_strided_slice %280 {offsets = [0, 128], sizes = [8, 128], strides = [1, 1]} : vector<8x384xf32> to vector<8x128xf32>
    %283 = vector.extract_strided_slice %280 {offsets = [0, 256], sizes = [8, 128], strides = [1, 1]} : vector<8x384xf32> to vector<8x128xf32>
    %284 = vector.extract_strided_slice %274 {offsets = [0, 384], sizes = [8, 128], strides = [1, 1]} : vector<8x512xf32> to vector<8x128xf32>
    %285 = math.tanh %284 : vector<8x128xf32>
    %286 = arith.mulf %282, %266 : vector<8x128xf32>
    %287 = arith.mulf %281, %285 : vector<8x128xf32>
    %288 = arith.addf %286, %287 : vector<8x128xf32>
    %289 = math.tanh %288 : vector<8x128xf32>
    %290 = arith.mulf %283, %289 : vector<8x128xf32>
    %c16_138 = arith.constant 16 : index
    %c0_139 = arith.constant 0 : index
    %291 = vector.load %arg12[%c16_138, %c0_139] : memref<64x128xf32, #tpu.memory_space<vmem>>, vector<8x128xf32>
    tpu.vector_store %arg12[%c16_138, %c0_139], %290 {strides = array<i32>} : memref<64x128xf32, #tpu.memory_space<vmem>>, vector<8x128xf32>,
    %c24_140 = arith.constant 24 : index
    %c0_141 = arith.constant 0 : index
    %292 = vector.load %arg14[%c24_140, %c0_141] : memref<64x512xf32, #tpu.memory_space<vmem>>, vector<8x512xf32>
    %c1_142 = arith.constant 1 : index
    %c0_143 = arith.constant 0 : index
    %c0_144 = arith.constant 0 : index
    %293 = vector.load %arg7[%c1_142, %c0_143, %c0_144] : memref<2x128x512xf32, #tpu.memory_space<vmem>>, vector<1x128x512xf32>
    %294 = vector.shape_cast %293 : vector<1x128x512xf32> to vector<128x512xf32>
    %cst_145 = arith.constant dense<0.000000e+00> : vector<8x512xf32>
    %295 = tpu.matmul %290, %294, %cst_145 {dimension_numbers = #tpu.dot_dimension_numbers<[1], [0], [0], [1], [0, 0, 1, 1], [], []>} : vector<8x128xf32>, vector<128x512xf32>, vector<8x512xf32> -> vector<8x512xf32>
    %296 = arith.addf %292, %295 : vector<8x512xf32>
    %297 = vector.extract_strided_slice %296 {offsets = [0, 0], sizes = [8, 384], strides = [1, 1]} : vector<8x512xf32> to vector<8x384xf32>
    %298 = arith.negf %297 : vector<8x384xf32>
    %299 = math.exp %298 : vector<8x384xf32>
    %cst_146 = arith.constant 1.000000e+00 : f32
    %300 = vector.broadcast %cst_146 : f32 to vector<8x384xf32>
    %301 = arith.addf %300, %299 : vector<8x384xf32>
    %302 = arith.divf %300, %301 : vector<8x384xf32>
    %303 = vector.extract_strided_slice %302 {offsets = [0, 0], sizes = [8, 128], strides = [1, 1]} : vector<8x384xf32> to vector<8x128xf32>
    %304 = vector.extract_strided_slice %302 {offsets = [0, 128], sizes = [8, 128], strides = [1, 1]} : vector<8x384xf32> to vector<8x128xf32>
    %305 = vector.extract_strided_slice %302 {offsets = [0, 256], sizes = [8, 128], strides = [1, 1]} : vector<8x384xf32> to vector<8x128xf32>
    %306 = vector.extract_strided_slice %296 {offsets = [0, 384], sizes = [8, 128], strides = [1, 1]} : vector<8x512xf32> to vector<8x128xf32>
    %307 = math.tanh %306 : vector<8x128xf32>
    %308 = arith.mulf %304, %288 : vector<8x128xf32>
    %309 = arith.mulf %303, %307 : vector<8x128xf32>
    %310 = arith.addf %308, %309 : vector<8x128xf32>
    %311 = math.tanh %310 : vector<8x128xf32>
    %312 = arith.mulf %305, %311 : vector<8x128xf32>
    %c24_147 = arith.constant 24 : index
    %c0_148 = arith.constant 0 : index
    %313 = vector.load %arg12[%c24_147, %c0_148] : memref<64x128xf32, #tpu.memory_space<vmem>>, vector<8x128xf32>
    tpu.vector_store %arg12[%c24_147, %c0_148], %312 {strides = array<i32>} : memref<64x128xf32, #tpu.memory_space<vmem>>, vector<8x128xf32>,
    %c32_149 = arith.constant 32 : index
    %c0_150 = arith.constant 0 : index
    %314 = vector.load %arg14[%c32_149, %c0_150] : memref<64x512xf32, #tpu.memory_space<vmem>>, vector<8x512xf32>
    %c1_151 = arith.constant 1 : index
    %c0_152 = arith.constant 0 : index
    %c0_153 = arith.constant 0 : index
    %315 = vector.load %arg7[%c1_151, %c0_152, %c0_153] : memref<2x128x512xf32, #tpu.memory_space<vmem>>, vector<1x128x512xf32>
    %316 = vector.shape_cast %315 : vector<1x128x512xf32> to vector<128x512xf32>
    %cst_154 = arith.constant dense<0.000000e+00> : vector<8x512xf32>
    %317 = tpu.matmul %312, %316, %cst_154 {dimension_numbers = #tpu.dot_dimension_numbers<[1], [0], [0], [1], [0, 0, 1, 1], [], []>} : vector<8x128xf32>, vector<128x512xf32>, vector<8x512xf32> -> vector<8x512xf32>
    %318 = arith.addf %314, %317 : vector<8x512xf32>
    %319 = vector.extract_strided_slice %318 {offsets = [0, 0], sizes = [8, 384], strides = [1, 1]} : vector<8x512xf32> to vector<8x384xf32>
    %320 = arith.negf %319 : vector<8x384xf32>
    %321 = math.exp %320 : vector<8x384xf32>
    %cst_155 = arith.constant 1.000000e+00 : f32
    %322 = vector.broadcast %cst_155 : f32 to vector<8x384xf32>
    %323 = arith.addf %322, %321 : vector<8x384xf32>
    %324 = arith.divf %322, %323 : vector<8x384xf32>
    %325 = vector.extract_strided_slice %324 {offsets = [0, 0], sizes = [8, 128], strides = [1, 1]} : vector<8x384xf32> to vector<8x128xf32>
    %326 = vector.extract_strided_slice %324 {offsets = [0, 128], sizes = [8, 128], strides = [1, 1]} : vector<8x384xf32> to vector<8x128xf32>
    %327 = vector.extract_strided_slice %324 {offsets = [0, 256], sizes = [8, 128], strides = [1, 1]} : vector<8x384xf32> to vector<8x128xf32>
    %328 = vector.extract_strided_slice %318 {offsets = [0, 384], sizes = [8, 128], strides = [1, 1]} : vector<8x512xf32> to vector<8x128xf32>
    %329 = math.tanh %328 : vector<8x128xf32>
    %330 = arith.mulf %326, %310 : vector<8x128xf32>
    %331 = arith.mulf %325, %329 : vector<8x128xf32>
    %332 = arith.addf %330, %331 : vector<8x128xf32>
    %333 = math.tanh %332 : vector<8x128xf32>
    %334 = arith.mulf %327, %333 : vector<8x128xf32>
    %c32_156 = arith.constant 32 : index
    %c0_157 = arith.constant 0 : index
    %335 = vector.load %arg12[%c32_156, %c0_157] : memref<64x128xf32, #tpu.memory_space<vmem>>, vector<8x128xf32>
    tpu.vector_store %arg12[%c32_156, %c0_157], %334 {strides = array<i32>} : memref<64x128xf32, #tpu.memory_space<vmem>>, vector<8x128xf32>,
    %c40_158 = arith.constant 40 : index
    %c0_159 = arith.constant 0 : index
    %336 = vector.load %arg14[%c40_158, %c0_159] : memref<64x512xf32, #tpu.memory_space<vmem>>, vector<8x512xf32>
    %c1_160 = arith.constant 1 : index
    %c0_161 = arith.constant 0 : index
    %c0_162 = arith.constant 0 : index
    %337 = vector.load %arg7[%c1_160, %c0_161, %c0_162] : memref<2x128x512xf32, #tpu.memory_space<vmem>>, vector<1x128x512xf32>
    %338 = vector.shape_cast %337 : vector<1x128x512xf32> to vector<128x512xf32>
    %cst_163 = arith.constant dense<0.000000e+00> : vector<8x512xf32>
    %339 = tpu.matmul %334, %338, %cst_163 {dimension_numbers = #tpu.dot_dimension_numbers<[1], [0], [0], [1], [0, 0, 1, 1], [], []>} : vector<8x128xf32>, vector<128x512xf32>, vector<8x512xf32> -> vector<8x512xf32>
    %340 = arith.addf %336, %339 : vector<8x512xf32>
    %341 = vector.extract_strided_slice %340 {offsets = [0, 0], sizes = [8, 384], strides = [1, 1]} : vector<8x512xf32> to vector<8x384xf32>
    %342 = arith.negf %341 : vector<8x384xf32>
    %343 = math.exp %342 : vector<8x384xf32>
    %cst_164 = arith.constant 1.000000e+00 : f32
    %344 = vector.broadcast %cst_164 : f32 to vector<8x384xf32>
    %345 = arith.addf %344, %343 : vector<8x384xf32>
    %346 = arith.divf %344, %345 : vector<8x384xf32>
    %347 = vector.extract_strided_slice %346 {offsets = [0, 0], sizes = [8, 128], strides = [1, 1]} : vector<8x384xf32> to vector<8x128xf32>
    %348 = vector.extract_strided_slice %346 {offsets = [0, 128], sizes = [8, 128], strides = [1, 1]} : vector<8x384xf32> to vector<8x128xf32>
    %349 = vector.extract_strided_slice %346 {offsets = [0, 256], sizes = [8, 128], strides = [1, 1]} : vector<8x384xf32> to vector<8x128xf32>
    %350 = vector.extract_strided_slice %340 {offsets = [0, 384], sizes = [8, 128], strides = [1, 1]} : vector<8x512xf32> to vector<8x128xf32>
    %351 = math.tanh %350 : vector<8x128xf32>
    %352 = arith.mulf %348, %332 : vector<8x128xf32>
    %353 = arith.mulf %347, %351 : vector<8x128xf32>
    %354 = arith.addf %352, %353 : vector<8x128xf32>
    %355 = math.tanh %354 : vector<8x128xf32>
    %356 = arith.mulf %349, %355 : vector<8x128xf32>
    %c40_165 = arith.constant 40 : index
    %c0_166 = arith.constant 0 : index
    %357 = vector.load %arg12[%c40_165, %c0_166] : memref<64x128xf32, #tpu.memory_space<vmem>>, vector<8x128xf32>
    tpu.vector_store %arg12[%c40_165, %c0_166], %356 {strides = array<i32>} : memref<64x128xf32, #tpu.memory_space<vmem>>, vector<8x128xf32>,
    %c48_167 = arith.constant 48 : index
    %c0_168 = arith.constant 0 : index
    %358 = vector.load %arg14[%c48_167, %c0_168] : memref<64x512xf32, #tpu.memory_space<vmem>>, vector<8x512xf32>
    %c1_169 = arith.constant 1 : index
    %c0_170 = arith.constant 0 : index
    %c0_171 = arith.constant 0 : index
    %359 = vector.load %arg7[%c1_169, %c0_170, %c0_171] : memref<2x128x512xf32, #tpu.memory_space<vmem>>, vector<1x128x512xf32>
    %360 = vector.shape_cast %359 : vector<1x128x512xf32> to vector<128x512xf32>
    %cst_172 = arith.constant dense<0.000000e+00> : vector<8x512xf32>
    %361 = tpu.matmul %356, %360, %cst_172 {dimension_numbers = #tpu.dot_dimension_numbers<[1], [0], [0], [1], [0, 0, 1, 1], [], []>} : vector<8x128xf32>, vector<128x512xf32>, vector<8x512xf32> -> vector<8x512xf32>
    %362 = arith.addf %358, %361 : vector<8x512xf32>
    %363 = vector.extract_strided_slice %362 {offsets = [0, 0], sizes = [8, 384], strides = [1, 1]} : vector<8x512xf32> to vector<8x384xf32>
    %364 = arith.negf %363 : vector<8x384xf32>
    %365 = math.exp %364 : vector<8x384xf32>
    %cst_173 = arith.constant 1.000000e+00 : f32
    %366 = vector.broadcast %cst_173 : f32 to vector<8x384xf32>
    %367 = arith.addf %366, %365 : vector<8x384xf32>
    %368 = arith.divf %366, %367 : vector<8x384xf32>
    %369 = vector.extract_strided_slice %368 {offsets = [0, 0], sizes = [8, 128], strides = [1, 1]} : vector<8x384xf32> to vector<8x128xf32>
    %370 = vector.extract_strided_slice %368 {offsets = [0, 128], sizes = [8, 128], strides = [1, 1]} : vector<8x384xf32> to vector<8x128xf32>
    %371 = vector.extract_strided_slice %368 {offsets = [0, 256], sizes = [8, 128], strides = [1, 1]} : vector<8x384xf32> to vector<8x128xf32>
    %372 = vector.extract_strided_slice %362 {offsets = [0, 384], sizes = [8, 128], strides = [1, 1]} : vector<8x512xf32> to vector<8x128xf32>
    %373 = math.tanh %372 : vector<8x128xf32>
    %374 = arith.mulf %370, %354 : vector<8x128xf32>
    %375 = arith.mulf %369, %373 : vector<8x128xf32>
    %376 = arith.addf %374, %375 : vector<8x128xf32>
    %377 = math.tanh %376 : vector<8x128xf32>
    %378 = arith.mulf %371, %377 : vector<8x128xf32>
    %c48_174 = arith.constant 48 : index
    %c0_175 = arith.constant 0 : index
    %379 = vector.load %arg12[%c48_174, %c0_175] : memref<64x128xf32, #tpu.memory_space<vmem>>, vector<8x128xf32>
    tpu.vector_store %arg12[%c48_174, %c0_175], %378 {strides = array<i32>} : memref<64x128xf32, #tpu.memory_space<vmem>>, vector<8x128xf32>,
    %c56_176 = arith.constant 56 : index
    %c0_177 = arith.constant 0 : index
    %380 = vector.load %arg14[%c56_176, %c0_177] : memref<64x512xf32, #tpu.memory_space<vmem>>, vector<8x512xf32>
    %c1_178 = arith.constant 1 : index
    %c0_179 = arith.constant 0 : index
    %c0_180 = arith.constant 0 : index
    %381 = vector.load %arg7[%c1_178, %c0_179, %c0_180] : memref<2x128x512xf32, #tpu.memory_space<vmem>>, vector<1x128x512xf32>
    %382 = vector.shape_cast %381 : vector<1x128x512xf32> to vector<128x512xf32>
    %cst_181 = arith.constant dense<0.000000e+00> : vector<8x512xf32>
    %383 = tpu.matmul %378, %382, %cst_181 {dimension_numbers = #tpu.dot_dimension_numbers<[1], [0], [0], [1], [0, 0, 1, 1], [], []>} : vector<8x128xf32>, vector<128x512xf32>, vector<8x512xf32> -> vector<8x512xf32>
    %384 = arith.addf %380, %383 : vector<8x512xf32>
    %385 = vector.extract_strided_slice %384 {offsets = [0, 0], sizes = [8, 384], strides = [1, 1]} : vector<8x512xf32> to vector<8x384xf32>
    %386 = arith.negf %385 : vector<8x384xf32>
    %387 = math.exp %386 : vector<8x384xf32>
    %cst_182 = arith.constant 1.000000e+00 : f32
    %388 = vector.broadcast %cst_182 : f32 to vector<8x384xf32>
    %389 = arith.addf %388, %387 : vector<8x384xf32>
    %390 = arith.divf %388, %389 : vector<8x384xf32>
    %391 = vector.extract_strided_slice %390 {offsets = [0, 0], sizes = [8, 128], strides = [1, 1]} : vector<8x384xf32> to vector<8x128xf32>
    %392 = vector.extract_strided_slice %390 {offsets = [0, 128], sizes = [8, 128], strides = [1, 1]} : vector<8x384xf32> to vector<8x128xf32>
    %393 = vector.extract_strided_slice %390 {offsets = [0, 256], sizes = [8, 128], strides = [1, 1]} : vector<8x384xf32> to vector<8x128xf32>
    %394 = vector.extract_strided_slice %384 {offsets = [0, 384], sizes = [8, 128], strides = [1, 1]} : vector<8x512xf32> to vector<8x128xf32>
    %395 = math.tanh %394 : vector<8x128xf32>
    %396 = arith.mulf %392, %376 : vector<8x128xf32>
    %397 = arith.mulf %391, %395 : vector<8x128xf32>
    %398 = arith.addf %396, %397 : vector<8x128xf32>
    %399 = math.tanh %398 : vector<8x128xf32>
    %400 = arith.mulf %393, %399 : vector<8x128xf32>
    %c56_183 = arith.constant 56 : index
    %c0_184 = arith.constant 0 : index
    %401 = vector.load %arg12[%c56_183, %c0_184] : memref<64x128xf32, #tpu.memory_space<vmem>>, vector<8x128xf32>
    tpu.vector_store %arg12[%c56_183, %c0_184], %400 {strides = array<i32>} : memref<64x128xf32, #tpu.memory_space<vmem>>, vector<8x128xf32>,
    %c0_185 = arith.constant 0 : index
    %c0_186 = arith.constant 0 : index
    %402 = vector.load %arg12[%c0_185, %c0_186] : memref<64x128xf32, #tpu.memory_space<vmem>>, vector<64x128xf32>
    %c0_187 = arith.constant 0 : index
    %c0_188 = arith.constant 0 : index
    %403 = vector.load %arg9[%c0_187, %c0_188] : memref<128x128xf32, #tpu.memory_space<vmem>>, vector<128x128xf32>
    %cst_189 = arith.constant dense<0.000000e+00> : vector<64x128xf32>
    %404 = tpu.matmul %402, %403, %cst_189 {dimension_numbers = #tpu.dot_dimension_numbers<[1], [0], [0], [1], [0, 0, 1, 1], [], []>} : vector<64x128xf32>, vector<128x128xf32>, vector<64x128xf32> -> vector<64x128xf32>
    %c0_190 = arith.constant 0 : index
    %c0_191 = arith.constant 0 : index
    %405 = vector.load %arg10[%c0_190, %c0_191] : memref<1x128xf32, #tpu.memory_space<vmem>>, vector<1x128xf32>
    %406 = vector.broadcast %405 : vector<1x128xf32> to vector<64x128xf32>
    %407 = arith.addf %404, %406 : vector<64x128xf32>
    %c0_192 = arith.constant 0 : index
    %c0_193 = arith.constant 0 : index
    %c0_194 = arith.constant 0 : index
    %408 = vector.load %arg11[%c0_192, %c0_193, %c0_194] : memref<1x64x128xf32, #tpu.memory_space<vmem>>, vector<1x64x128xf32>
    %409 = vector.shape_cast %408 : vector<1x64x128xf32> to vector<64x128xf32>
    %410 = vector.shape_cast %407 : vector<64x128xf32> to vector<1x64x128xf32>
    tpu.vector_store %arg11[%c0_192, %c0_193, %c0_194], %410 {strides = array<i32>} : memref<1x64x128xf32, #tpu.memory_space<vmem>>, vector<1x64x128xf32>,
    return
  }
  func.func @transform_0(%arg0: i32) -> (i32, i32, i32) {
    %c0_i32 = arith.constant 0 : i32
    %c0_i32_0 = arith.constant 0 : i32
    %c0_i32_1 = arith.constant 0 : i32
    return %arg0, %c0_i32, %c0_i32_0 : i32, i32, i32
  }
  func.func @transform_1(%arg0: i32) -> (i32, i32, i32) {
    %c0_i32 = arith.constant 0 : i32
    %c0_i32_0 = arith.constant 0 : i32
    %c0_i32_1 = arith.constant 0 : i32
    return %arg0, %c0_i32, %c0_i32_0 : i32, i32, i32
  }
  func.func @transform_2(%arg0: i32) -> (i32, i32) {
    %c0_i32 = arith.constant 0 : i32
    %c0_i32_0 = arith.constant 0 : i32
    %c0_i32_1 = arith.constant 0 : i32
    return %c0_i32, %c0_i32_0 : i32, i32
  }
  func.func @transform_3(%arg0: i32) -> (i32, i32) {
    %c0_i32 = arith.constant 0 : i32
    %c0_i32_0 = arith.constant 0 : i32
    %c0_i32_1 = arith.constant 0 : i32
    return %c0_i32, %c0_i32_0 : i32, i32
  }
  func.func @transform_4(%arg0: i32) -> (i32, i32) {
    %c0_i32 = arith.constant 0 : i32
    %c0_i32_0 = arith.constant 0 : i32
    %c0_i32_1 = arith.constant 0 : i32
    return %c0_i32, %c0_i32_0 : i32, i32
  }
  func.func @transform_5(%arg0: i32) -> (i32, i32, i32) {
    %c0_i32 = arith.constant 0 : i32
    %c0_i32_0 = arith.constant 0 : i32
    %c0_i32_1 = arith.constant 0 : i32
    %c0_i32_2 = arith.constant 0 : i32
    return %c0_i32, %c0_i32_0, %c0_i32_1 : i32, i32, i32
  }
  func.func @transform_6(%arg0: i32) -> (i32, i32, i32) {
    %c0_i32 = arith.constant 0 : i32
    %c0_i32_0 = arith.constant 0 : i32
    %c0_i32_1 = arith.constant 0 : i32
    %c0_i32_2 = arith.constant 0 : i32
    return %c0_i32, %c0_i32_0, %c0_i32_1 : i32, i32, i32
  }
  func.func @transform_7(%arg0: i32) -> (i32, i32) {
    %c0_i32 = arith.constant 0 : i32
    %c0_i32_0 = arith.constant 0 : i32
    %c0_i32_1 = arith.constant 0 : i32
    return %c0_i32, %c0_i32_0 : i32, i32
  }
  func.func @transform_8(%arg0: i32) -> (i32, i32) {
    %c0_i32 = arith.constant 0 : i32
    %c0_i32_0 = arith.constant 0 : i32
    %c0_i32_1 = arith.constant 0 : i32
    return %c0_i32, %c0_i32_0 : i32, i32
  }
  func.func @transform_9(%arg0: i32) -> (i32, i32) {
    %c0_i32 = arith.constant 0 : i32
    %c0_i32_0 = arith.constant 0 : i32
    %c0_i32_1 = arith.constant 0 : i32
    return %c0_i32, %c0_i32_0 : i32, i32
  }
  func.func @transform_10(%arg0: i32) -> (i32, i32, i32) {
    %c0_i32 = arith.constant 0 : i32
    %c0_i32_0 = arith.constant 0 : i32
    %c0_i32_1 = arith.constant 0 : i32
    return %arg0, %c0_i32, %c0_i32_0 : i32, i32, i32
  }
}

</mosaic_0001>

<bundles_post_ra>
// kernel: tpu_custom_call.1
= control target key start
LH: loop header
LB: loop body
LE: loop exit
PB: predicated region body
PF: predicated region fallthrough
CT: control target
= control target key end

     0   :  { %s8283_s0 = inlined_call_operand.hbm [shape: f32[2,64,512], index: 0, kind: input, shape index: {}]   ;;  %s8284_s1 = inlined_call_operand.hbm [shape: f32[2,8,128], index: 1, kind: input, shape index: {}]   ;;  %s8285_s2 = inlined_call_operand.hbm [shape: f32[128,256], index: 2, kind: input, shape index: {}]   ;;  %s8286_s3 = inlined_call_operand.vmem [shape: f32[1,256], index: 3, kind: input, shape index: {}]   ;;  %s8287_s4 = inlined_call_operand.hbm [shape: f32[128,512], index: 4, kind: input, shape index: {}]   ;;  %s8288_s5 = inlined_call_operand.hbm [shape: f32[1,128,512], index: 5, kind: input, shape index: {}]   ;;  %s8289_s6 = inlined_call_operand.hbm [shape: f32[2,128,512], index: 6, kind: input, shape index: {}]   ;;  %s8290_s7 = inlined_call_operand.hbm [shape: f32[2,512], index: 7, kind: input, shape index: {}]   ;;  %s8291_s8 = inlined_call_operand.hbm [shape: f32[128,128], index: 8, kind: input, shape index: {}]   ;;  %s8292_s9 = inlined_call_operand.vmem [shape: f32[1,128], index: 9, kind: input, shape index: {}]   ;;  %s8293_s10 = inlined_call_operand.hbm [shape: f32[2,64,128], index: 10, kind: output, shape index: {}]  }
   0x1   :  { %8433 = sst [smem:[#allocation71_spill]] %s8285_s2 }
   0x2   :  { %8434 = sst [smem:[#allocation72_spill]] %s8287_s4 }
   0x3   :  { %8435 = sst [smem:[#allocation73_spill]] %s8288_s5 }
   0x4   :  { %8436 = sst [smem:[#allocation74_spill]] %s8289_s6 }
   0x5   :  { %8437 = sst [smem:[#allocation75_spill]] %s8290_s7 }
   0x6   :  { %8438 = sst [smem:[#allocation76_spill]] %s8291_s8 }
   0x7   :  { %15 = vsyncpa [#allocation6], 0 }
   0x8   :  { %17 = vsyncpa [#allocation6 + $0x1], 0 }
   0x9   :  { %18 = vsyncpa [#allocation9], 0 }
   0xa   :  { %20 = vsyncpa [#allocation9 + $0x1], 0 }
   0xb   :  { %21 = vsyncpa [#allocation12], 0 }
   0xc   :  { %22 = vsyncpa [#allocation15], 0 }
   0xd   :  { %23 = vsyncpa [#allocation18], 0 }
   0xe   :  { %24 = vsyncpa [#allocation7], 0 }
   0xf   :  { %26 = vsyncpa [#allocation7 + $0x1], 0  ;;  %s5659_s13 = smov 0   ;;  %s5661_s14 = smov 0  }
  0x10   :  { %s5663_s15 = smov 0   ;;  %s5665_s16 = smov 0  }
  0x11 LB: > { %8439 = sst [smem:[#allocation27_spill]] %s5584_s15  ;;  %s5683_s20 = sadd.s32 4294967295, %s5588_s16   ;;  %s5588_s16 = sphi %s5665_s16, %s8682_s16   ;;  %s5584_s15 = sphi %s5663_s15, %s8684_s15   ;;  %s5580_s14 = sphi %s5661_s14, %s8686_s14   ;;  %s5576_s13 = sphi %s5659_s13, %s8685_s13  }
  0x12   : > { %s8440_s2 = sld [smem:[#allocation71_spill]]  ;;  %p4802_p0 = scmp.ge.s32.totalorder %s5588_s16, 1 }
  0x13   : > { %p53_p1 = scmp.eq.s32.totalorder %s5683_s20, 0  ;;  %p283_p2 = scmp.lt.s32.totalorder %s5588_s16, 3 }
  0x14   : > { %s5590_s22 = smov [#allocation10]   ;;  %s8442_s4 = sld [smem:[#allocation72_spill]] }
  0x15   : > { %p5688_p3 = pnand %p4802_p0, %p283_p2  ;;  %s296_s23 = sshll.u32 %s5590_s22, 4  ;;  %s297_s23 = int_to_ptr.vmem [resolvable:$true] %s296_s23 }
  0x16   : > { %s5591_s28 = smov [#allocation11]   ;;  %s5592_s30 = smov 256  }
  0x17   : > { %p4910_p4 = pneg %p5688_p3  ;;  %s313_s29 = sshll.u32 %s5591_s28, 4  ;;  %s314_s29 = int_to_ptr.vmem [resolvable:$true] %s313_s29 }
  0x18   : > { %s294_s19 = sshll.u32 %s8440_s2, 4  ;;  %s5593_s11 = smov 16   ;;  %s295_s19 = int_to_ptr.hbm [resolvable:$true] %s294_s19 }
  0x19   : > { %p5700_p6 = pnand %p4910_p4, %p53_p1  ;;  %s8294_s12 = smov 512  }
  0x1a   : > { %s311_s26 = sshll.u32 %s8442_s4, 4  ;;  %s8295_s17 = smov 32   ;;  %s312_s26 = int_to_ptr.hbm [resolvable:$true] %s311_s26 }
  0x1b   : > { %4913 = dma.hbm_to_vmem [thread:$0]  (!%p5700_p6), %s295_s19, 4096, %s297_s23, [#allocation9], %s5592_s30, %s5592_s30, %s5593_s11  }
  0x1c   : > { %4916 = dma.hbm_to_vmem [thread:$0]  (!%p5700_p6), %s312_s26, 8192, %s314_s29, [#allocation12], %s8294_s12, %s8294_s12, %s8295_s17  }
  0x1d   : > { %s8444_s6 = sld [smem:[#allocation74_spill]]  ;;  %s5596_s25 = smov [#allocation14]  }
  0x1e   : > { %s341_s28 = sshll.u32 %s5596_s25, 4  ;;  %s8445_s5 = sld [smem:[#allocation73_spill]]  ;;  %s342_s28 = int_to_ptr.vmem [resolvable:$true] %s341_s28 }
  0x1f   : > { %s5597_s26 = smov [#allocation13]   ;;  %s8446_s7 = sld [smem:[#allocation75_spill]] }
  0x20   : > { %s327_s29 = sshll.u32 %s5597_s26, 4  ;;  %s8447_s8 = sld [smem:[#allocation76_spill]]  ;;  %s328_s29 = int_to_ptr.vmem [resolvable:$true] %s327_s29 }
  0x21   : > { %s5598_s25 = smov [#allocation16]   ;;  %s5599_s19 = smov [#allocation17]  }
  0x22   : > { %s5600_s26 = smov 128   ;;  %s4801_s30 = sadd.s32 4294967294, %s5588_s16  }
  0x23   : > { %s339_s24 = sshll.u32 %s8444_s6, 4  ;;  %s5739_s11 = sadd.s32 1, %s5588_s16   ;;  %s340_s24 = int_to_ptr.hbm [resolvable:$true] %s339_s24 }
  0x24   : > { %s325_s23 = sshll.u32 %s8445_s5, 4  ;;  %8448 = sst [smem:[#allocation28_spill]] %s5739_s11  ;;  %s326_s23 = int_to_ptr.hbm [resolvable:$true] %s325_s23 }
  0x25   : > { %4922 = dma.hbm_to_vmem [thread:$0]  (!%p5700_p6), %s340_s24, 16384, %s342_s28, [#allocation15], %s8294_s12, %s8294_s12, %s8295_s17  }
  0x26   : > { %s354_s18 = sshll.u32 %s8446_s7, 4  ;;  %s365_s24 = sshll.u32 %s8447_s8, 4  ;;  %s355_s18 = int_to_ptr.hbm [resolvable:$true] %s354_s18  ;;  %s366_s24 = int_to_ptr.hbm [resolvable:$true] %s365_s24 }
  0x27   : > { %4919 = dma.hbm_to_vmem [thread:$0]  (!%p5700_p6), %s326_s23, 8192, %s328_s29, [#allocation12], %s8294_s12, %s8294_s12, %s8295_s17  }
  0x28   : > { %s356_s28 = sshll.u32 %s5598_s25, 4  ;;  %s367_s23 = sshll.u32 %s5599_s19, 4  ;;  %s357_s28 = int_to_ptr.vmem [resolvable:$true] %s356_s28  ;;  %s368_s23 = int_to_ptr.vmem [resolvable:$true] %s367_s23 }
  0x29   : > { %4925 = dma.hbm_to_vmem [thread:$0]  (!%p5700_p6), %s355_s18, 128, %s357_s28, [#allocation15]  }
  0x2a   : > { %s5601_s29 = smov 8   ;;  %s36_s2 = ssub.s32 %s5588_s16, %s5739_s11 }
  0x2b   : > { %4928 = dma.hbm_to_vmem [thread:$0]  (!%p5700_p6), %s366_s24, 2048, %s368_s23, [#allocation18], %s5600_s26, %s5600_s26, %s5601_s29  }
  0x2c   : > { %s39_s22 = sadd.s32 1, %s5584_s15  ;;  %p37_p7 = scmp.eq.s32.totalorder %s36_s2, 0 }
  0x2d   : > { %p46_p8 = scmp.ne.s32.totalorder %s5584_s15, %s5580_s14  ;;  %p47_p9 = scmp.eq.s32.totalorder %s5588_s16, 0 }
  0x2e   : > { %p52_p10 = scmp.ne.s32.totalorder %s5580_s14, %s5576_s13  ;;  %p270_p13 = scmp.eq.s32.totalorder %s5683_s20, 1 }
  0x2f   : > { %s5750_s18 = scalar_select %p37_p7, %s5584_s15, %s39_s22  }
  0x30   : > { %p5752_p11 = por %p47_p9, %p46_p8  ;;  %p5758_p12 = por %p53_p1, %p52_p10 }
  0x31   : > { %8449 = sst [smem:[#allocation29_spill]] %s5750_s18  ;;  %p276_p0 = scmp.eq.s32.totalorder %s4801_s30, 1 }
  0x32   : > { %p4946_p2 = scmp.lt.s32.totalorder %s5588_s16, 2  ;;  %s5765_s24 = sand.u32 1, %s5584_s15  }
  0x33   : > { %p5767_p4 = por %p270_p13, %p46_p8  ;;  %p5771_p6 = por %p276_p0, %p52_p10 }
  0x34   : > { %s4810_s23 = sshll.u32 %s5765_s24, 8  ;;  %s4878_s26 = sshll.u32 %s5588_s16, 8 }
  0x35   : > { %s393_s30 = scalar_lea.hbm %s8283_s0, %s4878_s26  ;;  %s388_s22 = scalar_lea.vmem [#allocation5], %s4810_s23 }
  0x36   : > { %s396_s12 = sshll.u32 %s388_s22, 4  ;;  %s394_s17 = sshll.u32 %s393_s30, 4  ;;  %s397_s12 = int_to_ptr.vmem [resolvable:$true] %s396_s12  ;;  %s395_s17 = int_to_ptr.hbm [resolvable:$true] %s394_s17 }
  0x37   : > { %p5782_p7 = pnand %p4946_p2, %p5752_p11  ;;  %s406_s5 = sand.u32 1, %s5588_s16  }
  0x38   : > { %s4813_s6 = sshll.u32 %s5765_s24, 3  ;;  %s385_s7 = scalar_lea.sflag [#allocation6], %s5765_s24 }
  0x39   : > { %s5442_s8 = sshra.s32 %s395_s17, 4  ;;  %p5446_p9 = pneg %p5782_p7  ;;  %s5443_s8 = int_to_ptr.hbm [resolvable:$true] %s5442_s8 }
  0x3a   : > { %s5444_s18 = scalar_lea.hbm %s5443_s8, 256  ;;  %s5449_s26 = scalar_lea.hbm %s8283_s0, 512 }
  0x3b   : > { %p5445_p8 = scmp.ne.s32.totalorder %s5443_s8, %s5444_s18  ;;  %p5450_p11 = scmp.lt.s32.totalorder %s5443_s8, %s8283_s0 }
  0x3c   : > { %p5451_p0 = scmp.lt.s32.totalorder %s5449_s26, %s5444_s18 }
  0x3d   : > { %p5447_p10 = pnand %p5446_p9, %p5445_p8 }
  0x3e   : > { %p5452_p2 = por %p5451_p0, %p5450_p11 }
  0x3f   : > { %p5448_p13 = pneg %p5447_p10 }
  0x41   : > { %p5453_p5 = pnand %p5452_p2, %p5448_p13 }
  0x43   : > { %5456 = shalt.err (!%p5453_p5)
}
  0x44   : > { %s8455_s24 = smov 32   ;;  %s8456_s30 = smov 512  }
  0x45   : > { %4932 = dma.hbm_to_vmem [thread:$0]  (!%p5782_p7), %s395_s17, 4096, %s397_s12, %s385_s7, %s8456_s30, %s8456_s30, %s8455_s24  }
  0x46   : > { %s4814_s22 = sshll.u32 %s5588_s16, 3  ;;  %s410_s11 = scalar_lea.vmem [#allocation8], %s4813_s6 }
  0x47   : > { %s414_s23 = scalar_lea.hbm %s8284_s1, %s4814_s22  ;;  %s418_s29 = sshll.u32 %s410_s11, 4  ;;  %s419_s29 = int_to_ptr.vmem [resolvable:$true] %s418_s29 }
  0x48   : > { %s416_s8 = sshll.u32 %s414_s23, 4  ;;  %s407_s18 = scalar_lea.sflag [#allocation9], %s406_s5  ;;  %s417_s8 = int_to_ptr.hbm [resolvable:$true] %s416_s8 }
  0x49   : > { %s5472_s26 = sshra.s32 %s417_s8, 4  ;;  %s5479_s17 = scalar_lea.hbm %s8284_s1, 16  ;;  %s5473_s26 = int_to_ptr.hbm [resolvable:$true] %s5472_s26 }
  0x4a   : > { %s5474_s2 = scalar_lea.hbm %s5473_s26, 8  ;;  %p5480_p13 = scmp.lt.s32.totalorder %s5473_s26, %s8284_s1 }
  0x4b   : > { %p5475_p5 = scmp.ne.s32.totalorder %s5473_s26, %s5474_s2  ;;  %p5481_p11 = scmp.lt.s32.totalorder %s5479_s17, %s5474_s2 }
  0x4d   : > { %p5477_p8 = pnand %p5475_p5, %p5446_p9  ;;  %p5482_p0 = por %p5481_p11, %p5480_p13 }
  0x4f   : > { %p5478_p10 = pneg %p5477_p8 }
  0x51   : > { %p5483_p2 = pnand %p5482_p0, %p5478_p10 }
  0x53   : > { %5486 = shalt.err (!%p5483_p2)
}
  0x54   : > { %4935 = dma.hbm_to_vmem [thread:$0]  (!%p5782_p7), %s417_s8, 128, %s419_s29, %s407_s18  }
  0x55   : > { %427 = sbr.rel (%p5688_p3) target bundleno = 3234 (0xca2), region = 60 }
  0x5a   : > { %s5823_s5 = sand.u32 1, %s5580_s14  }
  0x5b   : > { %s4816_s6 = sshll.u32 %s5823_s5, 8  ;;  %s430_s11 = scalar_lea.sflag [#allocation6], %s5823_s5 }
  0x5c   : > { %s5827_s30 = scalar_lea.vmem [#allocation5], %s4816_s6 }
  0x5d   : > { %5547 = dma.done.wait (%p5758_p12), %s430_s11, 4096  }
  0x5e   : > { %5549 = vsyncadd (%p5758_p12), %s430_s11, 4294963200  ;;  %s439_s4 = sand.u32 1, %s5683_s20   ;;  %s4817_s21 = sshll.u32 %s5823_s5, 3 }
  0x5f   : > { %s440_s22 = scalar_lea.sflag [#allocation9], %s439_s4  ;;  %s5835_s25 = scalar_lea.vmem [#allocation8], %s4817_s21 }
  0x60   : > { %5551 = dma.done.wait (%p5758_p12), %s440_s22, 128  }
  0x61   : > { %5553 = vsyncadd (%p5758_p12), %s440_s22, 4294967168 }
  0x62   : > { %5555 = dma.done.wait (%p53_p1), [#allocation9], 4096  }
  0x63   : > { %5557 = vsyncadd (%p53_p1), [#allocation9], 4294963200 }
  0x64   : > { %5559 = dma.done.wait (%p53_p1), [#allocation12], 16384  }
  0x65   : > { %5561 = vsyncadd (%p53_p1), [#allocation12], 4294950912 }
  0x66   : > { %5563 = dma.done.wait (%p53_p1), [#allocation15], 16512  }
  0x67   : > { %5565 = vsyncadd (%p53_p1), [#allocation15], 4294950784 }
  0x68   : > { %5567 = dma.done.wait (%p53_p1), [#allocation18], 2048  }
  0x69   : > { %5569 = vsyncadd (%p53_p1), [#allocation18], 4294965248  ;;  %v547_v0 = vld [vmem:[#allocation10 + $0xf0] sm:$0xff]  ;;  %v545_v1 = vld [vmem:[#allocation10 + $0xe0] sm:$0xff]  ;;  %s4824_s18 = sshll.u32 %s5823_s5, 6  ;;  %s4879_s12 = sshll.u32 %s5683_s20, 6 }
  0x6a   : > { %555 = vmatpush.msra.mxu0 %v547_v0  ;;  %v543_v2 = vld [vmem:[#allocation10 + $0xd0] sm:$0xff]  ;;  %v541_v3 = vld [vmem:[#allocation10 + $0xc0] sm:$0xff]  ;;  %v548_v5 = vld [vmem:[#allocation10 + $0xf8] sm:$0xff]  ;;  %s8224_s7 = scalar_lea.vmem [#allocation19], %s4824_s18  ;;  %s4644_s24 = scalar_lea.hbm %s8293_s10, %s4879_s12 }
  0x6b   : > { %v539_v4 = vld [vmem:[#allocation10 + $0xb0] sm:$0xff]  ;;  %575 = vmatpush.msra.mxu1 %v548_v5  ;;  %v657_v6 = vld [vmem:[#allocation11 + $0x1e0] sm:$0xff]  ;;  %v546_v7 = vld [vmem:[#allocation10 + $0xe8] sm:$0xff]  ;;  %s4645_s6 = sshll.u32 %s8224_s7, 4  ;;  %s4647_s11 = sshll.u32 %s4644_s24, 4  ;;  %s4646_s6 = int_to_ptr.vmem [resolvable:$true] %s4645_s6  ;;  %s4648_s11 = int_to_ptr.hbm [resolvable:$true] %s4647_s11 }
  0x6c   : > { %556 = vmatpush.msra.mxu0 %v545_v1  ;;  %v653_v8 = vld [vmem:[#allocation11 + $0x1c0] sm:$0xff]  ;;  %671 = vmatpush.msra.mxu3 %v657_v6  ;;  %v544_v9 = vld [vmem:[#allocation10 + $0xd8] sm:$0xff]  ;;  %v542_v12 = vld [vmem:[#allocation10 + $0xc8] sm:$0xff]  ;;  %s5516_s4 = sshra.s32 %s4648_s11, 4  ;;  %s5517_s4 = int_to_ptr.hbm [resolvable:$true] %s5516_s4 }
  0x6d   : > { %v537_v10 = vld [vmem:[#allocation10 + $0xa0] sm:$0xff]  ;;  %576 = vmatpush.msra.mxu1 %v546_v7  ;;  %v535_v13 = vld [vmem:[#allocation10 + $0x90] sm:$0xff]  ;;  %v540_v15 = vld [vmem:[#allocation10 + $0xb8] sm:$0xff]  ;;  %s5518_s21 = scalar_lea.hbm %s5517_s4, 64  ;;  %p5523_p7 = scmp.lt.s32.totalorder %s5517_s4, %s8293_s10 }
  0x6e   : > { %557 = vmatpush.msra.mxu0 %v543_v2  ;;  %v649_v11 = vld [vmem:[#allocation11 + $0x1a0] sm:$0xff]  ;;  %672 = vmatpush.msra.mxu3 %v653_v8  ;;  %v538_v18 = vld [vmem:[#allocation10 + $0xa8] sm:$0xff]  ;;  %v531_v19 = vld [vmem:[#allocation10 + $0x70] sm:$0xff]  ;;  %p5519_p1 = scmp.ne.s32.totalorder %s5517_s4, %s5518_s21 }
  0x6f   : > { %577 = vmatpush.msra.mxu1 %v544_v9  ;;  %v645_v14 = vld [vmem:[#allocation11 + $0x180] sm:$0xff]  ;;  %v536_v21 = vld [vmem:[#allocation10 + $0x98] sm:$0xff]  ;;  %v534_v24 = vld [vmem:[#allocation10 + $0x88] sm:$0xff] }
  0x70   : > { %558 = vmatpush.msra.mxu0 %v541_v3  ;;  %673 = vmatpush.msra.mxu3 %v649_v11  ;;  %v533_v16 = vld [vmem:[#allocation10 + $0x80] sm:$0xff]  ;;  %v527_v25 = vld [vmem:[#allocation10 + $0x50] sm:$0xff]  ;;  %v532_v27 = vld [vmem:[#allocation10 + $0x78] sm:$0xff]  ;;  %p5520_p3 = pnand %p5519_p1, %p5767_p4 }
  0x71   : > { %578 = vmatpush.msra.mxu1 %v542_v12  ;;  %v641_v17 = vld [vmem:[#allocation11 + $0x160] sm:$0xff]  ;;  %v530_v30 = vld [vmem:[#allocation10 + $0x68] sm:$0xff]  ;;  %v523_v31 = vld [vmem:[#allocation10 + $0x30] sm:$0xff] }
  0x72   : > { %559 = vmatpush.msra.mxu0 %v539_v4  ;;  %674 = vmatpush.msra.mxu3 %v645_v14  ;;  %v637_v20 = vld [vmem:[#allocation11 + $0x140] sm:$0xff]  ;;  %v528_v33 = vld [vmem:[#allocation10 + $0x58] sm:$0xff]  ;;  %v526_v36 = vld [vmem:[#allocation10 + $0x48] sm:$0xff]  ;;  %p5521_p12 = pneg %p5520_p3 }
  0x73   : > { %579 = vmatpush.msra.mxu1 %v540_v15  ;;  %v529_v22 = vld [vmem:[#allocation10 + $0x60] sm:$0xff]  ;;  %v519_v37 = vld [vmem:[#allocation10 + $0x10] sm:$0xff]  ;;  %v524_v39 = vld [vmem:[#allocation10 + $0x38] sm:$0xff] }
  0x74   : > { %560 = vmatpush.msra.mxu0 %v537_v10  ;;  %675 = vmatpush.msra.mxu3 %v641_v17  ;;  %v633_v23 = vld [vmem:[#allocation11 + $0x120] sm:$0xff]  ;;  %v5858_v42 = vld [vmem:[%s5835_s25] sm:$0xff]  ;;  %v522_v43 = vld [vmem:[#allocation10 + $0x28] sm:$0xff]  ;;  %s5522_s25 = scalar_lea.hbm %s8293_s10, 128 }
  0x75   : > { %580 = vmatpush.msra.mxu1 %v538_v18  ;;  %v629_v26 = vld [vmem:[#allocation11 + $0x100] sm:$0xff]  ;;  %v659_v45 = vld [vmem:[#allocation11 + $0x1f0] sm:$0xff]  ;;  %v520_v46 = vld [vmem:[#allocation10 + $0x18] sm:$0xff]  ;;  %p5524_p9 = scmp.lt.s32.totalorder %s5522_s25, %s5518_s21 }
  0x76   : > { %561 = vmatpush.msra.mxu0 %v535_v13  ;;  %676 = vmatpush.msra.mxu3 %v637_v20  ;;  %v525_v28 = vld [vmem:[#allocation10 + $0x40] sm:$0xff]  ;;  %v655_v48 = vld [vmem:[#allocation11 + $0x1d0] sm:$0xff]  ;;  %v518_v49 = vld [vmem:[#allocation10 + $0x8] sm:$0xff] }
  0x77   : > { %581 = vmatpush.msra.mxu1 %v536_v21  ;;  %v625_v29 = vld [vmem:[#allocation11 + $0xe0] sm:$0xff]  ;;  %v660_v51 = vld [vmem:[#allocation11 + $0x1f8] sm:$0xff]  ;;  %v658_v52 = vld [vmem:[#allocation11 + $0x1e8] sm:$0xff]  ;;  %p5525_p5 = por %p5524_p9, %p5523_p7 }
  0x78   : > { %562 = vmatpush.msra.mxu0 %v533_v16  ;;  %677 = vmatpush.msra.mxu3 %v633_v23  ;;  %v621_v32 = vld [vmem:[#allocation11 + $0xc0] sm:$0xff]  ;;  %v651_v53 = vld [vmem:[#allocation11 + $0x1b0] sm:$0xff]  ;;  %v656_v54 = vld [vmem:[#allocation11 + $0x1d8] sm:$0xff] }
  0x79   : > { %582 = vmatpush.msra.mxu1 %v534_v24  ;;  %v521_v34 = vld [vmem:[#allocation10 + $0x20] sm:$0xff]  ;;  %v654_v55 = vld [vmem:[#allocation11 + $0x1c8] sm:$0xff]  ;;  %v647_v56 = vld [vmem:[#allocation11 + $0x190] sm:$0xff]  ;;  %p5526_p8 = pnand %p5525_p5, %p5521_p12 }
  0x7a   : > { %563 = vmatpush.msra.mxu0 %v531_v19  ;;  %678 = vmatpush.msra.mxu3 %v629_v26  ;;  %v617_v35 = vld [vmem:[#allocation11 + $0xa0] sm:$0xff]  ;;  %v652_v57 = vld [vmem:[#allocation11 + $0x1b8] sm:$0xff]  ;;  %v650_v59 = vld [vmem:[#allocation11 + $0x1a8] sm:$0xff] }
  0x7b   : > { %583 = vmatpush.msra.mxu1 %v532_v27  ;;  %v613_v38 = vld [vmem:[#allocation11 + $0x80] sm:$0xff]  ;;  %v643_v60 = vld [vmem:[#allocation11 + $0x170] sm:$0xff]  ;;  %v648_v61 = vld [vmem:[#allocation11 + $0x198] sm:$0xff] }
  0x7c   : > { %564 = vmatpush.msra.mxu0 %v529_v22  ;;  %679 = vmatpush.msra.mxu3 %v625_v29  ;;  %v517_v40 = vld [vmem:[#allocation10] sm:$0xff]  ;;  %v646_v63 = vld [vmem:[#allocation11 + $0x188] sm:$0xff]  ;;  %v639_v0 = vld [vmem:[#allocation11 + $0x150] sm:$0xff] }
  0x7d   : > { %584 = vmatpush.msra.mxu1 %v530_v30  ;;  %v609_v41 = vld [vmem:[#allocation11 + $0x60] sm:$0xff]  ;;  %v644_v1 = vld [vmem:[#allocation11 + $0x178] sm:$0xff]  ;;  %v642_v3 = vld [vmem:[#allocation11 + $0x168] sm:$0xff] }
  0x7e   : > { %565 = vmatpush.msra.mxu0 %v527_v25  ;;  %680 = vmatpush.msra.mxu3 %v621_v32  ;;  %v605_v44 = vld [vmem:[#allocation11 + $0x40] sm:$0xff]  ;;  %v635_v4 = vld [vmem:[#allocation11 + $0x130] sm:$0xff]  ;;  %v640_v5 = vld [vmem:[#allocation11 + $0x158] sm:$0xff] }
  0x7f   : > { %585 = vmatpush.msra.mxu1 %v528_v33  ;;  %v601_v47 = vld [vmem:[#allocation11 + $0x20] sm:$0xff]  ;;  %v638_v7 = vld [vmem:[#allocation11 + $0x148] sm:$0xff]  ;;  %v631_v8 = vld [vmem:[#allocation11 + $0x110] sm:$0xff] }
  0x80   : > { %566 = vmatpush.msra.mxu0 %v525_v28  ;;  %681 = vmatpush.msra.mxu3 %v617_v35  ;;  %v597_v50 = vld [vmem:[#allocation11] sm:$0xff]  ;;  %v636_v9 = vld [vmem:[#allocation11 + $0x138] sm:$0xff]  ;;  %v634_v11 = vld [vmem:[#allocation11 + $0x128] sm:$0xff] }
  0x81   : > { %586 = vmatpush.msra.mxu1 %v526_v36  ;;  %v5861_v58 = vld [vmem:[#allocation14 + $0x1e0] sm:$0xff]  ;;  %v627_v12 = vld [vmem:[#allocation11 + $0xf0] sm:$0xff]  ;;  %v632_v13 = vld [vmem:[#allocation11 + $0x118] sm:$0xff] }
  0x82   : > { %567 = vmatpush.msra.mxu0 %v523_v31  ;;  %682 = vmatpush.msra.mxu3 %v613_v38  ;;  %v5864_v62 = vld [vmem:[#allocation14 + $0x1c0] sm:$0xff]  ;;  %v630_v15 = vld [vmem:[#allocation11 + $0x108] sm:$0xff]  ;;  %v623_v16 = vld [vmem:[#allocation11 + $0xd0] sm:$0xff] }
  0x83   : > { %587 = vmatpush.msra.mxu1 %v524_v39  ;;  %831 = vmatpush.msra.mxu2 %v5861_v58  ;;  %v5867_v2 = vld [vmem:[#allocation14 + $0x1a0] sm:$0xff]  ;;  %v628_v17 = vld [vmem:[#allocation11 + $0xf8] sm:$0xff]  ;;  %v626_v19 = vld [vmem:[#allocation11 + $0xe8] sm:$0xff] }
  0x84   : > { %568 = vmatpush.msra.mxu0 %v521_v34  ;;  %683 = vmatpush.msra.mxu3 %v609_v41  ;;  %v5870_v6 = vld [vmem:[#allocation14 + $0x180] sm:$0xff]  ;;  %v619_v20 = vld [vmem:[#allocation11 + $0xb0] sm:$0xff]  ;;  %v624_v21 = vld [vmem:[#allocation11 + $0xd8] sm:$0xff] }
  0x85   : > { %588 = vmatpush.msra.mxu1 %v522_v43  ;;  %832 = vmatpush.msra.mxu2 %v5864_v62  ;;  %v5873_v10 = vld [vmem:[#allocation14 + $0x160] sm:$0xff]  ;;  %v622_v23 = vld [vmem:[#allocation11 + $0xc8] sm:$0xff]  ;;  %v615_v24 = vld [vmem:[#allocation11 + $0x90] sm:$0xff] }
  0x86   : > { %569 = vmatpush.msra.mxu0 %v519_v37  ;;  %684 = vmatpush.msra.mxu3 %v605_v44  ;;  %v5876_v14 = vld [vmem:[#allocation14 + $0x140] sm:$0xff]  ;;  %v620_v25 = vld [vmem:[#allocation11 + $0xb8] sm:$0xff]  ;;  %v618_v27 = vld [vmem:[#allocation11 + $0xa8] sm:$0xff] }
  0x87   : > { %589 = vmatpush.msra.mxu1 %v520_v46  ;;  %833 = vmatpush.msra.mxu2 %v5867_v2  ;;  %v5879_v18 = vld [vmem:[#allocation14 + $0x120] sm:$0xff]  ;;  %v611_v28 = vld [vmem:[#allocation11 + $0x70] sm:$0xff]  ;;  %v616_v29 = vld [vmem:[#allocation11 + $0x98] sm:$0xff] }
  0x88   : > { %570 = vmatpush.msra.mxu0 %v517_v40  ;;  %685 = vmatpush.msra.mxu3 %v601_v47  ;;  %v5882_v22 = vld [vmem:[#allocation14 + $0x100] sm:$0xff]  ;;  %v614_v31 = vld [vmem:[#allocation11 + $0x88] sm:$0xff]  ;;  %v607_v32 = vld [vmem:[#allocation11 + $0x50] sm:$0xff] }
  0x89   : > { %571 = vmatmul.f32.vlgmr.msra.gmra.mxu0 %v5858_v42  ;;  %590 = vmatpush.msra.mxu1 %v518_v49  ;;  %v5885_v26 = vld [vmem:[#allocation14 + $0xe0] sm:$0xff]  ;;  %v612_v33 = vld [vmem:[#allocation11 + $0x78] sm:$0xff]  ;;  %v610_v35 = vld [vmem:[#allocation11 + $0x68] sm:$0xff] }
  0x8a   : > { %711 = vmatpush.msrb.mxu0 %v659_v45  ;;  %686 = vmatpush.msra.mxu3 %v597_v50  ;;  %8457 = vst [vmem:[#allocation30_spill] sm:$0xff] %v5885_v26  ;;  %v5888_v30 = vld [vmem:[#allocation14 + $0xc0] sm:$0xff]  ;;  %v603_v36 = vld [vmem:[#allocation11 + $0x30] sm:$0xff]  ;;  %v608_v37 = vld [vmem:[#allocation11 + $0x58] sm:$0xff] }
  0x8b   : > { %731 = vmatpush.msrb.mxu1 %v660_v51  ;;  %687 = vmatmul.f32.vlgmr.msra.gmra.mxu3 %v5858_v42  ;;  %v5891_v34 = vld [vmem:[#allocation14 + $0xa0] sm:$0xff]  ;;  %v606_v38 = vld [vmem:[#allocation11 + $0x48] sm:$0xff]  ;;  %v599_v39 = vld [vmem:[#allocation11 + $0x10] sm:$0xff] }
  0x8c   : > { %712 = vmatpush.msrb.mxu0 %v655_v48  ;;  %691 = vmatpush.msrb.mxu3 %v658_v52  ;;  %v604_v40 = vld [vmem:[#allocation11 + $0x38] sm:$0xff]  ;;  %v5895_v41 = vld [vmem:[#allocation14 + $0x1f0] sm:$0xff]  ;;  %v602_v43 = vld [vmem:[#allocation11 + $0x28] sm:$0xff] }
  0x8d   : > { %732 = vmatpush.msrb.mxu1 %v656_v54  ;;  %834 = vmatpush.msra.mxu2 %v5870_v6  ;;  %v600_v44 = vld [vmem:[#allocation11 + $0x18] sm:$0xff]  ;;  %v5897_v45 = vld [vmem:[#allocation14 + $0x1d0] sm:$0xff]  ;;  %v598_v46 = vld [vmem:[#allocation11 + $0x8] sm:$0xff] }
  0x8e   : > { %713 = vmatpush.msrb.mxu0 %v651_v53  ;;  %692 = vmatpush.msrb.mxu3 %v654_v55  ;;  %v5900_v47 = vld [vmem:[#allocation14 + $0x1f8] sm:$0xff]  ;;  %v5903_v48 = vld [vmem:[#allocation14 + $0x1e8] sm:$0xff]  ;;  %v5905_v49 = vld [vmem:[#allocation14 + $0x1b0] sm:$0xff] }
  0x8f   : > { %733 = vmatpush.msrb.mxu1 %v652_v57  ;;  %835 = vmatpush.msra.mxu2 %v5873_v10  ;;  %v5908_v50 = vld [vmem:[#allocation14 + $0x1d8] sm:$0xff]  ;;  %v5911_v51 = vld [vmem:[#allocation14 + $0x1c8] sm:$0xff]  ;;  %v5913_v52 = vld [vmem:[#allocation14 + $0x190] sm:$0xff] }
  0x90   : > { %714 = vmatpush.msrb.mxu0 %v647_v56  ;;  %693 = vmatpush.msrb.mxu3 %v650_v59  ;;  %v5917_v53 = vld [vmem:[#allocation14 + $0x1b8] sm:$0xff]  ;;  %v5920_v54 = vld [vmem:[#allocation14 + $0x1a8] sm:$0xff]  ;;  %v5922_v55 = vld [vmem:[#allocation14 + $0x170] sm:$0xff] }
  0x91   : > { %734 = vmatpush.msrb.mxu1 %v648_v61  ;;  %836 = vmatpush.msra.mxu2 %v5876_v14  ;;  %v5927_v56 = vld [vmem:[#allocation14 + $0x198] sm:$0xff]  ;;  %v5930_v57 = vld [vmem:[#allocation14 + $0x188] sm:$0xff]  ;;  %v5932_v59 = vld [vmem:[#allocation14 + $0x150] sm:$0xff] }
  0x92   : > { %715 = vmatpush.msrb.mxu0 %v643_v60  ;;  %694 = vmatpush.msrb.mxu3 %v646_v63  ;;  %v5937_v60 = vld [vmem:[#allocation14 + $0x178] sm:$0xff]  ;;  %v5940_v61 = vld [vmem:[#allocation14 + $0x168] sm:$0xff]  ;;  %v5942_v63 = vld [vmem:[#allocation14 + $0x130] sm:$0xff] }
  0x93   : > { %735 = vmatpush.msrb.mxu1 %v644_v1  ;;  %837 = vmatpush.msra.mxu2 %v5879_v18  ;;  %v5949_v1 = vld [vmem:[#allocation14 + $0x148] sm:$0xff] }
  0x94   : > { %716 = vmatpush.msrb.mxu0 %v639_v0  ;;  %695 = vmatpush.msrb.mxu3 %v642_v3  ;;  %v5946_v0 = vld [vmem:[#allocation14 + $0x158] sm:$0xff]  ;;  %8458 = vst [vmem:[#allocation31_spill] sm:$0xff] %v5949_v1  ;;  %v5951_v3 = vld [vmem:[#allocation14 + $0x110] sm:$0xff] }
  0x95   : > { %736 = vmatpush.msrb.mxu1 %v640_v5  ;;  %838 = vmatpush.msra.mxu2 %v5882_v22  ;;  %v5958_v5 = vld [vmem:[#allocation14 + $0x128] sm:$0xff] }
  0x96   : > { %717 = vmatpush.msrb.mxu0 %v635_v4  ;;  %696 = vmatpush.msrb.mxu3 %v638_v7  ;;  %v5955_v4 = vld [vmem:[#allocation14 + $0x138] sm:$0xff]  ;;  %v5960_v7 = vld [vmem:[#allocation14 + $0xf0] sm:$0xff] }
  0x97   : > { %737 = vmatpush.msrb.mxu1 %v636_v9  ;;  %839 = vmatpush.msra.mxu2 %v5885_v26  ;;  %8459 = vst [vmem:[#allocation32_spill] sm:$0xff] %v5955_v4  ;;  %v5967_v9 = vld [vmem:[#allocation14 + $0x108] sm:$0xff] }
  0x98   : > { %718 = vmatpush.msrb.mxu0 %v631_v8  ;;  %697 = vmatpush.msrb.mxu3 %v634_v11  ;;  %8460 = vst [vmem:[#allocation33_spill] sm:$0xff] %v5960_v7  ;;  %v5964_v8 = vld [vmem:[#allocation14 + $0x118] sm:$0xff]  ;;  %v5969_v11 = vld [vmem:[#allocation14 + $0xd0] sm:$0xff] }
  0x99   : > { %738 = vmatpush.msrb.mxu1 %v632_v13  ;;  %840 = vmatpush.msra.mxu2 %v5888_v30  ;;  %v5976_v13 = vld [vmem:[#allocation14 + $0xe8] sm:$0xff] }
  0x9a   : > { %719 = vmatpush.msrb.mxu0 %v627_v12  ;;  %698 = vmatpush.msrb.mxu3 %v630_v15  ;;  %v5973_v12 = vld [vmem:[#allocation14 + $0xf8] sm:$0xff]  ;;  %v5978_v15 = vld [vmem:[#allocation14 + $0xb0] sm:$0xff] }
  0x9b   : > { %739 = vmatpush.msrb.mxu1 %v628_v17  ;;  %841 = vmatpush.msra.mxu2 %v5891_v34  ;;  %v5985_v17 = vld [vmem:[#allocation14 + $0xc8] sm:$0xff] }
  0x9c   : > { %720 = vmatpush.msrb.mxu0 %v623_v16  ;;  %699 = vmatpush.msrb.mxu3 %v626_v19  ;;  %v5982_v16 = vld [vmem:[#allocation14 + $0xd8] sm:$0xff] }
  0x9d   : > { %740 = vmatpush.msrb.mxu1 %v624_v21  ;;  %v5989_v19 = vld [vmem:[#allocation14 + $0xb8] sm:$0xff]  ;;  %v5998_v21 = vld [vmem:[#allocation14 + $0x80] sm:$0xff] }
  0x9e   : > { %721 = vmatpush.msrb.mxu0 %v619_v20  ;;  %700 = vmatpush.msrb.mxu3 %v622_v23  ;;  %v5992_v20 = vld [vmem:[#allocation14 + $0xa8] sm:$0xff] }
  0x9f   : > { %741 = vmatpush.msrb.mxu1 %v620_v25  ;;  %v6000_v23 = vld [vmem:[#allocation14 + $0x88] sm:$0xff]  ;;  %842 = vmatpush.msra.mxu2 %v5998_v21  ;;  %v6006_v25 = vld [vmem:[#allocation14 + $0x98] sm:$0xff] }
  0xa0   : > { %722 = vmatpush.msrb.mxu0 %v615_v24  ;;  %701 = vmatpush.msrb.mxu3 %v618_v27  ;;  %v6002_v24 = vld [vmem:[#allocation14 + $0x90] sm:$0xff]  ;;  %v6012_v27 = vld [vmem:[#allocation14 + $0x68] sm:$0xff] }
  0xa1   : > { %742 = vmatpush.msrb.mxu1 %v616_v29  ;;  %v6018_v29 = vld [vmem:[#allocation14 + $0x78] sm:$0xff] }
  0xa2   : > { %723 = vmatpush.msrb.mxu0 %v611_v28  ;;  %702 = vmatpush.msrb.mxu3 %v614_v31  ;;  %v6014_v28 = vld [vmem:[#allocation14 + $0x70] sm:$0xff]  ;;  %v6020_v31 = vld [vmem:[#allocation14 + $0x40] sm:$0xff] }
  0xa3   : > { %743 = vmatpush.msrb.mxu1 %v612_v33  ;;  %v6026_v33 = vld [vmem:[#allocation14 + $0x50] sm:$0xff] }
  0xa4   : > { %724 = vmatpush.msrb.mxu0 %v607_v32  ;;  %703 = vmatpush.msrb.mxu3 %v610_v35  ;;  %v6022_v32 = vld [vmem:[#allocation14 + $0x48] sm:$0xff]  ;;  %v6028_v35 = vld [vmem:[#allocation14 + $0x58] sm:$0xff] }
  0xa5   : > { %744 = vmatpush.msrb.mxu1 %v608_v37  ;;  %v6034_v37 = vld [vmem:[#allocation14 + $0x28] sm:$0xff] }
  0xa6   : > { %725 = vmatpush.msrb.mxu0 %v603_v36  ;;  %704 = vmatpush.msrb.mxu3 %v606_v38  ;;  %v6030_v36 = vld [vmem:[#allocation14 + $0x20] sm:$0xff]  ;;  %v6036_v38 = vld [vmem:[#allocation14 + $0x30] sm:$0xff] }
  0xa7   : > { %745 = vmatpush.msrb.mxu1 %v604_v40  ;;  %v6042_v40 = vld [vmem:[#allocation14] sm:$0xff] }
  0xa8   : > { %726 = vmatpush.msrb.mxu0 %v599_v39  ;;  %705 = vmatpush.msrb.mxu3 %v602_v43  ;;  %v6038_v39 = vld [vmem:[#allocation14 + $0x38] sm:$0xff]  ;;  %v6044_v43 = vld [vmem:[#allocation14 + $0x8] sm:$0xff] }
  0xa9   : > { %591 = vmatmul.f32.vlgmr.msra.gmra.mxu1 %v5858_v42  ;;  %727 = vmatmul.f32.vlgmr.msrb.gmra.mxu0 %v5858_v42 }
  0xaa   : > { %871 = vmatpush.msra.mxu0 %v5895_v41  ;;  %746 = vmatpush.msrb.mxu1 %v600_v44  ;;  %v6048_v44 = vld [vmem:[#allocation14 + $0x10] sm:$0xff] }
  0xab   : > { %706 = vmatpush.msrb.mxu3 %v598_v46  ;;  %v6050_v46 = vld [vmem:[#allocation14 + $0x18] sm:$0xff] }
  0xac   : > { %872 = vmatpush.msra.mxu0 %v5897_v45  ;;  %891 = vmatpush.msra.mxu1 %v5900_v47 }
  0xad   : > { %851 = vmatpush.msra.mxu3 %v5903_v48 }
  0xae   : > { %873 = vmatpush.msra.mxu0 %v5905_v49  ;;  %892 = vmatpush.msra.mxu1 %v5908_v50 }
  0xaf   : > { %707 = vmatmul.f32.vlgmr.msrb.gmra.mxu3 %v5858_v42 }
  0xb0   : > { %852 = vmatpush.msra.mxu3 %v5911_v51  ;;  %874 = vmatpush.msra.mxu0 %v5913_v52 }
  0xb1   : > { %893 = vmatpush.msra.mxu1 %v5917_v53 }
  0xb2   : > { %853 = vmatpush.msra.mxu3 %v5920_v54  ;;  %875 = vmatpush.msra.mxu0 %v5922_v55 }
  0xb3   : > { %894 = vmatpush.msra.mxu1 %v5927_v56 }
  0xb4   : > { %854 = vmatpush.msra.mxu3 %v5930_v57  ;;  %876 = vmatpush.msra.mxu0 %v5932_v59 }
  0xb5   : > { %895 = vmatpush.msra.mxu1 %v5937_v60 }
  0xb6   : > { %855 = vmatpush.msra.mxu3 %v5940_v61  ;;  %877 = vmatpush.msra.mxu0 %v5942_v63 }
  0xb7   : > { %896 = vmatpush.msra.mxu1 %v5946_v0 }
  0xb8   : > { %856 = vmatpush.msra.mxu3 %v5949_v1  ;;  %878 = vmatpush.msra.mxu0 %v5951_v3 }
  0xb9   : > { %897 = vmatpush.msra.mxu1 %v5955_v4 }
  0xba   : > { %857 = vmatpush.msra.mxu3 %v5958_v5  ;;  %879 = vmatpush.msra.mxu0 %v5960_v7 }
  0xbb   : > { %898 = vmatpush.msra.mxu1 %v5964_v8 }
  0xbc   : > { %858 = vmatpush.msra.mxu3 %v5967_v9  ;;  %880 = vmatpush.msra.mxu0 %v5969_v11 }
  0xbd   : > { %899 = vmatpush.msra.mxu1 %v5973_v12 }
  0xbe   : > { %859 = vmatpush.msra.mxu3 %v5976_v13  ;;  %881 = vmatpush.msra.mxu0 %v5978_v15 }
  0xbf   : > { %900 = vmatpush.msra.mxu1 %v5982_v16 }
  0xc0   : > { %860 = vmatpush.msra.mxu3 %v5985_v17  ;;  %747 = vmatmul.f32.vlgmr.msrb.gmra.mxu1 %v5858_v42  ;;  %v6010_v42 = vld [vmem:[#allocation14 + $0x60] sm:$0xff] }
  0xc1   : > { %901 = vmatpush.msra.mxu1 %v5989_v19  ;;  %882 = vmatpush.msra.mxu0 %v6002_v24 }
  0xc2   : > { %861 = vmatpush.msra.mxu3 %v5992_v20  ;;  %843 = vmatpush.msra.mxu2 %v6010_v42 }
  0xc3   : > { %902 = vmatpush.msra.mxu1 %v6006_v25  ;;  %883 = vmatpush.msra.mxu0 %v6014_v28 }
  0xc4   : > { %862 = vmatpush.msra.mxu3 %v6000_v23  ;;  %844 = vmatpush.msra.mxu2 %v6020_v31 }
  0xc5   : > { %903 = vmatpush.msra.mxu1 %v6018_v29  ;;  %884 = vmatpush.msra.mxu0 %v6026_v33 }
  0xc6   : > { %863 = vmatpush.msra.mxu3 %v6012_v27  ;;  %845 = vmatpush.msra.mxu2 %v6030_v36 }
  0xc7   : > { %904 = vmatpush.msra.mxu1 %v6028_v35  ;;  %885 = vmatpush.msra.mxu0 %v6036_v38 }
  0xc8   : > { %864 = vmatpush.msra.mxu3 %v6022_v32  ;;  %846 = vmatpush.msra.mxu2 %v6042_v40 }
  0xc9   : > { %905 = vmatpush.msra.mxu1 %v6038_v39  ;;  %886 = vmatpush.msra.mxu0 %v6048_v44 }
  0xca   : > { %865 = vmatpush.msra.mxu3 %v6034_v37  ;;  %1055 = vmatpush.msrb.mxu2 %v5861_v58 }
  0xcb   : > { %906 = vmatpush.msra.mxu1 %v6050_v46  ;;  %1095 = vmatpush.msrb.mxu0 %v5895_v41 }
  0xcc   : > { %866 = vmatpush.msra.mxu3 %v6044_v43  ;;  %1056 = vmatpush.msrb.mxu2 %v5864_v62 }
  0xcd   : > { %1115 = vmatpush.msrb.mxu1 %v5900_v47  ;;  %1096 = vmatpush.msrb.mxu0 %v5897_v45 }
  0xce   : > { %1075 = vmatpush.msrb.mxu3 %v5903_v48  ;;  %1057 = vmatpush.msrb.mxu2 %v5867_v2 }
  0xcf   : > { %1116 = vmatpush.msrb.mxu1 %v5908_v50  ;;  %1097 = vmatpush.msrb.mxu0 %v5905_v49 }
  0xd0   : > { %1076 = vmatpush.msrb.mxu3 %v5911_v51  ;;  %1058 = vmatpush.msrb.mxu2 %v5870_v6 }
  0xd1   : > { %1117 = vmatpush.msrb.mxu1 %v5917_v53  ;;  %1098 = vmatpush.msrb.mxu0 %v5913_v52 }
  0xd2   : > { %1077 = vmatpush.msrb.mxu3 %v5920_v54  ;;  %1059 = vmatpush.msrb.mxu2 %v5873_v10 }
  0xd3   : > { %1118 = vmatpush.msrb.mxu1 %v5927_v56  ;;  %1099 = vmatpush.msrb.mxu0 %v5922_v55 }
  0xd4   : > { %1078 = vmatpush.msrb.mxu3 %v5930_v57  ;;  %1060 = vmatpush.msrb.mxu2 %v5876_v14 }
  0xd5   : > { %1119 = vmatpush.msrb.mxu1 %v5937_v60  ;;  %1100 = vmatpush.msrb.mxu0 %v5932_v59 }
  0xd6   : > { %1079 = vmatpush.msrb.mxu3 %v5940_v61  ;;  %1061 = vmatpush.msrb.mxu2 %v5879_v18 }
  0xd7   : > { %1120 = vmatpush.msrb.mxu1 %v5946_v0  ;;  %1101 = vmatpush.msrb.mxu0 %v5942_v63 }
  0xd8   : > { %1080 = vmatpush.msrb.mxu3 %v5949_v1  ;;  %1062 = vmatpush.msrb.mxu2 %v5882_v22  ;;  %v549_v1 = vld [vmem:[%s8286_s3] sm:$0x3] }
  0xd9   : > { %1121 = vmatpush.msrb.mxu1 %v5955_v4  ;;  %1102 = vmatpush.msrb.mxu0 %v5951_v3  ;;  %v551_v4 = vperm.slane %v549_v1, 0 }
  0xda   : > { %1081 = vmatpush.msrb.mxu3 %v5958_v5  ;;  %1063 = vmatpush.msrb.mxu2 %v5885_v26 }
  0xdb   : > { %1122 = vmatpush.msrb.mxu1 %v5964_v8  ;;  %1103 = vmatpush.msrb.mxu0 %v5960_v7 }
  0xdc   : > { %1082 = vmatpush.msrb.mxu3 %v5967_v9  ;;  %1064 = vmatpush.msrb.mxu2 %v5888_v30 }
  0xdd   : > { %1123 = vmatpush.msrb.mxu1 %v5973_v12  ;;  %1104 = vmatpush.msrb.mxu0 %v5969_v11 }
  0xde   : > { %1083 = vmatpush.msrb.mxu3 %v5976_v13  ;;  %1065 = vmatpush.msrb.mxu2 %v5891_v34 }
  0xdf   : > { %1124 = vmatpush.msrb.mxu1 %v5982_v16  ;;  %1105 = vmatpush.msrb.mxu0 %v5978_v15 }
  0xe0   : > { %1084 = vmatpush.msrb.mxu3 %v5985_v17  ;;  %1066 = vmatpush.msrb.mxu2 %v5998_v21 }
  0xe1   : > { %1125 = vmatpush.msrb.mxu1 %v5989_v19  ;;  %1106 = vmatpush.msrb.mxu0 %v6002_v24 }
  0xe2   : > { %1085 = vmatpush.msrb.mxu3 %v5992_v20  ;;  %1067 = vmatpush.msrb.mxu2 %v6010_v42 }
  0xe3   : > { %1126 = vmatpush.msrb.mxu1 %v6006_v25  ;;  %1107 = vmatpush.msrb.mxu0 %v6014_v28 }
  0xe4   : > { %1086 = vmatpush.msrb.mxu3 %v6000_v23  ;;  %1068 = vmatpush.msrb.mxu2 %v6020_v31 }
  0xe5   : > { %1127 = vmatpush.msrb.mxu1 %v6018_v29  ;;  %1108 = vmatpush.msrb.mxu0 %v6026_v33 }
  0xe6   : > { %1087 = vmatpush.msrb.mxu3 %v6012_v27  ;;  %1069 = vmatpush.msrb.mxu2 %v6030_v36 }
  0xe7   : > { %1128 = vmatpush.msrb.mxu1 %v6028_v35  ;;  %1109 = vmatpush.msrb.mxu0 %v6036_v38 }
  0xe8   : > { %1088 = vmatpush.msrb.mxu3 %v6022_v32  ;;  %1070 = vmatpush.msrb.mxu2 %v6042_v40 }
  0xe9   : > { %1129 = vmatpush.msrb.mxu1 %v6038_v39  ;;  %1110 = vmatpush.msrb.mxu0 %v6048_v44 }
  0xea   : > { %1089 = vmatpush.msrb.mxu3 %v6034_v37 }
  0xeb   : > { %1130 = vmatpush.msrb.mxu1 %v6050_v46 }
  0xec   : > { %1090 = vmatpush.msrb.mxu3 %v6044_v43 }
 0x106   : > { %v572_v26 = vpop.f32.mrf.mxu0 }
 0x107   : > { %v573_v7 = vadd.f32 %v572_v26, %v551_v4 }
 0x109   : > { %5001 = vtanh.f32 %v573_v7 }
 0x10f   : > { %v5002_v26 = vpop.eup %5001 }
 0x110   : > { %847 = vmatmul.f32.vlgmr.msra.gmra.mxu2 %v5002_v26  ;;  %867 = vmatmul.f32.vlgmr.msra.gmra.mxu3 %v5002_v26 }
 0x111   : > { %887 = vmatmul.f32.vlgmr.msra.gmra.mxu0 %v5002_v26  ;;  %907 = vmatmul.f32.vlgmr.msra.gmra.mxu1 %v5002_v26 }
 0x112   : > { %1279 = vmatpush.msra.mxu2 %v5861_v58  ;;  %1299 = vmatpush.msra.mxu3 %v5903_v48  ;;  %v8461_v58 = vld [vmem:[#allocation31_spill] sm:$0xff] }
 0x113   : > { %1319 = vmatpush.msra.mxu0 %v5895_v41  ;;  %1339 = vmatpush.msra.mxu1 %v5900_v47 }
 0x114   : > { %1280 = vmatpush.msra.mxu2 %v5864_v62  ;;  %1300 = vmatpush.msra.mxu3 %v5911_v51  ;;  %v8462_v62 = vld [vmem:[#allocation32_spill] sm:$0xff] }
 0x115   : > { %1320 = vmatpush.msra.mxu0 %v5897_v45  ;;  %1340 = vmatpush.msra.mxu1 %v5908_v50 }
 0x116   : > { %1281 = vmatpush.msra.mxu2 %v5867_v2  ;;  %1301 = vmatpush.msra.mxu3 %v5920_v54  ;;  %v8463_v2 = vld [vmem:[#allocation30_spill] sm:$0xff]  ;;  %v756_v54 = vld [vmem:[%s5827_s30 + $0x8] sm:$0xff] }
 0x117   : > { %1321 = vmatpush.msra.mxu0 %v5905_v49  ;;  %1341 = vmatpush.msra.mxu1 %v5917_v53  ;;  %v755_v53 = vld [vmem:[%s5827_s30] sm:$0xff] }
 0x118   : > { %1282 = vmatpush.msra.mxu2 %v5870_v6  ;;  %1302 = vmatpush.msra.mxu3 %v5930_v57  ;;  %v8464_v6 = vld [vmem:[#allocation33_spill] sm:$0xff] }
 0x119   : > { %1322 = vmatpush.msra.mxu0 %v5913_v52  ;;  %1342 = vmatpush.msra.mxu1 %v5927_v56 }
 0x11a   : > { %1283 = vmatpush.msra.mxu2 %v5873_v10  ;;  %1303 = vmatpush.msra.mxu3 %v5940_v61  ;;  %v688_v10 = vpop.f32.mrf.mxu3 }
 0x11b   : > { %1323 = vmatpush.msra.mxu0 %v5922_v55  ;;  %1343 = vmatpush.msra.mxu1 %v5937_v60 }
 0x11c   : > { %1284 = vmatpush.msra.mxu2 %v5876_v14  ;;  %1304 = vmatpush.msra.mxu3 %v8461_v58  ;;  %v661_v14 = vld [vmem:[#allocation16] ss:$2 sm:$0xf] }
 0x11d   : > { %1324 = vmatpush.msra.mxu0 %v5932_v59  ;;  %1344 = vmatpush.msra.mxu1 %v5946_v0  ;;  %v663_v45 = vperm.slane %v661_v14, 0  ;;  %v664_v47 = vperm.slane %v661_v14, 1  ;;  %v666_v7 = vperm.slane %v661_v14, 3 }
 0x11e   : > { %1285 = vmatpush.msra.mxu2 %v5879_v18  ;;  %1305 = vmatpush.msra.mxu3 %v5958_v5  ;;  %v665_v18 = vperm.slane %v661_v14, 2 }
 0x11f   : > { %1325 = vmatpush.msra.mxu0 %v5942_v63  ;;  %1345 = vmatpush.msra.mxu1 %v8462_v62  ;;  %v6193_v49 = vadd.f32 %v688_v10, %v663_v45 }
 0x120   : > { %1286 = vmatpush.msra.mxu2 %v5882_v22  ;;  %1306 = vmatpush.msra.mxu3 %v5967_v9 }
 0x121   : > { %1326 = vmatpush.msra.mxu0 %v5951_v3  ;;  %1346 = vmatpush.msra.mxu1 %v5964_v8  ;;  %8466 = vst [vmem:[#allocation32_spill] sm:$0xff] %v6193_v49  ;;  %v763_v57 = vadd.f32 %v755_v53, %v6193_v49  ;;  %v981_v53 = vld [vmem:[%s5827_s30 + $0x30] sm:$0xff] }
 0x122   : > { %1287 = vmatpush.msra.mxu2 %v8463_v2  ;;  %1307 = vmatpush.msra.mxu3 %v5976_v13 }
 0x123   : > { %1327 = vmatpush.msra.mxu0 %v8464_v6  ;;  %1347 = vmatpush.msra.mxu1 %v5973_v12 }
 0x124   : > { %1288 = vmatpush.msra.mxu2 %v5888_v30  ;;  %1308 = vmatpush.msra.mxu3 %v5985_v17 }
 0x125   : > { %1328 = vmatpush.msra.mxu0 %v5969_v11  ;;  %1348 = vmatpush.msra.mxu1 %v5982_v16 }
 0x126   : > { %1289 = vmatpush.msra.mxu2 %v5891_v34  ;;  %1309 = vmatpush.msra.mxu3 %v5992_v20  ;;  %v728_v22 = vpop.f32.mrf.mxu0  ;;  %v757_v34 = vld [vmem:[%s5827_s30 + $0x10] sm:$0xff]  ;;  %v6199_v55 = vpop.f32.mrf.mxu1 }
 0x127   : > { %1329 = vmatpush.msra.mxu0 %v5978_v15  ;;  %1349 = vmatpush.msra.mxu1 %v5989_v19  ;;  %v6189_v30 = vadd.f32 %v728_v22, %v665_v18  ;;  %8468 = vst [vmem:[#allocation33_spill] sm:$0xff] %v6199_v55  ;;  %v758_v15 = vld [vmem:[%s5827_s30 + $0x18] sm:$0xff]  ;;  %v6400_v55 = vld [vmem:[#allocation14 + $0x50] sm:$0xff] }
 0x128   : > { %1290 = vmatpush.msra.mxu2 %v5998_v21  ;;  %1310 = vmatpush.msra.mxu3 %v6000_v23  ;;  %8488 = vst [vmem:[#allocation53_spill] sm:$0xff] %v6400_v55 }
 0x129   : > { %1330 = vmatpush.msra.mxu0 %v6002_v24  ;;  %1350 = vmatpush.msra.mxu1 %v6006_v25  ;;  %8465 = vst [vmem:[#allocation31_spill] sm:$0xff] %v6189_v30  ;;  %v765_v48 = vadd.f32 %v757_v34, %v6189_v30 }
 0x12a   : > { %1291 = vmatpush.msra.mxu2 %v6010_v42  ;;  %1311 = vmatpush.msra.mxu3 %v6012_v27 }
 0x12b   : > { %1331 = vmatpush.msra.mxu0 %v6014_v28  ;;  %1351 = vmatpush.msra.mxu1 %v6018_v29 }
 0x12c   : > { %1292 = vmatpush.msra.mxu2 %v6020_v31  ;;  %1312 = vmatpush.msra.mxu3 %v6022_v32 }
 0x12d   : > { %1332 = vmatpush.msra.mxu0 %v6026_v33  ;;  %1352 = vmatpush.msra.mxu1 %v6028_v35 }
 0x12e   : > { %1293 = vmatpush.msra.mxu2 %v6030_v36  ;;  %1313 = vmatpush.msra.mxu3 %v6034_v37 }
 0x12f   : > { %1333 = vmatpush.msra.mxu0 %v6036_v38  ;;  %1353 = vmatpush.msra.mxu1 %v6038_v39 }
 0x130   : > { %1294 = vmatpush.msra.mxu2 %v6042_v40  ;;  %1314 = vmatpush.msra.mxu3 %v6044_v43 }
 0x131   : > { %1334 = vmatpush.msra.mxu0 %v6048_v44  ;;  %1354 = vmatpush.msra.mxu1 %v6050_v46 }
 0x132   : > { %v708_v41 = vpop.f32.mrf.mxu3 }
 0x133   : > { %v6195_v50 = vadd.f32 %v708_v41, %v664_v47 }
 0x135   : > { %8467 = vst [vmem:[#allocation30_spill] sm:$0xff] %v6195_v50  ;;  %v764_v59 = vadd.f32 %v756_v54, %v6195_v50  ;;  %v989_v54 = vadd.f32 %v981_v53, %v6189_v30 }
 0x13d   : > { %v748_v5 = vpop.f32.mrf.mxu1 }
 0x13e   : > { %v6203_v12 = vadd.f32 %v748_v5, %v666_v7 }
 0x140   : > { %8469 = vst [vmem:[#allocation34_spill] sm:$0xff] %v6203_v12  ;;  %v766_v17 = vadd.f32 %v758_v15, %v6203_v12 }
 0x18e   : > { %v888_v51 = vpop.f32.mrf.mxu0  ;;  %v908_v19 = vpop.f32.mrf.mxu1 }
 0x18f   : > { %v913_v52 = vadd.f32 %v888_v51, %v765_v48  ;;  %v914_v23 = vadd.f32 %v908_v19, %v766_v17  ;;  %v982_v19 = vld [vmem:[%s5827_s30 + $0x38] sm:$0xff] }
 0x191   : > { %v4827_v56 = vmul.f32 -1.442695, %v913_v52 }
 0x193   : > { %5003 = vpow2.f32 %v4827_v56  ;;  %v848_v60 = vpop.f32.mrf.mxu2  ;;  %v868_v61 = vpop.f32.mrf.mxu3 }
 0x194   : > { %v911_v63 = vadd.f32 %v848_v60, %v763_v57  ;;  %v912_v0 = vadd.f32 %v868_v61, %v764_v59  ;;  %v979_v59 = vld [vmem:[%s5827_s30 + $0x20] sm:$0xff]  ;;  %v980_v60 = vld [vmem:[%s5827_s30 + $0x28] sm:$0xff] }
 0x196   : > { %v4825_v1 = vmul.f32 -1.442695, %v911_v63  ;;  %v4826_v3 = vmul.f32 -1.442695, %v912_v0  ;;  %v987_v63 = vadd.f32 %v979_v59, %v6193_v49  ;;  %v988_v0 = vadd.f32 %v980_v60, %v6195_v50  ;;  %v6236_v59 = vld [vmem:[#allocation14 + $0x1e8] sm:$0xff]  ;;  %v6238_v60 = vld [vmem:[#allocation14 + $0x1f0] sm:$0xff] }
 0x197   : > { %8473 = vst [vmem:[#allocation38_spill] sm:$0xff] %v6236_v59 }
 0x198   : > { %5005 = vpow2.f32 %v4825_v1 }
 0x199   : > { %v5004_v4 = vpop.eup %5003  ;;  %5007 = vpow2.f32 %v4826_v3 }
 0x19a   : > { %v926_v8 = vadd.f32 1.0, %v5004_v4 }
 0x19c   : > { %5009 = vrcp.f32 %v926_v8  ;;  %v968_v34 = vand.u32 2147483648, %v926_v8  ;;  %vm962_vm9 = vweird.f32 %v926_v8  ;;  %v966_v41 = vand.u32 2147483647, %v926_v8 }
 0x19e   : > { %v5006_v9 = vpop.eup %5005  ;;  %v969_v47 = vor.u32 1.1754944e-38, %v968_v34  ;;  %vm967_vm11 = vcmp.eq.f32.partialorder %v966_v41, 8.507059e+37 }
 0x19f   : > { %v5008_v11 = vpop.eup %5007  ;;  %v924_v13 = vadd.f32 1.0, %v5006_v9 }
 0x1a0   : > { %v925_v16 = vadd.f32 1.0, %v5008_v11 }
 0x1a1   : > { %5011 = vrcp.f32 %v924_v13  ;;  %v938_v29 = vand.u32 2147483648, %v924_v13  ;;  %v936_v33 = vand.u32 2147483647, %v924_v13  ;;  %vm932_vm2 = vweird.f32 %v924_v13 }
 0x1a2   : > { %5013 = vrcp.f32 %v925_v16  ;;  %v5010_v20 = vpop.eup %5009  ;;  %v953_v35 = vand.u32 2147483648, %v925_v16  ;;  %v951_v37 = vand.u32 2147483647, %v925_v16  ;;  %vm947_vm4 = vweird.f32 %v925_v16 }
 0x1a3   : > { %v958_v27 = vmul.f32 %v5010_v20, %v926_v8  ;;  %5015 = vtanh.f32 %v914_v23  ;;  %v939_v40 = vor.u32 1.1754944e-38, %v938_v29  ;;  %vm937_vm5 = vcmp.eq.f32.partialorder %v936_v33, 8.507059e+37 }
 0x1a4   : > { %v954_v46 = vor.u32 1.1754944e-38, %v953_v35  ;;  %vm952_vm7 = vcmp.eq.f32.partialorder %v951_v37, 8.507059e+37  ;;  %vm963_vm8 = vweird.f32 %v5010_v20 }
 0x1a5   : > { %v959_v38 = vsub.f32 1.0, %v958_v27  ;;  %vm964_vm10 = vmor %vm962_vm9, %vm963_vm8 }
 0x1a7   : > { %v5012_v21 = vpop.eup %5011  ;;  %v960_v2 = vmul.f32 %v5010_v20, %v959_v38 }
 0x1a8   : > { %v5014_v24 = vpop.eup %5013  ;;  %v928_v25 = vmul.f32 %v5012_v21, %v924_v13  ;;  %vm933_vm0 = vweird.f32 %v5012_v21 }
 0x1a9   : > { %v943_v42 = vmul.f32 %v5014_v24, %v925_v16  ;;  %vm948_vm1 = vweird.f32 %v5014_v24  ;;  %vm934_vm3 = vmor %vm932_vm2, %vm933_vm0  ;;  %v5016_v26 = vpop.eup %5015  ;;  %v961_v22 = vadd.f32 %v5010_v20, %v960_v2 }
 0x1aa   : > { %v929_v28 = vsub.f32 1.0, %v928_v25  ;;  %vm949_vm6 = vmor %vm947_vm4, %vm948_vm1 }
 0x1ab   : > { %v944_v31 = vsub.f32 1.0, %v943_v42  ;;  %v965_v45 = vsel %vm964_vm10, %v5010_v20, %v961_v22 }
 0x1ac   : > { %v930_v32 = vmul.f32 %v5012_v21, %v929_v28  ;;  %v970_v51 = vsel %vm967_vm11, %v969_v47, %v965_v45 }
 0x1ad   : > { %v945_v36 = vmul.f32 %v5014_v24, %v944_v31 }
 0x1ae   : > { %v931_v39 = vadd.f32 %v5012_v21, %v930_v32 }
 0x1af   : > { %v946_v43 = vadd.f32 %v5014_v24, %v945_v36 }
 0x1b0   : > { %v935_v44 = vsel %vm934_vm3, %v5012_v21, %v931_v39  ;;  %v990_v21 = vadd.f32 %v982_v19, %v6203_v12  ;;  %v6286_v19 = vld [vmem:[#allocation14 + $0x170] sm:$0xff] }
 0x1b1   : > { %v940_v58 = vsel %vm937_vm5, %v939_v40, %v935_v44  ;;  %v950_v62 = vsel %vm949_vm6, %v5014_v24, %v946_v43 }
 0x1b2   : > { %v974_v6 = vmul.f32 %v5016_v26, %v940_v58  ;;  %v955_v10 = vsel %vm952_vm7, %v954_v46, %v950_v62 }
 0x1b3   : > { %v973_v14 = vmul.f32 0.0, %v955_v10 }
 0x1b5   : > { %v6207_v18 = vadd.f32 %v974_v6, %v973_v14 }
 0x1b7   : > { %5017 = vtanh.f32 %v6207_v18 }
 0x1bd   : > { %v5018_v48 = vpop.eup %5017 }
 0x1be   : > { %v6210_v52 = vmul.f32 %v5018_v48, %v970_v51 }
 0x1c0   : > { %8470 = vst [vmem:[#allocation35_spill] sm:$0xff] %v6210_v52  ;;  %1071 = vmatmul.f32.vlgmr.msrb.gmra.mxu2 %v6210_v52  ;;  %1091 = vmatmul.f32.vlgmr.msrb.gmra.mxu3 %v6210_v52 }
 0x1c1   : > { %1111 = vmatmul.f32.vlgmr.msrb.gmra.mxu0 %v6210_v52  ;;  %1131 = vmatmul.f32.vlgmr.msrb.gmra.mxu1 %v6210_v52  ;;  %v6410_v52 = vld [vmem:[#allocation14 + $0x20] sm:$0xff] }
 0x1c2   : > { %1523 = vmatpush.msrb.mxu3 %v6236_v59  ;;  %1543 = vmatpush.msrb.mxu0 %v6238_v60 }
 0x23e   : > { %v1112_v56 = vpop.f32.mrf.mxu0  ;;  %v1132_v20 = vpop.f32.mrf.mxu1 }
 0x23f   : > { %v1137_v57 = vadd.f32 %v1112_v56, %v989_v54  ;;  %v1138_v25 = vadd.f32 %v1132_v20, %v990_v21  ;;  %v1205_v20 = vld [vmem:[%s5827_s30 + $0x50] sm:$0xff]  ;;  %v6291_v21 = vld [vmem:[#allocation14 + $0x178] sm:$0xff] }
 0x241   : > { %v4830_v61 = vmul.f32 -1.442695, %v1137_v57 }
 0x243   : > { %5019 = vpow2.f32 %v4830_v61  ;;  %v1072_v1 = vpop.f32.mrf.mxu2  ;;  %v1092_v3 = vpop.f32.mrf.mxu3  ;;  %v6242_v61 = vld [vmem:[#allocation14 + $0x1f8] sm:$0xff] }
 0x244   : > { %v1135_v4 = vadd.f32 %v1072_v1, %v987_v63  ;;  %v1136_v5 = vadd.f32 %v1092_v3, %v988_v0  ;;  %8474 = vst [vmem:[#allocation39_spill] sm:$0xff] %v6242_v61  ;;  %1563 = vmatpush.msrb.mxu1 %v6242_v61  ;;  %v6246_v63 = vld [vmem:[#allocation14 + $0x1c0] sm:$0xff]  ;;  %v6248_v0 = vld [vmem:[#allocation14 + $0x1c8] sm:$0xff]  ;;  %v6250_v1 = vld [vmem:[#allocation14 + $0x1d0] sm:$0xff] }
 0x245   : > { %8475 = vst [vmem:[#allocation40_spill] sm:$0xff] %v6246_v63  ;;  %1524 = vmatpush.msrb.mxu3 %v6248_v0  ;;  %v6254_v3 = vld [vmem:[#allocation14 + $0x1d8] sm:$0xff]  ;;  %1544 = vmatpush.msrb.mxu0 %v6250_v1 }
 0x246   : > { %v4828_v7 = vmul.f32 -1.442695, %v1135_v4  ;;  %v4829_v8 = vmul.f32 -1.442695, %v1136_v5  ;;  %8476 = vst [vmem:[#allocation41_spill] sm:$0xff] %v6250_v1  ;;  %1564 = vmatpush.msrb.mxu1 %v6254_v3  ;;  %v6258_v4 = vld [vmem:[#allocation14 + $0x1a0] sm:$0xff] }
 0x247   : > { %8477 = vst [vmem:[#allocation42_spill] sm:$0xff] %v6254_v3  ;;  %v6260_v5 = vld [vmem:[#allocation14 + $0x1a8] sm:$0xff] }
 0x248   : > { %5021 = vpow2.f32 %v4828_v7  ;;  %v6262_v7 = vld [vmem:[#allocation14 + $0x1b0] sm:$0xff]  ;;  %1525 = vmatpush.msrb.mxu3 %v6260_v5 }
 0x249   : > { %v5020_v9 = vpop.eup %5019  ;;  %5023 = vpow2.f32 %v4829_v8  ;;  %v6266_v8 = vld [vmem:[#allocation14 + $0x1b8] sm:$0xff]  ;;  %1545 = vmatpush.msrb.mxu0 %v6262_v7 }
 0x24a   : > { %v1150_v11 = vadd.f32 1.0, %v5020_v9  ;;  %1565 = vmatpush.msrb.mxu1 %v6266_v8  ;;  %v6270_v9 = vld [vmem:[#allocation14 + $0x180] sm:$0xff] }
 0x24c   : > { %5025 = vrcp.f32 %v1150_v11  ;;  %v1192_v47 = vand.u32 2147483648, %v1150_v11  ;;  %vm1186_vm5 = vweird.f32 %v1150_v11  ;;  %v1190_v48 = vand.u32 2147483647, %v1150_v11 }
 0x24e   : > { %v5022_v13 = vpop.eup %5021  ;;  %v1193_v53 = vor.u32 1.1754944e-38, %v1192_v47  ;;  %vm1191_vm7 = vcmp.eq.f32.partialorder %v1190_v48, 8.507059e+37  ;;  %v6356_v47 = vld [vmem:[#allocation14 + $0xd8] sm:$0xff] }
 0x24f   : > { %v5024_v15 = vpop.eup %5023  ;;  %v1148_v16 = vadd.f32 1.0, %v5022_v13  ;;  %v6274_v13 = vld [vmem:[#allocation14 + $0x190] sm:$0xff] }
 0x250   : > { %v1149_v17 = vadd.f32 1.0, %v5024_v15  ;;  %8478 = vst [vmem:[#allocation43_spill] sm:$0xff] %v6274_v13  ;;  %v6278_v15 = vld [vmem:[#allocation14 + $0x198] sm:$0xff]  ;;  %1546 = vmatpush.msrb.mxu0 %v6274_v13 }
 0x251   : > { %5027 = vrcp.f32 %v1148_v16  ;;  %v1162_v32 = vand.u32 2147483648, %v1148_v16  ;;  %v1160_v36 = vand.u32 2147483647, %v1148_v16  ;;  %vm1156_vm14 = vweird.f32 %v1148_v16  ;;  %8479 = vst [vmem:[#allocation44_spill] sm:$0xff] %v6278_v15  ;;  %1566 = vmatpush.msrb.mxu1 %v6278_v15 }
 0x252   : > { %5029 = vrcp.f32 %v1149_v17  ;;  %v5026_v23 = vpop.eup %5025  ;;  %v1177_v37 = vand.u32 2147483648, %v1149_v17  ;;  %v1175_v39 = vand.u32 2147483647, %v1149_v17  ;;  %vm1171_vm0 = vweird.f32 %v1149_v17  ;;  %1547 = vmatpush.msrb.mxu0 %v6286_v19 }
 0x253   : > { %v1182_v29 = vmul.f32 %v5026_v23, %v1150_v11  ;;  %5031 = vtanh.f32 %v1138_v25  ;;  %v1163_v44 = vor.u32 1.1754944e-38, %v1162_v32  ;;  %vm1161_vm1 = vcmp.eq.f32.partialorder %v1160_v36, 8.507059e+37  ;;  %v6272_v11 = vld [vmem:[#allocation14 + $0x188] sm:$0xff]  ;;  %1567 = vmatpush.msrb.mxu1 %v6291_v21  ;;  %v6299_v25 = vld [vmem:[#allocation14 + $0x150] sm:$0xff]  ;;  %v6316_v32 = vld [vmem:[#allocation14 + $0x138] sm:$0xff] }
 0x254   : > { %v1178_v58 = vor.u32 1.1754944e-38, %v1177_v37  ;;  %vm1176_vm3 = vcmp.eq.f32.partialorder %v1175_v39, 8.507059e+37  ;;  %vm1187_vm4 = vweird.f32 %v5026_v23  ;;  %1526 = vmatpush.msrb.mxu3 %v6272_v11  ;;  %1548 = vmatpush.msrb.mxu0 %v6299_v25  ;;  %8484 = vst [vmem:[#allocation49_spill] sm:$0xff] %v6316_v32  ;;  %v6322_v36 = vld [vmem:[#allocation14 + $0x108] sm:$0xff]  ;;  %v6324_v37 = vld [vmem:[#allocation14 + $0x110] sm:$0xff] }
 0x255   : > { %v1183_v40 = vsub.f32 1.0, %v1182_v29  ;;  %vm1188_vm6 = vmor %vm1186_vm5, %vm1187_vm4  ;;  %v6311_v29 = vld [vmem:[#allocation14 + $0x130] sm:$0xff] }
 0x256   : > { %1549 = vmatpush.msrb.mxu0 %v6311_v29  ;;  %v1203_v39 = vld [vmem:[%s5827_s30 + $0x40] sm:$0xff] }
 0x257   : > { %v5028_v24 = vpop.eup %5027  ;;  %v1184_v10 = vmul.f32 %v5026_v23, %v1183_v40  ;;  %v1204_v40 = vld [vmem:[%s5827_s30 + $0x48] sm:$0xff] }
 0x258   : > { %v5030_v42 = vpop.eup %5029  ;;  %v1152_v27 = vmul.f32 %v5028_v24, %v1148_v16  ;;  %vm1157_vm12 = vweird.f32 %v5028_v24  ;;  %v6282_v16 = vld [vmem:[#allocation14 + $0x160] sm:$0xff]  ;;  %1550 = vmatpush.msrb.mxu0 %v6324_v37 }
 0x259   : > { %v1167_v28 = vmul.f32 %v5030_v42, %v1149_v17  ;;  %vm1172_vm13 = vweird.f32 %v5030_v42  ;;  %vm1158_vm15 = vmor %vm1156_vm14, %vm1157_vm12  ;;  %v5032_v62 = vpop.eup %5031  ;;  %v1185_v45 = vadd.f32 %v5026_v23, %v1184_v10  ;;  %8480 = vst [vmem:[#allocation45_spill] sm:$0xff] %v6282_v16  ;;  %v6284_v17 = vld [vmem:[#allocation14 + $0x168] sm:$0xff]  ;;  %v6348_v10 = vld [vmem:[#allocation14 + $0xc0] sm:$0xff] }
 0x25a   : > { %v1153_v31 = vsub.f32 1.0, %v1152_v27  ;;  %vm1173_vm2 = vmor %vm1171_vm0, %vm1172_vm13  ;;  %8481 = vst [vmem:[#allocation46_spill] sm:$0xff] %v6284_v17  ;;  %1527 = vmatpush.msrb.mxu3 %v6284_v17  ;;  %v6307_v27 = vld [vmem:[#allocation14 + $0x120] sm:$0xff] }
 0x25b   : > { %v1168_v33 = vsub.f32 1.0, %v1167_v28  ;;  %v1189_v51 = vsel %vm1188_vm6, %v5026_v23, %v1185_v45  ;;  %v6295_v23 = vld [vmem:[#allocation14 + $0x140] sm:$0xff]  ;;  %v6309_v28 = vld [vmem:[#allocation14 + $0x128] sm:$0xff] }
 0x25c   : > { %v1154_v35 = vmul.f32 %v5028_v24, %v1153_v31  ;;  %v1194_v56 = vsel %vm1191_vm7, %v1193_v53, %v1189_v51  ;;  %v1213_v31 = vadd.f32 %v1205_v20, %v6189_v30  ;;  %v6360_v53 = vld [vmem:[#allocation14 + $0xa0] sm:$0xff]  ;;  %v6368_v20 = vld [vmem:[#allocation14 + $0xb8] sm:$0xff] }
 0x25d   : > { %v1169_v38 = vmul.f32 %v5030_v42, %v1168_v33  ;;  %v6418_v30 = vld [vmem:[#allocation14 + $0x38] sm:$0xff] }
 0x25e   : > { %v1155_v43 = vadd.f32 %v5028_v24, %v1154_v35  ;;  %v6320_v35 = vld [vmem:[#allocation14 + $0x100] sm:$0xff] }
 0x25f   : > { %v1170_v46 = vadd.f32 %v5030_v42, %v1169_v38 }
 0x260   : > { %v1159_v26 = vsel %vm1158_vm15, %v5028_v24, %v1155_v43  ;;  %v6297_v24 = vld [vmem:[#allocation14 + $0x148] sm:$0xff]  ;;  %v6330_v43 = vld [vmem:[#allocation14 + $0x118] sm:$0xff] }
 0x261   : > { %v1164_v2 = vsel %vm1161_vm1, %v1163_v44, %v1159_v26  ;;  %v1174_v6 = vsel %vm1173_vm2, %v5030_v42, %v1170_v46  ;;  %8482 = vst [vmem:[#allocation47_spill] sm:$0xff] %v6297_v24  ;;  %1528 = vmatpush.msrb.mxu3 %v6297_v24  ;;  %v6303_v42 = vld [vmem:[#allocation14 + $0x158] sm:$0xff]  ;;  %v6334_v44 = vld [vmem:[#allocation14 + $0xe0] sm:$0xff]  ;;  %v6336_v46 = vld [vmem:[#allocation14 + $0xe8] sm:$0xff] }
 0x262   : > { %v1198_v14 = vmul.f32 %v5032_v62, %v1164_v2  ;;  %v1179_v22 = vsel %vm1176_vm3, %v1178_v58, %v1174_v6  ;;  %8483 = vst [vmem:[#allocation48_spill] sm:$0xff] %v6303_v42  ;;  %1568 = vmatpush.msrb.mxu1 %v6303_v42  ;;  %v6338_v26 = vld [vmem:[#allocation14 + $0xf0] sm:$0xff]  ;;  %v6342_v62 = vld [vmem:[#allocation14 + $0xf8] sm:$0xff]  ;;  %v1211_v2 = vadd.f32 %v1203_v39, %v6193_v49  ;;  %v6374_v39 = vld [vmem:[#allocation14 + $0x88] sm:$0xff] }
 0x263   : > { %v1197_v34 = vmul.f32 %v1179_v22, %v6207_v18  ;;  %v6234_v18 = vld [vmem:[#allocation14 + $0x1e0] sm:$0xff]  ;;  %1529 = vmatpush.msrb.mxu3 %v6309_v28  ;;  %v1212_v6 = vadd.f32 %v1204_v40, %v6195_v50  ;;  %1551 = vmatpush.msrb.mxu0 %v6338_v26  ;;  %v6352_v22 = vld [vmem:[#allocation14 + $0xd0] sm:$0xff]  ;;  %v6412_v50 = vld [vmem:[#allocation14 + $0x28] sm:$0xff] }
 0x264   : > { %8472 = vst [vmem:[#allocation37_spill] sm:$0xff] %v6234_v18  ;;  %1503 = vmatpush.msrb.mxu2 %v6234_v18  ;;  %1569 = vmatpush.msrb.mxu1 %v6316_v32  ;;  %v6378_v40 = vld [vmem:[#allocation14 + $0x90] sm:$0xff] }
 0x265   : > { %v6225_v41 = vadd.f32 %v1198_v14, %v1197_v34  ;;  %1530 = vmatpush.msrb.mxu3 %v6322_v36  ;;  %v6350_v14 = vld [vmem:[#allocation14 + $0xc8] sm:$0xff]  ;;  %1552 = vmatpush.msrb.mxu0 %v6352_v22  ;;  %8490 = vst [vmem:[#allocation55_spill] sm:$0xff] %v6412_v50  ;;  %v6414_v49 = vld [vmem:[#allocation14 + $0x30] sm:$0xff] }
 0x266   : > { %1504 = vmatpush.msrb.mxu2 %v6246_v63  ;;  %1570 = vmatpush.msrb.mxu1 %v6330_v43  ;;  %8491 = vst [vmem:[#allocation56_spill] sm:$0xff] %v6414_v49 }
 0x267   : > { %5033 = vtanh.f32 %v6225_v41  ;;  %1531 = vmatpush.msrb.mxu3 %v6336_v46 }
 0x268   : > { %1505 = vmatpush.msrb.mxu2 %v6258_v4  ;;  %1571 = vmatpush.msrb.mxu1 %v6342_v62 }
 0x269   : > { %1532 = vmatpush.msrb.mxu3 %v6350_v14 }
 0x26a   : > { %1506 = vmatpush.msrb.mxu2 %v6270_v9  ;;  %1572 = vmatpush.msrb.mxu1 %v6356_v47 }
 0x26c   : > { %1507 = vmatpush.msrb.mxu2 %v6282_v16  ;;  %1573 = vmatpush.msrb.mxu1 %v6368_v20 }
 0x26d   : > { %v5034_v54 = vpop.eup %5033 }
 0x26e   : > { %v6228_v57 = vmul.f32 %v5034_v54, %v1194_v56  ;;  %1508 = vmatpush.msrb.mxu2 %v6295_v23  ;;  %v6362_v54 = vld [vmem:[#allocation14 + $0xa8] sm:$0xff]  ;;  %v6364_v56 = vld [vmem:[#allocation14 + $0xb0] sm:$0xff] }
 0x26f   : > { %1533 = vmatpush.msrb.mxu3 %v6362_v54  ;;  %1553 = vmatpush.msrb.mxu0 %v6364_v56 }
 0x270   : > { %8471 = vst [vmem:[#allocation36_spill] sm:$0xff] %v6228_v57  ;;  %1295 = vmatmul.f32.vlgmr.msra.gmra.mxu2 %v6228_v57  ;;  %1315 = vmatmul.f32.vlgmr.msra.gmra.mxu3 %v6228_v57 }
 0x271   : > { %1335 = vmatmul.f32.vlgmr.msra.gmra.mxu0 %v6228_v57  ;;  %1355 = vmatmul.f32.vlgmr.msra.gmra.mxu1 %v6228_v57 }
 0x272   : > { %1509 = vmatpush.msrb.mxu2 %v6307_v27  ;;  %1534 = vmatpush.msrb.mxu3 %v6374_v39 }
 0x273   : > { %1554 = vmatpush.msrb.mxu0 %v6378_v40 }
 0x274   : > { %1510 = vmatpush.msrb.mxu2 %v6320_v35 }
 0x276   : > { %1511 = vmatpush.msrb.mxu2 %v6334_v44 }
 0x278   : > { %1512 = vmatpush.msrb.mxu2 %v6348_v10 }
 0x27a   : > { %1513 = vmatpush.msrb.mxu2 %v6360_v53 }
 0x2ee   : > { %v1336_v33 = vpop.f32.mrf.mxu0 }
 0x2ef   : > { %v1361_v38 = vadd.f32 %v1336_v33, %v1213_v31 }
 0x2f1   : > { %v4833_v58 = vmul.f32 -1.442695, %v1361_v38  ;;  %v6372_v38 = vld [vmem:[#allocation14 + $0x80] sm:$0xff] }
 0x2f2   : > { %1514 = vmatpush.msrb.mxu2 %v6372_v38 }
 0x2f3   : > { %5035 = vpow2.f32 %v4833_v58  ;;  %v1296_v34 = vpop.f32.mrf.mxu2  ;;  %v1316_v45 = vpop.f32.mrf.mxu3  ;;  %v6380_v58 = vld [vmem:[#allocation14 + $0x98] sm:$0xff] }
 0x2f4   : > { %v1359_v48 = vadd.f32 %v1296_v34, %v1211_v2  ;;  %v1360_v51 = vadd.f32 %v1316_v45, %v1212_v6  ;;  %1574 = vmatpush.msrb.mxu1 %v6380_v58  ;;  %v6384_v2 = vld [vmem:[#allocation14 + $0x60] sm:$0xff]  ;;  %v6386_v6 = vld [vmem:[#allocation14 + $0x68] sm:$0xff]  ;;  %v6388_v34 = vld [vmem:[#allocation14 + $0x70] sm:$0xff] }
 0x2f5   : > { %1515 = vmatpush.msrb.mxu2 %v6384_v2  ;;  %1535 = vmatpush.msrb.mxu3 %v6386_v6 }
 0x2f6   : > { %v4831_v31 = vmul.f32 -1.442695, %v1359_v48  ;;  %v4832_v33 = vmul.f32 -1.442695, %v1360_v51  ;;  %v6392_v48 = vld [vmem:[#allocation14 + $0x78] sm:$0xff]  ;;  %1555 = vmatpush.msrb.mxu0 %v6388_v34  ;;  %v6396_v51 = vld [vmem:[#allocation14 + $0x40] sm:$0xff] }
 0x2f7   : > { %8485 = vst [vmem:[#allocation50_spill] sm:$0xff] %v6392_v48  ;;  %1575 = vmatpush.msrb.mxu1 %v6392_v48  ;;  %1516 = vmatpush.msrb.mxu2 %v6396_v51 }
 0x2f8   : > { %5037 = vpow2.f32 %v4831_v31  ;;  %8486 = vst [vmem:[#allocation51_spill] sm:$0xff] %v6396_v51  ;;  %v6398_v31 = vld [vmem:[#allocation14 + $0x48] sm:$0xff]  ;;  %1556 = vmatpush.msrb.mxu0 %v6400_v55  ;;  %v6426_v55 = vld [vmem:[#allocation14 + $0x10] sm:$0xff] }
 0x2f9   : > { %v5036_v45 = vpop.eup %5035  ;;  %5039 = vpow2.f32 %v4832_v33  ;;  %8487 = vst [vmem:[#allocation52_spill] sm:$0xff] %v6398_v31  ;;  %1536 = vmatpush.msrb.mxu3 %v6398_v31  ;;  %v6404_v33 = vld [vmem:[#allocation14 + $0x58] sm:$0xff]  ;;  %1517 = vmatpush.msrb.mxu2 %v6410_v52 }
 0x2fa   : > { %8489 = vst [vmem:[#allocation54_spill] sm:$0xff] %v6404_v33  ;;  %v6406_v57 = vadd.f32 1.0, %v5036_v45  ;;  %1576 = vmatpush.msrb.mxu1 %v6404_v33  ;;  %1557 = vmatpush.msrb.mxu0 %v6414_v49  ;;  %v6422_v45 = vld [vmem:[#allocation14] sm:$0xff]  ;;  %v6424_v33 = vld [vmem:[#allocation14 + $0x8] sm:$0xff] }
 0x2fb   : > { %1537 = vmatpush.msrb.mxu3 %v6412_v50  ;;  %1518 = vmatpush.msrb.mxu2 %v6422_v45  ;;  %v6432_v50 = vld [vmem:[#allocation14 + $0x18] sm:$0xff] }
 0x2fc   : > { %1577 = vmatpush.msrb.mxu1 %v6418_v30  ;;  %5041 = vrcp.f32 %v6406_v57  ;;  %1558 = vmatpush.msrb.mxu0 %v6426_v55  ;;  %vm1410_vm1 = vweird.f32 %v6406_v57 }
 0x2fd   : > { %1538 = vmatpush.msrb.mxu3 %v6424_v33  ;;  %1727 = vmatpush.msra.mxu2 %v6234_v18 }
 0x2fe   : > { %v5038_v31 = vpop.eup %5037  ;;  %1578 = vmatpush.msrb.mxu1 %v6432_v50  ;;  %1767 = vmatpush.msra.mxu0 %v6238_v60 }
 0x2ff   : > { %v5040_v51 = vpop.eup %5039  ;;  %v6428_v48 = vadd.f32 1.0, %v5038_v31  ;;  %1747 = vmatpush.msra.mxu3 %v6236_v59  ;;  %v1206_v31 = vld [vmem:[%s5827_s30 + $0x58] sm:$0xff]  ;;  %1728 = vmatpush.msra.mxu2 %v6246_v63 }
 0x300   : > { %v6435_v49 = vadd.f32 1.0, %v5040_v51  ;;  %1787 = vmatpush.msra.mxu1 %v6242_v61  ;;  %v1356_v51 = vpop.f32.mrf.mxu1  ;;  %1768 = vmatpush.msra.mxu0 %v6250_v1  ;;  %v1214_v18 = vadd.f32 %v1206_v31, %v6203_v12 }
 0x301   : > { %5043 = vrcp.f32 %v6428_v48  ;;  %1748 = vmatpush.msra.mxu3 %v6248_v0  ;;  %1729 = vmatpush.msra.mxu2 %v6258_v4  ;;  %v1386_v12 = vand.u32 2147483648, %v6428_v48  ;;  %vm1380_vm10 = vweird.f32 %v6428_v48 }
 0x302   : > { %5045 = vrcp.f32 %v6435_v49  ;;  %1788 = vmatpush.msra.mxu1 %v6254_v3  ;;  %v6453_v59 = vpop.eup %5041  ;;  %1769 = vmatpush.msra.mxu0 %v6262_v7  ;;  %v1362_v61 = vadd.f32 %v1356_v51, %v1214_v18  ;;  %vm1395_vm12 = vweird.f32 %v6435_v49 }
 0x303   : > { %1749 = vmatpush.msra.mxu3 %v6260_v5  ;;  %1730 = vmatpush.msra.mxu2 %v6270_v9  ;;  %v1406_v18 = vmul.f32 %v6453_v59, %v6406_v57  ;;  %vm1411_vm0 = vweird.f32 %v6453_v59 }
 0x304   : > { %1789 = vmatpush.msra.mxu1 %v6266_v8  ;;  %1770 = vmatpush.msra.mxu0 %v6274_v13  ;;  %5047 = vtanh.f32 %v1362_v61  ;;  %v1399_v61 = vand.u32 2147483647, %v6435_v49  ;;  %vm1412_vm2 = vmor %vm1410_vm1, %vm1411_vm0 }
 0x305   : > { %1750 = vmatpush.msra.mxu3 %v6272_v11  ;;  %1731 = vmatpush.msra.mxu2 %v6282_v16  ;;  %v1401_v16 = vand.u32 2147483648, %v6435_v49 }
 0x306   : > { %1790 = vmatpush.msra.mxu1 %v6278_v15  ;;  %1771 = vmatpush.msra.mxu0 %v6286_v19  ;;  %vm1400_vm15 = vcmp.eq.f32.partialorder %v1399_v61, 8.507059e+37  ;;  %v8493_v61 = vld [vmem:[#allocation51_spill] sm:$0xff] }
 0x307   : > { %v5044_v63 = vpop.eup %5043  ;;  %1751 = vmatpush.msra.mxu3 %v6284_v17  ;;  %1732 = vmatpush.msra.mxu2 %v6295_v23  ;;  %v1384_v17 = vand.u32 2147483647, %v6428_v48 }
 0x308   : > { %v5046_v1 = vpop.eup %5045  ;;  %v1376_v3 = vmul.f32 %v5044_v63, %v6428_v48  ;;  %1791 = vmatpush.msra.mxu1 %v6291_v21  ;;  %vm1381_vm8 = vweird.f32 %v5044_v63  ;;  %1772 = vmatpush.msra.mxu0 %v6299_v25 }
 0x309   : > { %v1391_v31 = vmul.f32 %v5046_v1, %v6435_v49  ;;  %1752 = vmatpush.msra.mxu3 %v6297_v24  ;;  %vm1396_vm9 = vweird.f32 %v5046_v1  ;;  %1733 = vmatpush.msra.mxu2 %v6307_v27  ;;  %vm1382_vm11 = vmor %vm1380_vm10, %vm1381_vm8  ;;  %vm1385_vm13 = vcmp.eq.f32.partialorder %v1384_v17, 8.507059e+37 }
 0x30a   : > { %v1377_v51 = vsub.f32 1.0, %v1376_v3  ;;  %1792 = vmatpush.msra.mxu1 %v6303_v42  ;;  %1773 = vmatpush.msra.mxu0 %v6311_v29  ;;  %vm1397_vm14 = vmor %vm1395_vm12, %vm1396_vm9  ;;  %v5048_v48 = vpop.eup %5047 }
 0x30b   : > { %v1392_v13 = vsub.f32 1.0, %v1391_v31  ;;  %1753 = vmatpush.msra.mxu3 %v6309_v28  ;;  %v1407_v31 = vsub.f32 1.0, %v1406_v18  ;;  %1734 = vmatpush.msra.mxu2 %v6320_v35 }
 0x30c   : > { %v1378_v15 = vmul.f32 %v5044_v63, %v1377_v51  ;;  %1793 = vmatpush.msra.mxu1 %v6316_v32  ;;  %v1387_v51 = vor.u32 1.1754944e-38, %v1386_v12  ;;  %1774 = vmatpush.msra.mxu0 %v6324_v37 }
 0x30d   : > { %v1393_v3 = vmul.f32 %v5046_v1, %v1392_v13  ;;  %1754 = vmatpush.msra.mxu3 %v6322_v36  ;;  %1735 = vmatpush.msra.mxu2 %v6334_v44  ;;  %v1408_v49 = vmul.f32 %v6453_v59, %v1407_v31  ;;  %v8494_v31 = vld [vmem:[#allocation52_spill] sm:$0xff] }
 0x30e   : > { %v1379_v24 = vadd.f32 %v5044_v63, %v1378_v15  ;;  %v1402_v15 = vor.u32 1.1754944e-38, %v1401_v16  ;;  %1794 = vmatpush.msra.mxu1 %v6330_v43  ;;  %1775 = vmatpush.msra.mxu0 %v6338_v26 }
 0x30f   : > { %v1394_v42 = vadd.f32 %v5046_v1, %v1393_v3  ;;  %1755 = vmatpush.msra.mxu3 %v6336_v46  ;;  %1736 = vmatpush.msra.mxu2 %v6348_v10  ;;  %v1409_v17 = vadd.f32 %v6453_v59, %v1408_v49  ;;  %v8500_v49 = vld [vmem:[#allocation37_spill] sm:$0xff] }
 0x310   : > { %v1383_v13 = vsel %vm1382_vm11, %v5044_v63, %v1379_v24  ;;  %1795 = vmatpush.msra.mxu1 %v6342_v62  ;;  %1776 = vmatpush.msra.mxu0 %v6352_v22  ;;  %v1414_v24 = vand.u32 2147483647, %v6406_v57 }
 0x311   : > { %v1388_v18 = vsel %vm1385_vm13, %v1387_v51, %v1383_v13  ;;  %v1398_v32 = vsel %vm1397_vm14, %v5046_v1, %v1394_v42  ;;  %1756 = vmatpush.msra.mxu3 %v6350_v14  ;;  %1737 = vmatpush.msra.mxu2 %v6360_v53  ;;  %v1413_v42 = vsel %vm1412_vm2, %v6453_v59, %v1409_v17  ;;  %v8496_v51 = vld [vmem:[#allocation54_spill] sm:$0xff]  ;;  %v8504_v17 = vld [vmem:[#allocation41_spill] sm:$0xff] }
 0x312   : > { %v1422_v12 = vmul.f32 %v5048_v48, %v1388_v18  ;;  %v1403_v63 = vsel %vm1400_vm15, %v1402_v15, %v1398_v32  ;;  %1796 = vmatpush.msra.mxu1 %v6356_v47  ;;  %1777 = vmatpush.msra.mxu0 %v6364_v56  ;;  %v8492_v32 = vld [vmem:[#allocation50_spill] sm:$0xff]  ;;  %vm1415_vm3 = vcmp.eq.f32.partialorder %v1414_v24, 8.507059e+37  ;;  %v8497_v48 = vld [vmem:[#allocation55_spill] sm:$0xff]  ;;  %v8499_v18 = vld [vmem:[#allocation56_spill] sm:$0xff] }
 0x313   : > { %v1421_v16 = vmul.f32 %v1403_v63, %v6225_v41  ;;  %1757 = vmatpush.msra.mxu3 %v6362_v54  ;;  %v1416_v41 = vand.u32 2147483648, %v6406_v57  ;;  %1738 = vmatpush.msra.mxu2 %v6372_v38  ;;  %v8495_v57 = vld [vmem:[#allocation53_spill] sm:$0xff]  ;;  %v8502_v63 = vld [vmem:[#allocation39_spill] sm:$0xff]  ;;  %v8507_v24 = vld [vmem:[#allocation44_spill] sm:$0xff] }
 0x314   : > { %1797 = vmatpush.msra.mxu1 %v6368_v20  ;;  %1778 = vmatpush.msra.mxu0 %v6378_v40 }
 0x315   : > { %v6499_v1 = vadd.f32 %v1422_v12, %v1421_v16  ;;  %1758 = vmatpush.msra.mxu3 %v6374_v39  ;;  %1739 = vmatpush.msra.mxu2 %v6384_v2  ;;  %v1417_v3 = vor.u32 1.1754944e-38, %v1416_v41  ;;  %v8501_v12 = vld [vmem:[#allocation38_spill] sm:$0xff]  ;;  %v8503_v16 = vld [vmem:[#allocation40_spill] sm:$0xff] }
 0x316   : > { %1798 = vmatpush.msra.mxu1 %v6380_v58  ;;  %1779 = vmatpush.msra.mxu0 %v6388_v34  ;;  %v8505_v41 = vld [vmem:[#allocation42_spill] sm:$0xff] }
 0x317   : > { %5049 = vtanh.f32 %v6499_v1  ;;  %1759 = vmatpush.msra.mxu3 %v6386_v6  ;;  %1740 = vmatpush.msra.mxu2 %v8493_v61  ;;  %v1418_v15 = vsel %vm1415_vm3, %v1417_v3, %v1413_v42  ;;  %v8509_v42 = vld [vmem:[#allocation46_spill] sm:$0xff] }
 0x318   : > { %1799 = vmatpush.msra.mxu1 %v8492_v32  ;;  %1780 = vmatpush.msra.mxu0 %v8495_v57 }
 0x319   : > { %1760 = vmatpush.msra.mxu3 %v8494_v31  ;;  %1741 = vmatpush.msra.mxu2 %v6410_v52 }
 0x31a   : > { %1800 = vmatpush.msra.mxu1 %v8496_v51  ;;  %1781 = vmatpush.msra.mxu0 %v8499_v18 }
 0x31b   : > { %1761 = vmatpush.msra.mxu3 %v8497_v48  ;;  %1742 = vmatpush.msra.mxu2 %v6422_v45 }
 0x31c   : > { %1801 = vmatpush.msra.mxu1 %v6418_v30  ;;  %1782 = vmatpush.msra.mxu0 %v6426_v55 }
 0x31d   : > { %v5050_v13 = vpop.eup %5049  ;;  %1762 = vmatpush.msra.mxu3 %v6424_v33 }
 0x31e   : > { %v6526_v59 = vmul.f32 %v5050_v13, %v1418_v15  ;;  %1802 = vmatpush.msra.mxu1 %v6432_v50 }
 0x320   : > { %8498 = vst [vmem:[#allocation50_spill] sm:$0xff] %v6526_v59  ;;  %1519 = vmatmul.f32.vlgmr.msrb.gmra.mxu2 %v6526_v59  ;;  %1539 = vmatmul.f32.vlgmr.msrb.gmra.mxu3 %v6526_v59 }
 0x321   : > { %1559 = vmatmul.f32.vlgmr.msrb.gmra.mxu0 %v6526_v59  ;;  %1579 = vmatmul.f32.vlgmr.msrb.gmra.mxu1 %v6526_v59  ;;  %v6814_v59 = vld [vmem:[#allocation14 + $0x20] sm:$0xff] }
 0x322   : > { %1951 = vmatpush.msrb.mxu2 %v8500_v49  ;;  %1971 = vmatpush.msrb.mxu3 %v8501_v12 }
 0x323   : > { %1991 = vmatpush.msrb.mxu0 %v6238_v60  ;;  %2011 = vmatpush.msrb.mxu1 %v8502_v63  ;;  %v8506_v60 = vld [vmem:[#allocation43_spill] sm:$0xff] }
 0x324   : > { %1952 = vmatpush.msrb.mxu2 %v8503_v16  ;;  %1972 = vmatpush.msrb.mxu3 %v6248_v0  ;;  %v8508_v0 = vld [vmem:[#allocation45_spill] sm:$0xff] }
 0x325   : > { %1992 = vmatpush.msrb.mxu0 %v8504_v17  ;;  %2012 = vmatpush.msrb.mxu1 %v8505_v41 }
 0x326   : > { %1953 = vmatpush.msrb.mxu2 %v6258_v4  ;;  %1973 = vmatpush.msrb.mxu3 %v6260_v5  ;;  %v8510_v4 = vld [vmem:[#allocation47_spill] sm:$0xff]  ;;  %v8511_v5 = vld [vmem:[#allocation48_spill] sm:$0xff] }
 0x327   : > { %1993 = vmatpush.msrb.mxu0 %v6262_v7  ;;  %2013 = vmatpush.msrb.mxu1 %v6266_v8  ;;  %v8512_v7 = vld [vmem:[#allocation49_spill] sm:$0xff] }
 0x328   : > { %1954 = vmatpush.msrb.mxu2 %v6270_v9  ;;  %1974 = vmatpush.msrb.mxu3 %v6272_v11  ;;  %v1429_v8 = vld [vmem:[%s5827_s30 + $0x70] sm:$0xff]  ;;  %v8513_v9 = vld [vmem:[#allocation31_spill] sm:$0xff] }
 0x329   : > { %1994 = vmatpush.msrb.mxu0 %v8506_v60  ;;  %2014 = vmatpush.msrb.mxu1 %v8507_v24  ;;  %v1437_v11 = vadd.f32 %v1429_v8, %v8513_v9 }
 0x32a   : > { %1955 = vmatpush.msrb.mxu2 %v8508_v0  ;;  %1975 = vmatpush.msrb.mxu3 %v8509_v42 }
 0x32b   : > { %1995 = vmatpush.msrb.mxu0 %v6286_v19  ;;  %2015 = vmatpush.msrb.mxu1 %v6291_v21 }
 0x32c   : > { %1956 = vmatpush.msrb.mxu2 %v6295_v23  ;;  %1976 = vmatpush.msrb.mxu3 %v8510_v4  ;;  %v1428_v23 = vld [vmem:[%s5827_s30 + $0x68] sm:$0xff] }
 0x32d   : > { %1996 = vmatpush.msrb.mxu0 %v6299_v25  ;;  %2016 = vmatpush.msrb.mxu1 %v8511_v5 }
 0x32e   : > { %1957 = vmatpush.msrb.mxu2 %v6307_v27  ;;  %1977 = vmatpush.msrb.mxu3 %v6309_v28  ;;  %v8514_v27 = vld [vmem:[#allocation32_spill] sm:$0xff] }
 0x32f   : > { %1997 = vmatpush.msrb.mxu0 %v6311_v29  ;;  %2017 = vmatpush.msrb.mxu1 %v8512_v7  ;;  %v8515_v29 = vld [vmem:[#allocation30_spill] sm:$0xff] }
 0x330   : > { %1958 = vmatpush.msrb.mxu2 %v6320_v35  ;;  %1978 = vmatpush.msrb.mxu3 %v6322_v36 }
 0x331   : > { %1998 = vmatpush.msrb.mxu0 %v6324_v37  ;;  %2018 = vmatpush.msrb.mxu1 %v6330_v43 }
 0x332   : > { %1959 = vmatpush.msrb.mxu2 %v6334_v44  ;;  %1979 = vmatpush.msrb.mxu3 %v6336_v46 }
 0x333   : > { %1999 = vmatpush.msrb.mxu0 %v6338_v26  ;;  %2019 = vmatpush.msrb.mxu1 %v6342_v62 }
 0x334   : > { %1960 = vmatpush.msrb.mxu2 %v6348_v10  ;;  %1980 = vmatpush.msrb.mxu3 %v6350_v14 }
 0x335   : > { %2000 = vmatpush.msrb.mxu0 %v6352_v22  ;;  %2020 = vmatpush.msrb.mxu1 %v6356_v47  ;;  %v1430_v22 = vld [vmem:[%s5827_s30 + $0x78] sm:$0xff] }
 0x336   : > { %1961 = vmatpush.msrb.mxu2 %v6360_v53  ;;  %1981 = vmatpush.msrb.mxu3 %v6362_v54  ;;  %v8516_v53 = vld [vmem:[#allocation34_spill] sm:$0xff] }
 0x337   : > { %2001 = vmatpush.msrb.mxu0 %v6364_v56  ;;  %2021 = vmatpush.msrb.mxu1 %v6368_v20  ;;  %v1438_v54 = vadd.f32 %v1430_v22, %v8516_v53 }
 0x338   : > { %1962 = vmatpush.msrb.mxu2 %v6372_v38  ;;  %1982 = vmatpush.msrb.mxu3 %v6374_v39 }
 0x339   : > { %2002 = vmatpush.msrb.mxu0 %v6378_v40  ;;  %2022 = vmatpush.msrb.mxu1 %v6380_v58 }
 0x33a   : > { %1963 = vmatpush.msrb.mxu2 %v6384_v2  ;;  %1983 = vmatpush.msrb.mxu3 %v6386_v6 }
 0x33b   : > { %2003 = vmatpush.msrb.mxu0 %v6388_v34  ;;  %2023 = vmatpush.msrb.mxu1 %v8492_v32 }
 0x33c   : > { %1964 = vmatpush.msrb.mxu2 %v8493_v61  ;;  %1984 = vmatpush.msrb.mxu3 %v8494_v31 }
 0x33d   : > { %2004 = vmatpush.msrb.mxu0 %v8495_v57  ;;  %2024 = vmatpush.msrb.mxu1 %v8496_v51 }
 0x33e   : > { %1965 = vmatpush.msrb.mxu2 %v6410_v52  ;;  %1985 = vmatpush.msrb.mxu3 %v8497_v48  ;;  %v1427_v52 = vld [vmem:[%s5827_s30 + $0x60] sm:$0xff] }
 0x33f   : > { %2005 = vmatpush.msrb.mxu0 %v8499_v18  ;;  %2025 = vmatpush.msrb.mxu1 %v6418_v30  ;;  %v1435_v28 = vadd.f32 %v1427_v52, %v8514_v27  ;;  %v1436_v30 = vadd.f32 %v1428_v23, %v8515_v29 }
 0x340   : > { %1966 = vmatpush.msrb.mxu2 %v6422_v45  ;;  %1986 = vmatpush.msrb.mxu3 %v6424_v33 }
 0x341   : > { %2006 = vmatpush.msrb.mxu0 %v6426_v55  ;;  %2026 = vmatpush.msrb.mxu1 %v6432_v50 }
 0x39e   : > { %v1560_v19 = vpop.f32.mrf.mxu0  ;;  %v1580_v47 = vpop.f32.mrf.mxu1 }
 0x39f   : > { %v1585_v21 = vadd.f32 %v1560_v19, %v1437_v11  ;;  %v1586_v38 = vadd.f32 %v1580_v47, %v1438_v54  ;;  %v1654_v54 = vld [vmem:[%s5827_s30 + $0x98] sm:$0xff] }
 0x3a1   : > { %v4836_v25 = vmul.f32 -1.442695, %v1585_v21 }
 0x3a3   : > { %5051 = vpow2.f32 %v4836_v25  ;;  %v1520_v35 = vpop.f32.mrf.mxu2  ;;  %v1540_v36 = vpop.f32.mrf.mxu3  ;;  %v1651_v25 = vld [vmem:[%s5827_s30 + $0x80] sm:$0xff] }
 0x3a4   : > { %v1583_v37 = vadd.f32 %v1520_v35, %v1435_v28  ;;  %v1584_v55 = vadd.f32 %v1540_v36, %v1436_v30  ;;  %v1652_v28 = vld [vmem:[%s5827_s30 + $0x88] sm:$0xff]  ;;  %v1659_v35 = vadd.f32 %v1651_v25, %v8514_v27  ;;  %v6640_v25 = vld [vmem:[#allocation14 + $0x1e8] sm:$0xff] }
 0x3a5   : > { %v1660_v36 = vadd.f32 %v1652_v28, %v8515_v29  ;;  %v6642_v28 = vld [vmem:[#allocation14 + $0x1f0] sm:$0xff] }
 0x3a6   : > { %v4834_v43 = vmul.f32 -1.442695, %v1583_v37  ;;  %v4835_v50 = vmul.f32 -1.442695, %v1584_v55 }
 0x3a8   : > { %5053 = vpow2.f32 %v4834_v43 }
 0x3a9   : > { %v5052_v44 = vpop.eup %5051  ;;  %5055 = vpow2.f32 %v4835_v50 }
 0x3aa   : > { %v1598_v46 = vadd.f32 1.0, %v5052_v44 }
 0x3ac   : > { %5057 = vrcp.f32 %v1598_v46  ;;  %v1640_v42 = vand.u32 2147483648, %v1598_v46  ;;  %vm1634_vm13 = vweird.f32 %v1598_v46  ;;  %v1638_v4 = vand.u32 2147483647, %v1598_v46 }
 0x3ae   : > { %v5054_v26 = vpop.eup %5053  ;;  %v1641_v7 = vor.u32 1.1754944e-38, %v1640_v42  ;;  %vm1639_vm15 = vcmp.eq.f32.partialorder %v1638_v4, 8.507059e+37 }
 0x3af   : > { %v5056_v62 = vpop.eup %5055  ;;  %v1596_v10 = vadd.f32 1.0, %v5054_v26 }
 0x3b0   : > { %v1597_v14 = vadd.f32 1.0, %v5056_v62 }
 0x3b1   : > { %5059 = vrcp.f32 %v1596_v10  ;;  %v1610_v34 = vand.u32 2147483648, %v1596_v10  ;;  %v1608_v32 = vand.u32 2147483647, %v1596_v10  ;;  %vm1604_vm6 = vweird.f32 %v1596_v10 }
 0x3b2   : > { %5061 = vrcp.f32 %v1597_v14  ;;  %v5058_v56 = vpop.eup %5057  ;;  %v1625_v3 = vand.u32 2147483648, %v1597_v14  ;;  %v1623_v31 = vand.u32 2147483647, %v1597_v14  ;;  %vm1619_vm8 = vweird.f32 %v1597_v14 }
 0x3b3   : > { %v1630_v2 = vmul.f32 %v5058_v56, %v1598_v46  ;;  %5063 = vtanh.f32 %v1586_v38  ;;  %v1611_v13 = vor.u32 1.1754944e-38, %v1610_v34  ;;  %vm1609_vm9 = vcmp.eq.f32.partialorder %v1608_v32, 8.507059e+37 }
 0x3b4   : > { %v1626_v18 = vor.u32 1.1754944e-38, %v1625_v3  ;;  %vm1624_vm11 = vcmp.eq.f32.partialorder %v1623_v31, 8.507059e+37  ;;  %vm1635_vm12 = vweird.f32 %v5058_v56 }
 0x3b5   : > { %v1631_v57 = vsub.f32 1.0, %v1630_v2  ;;  %vm1636_vm14 = vmor %vm1634_vm13, %vm1635_vm12 }
 0x3b7   : > { %v5060_v20 = vpop.eup %5059  ;;  %v1632_v16 = vmul.f32 %v5058_v56, %v1631_v57 }
 0x3b8   : > { %v5062_v39 = vpop.eup %5061  ;;  %v1600_v40 = vmul.f32 %v5060_v20, %v1596_v10  ;;  %vm1605_vm4 = vweird.f32 %v5060_v20 }
 0x3b9   : > { %v1615_v58 = vmul.f32 %v5062_v39, %v1597_v14  ;;  %vm1620_vm5 = vweird.f32 %v5062_v39  ;;  %vm1606_vm7 = vmor %vm1604_vm6, %vm1605_vm4  ;;  %v5064_v49 = vpop.eup %5063  ;;  %v1633_v0 = vadd.f32 %v5058_v56, %v1632_v16 }
 0x3ba   : > { %v1601_v6 = vsub.f32 1.0, %v1600_v40  ;;  %vm1621_vm10 = vmor %vm1619_vm8, %vm1620_vm5 }
 0x3bb   : > { %v1616_v33 = vsub.f32 1.0, %v1615_v58  ;;  %v1637_v5 = vsel %vm1636_vm14, %v5058_v56, %v1633_v0 }
 0x3bc   : > { %v1602_v45 = vmul.f32 %v5060_v20, %v1601_v6  ;;  %v1642_v11 = vsel %vm1639_vm15, %v1641_v7, %v1637_v5 }
 0x3bd   : > { %v1617_v61 = vmul.f32 %v5062_v39, %v1616_v33 }
 0x3be   : > { %v1603_v51 = vadd.f32 %v5060_v20, %v1602_v45 }
 0x3bf   : > { %v1618_v15 = vadd.f32 %v5062_v39, %v1617_v61 }
 0x3c0   : > { %v1607_v48 = vsel %vm1606_vm7, %v5060_v20, %v1603_v51  ;;  %v1662_v20 = vadd.f32 %v1654_v54, %v8516_v53  ;;  %v6690_v54 = vld [vmem:[#allocation14 + $0x170] sm:$0xff] }
 0x3c1   : > { %v1612_v12 = vsel %vm1609_vm9, %v1611_v13, %v1607_v48  ;;  %v1622_v63 = vsel %vm1621_vm10, %v5062_v39, %v1618_v15 }
 0x3c2   : > { %v1646_v17 = vmul.f32 %v5064_v49, %v1612_v12  ;;  %v1627_v41 = vsel %vm1624_vm11, %v1626_v18, %v1622_v63 }
 0x3c3   : > { %v1645_v60 = vmul.f32 %v1627_v41, %v6499_v1  ;;  %v1653_v1 = vld [vmem:[%s5827_s30 + $0x90] sm:$0xff] }
 0x3c4   : > { %v1661_v21 = vadd.f32 %v1653_v1, %v8513_v9 }
 0x3c5   : > { %v6611_v24 = vadd.f32 %v1646_v17, %v1645_v60 }
 0x3c7   : > { %5065 = vtanh.f32 %v6611_v24 }
 0x3cd   : > { %v5066_v8 = vpop.eup %5065 }
 0x3ce   : > { %v6614_v19 = vmul.f32 %v5066_v8, %v1642_v11 }
 0x3d0   : > { %8517 = vst [vmem:[#allocation51_spill] sm:$0xff] %v6614_v19  ;;  %1743 = vmatmul.f32.vlgmr.msra.gmra.mxu2 %v6614_v19  ;;  %1763 = vmatmul.f32.vlgmr.msra.gmra.mxu3 %v6614_v19 }
 0x3d1   : > { %1783 = vmatmul.f32.vlgmr.msra.gmra.mxu0 %v6614_v19  ;;  %1803 = vmatmul.f32.vlgmr.msra.gmra.mxu1 %v6614_v19 }
 0x3d2   : > { %2195 = vmatpush.msra.mxu3 %v6640_v25  ;;  %2215 = vmatpush.msra.mxu0 %v6642_v28 }
 0x44e   : > { %v1784_v52 = vpop.f32.mrf.mxu0  ;;  %v1804_v56 = vpop.f32.mrf.mxu1 }
 0x44f   : > { %v1809_v23 = vadd.f32 %v1784_v52, %v1661_v21  ;;  %v1810_v40 = vadd.f32 %v1804_v56, %v1662_v20  ;;  %v1877_v56 = vld [vmem:[%s5827_s30 + $0xb0] sm:$0xff]  ;;  %v6695_v20 = vld [vmem:[#allocation14 + $0x178] sm:$0xff] }
 0x451   : > { %v4839_v30 = vmul.f32 -1.442695, %v1809_v23 }
 0x453   : > { %5067 = vpow2.f32 %v4839_v30  ;;  %v1744_v37 = vpop.f32.mrf.mxu2  ;;  %v1764_v55 = vpop.f32.mrf.mxu3  ;;  %v6646_v30 = vld [vmem:[#allocation14 + $0x1f8] sm:$0xff] }
 0x454   : > { %v1807_v43 = vadd.f32 %v1744_v37, %v1659_v35  ;;  %v1808_v50 = vadd.f32 %v1764_v55, %v1660_v36  ;;  %2235 = vmatpush.msra.mxu1 %v6646_v30  ;;  %v6650_v35 = vld [vmem:[#allocation14 + $0x1c0] sm:$0xff]  ;;  %v6652_v36 = vld [vmem:[#allocation14 + $0x1c8] sm:$0xff]  ;;  %v6654_v37 = vld [vmem:[#allocation14 + $0x1d0] sm:$0xff] }
 0x455   : > { %2196 = vmatpush.msra.mxu3 %v6652_v36  ;;  %v6658_v55 = vld [vmem:[#allocation14 + $0x1d8] sm:$0xff]  ;;  %2216 = vmatpush.msra.mxu0 %v6654_v37 }
 0x456   : > { %v4837_v44 = vmul.f32 -1.442695, %v1807_v43  ;;  %v4838_v46 = vmul.f32 -1.442695, %v1808_v50  ;;  %2236 = vmatpush.msra.mxu1 %v6658_v55  ;;  %v6662_v43 = vld [vmem:[#allocation14 + $0x1a0] sm:$0xff]  ;;  %v6664_v50 = vld [vmem:[#allocation14 + $0x1a8] sm:$0xff] }
 0x457   : > { %2197 = vmatpush.msra.mxu3 %v6664_v50 }
 0x458   : > { %5069 = vpow2.f32 %v4837_v44  ;;  %v6666_v44 = vld [vmem:[#allocation14 + $0x1b0] sm:$0xff] }
 0x459   : > { %v5068_v26 = vpop.eup %5067  ;;  %5071 = vpow2.f32 %v4838_v46  ;;  %v6670_v46 = vld [vmem:[#allocation14 + $0x1b8] sm:$0xff]  ;;  %2217 = vmatpush.msra.mxu0 %v6666_v44 }
 0x45a   : > { %v1822_v62 = vadd.f32 1.0, %v5068_v26  ;;  %2237 = vmatpush.msra.mxu1 %v6670_v46  ;;  %v6674_v26 = vld [vmem:[#allocation14 + $0x180] sm:$0xff] }
 0x45c   : > { %5073 = vrcp.f32 %v1822_v62  ;;  %v1864_v7 = vand.u32 2147483648, %v1822_v62  ;;  %vm1858_vm9 = vweird.f32 %v1822_v62  ;;  %v1862_v8 = vand.u32 2147483647, %v1822_v62 }
 0x45e   : > { %v5070_v10 = vpop.eup %5069  ;;  %v1865_v1 = vor.u32 1.1754944e-38, %v1864_v7  ;;  %vm1863_vm11 = vcmp.eq.f32.partialorder %v1862_v8, 8.507059e+37  ;;  %v6760_v7 = vld [vmem:[#allocation14 + $0xd8] sm:$0xff] }
 0x45f   : > { %v5072_v14 = vpop.eup %5071  ;;  %v1820_v22 = vadd.f32 1.0, %v5070_v10  ;;  %v6678_v10 = vld [vmem:[#allocation14 + $0x190] sm:$0xff] }
 0x460   : > { %v1821_v47 = vadd.f32 1.0, %v5072_v14  ;;  %v6682_v14 = vld [vmem:[#allocation14 + $0x198] sm:$0xff]  ;;  %2218 = vmatpush.msra.mxu0 %v6678_v10 }
 0x461   : > { %5075 = vrcp.f32 %v1820_v22  ;;  %v1834_v45 = vand.u32 2147483648, %v1820_v22  ;;  %v1832_v61 = vand.u32 2147483647, %v1820_v22  ;;  %vm1828_vm2 = vweird.f32 %v1820_v22  ;;  %2238 = vmatpush.msra.mxu1 %v6682_v14 }
 0x462   : > { %5077 = vrcp.f32 %v1821_v47  ;;  %v5074_v38 = vpop.eup %5073  ;;  %v1849_v31 = vand.u32 2147483648, %v1821_v47  ;;  %v1847_v51 = vand.u32 2147483647, %v1821_v47  ;;  %vm1843_vm4 = vweird.f32 %v1821_v47  ;;  %2219 = vmatpush.msra.mxu0 %v6690_v54 }
 0x463   : > { %v1854_v34 = vmul.f32 %v5074_v38, %v1822_v62  ;;  %5079 = vtanh.f32 %v1810_v40  ;;  %v1835_v48 = vor.u32 1.1754944e-38, %v1834_v45  ;;  %vm1833_vm5 = vcmp.eq.f32.partialorder %v1832_v61, 8.507059e+37  ;;  %v6676_v62 = vld [vmem:[#allocation14 + $0x188] sm:$0xff]  ;;  %2239 = vmatpush.msra.mxu1 %v6695_v20  ;;  %v6703_v40 = vld [vmem:[#allocation14 + $0x150] sm:$0xff]  ;;  %v6720_v45 = vld [vmem:[#allocation14 + $0x138] sm:$0xff] }
 0x464   : > { %v1850_v12 = vor.u32 1.1754944e-38, %v1849_v31  ;;  %vm1848_vm7 = vcmp.eq.f32.partialorder %v1847_v51, 8.507059e+37  ;;  %vm1859_vm8 = vweird.f32 %v5074_v38  ;;  %2198 = vmatpush.msra.mxu3 %v6676_v62  ;;  %2220 = vmatpush.msra.mxu0 %v6703_v40  ;;  %v6726_v61 = vld [vmem:[#allocation14 + $0x108] sm:$0xff]  ;;  %v6728_v31 = vld [vmem:[#allocation14 + $0x110] sm:$0xff] }
 0x465   : > { %v1855_v13 = vsub.f32 1.0, %v1854_v34  ;;  %vm1860_vm10 = vmor %vm1858_vm9, %vm1859_vm8  ;;  %v6715_v34 = vld [vmem:[#allocation14 + $0x130] sm:$0xff] }
 0x466   : > { %2221 = vmatpush.msra.mxu0 %v6715_v34  ;;  %v1875_v51 = vld [vmem:[%s5827_s30 + $0xa0] sm:$0xff] }
 0x467   : > { %v5076_v39 = vpop.eup %5075  ;;  %v1856_v41 = vmul.f32 %v5074_v38, %v1855_v13  ;;  %v1876_v13 = vld [vmem:[%s5827_s30 + $0xa8] sm:$0xff] }
 0x468   : > { %v5078_v58 = vpop.eup %5077  ;;  %v1824_v2 = vmul.f32 %v5076_v39, %v1820_v22  ;;  %vm1829_vm0 = vweird.f32 %v5076_v39  ;;  %v6686_v22 = vld [vmem:[#allocation14 + $0x160] sm:$0xff]  ;;  %2222 = vmatpush.msra.mxu0 %v6728_v31 }
 0x469   : > { %v1839_v6 = vmul.f32 %v5078_v58, %v1821_v47  ;;  %vm1844_vm1 = vweird.f32 %v5078_v58  ;;  %vm1830_vm3 = vmor %vm1828_vm2, %vm1829_vm0  ;;  %v5080_v63 = vpop.eup %5079  ;;  %v1857_v5 = vadd.f32 %v5074_v38, %v1856_v41  ;;  %v6688_v47 = vld [vmem:[#allocation14 + $0x168] sm:$0xff]  ;;  %v6752_v41 = vld [vmem:[#allocation14 + $0xc0] sm:$0xff] }
 0x46a   : > { %v1825_v33 = vsub.f32 1.0, %v1824_v2  ;;  %vm1845_vm6 = vmor %vm1843_vm4, %vm1844_vm1  ;;  %2199 = vmatpush.msra.mxu3 %v6688_v47  ;;  %v6711_v2 = vld [vmem:[#allocation14 + $0x120] sm:$0xff] }
 0x46b   : > { %v1840_v32 = vsub.f32 1.0, %v1839_v6  ;;  %v1861_v11 = vsel %vm1860_vm10, %v5074_v38, %v1857_v5  ;;  %v6699_v38 = vld [vmem:[#allocation14 + $0x140] sm:$0xff]  ;;  %v6713_v6 = vld [vmem:[#allocation14 + $0x128] sm:$0xff] }
 0x46c   : > { %v1826_v3 = vmul.f32 %v5076_v39, %v1825_v33  ;;  %v1866_v52 = vsel %vm1863_vm11, %v1865_v1, %v1861_v11  ;;  %v1885_v33 = vadd.f32 %v1877_v56, %v8513_v9  ;;  %v6764_v1 = vld [vmem:[#allocation14 + $0xa0] sm:$0xff]  ;;  %v6772_v56 = vld [vmem:[#allocation14 + $0xb8] sm:$0xff] }
 0x46d   : > { %v1841_v57 = vmul.f32 %v5078_v58, %v1840_v32  ;;  %v6822_v9 = vld [vmem:[#allocation14 + $0x38] sm:$0xff] }
 0x46e   : > { %v1827_v15 = vadd.f32 %v5076_v39, %v1826_v3  ;;  %v6724_v3 = vld [vmem:[#allocation14 + $0x100] sm:$0xff] }
 0x46f   : > { %v1842_v18 = vadd.f32 %v5078_v58, %v1841_v57 }
 0x470   : > { %v1831_v49 = vsel %vm1830_vm3, %v5076_v39, %v1827_v15  ;;  %v6701_v39 = vld [vmem:[#allocation14 + $0x148] sm:$0xff]  ;;  %v6734_v15 = vld [vmem:[#allocation14 + $0x118] sm:$0xff] }
 0x471   : > { %v1836_v16 = vsel %vm1833_vm5, %v1835_v48, %v1831_v49  ;;  %v1846_v17 = vsel %vm1845_vm6, %v5078_v58, %v1842_v18  ;;  %2200 = vmatpush.msra.mxu3 %v6701_v39  ;;  %v6707_v58 = vld [vmem:[#allocation14 + $0x158] sm:$0xff]  ;;  %v6738_v48 = vld [vmem:[#allocation14 + $0xe0] sm:$0xff]  ;;  %v6740_v18 = vld [vmem:[#allocation14 + $0xe8] sm:$0xff] }
 0x472   : > { %v1870_v60 = vmul.f32 %v5080_v63, %v1836_v16  ;;  %v1851_v0 = vsel %vm1848_vm7, %v1850_v12, %v1846_v17  ;;  %2240 = vmatpush.msra.mxu1 %v6707_v58  ;;  %v6742_v49 = vld [vmem:[#allocation14 + $0xf0] sm:$0xff]  ;;  %v6746_v63 = vld [vmem:[#allocation14 + $0xf8] sm:$0xff]  ;;  %v1883_v16 = vadd.f32 %v1875_v51, %v8514_v27  ;;  %v1884_v17 = vadd.f32 %v1876_v13, %v8515_v29  ;;  %v6778_v51 = vld [vmem:[#allocation14 + $0x88] sm:$0xff] }
 0x473   : > { %v1869_v42 = vmul.f32 %v1851_v0, %v6611_v24  ;;  %v6638_v24 = vld [vmem:[#allocation14 + $0x1e0] sm:$0xff]  ;;  %2201 = vmatpush.msra.mxu3 %v6713_v6  ;;  %2223 = vmatpush.msra.mxu0 %v6742_v49  ;;  %v6756_v0 = vld [vmem:[#allocation14 + $0xd0] sm:$0xff]  ;;  %v6816_v29 = vld [vmem:[#allocation14 + $0x28] sm:$0xff] }
 0x474   : > { %2175 = vmatpush.msra.mxu2 %v6638_v24  ;;  %2241 = vmatpush.msra.mxu1 %v6720_v45  ;;  %v6782_v13 = vld [vmem:[#allocation14 + $0x90] sm:$0xff]  ;;  %8524 = vst [vmem:[#allocation38_spill] sm:$0xff] %v6816_v29 }
 0x475   : > { %v6629_v4 = vadd.f32 %v1870_v60, %v1869_v42  ;;  %2202 = vmatpush.msra.mxu3 %v6726_v61  ;;  %v6754_v60 = vld [vmem:[#allocation14 + $0xc8] sm:$0xff]  ;;  %2224 = vmatpush.msra.mxu0 %v6756_v0  ;;  %v6818_v27 = vld [vmem:[#allocation14 + $0x30] sm:$0xff] }
 0x476   : > { %2176 = vmatpush.msra.mxu2 %v6650_v35  ;;  %2242 = vmatpush.msra.mxu1 %v6734_v15  ;;  %8525 = vst [vmem:[#allocation39_spill] sm:$0xff] %v6818_v27 }
 0x477   : > { %5081 = vtanh.f32 %v6629_v4  ;;  %2203 = vmatpush.msra.mxu3 %v6740_v18 }
 0x478   : > { %2177 = vmatpush.msra.mxu2 %v6662_v43  ;;  %2243 = vmatpush.msra.mxu1 %v6746_v63 }
 0x479   : > { %2204 = vmatpush.msra.mxu3 %v6754_v60 }
 0x47a   : > { %2178 = vmatpush.msra.mxu2 %v6674_v26  ;;  %2244 = vmatpush.msra.mxu1 %v6760_v7 }
 0x47c   : > { %2179 = vmatpush.msra.mxu2 %v6686_v22  ;;  %2245 = vmatpush.msra.mxu1 %v6772_v56 }
 0x47d   : > { %v5082_v21 = vpop.eup %5081 }
 0x47e   : > { %v6632_v23 = vmul.f32 %v5082_v21, %v1866_v52  ;;  %2180 = vmatpush.msra.mxu2 %v6699_v38  ;;  %v6766_v21 = vld [vmem:[#allocation14 + $0xa8] sm:$0xff]  ;;  %v6768_v52 = vld [vmem:[#allocation14 + $0xb0] sm:$0xff] }
 0x47f   : > { %2205 = vmatpush.msra.mxu3 %v6766_v21  ;;  %2225 = vmatpush.msra.mxu0 %v6768_v52 }
 0x480   : > { %8518 = vst [vmem:[#allocation52_spill] sm:$0xff] %v6632_v23  ;;  %1967 = vmatmul.f32.vlgmr.msrb.gmra.mxu2 %v6632_v23  ;;  %1987 = vmatmul.f32.vlgmr.msrb.gmra.mxu3 %v6632_v23 }
 0x481   : > { %2007 = vmatmul.f32.vlgmr.msrb.gmra.mxu0 %v6632_v23  ;;  %2027 = vmatmul.f32.vlgmr.msrb.gmra.mxu1 %v6632_v23  ;;  %v6804_v23 = vld [vmem:[#allocation14 + $0x50] sm:$0xff] }
 0x482   : > { %2181 = vmatpush.msra.mxu2 %v6711_v2  ;;  %2206 = vmatpush.msra.mxu3 %v6778_v51  ;;  %8522 = vst [vmem:[#allocation56_spill] sm:$0xff] %v6804_v23 }
 0x483   : > { %2226 = vmatpush.msra.mxu0 %v6782_v13 }
 0x484   : > { %2182 = vmatpush.msra.mxu2 %v6724_v3 }
 0x486   : > { %2183 = vmatpush.msra.mxu2 %v6738_v48 }
 0x488   : > { %2184 = vmatpush.msra.mxu2 %v6752_v41 }
 0x48a   : > { %2185 = vmatpush.msra.mxu2 %v6764_v1 }
 0x4fe   : > { %v2008_v32 = vpop.f32.mrf.mxu0 }
 0x4ff   : > { %v2033_v57 = vadd.f32 %v2008_v32, %v1885_v33 }
 0x501   : > { %v4842_v12 = vmul.f32 -1.442695, %v2033_v57  ;;  %v6776_v57 = vld [vmem:[#allocation14 + $0x80] sm:$0xff] }
 0x502   : > { %2186 = vmatpush.msra.mxu2 %v6776_v57 }
 0x503   : > { %5083 = vpow2.f32 %v4842_v12  ;;  %v1968_v42 = vpop.f32.mrf.mxu2  ;;  %v1988_v5 = vpop.f32.mrf.mxu3  ;;  %v6784_v12 = vld [vmem:[#allocation14 + $0x98] sm:$0xff] }
 0x504   : > { %v2031_v8 = vadd.f32 %v1968_v42, %v1883_v16  ;;  %v2032_v11 = vadd.f32 %v1988_v5, %v1884_v17  ;;  %2246 = vmatpush.msra.mxu1 %v6784_v12  ;;  %v6788_v16 = vld [vmem:[#allocation14 + $0x60] sm:$0xff]  ;;  %v6790_v17 = vld [vmem:[#allocation14 + $0x68] sm:$0xff]  ;;  %v6792_v42 = vld [vmem:[#allocation14 + $0x70] sm:$0xff] }
 0x505   : > { %2187 = vmatpush.msra.mxu2 %v6788_v16  ;;  %2207 = vmatpush.msra.mxu3 %v6790_v17 }
 0x506   : > { %v4840_v33 = vmul.f32 -1.442695, %v2031_v8  ;;  %v4841_v32 = vmul.f32 -1.442695, %v2032_v11  ;;  %v6796_v8 = vld [vmem:[#allocation14 + $0x78] sm:$0xff]  ;;  %2227 = vmatpush.msra.mxu0 %v6792_v42  ;;  %v6800_v11 = vld [vmem:[#allocation14 + $0x40] sm:$0xff] }
 0x507   : > { %8519 = vst [vmem:[#allocation53_spill] sm:$0xff] %v6796_v8  ;;  %2247 = vmatpush.msra.mxu1 %v6796_v8  ;;  %2188 = vmatpush.msra.mxu2 %v6800_v11 }
 0x508   : > { %5085 = vpow2.f32 %v4840_v33  ;;  %8520 = vst [vmem:[#allocation54_spill] sm:$0xff] %v6800_v11  ;;  %v6802_v33 = vld [vmem:[#allocation14 + $0x48] sm:$0xff]  ;;  %2228 = vmatpush.msra.mxu0 %v6804_v23  ;;  %v6830_v23 = vld [vmem:[#allocation14 + $0x10] sm:$0xff] }
 0x509   : > { %v5084_v5 = vpop.eup %5083  ;;  %5087 = vpow2.f32 %v4841_v32  ;;  %8521 = vst [vmem:[#allocation55_spill] sm:$0xff] %v6802_v33  ;;  %2208 = vmatpush.msra.mxu3 %v6802_v33  ;;  %v6808_v32 = vld [vmem:[#allocation14 + $0x58] sm:$0xff]  ;;  %2189 = vmatpush.msra.mxu2 %v6814_v59 }
 0x50a   : > { %8523 = vst [vmem:[#allocation37_spill] sm:$0xff] %v6808_v32  ;;  %v6810_v19 = vadd.f32 1.0, %v5084_v5  ;;  %2248 = vmatpush.msra.mxu1 %v6808_v32  ;;  %2229 = vmatpush.msra.mxu0 %v6818_v27  ;;  %v6826_v5 = vld [vmem:[#allocation14] sm:$0xff]  ;;  %v6828_v32 = vld [vmem:[#allocation14 + $0x8] sm:$0xff] }
 0x50b   : > { %2209 = vmatpush.msra.mxu3 %v6816_v29  ;;  %2190 = vmatpush.msra.mxu2 %v6826_v5  ;;  %v6836_v29 = vld [vmem:[#allocation14 + $0x18] sm:$0xff] }
 0x50c   : > { %2249 = vmatpush.msra.mxu1 %v6822_v9  ;;  %5089 = vrcp.f32 %v6810_v19  ;;  %2230 = vmatpush.msra.mxu0 %v6830_v23  ;;  %vm2082_vm5 = vweird.f32 %v6810_v19 }
 0x50d   : > { %2210 = vmatpush.msra.mxu3 %v6828_v32  ;;  %2399 = vmatpush.msrb.mxu2 %v6638_v24 }
 0x50e   : > { %v5086_v33 = vpop.eup %5085  ;;  %2250 = vmatpush.msra.mxu1 %v6836_v29  ;;  %2439 = vmatpush.msrb.mxu0 %v6642_v28 }
 0x50f   : > { %v5088_v11 = vpop.eup %5087  ;;  %v6832_v8 = vadd.f32 1.0, %v5086_v33  ;;  %2419 = vmatpush.msrb.mxu3 %v6640_v25  ;;  %v1878_v33 = vld [vmem:[%s5827_s30 + $0xb8] sm:$0xff]  ;;  %2400 = vmatpush.msrb.mxu2 %v6650_v35 }
 0x510   : > { %v6839_v27 = vadd.f32 1.0, %v5088_v11  ;;  %2459 = vmatpush.msrb.mxu1 %v6646_v30  ;;  %v2028_v11 = vpop.f32.mrf.mxu1  ;;  %2440 = vmatpush.msrb.mxu0 %v6654_v37  ;;  %v1886_v24 = vadd.f32 %v1878_v33, %v8516_v53  ;;  %v2603_v33 = vld [vmem:[#allocation13 + $0x180] sm:$0xff] }
 0x511   : > { %5091 = vrcp.f32 %v6832_v8  ;;  %2420 = vmatpush.msrb.mxu3 %v6652_v36  ;;  %2401 = vmatpush.msrb.mxu2 %v6662_v43  ;;  %vm2052_vm14 = vweird.f32 %v6832_v8 }
 0x512   : > { %5093 = vrcp.f32 %v6839_v27  ;;  %2460 = vmatpush.msrb.mxu1 %v6658_v55  ;;  %v6857_v25 = vpop.eup %5089  ;;  %2441 = vmatpush.msrb.mxu0 %v6666_v44  ;;  %v2034_v30 = vadd.f32 %v2028_v11, %v1886_v24  ;;  %vm2067_vm0 = vweird.f32 %v6839_v27  ;;  %v2604_v11 = vld [vmem:[#allocation13 + $0x188] sm:$0xff]  ;;  %v2605_v24 = vld [vmem:[#allocation13 + $0x190] sm:$0xff] }
 0x513   : > { %2421 = vmatpush.msrb.mxu3 %v6664_v50  ;;  %2402 = vmatpush.msrb.mxu2 %v6674_v26  ;;  %v2078_v55 = vmul.f32 %v6857_v25, %v6810_v19  ;;  %v2058_v50 = vand.u32 2147483648, %v6832_v8  ;;  %v2056_v26 = vand.u32 2147483647, %v6832_v8  ;;  %vm2083_vm4 = vweird.f32 %v6857_v25 }
 0x514   : > { %2461 = vmatpush.msrb.mxu1 %v6670_v46  ;;  %2442 = vmatpush.msrb.mxu0 %v6678_v10  ;;  %5095 = vtanh.f32 %v2034_v30  ;;  %vm2084_vm6 = vmor %vm2082_vm5, %vm2083_vm4  ;;  %v2100_v30 = vld [vmem:[%s5827_s30 + $0xc8] sm:$0xff] }
 0x515   : > { %2422 = vmatpush.msrb.mxu3 %v6676_v62  ;;  %2403 = vmatpush.msrb.mxu2 %v6686_v22  ;;  %v2073_v62 = vand.u32 2147483648, %v6839_v27  ;;  %v2079_v22 = vsub.f32 1.0, %v2078_v55  ;;  %vm2057_vm1 = vcmp.eq.f32.partialorder %v2056_v26, 8.507059e+37  ;;  %v2601_v55 = vld [vmem:[#allocation13 + $0x170] sm:$0xff]  ;;  %v8535_v26 = vld [vmem:[#allocation30_spill] sm:$0xff] }
 0x516   : > { %2462 = vmatpush.msrb.mxu1 %v6682_v14  ;;  %2443 = vmatpush.msrb.mxu0 %v6690_v54  ;;  %v2071_v14 = vand.u32 2147483647, %v6839_v27  ;;  %v2059_v54 = vor.u32 1.1754944e-38, %v2058_v50  ;;  %v2602_v50 = vld [vmem:[#allocation13 + $0x178] sm:$0xff] }
 0x517   : > { %v5092_v28 = vpop.eup %5091  ;;  %2423 = vmatpush.msrb.mxu3 %v6688_v47  ;;  %2404 = vmatpush.msrb.mxu2 %v6699_v38 }
 0x518   : > { %v5094_v35 = vpop.eup %5093  ;;  %v2048_v36 = vmul.f32 %v5092_v28, %v6832_v8  ;;  %2463 = vmatpush.msrb.mxu1 %v6695_v20  ;;  %vm2053_vm12 = vweird.f32 %v5092_v28  ;;  %2444 = vmatpush.msrb.mxu0 %v6703_v40  ;;  %vm2072_vm3 = vcmp.eq.f32.partialorder %v2071_v14, 8.507059e+37  ;;  %v2596_v14 = vld [vmem:[#allocation13 + $0x148] sm:$0xff] }
 0x519   : > { %v2063_v37 = vmul.f32 %v5094_v35, %v6839_v27  ;;  %2424 = vmatpush.msrb.mxu3 %v6701_v39  ;;  %vm2068_vm13 = vweird.f32 %v5094_v35  ;;  %2405 = vmatpush.msrb.mxu2 %v6711_v2  ;;  %vm2054_vm15 = vmor %vm2052_vm14, %vm2053_vm12  ;;  %v2074_v39 = vor.u32 1.1754944e-38, %v2073_v62  ;;  %v2080_v27 = vmul.f32 %v6857_v25, %v2079_v22  ;;  %v2597_v22 = vld [vmem:[#allocation13 + $0x150] sm:$0xff] }
 0x51a   : > { %v2049_v43 = vsub.f32 1.0, %v2048_v36  ;;  %2464 = vmatpush.msrb.mxu1 %v6707_v58  ;;  %2445 = vmatpush.msrb.mxu0 %v6715_v34  ;;  %vm2069_vm2 = vmor %vm2067_vm0, %vm2068_vm13  ;;  %v5096_v40 = vpop.eup %5095  ;;  %v2599_v36 = vld [vmem:[#allocation13 + $0x160] sm:$0xff]  ;;  %v2108_v62 = vadd.f32 %v2100_v30, %v8535_v26 }
 0x51b   : > { %v2064_v44 = vsub.f32 1.0, %v2063_v37  ;;  %2425 = vmatpush.msrb.mxu3 %v6713_v6  ;;  %2406 = vmatpush.msrb.mxu2 %v6724_v3  ;;  %v2600_v37 = vld [vmem:[#allocation13 + $0x168] sm:$0xff]  ;;  %v2559_v30 = vld [vmem:[#allocation13 + $0x20] sm:$0xff] }
 0x51c   : > { %v2050_v46 = vmul.f32 %v5092_v28, %v2049_v43  ;;  %2465 = vmatpush.msrb.mxu1 %v6720_v45  ;;  %2446 = vmatpush.msrb.mxu0 %v6728_v31  ;;  %v2086_v31 = vand.u32 2147483647, %v6810_v19 }
 0x51d   : > { %v2065_v10 = vmul.f32 %v5094_v35, %v2064_v44  ;;  %2426 = vmatpush.msrb.mxu3 %v6726_v61  ;;  %2407 = vmatpush.msrb.mxu2 %v6738_v48  ;;  %v2081_v61 = vadd.f32 %v6857_v25, %v2080_v27  ;;  %v8526_v48 = vld [vmem:[#allocation53_spill] sm:$0xff]  ;;  %v8534_v44 = vld [vmem:[#allocation32_spill] sm:$0xff] }
 0x51e   : > { %v2051_v47 = vadd.f32 %v5092_v28, %v2050_v46  ;;  %2466 = vmatpush.msrb.mxu1 %v6734_v15  ;;  %2447 = vmatpush.msrb.mxu0 %v6742_v49  ;;  %v8527_v49 = vld [vmem:[#allocation54_spill] sm:$0xff]  ;;  %vm2087_vm7 = vcmp.eq.f32.partialorder %v2086_v31, 8.507059e+37  ;;  %v2594_v27 = vld [vmem:[#allocation13 + $0x138] sm:$0xff] }
 0x51f   : > { %v2066_v20 = vadd.f32 %v5094_v35, %v2065_v10  ;;  %2427 = vmatpush.msrb.mxu3 %v6740_v18  ;;  %2408 = vmatpush.msrb.mxu2 %v6752_v41  ;;  %v2085_v15 = vsel %vm2084_vm6, %v6857_v25, %v2081_v61  ;;  %v8530_v41 = vld [vmem:[#allocation37_spill] sm:$0xff]  ;;  %v2588_v61 = vld [vmem:[#allocation13 + $0x108] sm:$0xff]  ;;  %v2590_v31 = vld [vmem:[#allocation13 + $0x118] sm:$0xff] }
 0x520   : > { %v2055_v38 = vsel %vm2054_vm15, %v5092_v28, %v2051_v47  ;;  %2467 = vmatpush.msrb.mxu1 %v6746_v63  ;;  %2448 = vmatpush.msrb.mxu0 %v6756_v0  ;;  %v8528_v63 = vld [vmem:[#allocation55_spill] sm:$0xff]  ;;  %v2595_v10 = vld [vmem:[#allocation13 + $0x140] sm:$0xff] }
 0x521   : > { %v2060_v58 = vsel %vm2057_vm1, %v2059_v54, %v2055_v38  ;;  %v2070_v2 = vsel %vm2069_vm2, %v5094_v35, %v2066_v20  ;;  %2428 = vmatpush.msrb.mxu3 %v6754_v60  ;;  %2409 = vmatpush.msrb.mxu2 %v6764_v1  ;;  %v2099_v28 = vld [vmem:[%s5827_s30 + $0xc0] sm:$0xff]  ;;  %v2606_v35 = vld [vmem:[#allocation13 + $0x198] sm:$0xff] }
 0x522   : > { %v2094_v6 = vmul.f32 %v5096_v40, %v2060_v58  ;;  %v2075_v34 = vsel %vm2072_vm3, %v2074_v39, %v2070_v2  ;;  %2468 = vmatpush.msrb.mxu1 %v6760_v7  ;;  %2449 = vmatpush.msrb.mxu0 %v6768_v52  ;;  %v8531_v7 = vld [vmem:[#allocation38_spill] sm:$0xff]  ;;  %v2107_v46 = vadd.f32 %v2099_v28, %v8534_v44  ;;  %v2598_v20 = vld [vmem:[#allocation13 + $0x158] sm:$0xff]  ;;  %v2591_v40 = vld [vmem:[#allocation13 + $0x120] sm:$0xff] }
 0x523   : > { %v2093_v45 = vmul.f32 %v2075_v34, %v6629_v4  ;;  %2429 = vmatpush.msrb.mxu3 %v6766_v21  ;;  %v2088_v4 = vand.u32 2147483648, %v6810_v19  ;;  %2410 = vmatpush.msrb.mxu2 %v6776_v57  ;;  %v8529_v19 = vld [vmem:[#allocation56_spill] sm:$0xff]  ;;  %v8532_v21 = vld [vmem:[#allocation39_spill] sm:$0xff]  ;;  %v2616_v52 = vld [vmem:[#allocation13 + $0x1e8] sm:$0xff] }
 0x524   : > { %2469 = vmatpush.msrb.mxu1 %v6772_v56  ;;  %2450 = vmatpush.msrb.mxu0 %v6782_v13  ;;  %v2617_v56 = vld [vmem:[#allocation13 + $0x1f0] sm:$0xff]  ;;  %v2618_v57 = vld [vmem:[#allocation13 + $0x1f8] sm:$0xff]  ;;  %v2612_v13 = vld [vmem:[#allocation13 + $0x1c8] sm:$0xff] }
 0x525   : > { %v6903_v3 = vadd.f32 %v2094_v6, %v2093_v45  ;;  %2430 = vmatpush.msrb.mxu3 %v6778_v51  ;;  %2411 = vmatpush.msrb.mxu2 %v6788_v16  ;;  %v2089_v18 = vor.u32 1.1754944e-38, %v2088_v4  ;;  %v2611_v51 = vld [vmem:[#allocation13 + $0x1c0] sm:$0xff]  ;;  %v2614_v16 = vld [vmem:[#allocation13 + $0x1d8] sm:$0xff]  ;;  %v2592_v58 = vld [vmem:[#allocation13 + $0x128] sm:$0xff] }
 0x526   : > { %2470 = vmatpush.msrb.mxu1 %v6784_v12  ;;  %2451 = vmatpush.msrb.mxu0 %v6792_v42  ;;  %v2613_v12 = vld [vmem:[#allocation13 + $0x1d0] sm:$0xff]  ;;  %v2587_v45 = vld [vmem:[#allocation13 + $0x100] sm:$0xff]  ;;  %v2566_v28 = vld [vmem:[#allocation13 + $0x58] sm:$0xff] }
 0x527   : > { %5097 = vtanh.f32 %v6903_v3  ;;  %2431 = vmatpush.msrb.mxu3 %v6790_v17  ;;  %2412 = vmatpush.msrb.mxu2 %v8527_v49  ;;  %v2090_v0 = vsel %vm2087_vm7, %v2089_v18, %v2085_v15  ;;  %v2609_v17 = vld [vmem:[#allocation13 + $0x1b0] sm:$0xff]  ;;  %v2583_v15 = vld [vmem:[#allocation13 + $0xe0] sm:$0xff] }
 0x528   : > { %2471 = vmatpush.msrb.mxu1 %v8526_v48  ;;  %2452 = vmatpush.msrb.mxu0 %v8529_v19  ;;  %v8533_v42 = vld [vmem:[#allocation31_spill] sm:$0xff]  ;;  %v2584_v48 = vld [vmem:[#allocation13 + $0xe8] sm:$0xff]  ;;  %v2579_v19 = vld [vmem:[#allocation13 + $0xc0] sm:$0xff] }
 0x529   : > { %2432 = vmatpush.msrb.mxu3 %v8528_v63  ;;  %2413 = vmatpush.msrb.mxu2 %v6814_v59  ;;  %v2615_v59 = vld [vmem:[#allocation13 + $0x1e0] sm:$0xff]  ;;  %v2593_v2 = vld [vmem:[#allocation13 + $0x130] sm:$0xff]  ;;  %v2586_v63 = vld [vmem:[#allocation13 + $0xf8] sm:$0xff] }
 0x52a   : > { %2472 = vmatpush.msrb.mxu1 %v8530_v41  ;;  %2453 = vmatpush.msrb.mxu0 %v8532_v21  ;;  %v2589_v4 = vld [vmem:[#allocation13 + $0x110] sm:$0xff]  ;;  %v2580_v41 = vld [vmem:[#allocation13 + $0xc8] sm:$0xff]  ;;  %v2575_v21 = vld [vmem:[#allocation13 + $0xa0] sm:$0xff] }
 0x52b   : > { %2433 = vmatpush.msrb.mxu3 %v8531_v7  ;;  %2414 = vmatpush.msrb.mxu2 %v6826_v5  ;;  %v2585_v18 = vld [vmem:[#allocation13 + $0xf0] sm:$0xff] }
 0x52c   : > { %2473 = vmatpush.msrb.mxu1 %v6822_v9  ;;  %2454 = vmatpush.msrb.mxu0 %v6830_v23  ;;  %v2101_v9 = vld [vmem:[%s5827_s30 + $0xd0] sm:$0xff]  ;;  %v2608_v23 = vld [vmem:[#allocation13 + $0x1a8] sm:$0xff] }
 0x52d   : > { %v5098_v60 = vpop.eup %5097  ;;  %2434 = vmatpush.msrb.mxu3 %v6828_v32  ;;  %v2109_v8 = vadd.f32 %v2101_v9, %v8533_v42  ;;  %v2610_v32 = vld [vmem:[#allocation13 + $0x1b8] sm:$0xff] }
 0x52e   : > { %v6930_v1 = vmul.f32 %v5098_v60, %v2090_v0  ;;  %2474 = vmatpush.msrb.mxu1 %v6836_v29  ;;  %v2607_v29 = vld [vmem:[#allocation13 + $0x1a0] sm:$0xff]  ;;  %v2581_v60 = vld [vmem:[#allocation13 + $0xd0] sm:$0xff]  ;;  %v2582_v0 = vld [vmem:[#allocation13 + $0xd8] sm:$0xff] }
 0x530   : > { %2191 = vmatmul.f32.vlgmr.msra.gmra.mxu2 %v6930_v1  ;;  %2211 = vmatmul.f32.vlgmr.msra.gmra.mxu3 %v6930_v1 }
 0x531   : > { %2231 = vmatmul.f32.vlgmr.msra.gmra.mxu0 %v6930_v1  ;;  %2251 = vmatmul.f32.vlgmr.msra.gmra.mxu1 %v6930_v1 }
 0x532   : > { %2630 = vmatpush.msra.mxu2 %v2615_v59  ;;  %2671 = vmatpush.msra.mxu3 %v2616_v52  ;;  %v2576_v59 = vld [vmem:[#allocation13 + $0xa8] sm:$0xff]  ;;  %v2577_v52 = vld [vmem:[#allocation13 + $0xb0] sm:$0xff] }
 0x533   : > { %2712 = vmatpush.msra.mxu0 %v2617_v56  ;;  %2753 = vmatpush.msra.mxu1 %v2618_v57  ;;  %v2578_v56 = vld [vmem:[#allocation13 + $0xb8] sm:$0xff]  ;;  %v2571_v57 = vld [vmem:[#allocation13 + $0x80] sm:$0xff] }
 0x534   : > { %2631 = vmatpush.msra.mxu2 %v2611_v51  ;;  %2672 = vmatpush.msra.mxu3 %v2612_v13  ;;  %v2572_v51 = vld [vmem:[#allocation13 + $0x88] sm:$0xff]  ;;  %v2573_v13 = vld [vmem:[#allocation13 + $0x90] sm:$0xff] }
 0x535   : > { %2713 = vmatpush.msra.mxu0 %v2613_v12  ;;  %2754 = vmatpush.msra.mxu1 %v2614_v16 }
 0x536   : > { %2632 = vmatpush.msra.mxu2 %v2607_v29  ;;  %2673 = vmatpush.msra.mxu3 %v2608_v23  ;;  %v2574_v29 = vld [vmem:[#allocation13 + $0x98] sm:$0xff]  ;;  %v2102_v23 = vld [vmem:[%s5827_s30 + $0xd8] sm:$0xff] }
 0x537   : > { %2714 = vmatpush.msra.mxu0 %v2609_v17  ;;  %2755 = vmatpush.msra.mxu1 %v2610_v32  ;;  %v2568_v32 = vld [vmem:[#allocation13 + $0x68] sm:$0xff] }
 0x538   : > { %2633 = vmatpush.msra.mxu2 %v2603_v33  ;;  %2674 = vmatpush.msra.mxu3 %v2604_v11  ;;  %v2570_v33 = vld [vmem:[#allocation13 + $0x78] sm:$0xff]  ;;  %v2563_v11 = vld [vmem:[#allocation13 + $0x40] sm:$0xff] }
 0x539   : > { %2715 = vmatpush.msra.mxu0 %v2605_v24  ;;  %2756 = vmatpush.msra.mxu1 %v2606_v35  ;;  %v2564_v24 = vld [vmem:[#allocation13 + $0x48] sm:$0xff] }
 0x53a   : > { %2634 = vmatpush.msra.mxu2 %v2599_v36  ;;  %2675 = vmatpush.msra.mxu3 %v2600_v37  ;;  %v2560_v36 = vld [vmem:[#allocation13 + $0x28] sm:$0xff]  ;;  %v2561_v37 = vld [vmem:[#allocation13 + $0x30] sm:$0xff] }
 0x53b   : > { %2716 = vmatpush.msra.mxu0 %v2601_v55  ;;  %2757 = vmatpush.msra.mxu1 %v2602_v50  ;;  %v2110_v55 = vadd.f32 %v2102_v23, %v8516_v53  ;;  %v2555_v50 = vld [vmem:[#allocation13] sm:$0xff]  ;;  %v8538_v23 = vld [vmem:[#allocation50_spill] sm:$0xff] }
 0x53c   : > { %2635 = vmatpush.msra.mxu2 %v2595_v10  ;;  %2676 = vmatpush.msra.mxu3 %v2596_v14  ;;  %v2557_v10 = vld [vmem:[#allocation13 + $0x10] sm:$0xff]  ;;  %v2558_v14 = vld [vmem:[#allocation13 + $0x18] sm:$0xff] }
 0x53d   : > { %2717 = vmatpush.msra.mxu0 %v2597_v22  ;;  %2758 = vmatpush.msra.mxu1 %v2598_v20 }
 0x53e   : > { %2636 = vmatpush.msra.mxu2 %v2591_v40  ;;  %2677 = vmatpush.msra.mxu3 %v2592_v58 }
 0x53f   : > { %2718 = vmatpush.msra.mxu0 %v2593_v2  ;;  %2759 = vmatpush.msra.mxu1 %v2594_v27 }
 0x540   : > { %2637 = vmatpush.msra.mxu2 %v2587_v45  ;;  %2678 = vmatpush.msra.mxu3 %v2588_v61 }
 0x541   : > { %2719 = vmatpush.msra.mxu0 %v2589_v4  ;;  %2760 = vmatpush.msra.mxu1 %v2590_v31 }
 0x542   : > { %2638 = vmatpush.msra.mxu2 %v2583_v15  ;;  %2679 = vmatpush.msra.mxu3 %v2584_v48 }
 0x543   : > { %2720 = vmatpush.msra.mxu0 %v2585_v18  ;;  %2761 = vmatpush.msra.mxu1 %v2586_v63 }
 0x544   : > { %2639 = vmatpush.msra.mxu2 %v2579_v19  ;;  %2680 = vmatpush.msra.mxu3 %v2580_v41 }
 0x545   : > { %2721 = vmatpush.msra.mxu0 %v2581_v60  ;;  %2762 = vmatpush.msra.mxu1 %v2582_v0 }
 0x546   : > { %2640 = vmatpush.msra.mxu2 %v2575_v21  ;;  %2681 = vmatpush.msra.mxu3 %v2576_v59 }
 0x547   : > { %2722 = vmatpush.msra.mxu0 %v2577_v52  ;;  %2763 = vmatpush.msra.mxu1 %v2578_v56 }
 0x548   : > { %2641 = vmatpush.msra.mxu2 %v2571_v57  ;;  %2682 = vmatpush.msra.mxu3 %v2572_v51 }
 0x549   : > { %2723 = vmatpush.msra.mxu0 %v2573_v13  ;;  %2764 = vmatpush.msra.mxu1 %v2574_v29 }
 0x54a   : > { %2683 = vmatpush.msra.mxu3 %v2568_v32  ;;  %v6991_v32 = vld [vmem:[#allocation14 + $0x3c0] sm:$0xff] }
 0x54b   : > { %2765 = vmatpush.msra.mxu1 %v2570_v33  ;;  %v8539_v33 = vld [vmem:[#allocation51_spill] sm:$0xff] }
 0x54c   : > { %2684 = vmatpush.msra.mxu3 %v2564_v24  ;;  %v7011_v24 = vld [vmem:[#allocation14 + $0x3a0] sm:$0xff] }
 0x54d   : > { %2766 = vmatpush.msra.mxu1 %v2566_v28  ;;  %v7017_v28 = vld [vmem:[#allocation14 + $0x3f0] sm:$0xff] }
 0x54e   : > { %2685 = vmatpush.msra.mxu3 %v2560_v36  ;;  %v7026_v36 = vld [vmem:[#allocation14 + $0x3d8] sm:$0xff] }
 0x5ae   : > { %v2232_v5 = vpop.f32.mrf.mxu0  ;;  %v2252_v35 = vpop.f32.mrf.mxu1 }
 0x5af   : > { %v2257_v25 = vadd.f32 %v2232_v5, %v2109_v8  ;;  %v2567_v8 = vld [vmem:[#allocation13 + $0x60] sm:$0xff]  ;;  %v2569_v5 = vld [vmem:[#allocation13 + $0x70] sm:$0xff] }
 0x5b0   : > { %2642 = vmatpush.msra.mxu2 %v2567_v8  ;;  %2724 = vmatpush.msra.mxu0 %v2569_v5  ;;  %v6989_v8 = vld [vmem:[#allocation14 + $0x3e8] sm:$0xff] }
 0x5b1   : > { %v4845_v43 = vmul.f32 -1.442695, %v2257_v25  ;;  %v2565_v25 = vld [vmem:[#allocation13 + $0x50] sm:$0xff]  ;;  %v6995_v5 = vld [vmem:[#allocation14 + $0x3c8] sm:$0xff] }
 0x5b2   : > { %2643 = vmatpush.msra.mxu2 %v2563_v11  ;;  %2725 = vmatpush.msra.mxu0 %v2565_v25  ;;  %v8540_v11 = vld [vmem:[#allocation52_spill] sm:$0xff]  ;;  %v7013_v25 = vld [vmem:[#allocation14 + $0x3a8] sm:$0xff] }
 0x5b3   : > { %5099 = vpow2.f32 %v4845_v43  ;;  %v2192_v47 = vpop.f32.mrf.mxu2  ;;  %v2212_v54 = vpop.f32.mrf.mxu3  ;;  %v2562_v43 = vld [vmem:[#allocation13 + $0x38] sm:$0xff] }
 0x5b4   : > { %v2255_v38 = vadd.f32 %v2192_v47, %v2107_v46  ;;  %v2256_v39 = vadd.f32 %v2212_v54, %v2108_v62  ;;  %v2556_v46 = vld [vmem:[#allocation13 + $0x8] sm:$0xff]  ;;  %2644 = vmatpush.msra.mxu2 %v2559_v30  ;;  %v2258_v47 = vadd.f32 %v2252_v35, %v2110_v55  ;;  %2726 = vmatpush.msra.mxu0 %v2561_v37  ;;  %v7019_v30 = vld [vmem:[#allocation14 + $0x3f8] sm:$0xff]  ;;  %v7024_v35 = vld [vmem:[#allocation14 + $0x3d0] sm:$0xff] }
 0x5b5   : > { %2767 = vmatpush.msra.mxu1 %v2562_v43  ;;  %2686 = vmatpush.msra.mxu3 %v2556_v46  ;;  %v7030_v37 = vld [vmem:[#allocation14 + $0x3b0] sm:$0xff]  ;;  %v7032_v55 = vld [vmem:[#allocation14 + $0x3b8] sm:$0xff]  ;;  %v7037_v46 = vld [vmem:[#allocation14 + $0x380] sm:$0xff] }
 0x5b6   : > { %v4843_v6 = vmul.f32 -1.442695, %v2255_v38  ;;  %v4844_v34 = vmul.f32 -1.442695, %v2256_v39  ;;  %2645 = vmatpush.msra.mxu2 %v2555_v50  ;;  %2727 = vmatpush.msra.mxu0 %v2557_v10  ;;  %v7041_v10 = vld [vmem:[#allocation14 + $0x390] sm:$0xff] }
 0x5b7   : > { %2768 = vmatpush.msra.mxu1 %v2558_v14 }
 0x5b8   : > { %5101 = vpow2.f32 %v4843_v6 }
 0x5b9   : > { %v5100_v49 = vpop.eup %5099  ;;  %5103 = vpow2.f32 %v4844_v34 }
 0x5ba   : > { %v6948_v7 = vadd.f32 1.0, %v5100_v49 }
 0x5bc   : > { %5105 = vrcp.f32 %v6948_v7  ;;  %vm2306_vm1 = vweird.f32 %v6948_v7  ;;  %v2310_v57 = vand.u32 2147483647, %v6948_v7 }
 0x5be   : > { %v5102_v9 = vpop.eup %5101  ;;  %vm2311_vm3 = vcmp.eq.f32.partialorder %v2310_v57, 8.507059e+37  ;;  %v7106_v57 = vld [vmem:[#allocation14 + $0x318] sm:$0xff] }
 0x5bf   : > { %v5104_v12 = vpop.eup %5103  ;;  %v6950_v16 = vadd.f32 1.0, %v5102_v9  ;;  %v2312_v9 = vand.u32 2147483648, %v6948_v7 }
 0x5c0   : > { %v6954_v17 = vadd.f32 1.0, %v5104_v12 }
 0x5c1   : > { %5107 = vrcp.f32 %v6950_v16  ;;  %v2282_v58 = vand.u32 2147483648, %v6950_v16  ;;  %v2280_v6 = vand.u32 2147483647, %v6950_v16  ;;  %vm2276_vm10 = vweird.f32 %v6950_v16 }
 0x5c2   : > { %5109 = vrcp.f32 %v6954_v17  ;;  %v5106_v62 = vpop.eup %5105  ;;  %v2297_v34 = vand.u32 2147483648, %v6954_v17  ;;  %v2295_v61 = vand.u32 2147483647, %v6954_v17  ;;  %vm2291_vm12 = vweird.f32 %v6954_v17 }
 0x5c3   : > { %v2302_v39 = vmul.f32 %v5106_v62, %v6948_v7  ;;  %5111 = vtanh.f32 %v2258_v47  ;;  %v2283_v15 = vor.u32 1.1754944e-38, %v2282_v58  ;;  %vm2281_vm13 = vcmp.eq.f32.partialorder %v2280_v6, 8.507059e+37  ;;  %v8537_v7 = vld [vmem:[#allocation36_spill] sm:$0xff]  ;;  %v7061_v58 = vld [vmem:[#allocation14 + $0x348] sm:$0xff]  ;;  %v7065_v6 = vld [vmem:[#allocation14 + $0x320] sm:$0xff] }
 0x5c4   : > { %v2298_v49 = vor.u32 1.1754944e-38, %v2297_v34  ;;  %vm2296_vm15 = vcmp.eq.f32.partialorder %v2295_v61, 8.507059e+37  ;;  %vm2307_vm0 = vweird.f32 %v5106_v62  ;;  %v2313_v13 = vor.u32 1.1754944e-38, %v2312_v9  ;;  %v2324_v47 = vld [vmem:[%s5827_s30 + $0xe8] sm:$0xff]  ;;  %v7067_v34 = vld [vmem:[#allocation14 + $0x328] sm:$0xff] }
 0x5c5   : > { %v2303_v4 = vsub.f32 1.0, %v2302_v39  ;;  %vm2308_vm2 = vmor %vm2306_vm1, %vm2307_vm0 }
 0x5c7   : > { %v5108_v22 = vpop.eup %5107  ;;  %v2304_v60 = vmul.f32 %v5106_v62, %v2303_v4 }
 0x5c8   : > { %v5110_v54 = vpop.eup %5109  ;;  %v2272_v20 = vmul.f32 %v5108_v22, %v6950_v16  ;;  %vm2277_vm8 = vweird.f32 %v5108_v22 }
 0x5c9   : > { %v2287_v38 = vmul.f32 %v5110_v54, %v6954_v17  ;;  %vm2292_vm9 = vweird.f32 %v5110_v54  ;;  %vm2278_vm11 = vmor %vm2276_vm10, %vm2277_vm8  ;;  %v5112_v63 = vpop.eup %5111  ;;  %v2305_v56 = vadd.f32 %v5106_v62, %v2304_v60  ;;  %v6987_v17 = vld [vmem:[#allocation14 + $0x3e0] sm:$0xff]  ;;  %v7090_v60 = vld [vmem:[#allocation14 + $0x358] sm:$0xff] }
 0x5ca   : > { %v2273_v40 = vsub.f32 1.0, %v2272_v20  ;;  %vm2293_vm14 = vmor %vm2291_vm12, %vm2292_vm9  ;;  %v7051_v20 = vld [vmem:[#allocation14 + $0x368] sm:$0xff] }
 0x5cb   : > { %v2288_v2 = vsub.f32 1.0, %v2287_v38  ;;  %v2309_v51 = vsel %vm2308_vm2, %v5106_v62, %v2305_v56  ;;  %v7039_v62 = vld [vmem:[#allocation14 + $0x388] sm:$0xff]  ;;  %v7054_v38 = vld [vmem:[#allocation14 + $0x370] sm:$0xff] }
 0x5cc   : > { %v2274_v27 = vmul.f32 %v5108_v22, %v2273_v40  ;;  %v2314_v16 = vsel %vm2311_vm3, %v2313_v13, %v2309_v51  ;;  %v7059_v40 = vld [vmem:[#allocation14 + $0x340] sm:$0xff]  ;;  %v7100_v56 = vld [vmem:[#allocation14 + $0x2c8] sm:$0xff]  ;;  %v7108_v51 = vld [vmem:[#allocation14 + $0x2f0] sm:$0xff] }
 0x5cd   : > { %v2289_v45 = vmul.f32 %v5110_v54, %v2288_v2  ;;  %v7110_v13 = vld [vmem:[#allocation14 + $0x2a0] sm:$0xff] }
 0x5ce   : > { %v2275_v31 = vadd.f32 %v5108_v22, %v2274_v27  ;;  %v2332_v27 = vadd.f32 %v2324_v47, %v8535_v26  ;;  %v7076_v26 = vld [vmem:[#allocation14 + $0x350] sm:$0xff]  ;;  %v7146_v47 = vld [vmem:[#allocation14 + $0x2b8] sm:$0xff] }
 0x5cf   : > { %v2290_v48 = vadd.f32 %v5110_v54, %v2289_v45 }
 0x5d0   : > { %v2279_v18 = vsel %vm2278_vm11, %v5108_v22, %v2275_v31  ;;  %v2323_v22 = vld [vmem:[%s5827_s30 + $0xe0] sm:$0xff] }
 0x5d1   : > { %v2284_v19 = vsel %vm2281_vm13, %v2283_v15, %v2279_v18  ;;  %v2294_v41 = vsel %vm2293_vm14, %v5110_v54, %v2290_v48  ;;  %v7047_v54 = vld [vmem:[#allocation14 + $0x398] sm:$0xff]  ;;  %v2331_v2 = vadd.f32 %v2323_v22, %v8534_v44  ;;  %v7072_v15 = vld [vmem:[#allocation14 + $0x300] sm:$0xff]  ;;  %v7074_v44 = vld [vmem:[#allocation14 + $0x308] sm:$0xff] }
 0x5d2   : > { %v2318_v0 = vmul.f32 %v5112_v63, %v2284_v19  ;;  %v2299_v21 = vsel %vm2296_vm15, %v2298_v49, %v2294_v41  ;;  %v7080_v48 = vld [vmem:[#allocation14 + $0x2e0] sm:$0xff]  ;;  %v7082_v18 = vld [vmem:[#allocation14 + $0x330] sm:$0xff]  ;;  %v7084_v49 = vld [vmem:[#allocation14 + $0x378] sm:$0xff] }
 0x5d3   : > { %v2317_v59 = vmul.f32 %v2299_v21, %v6903_v3  ;;  %v8536_v3 = vld [vmem:[#allocation35_spill] sm:$0xff]  ;;  %v7086_v41 = vld [vmem:[#allocation14 + $0x2e8] sm:$0xff]  ;;  %v7096_v21 = vld [vmem:[#allocation14 + $0x338] sm:$0xff] }
 0x5d5   : > { %v6969_v52 = vadd.f32 %v2318_v0, %v2317_v59  ;;  %v7094_v0 = vld [vmem:[#allocation14 + $0x310] sm:$0xff]  ;;  %v7098_v59 = vld [vmem:[#allocation14 + $0x2c0] sm:$0xff] }
 0x5d7   : > { %5113 = vtanh.f32 %v6969_v52 }
 0x5dd   : > { %v5114_v12 = vpop.eup %5113 }
 0x5de   : > { %v2321_v29 = vmul.f32 %v5114_v12, %v2314_v16  ;;  %v7112_v12 = vld [vmem:[#allocation14 + $0x2a8] sm:$0xff]  ;;  %v7118_v16 = vld [vmem:[#allocation14 + $0x2f8] sm:$0xff] }
 0x5e0   : > { %2415 = vmatmul.f32.vlgmr.msrb.gmra.mxu2 %v2321_v29  ;;  %2435 = vmatmul.f32.vlgmr.msrb.gmra.mxu3 %v2321_v29 }
 0x5e1   : > { %2455 = vmatmul.f32.vlgmr.msrb.gmra.mxu0 %v2321_v29  ;;  %2475 = vmatmul.f32.vlgmr.msrb.gmra.mxu1 %v2321_v29 }
 0x5e2   : > { %2895 = vmatpush.msrb.mxu2 %v6987_v17  ;;  %2915 = vmatpush.msrb.mxu3 %v6989_v8 }
 0x5e3   : > { %2935 = vmatpush.msrb.mxu0 %v7017_v28  ;;  %2955 = vmatpush.msrb.mxu1 %v7019_v30 }
 0x5e4   : > { %2896 = vmatpush.msrb.mxu2 %v6991_v32  ;;  %2916 = vmatpush.msrb.mxu3 %v6995_v5 }
 0x5e5   : > { %2936 = vmatpush.msrb.mxu0 %v7024_v35  ;;  %2956 = vmatpush.msrb.mxu1 %v7026_v36 }
 0x5e6   : > { %2897 = vmatpush.msrb.mxu2 %v7011_v24  ;;  %2917 = vmatpush.msrb.mxu3 %v7013_v25 }
 0x5e7   : > { %2937 = vmatpush.msrb.mxu0 %v7030_v37  ;;  %2957 = vmatpush.msrb.mxu1 %v7032_v55 }
 0x5e8   : > { %2646 = vmatmul.f32.vlgmr.msra.gmra.mxu2 %v8536_v3  ;;  %2687 = vmatmul.f32.vlgmr.msra.gmra.mxu3 %v8536_v3 }
 0x5e9   : > { %2728 = vmatmul.f32.vlgmr.msra.gmra.mxu0 %v8536_v3  ;;  %2769 = vmatmul.f32.vlgmr.msra.gmra.mxu1 %v8536_v3 }
 0x5ea   : > { %2898 = vmatpush.msrb.mxu2 %v7037_v46  ;;  %2918 = vmatpush.msrb.mxu3 %v7039_v62 }
 0x5eb   : > { %2938 = vmatpush.msrb.mxu0 %v7041_v10  ;;  %2958 = vmatpush.msrb.mxu1 %v7047_v54 }
 0x5ec   : > { %2919 = vmatpush.msrb.mxu3 %v7051_v20 }
 0x5ed   : > { %2939 = vmatpush.msrb.mxu0 %v7054_v38  ;;  %2959 = vmatpush.msrb.mxu1 %v7084_v49 }
 0x5ee   : > { %2920 = vmatpush.msrb.mxu3 %v7061_v58 }
 0x5ef   : > { %2940 = vmatpush.msrb.mxu0 %v7076_v26  ;;  %2960 = vmatpush.msrb.mxu1 %v7090_v60 }
 0x5f0   : > { %2649 = vmatmul.f32.gmra.mxu2 %v8537_v7  ;;  %2690 = vmatmul.f32.gmra.mxu3 %v8537_v7 }
 0x5f1   : > { %2731 = vmatmul.f32.gmra.mxu0 %v8537_v7  ;;  %2772 = vmatmul.f32.gmra.mxu1 %v8537_v7  ;;  %v7124_v7 = vld [vmem:[#allocation14 + $0x280] sm:$0xff] }
 0x5f2   : > { %2921 = vmatpush.msrb.mxu3 %v7067_v34  ;;  %2941 = vmatpush.msrb.mxu0 %v7082_v18 }
 0x5f3   : > { %2961 = vmatpush.msrb.mxu1 %v7096_v21 }
 0x5f4   : > { %2922 = vmatpush.msrb.mxu3 %v7074_v44  ;;  %2942 = vmatpush.msrb.mxu0 %v7094_v0 }
 0x5f5   : > { %2962 = vmatpush.msrb.mxu1 %v7106_v57 }
 0x5f6   : > { %2923 = vmatpush.msrb.mxu3 %v7086_v41  ;;  %2943 = vmatpush.msrb.mxu0 %v7108_v51 }
 0x5f7   : > { %2963 = vmatpush.msrb.mxu1 %v7118_v16 }
 0x5f8   : > { %2652 = vmatmul.f32.gmra.mxu2 %v8538_v23  ;;  %2693 = vmatmul.f32.gmra.mxu3 %v8538_v23 }
 0x5f9   : > { %2734 = vmatmul.f32.gmra.mxu0 %v8538_v23  ;;  %2775 = vmatmul.f32.gmra.mxu1 %v8538_v23  ;;  %v7126_v23 = vld [vmem:[#allocation14 + $0x288] sm:$0xff] }
 0x5fa   : > { %2924 = vmatpush.msrb.mxu3 %v7100_v56  ;;  %8541 = vst [vmem:[#allocation40_spill] sm:$0xff] %v7126_v23 }
 0x5fc   : > { %2925 = vmatpush.msrb.mxu3 %v7112_v12 }
 0x5fe   : > { %2926 = vmatpush.msrb.mxu3 %v7126_v23 }
 0x600   : > { %2655 = vmatmul.f32.gmra.mxu2 %v8539_v33  ;;  %2696 = vmatmul.f32.gmra.mxu3 %v8539_v33 }
 0x601   : > { %2737 = vmatmul.f32.gmra.mxu0 %v8539_v33  ;;  %2778 = vmatmul.f32.gmra.mxu1 %v8539_v33  ;;  %v7132_v33 = vld [vmem:[#allocation14 + $0x2d8] sm:$0xff] }
 0x602   : > { %2964 = vmatpush.msrb.mxu1 %v7132_v33 }
 0x604   : > { %2965 = vmatpush.msrb.mxu1 %v7146_v47 }
 0x608   : > { %2658 = vmatmul.f32.gmra.mxu2 %v8540_v11  ;;  %2699 = vmatmul.f32.gmra.mxu3 %v8540_v11 }
 0x609   : > { %2740 = vmatmul.f32.gmra.mxu0 %v8540_v11  ;;  %2781 = vmatmul.f32.gmra.mxu1 %v8540_v11  ;;  %v7134_v11 = vld [vmem:[#allocation14 + $0x2b0] sm:$0xff] }
 0x610   : > { %2661 = vmatmul.f32.gmra.mxu2 %v6930_v1  ;;  %2702 = vmatmul.f32.gmra.mxu3 %v6930_v1 }
 0x611   : > { %2743 = vmatmul.f32.gmra.mxu0 %v6930_v1  ;;  %2784 = vmatmul.f32.gmra.mxu1 %v6930_v1  ;;  %v2325_v1 = vld [vmem:[%s5827_s30 + $0xf0] sm:$0xff] }
 0x612   : > { %v2333_v43 = vadd.f32 %v2325_v1, %v8533_v42  ;;  %v7049_v42 = vld [vmem:[#allocation14 + $0x360] sm:$0xff] }
 0x613   : > { %2899 = vmatpush.msrb.mxu2 %v7049_v42 }
 0x615   : > { %2900 = vmatpush.msrb.mxu2 %v7059_v40 }
 0x617   : > { %2901 = vmatpush.msrb.mxu2 %v7065_v6 }
 0x618   : > { %2664 = vmatmul.f32.gmra.mxu2 %v2321_v29  ;;  %2705 = vmatmul.f32.gmra.mxu3 %v2321_v29 }
 0x619   : > { %2746 = vmatmul.f32.gmra.mxu0 %v2321_v29  ;;  %2787 = vmatmul.f32.gmra.mxu1 %v2321_v29  ;;  %v7120_v29 = vld [vmem:[#allocation14 + $0x2d0] sm:$0xff] }
 0x61a   : > { %2902 = vmatpush.msrb.mxu2 %v7072_v15  ;;  %2944 = vmatpush.msrb.mxu0 %v7120_v29 }
 0x61c   : > { %2903 = vmatpush.msrb.mxu2 %v7080_v48  ;;  %2945 = vmatpush.msrb.mxu0 %v7134_v11 }
 0x61e   : > { %2904 = vmatpush.msrb.mxu2 %v7098_v59 }
 0x620   : > { %2905 = vmatpush.msrb.mxu2 %v7110_v13 }
 0x622   : > { %2906 = vmatpush.msrb.mxu2 %v7124_v7 }
 0x65e   : > { %v2456_v50 = vpop.f32.mrf.mxu0 }
 0x65f   : > { %v2481_v14 = vadd.f32 %v2456_v50, %v2333_v43  ;;  %v7136_v43 = vld [vmem:[#allocation14 + $0x260] sm:$0xff]  ;;  %v7138_v50 = vld [vmem:[#allocation14 + $0x268] sm:$0xff] }
 0x660   : > { %8542 = vst [vmem:[#allocation41_spill] sm:$0xff] %v7136_v43  ;;  %2907 = vmatpush.msrb.mxu2 %v7136_v43  ;;  %2927 = vmatpush.msrb.mxu3 %v7138_v50  ;;  %v7184_v43 = vld [vmem:[#allocation14 + $0x208] sm:$0xff] }
 0x661   : > { %v4848_v39 = vmul.f32 -1.442695, %v2481_v14  ;;  %8543 = vst [vmem:[#allocation42_spill] sm:$0xff] %v7138_v50  ;;  %v7182_v50 = vld [vmem:[#allocation14 + $0x200] sm:$0xff] }
 0x662   : > { %8553 = vst [vmem:[#allocation54_spill] sm:$0xff] %v7182_v50 }
 0x663   : > { %5115 = vpow2.f32 %v4848_v39  ;;  %v2416_v45 = vpop.f32.mrf.mxu2  ;;  %v2436_v61 = vpop.f32.mrf.mxu3  ;;  %v7148_v39 = vld [vmem:[#allocation14 + $0x290] sm:$0xff]  ;;  %8554 = vst [vmem:[#allocation55_spill] sm:$0xff] %v7184_v43 }
 0x664   : > { %v2479_v4 = vadd.f32 %v2416_v45, %v2331_v2  ;;  %v2480_v31 = vadd.f32 %v2436_v61, %v2332_v27  ;;  %8544 = vst [vmem:[#allocation43_spill] sm:$0xff] %v7148_v39  ;;  %v7154_v27 = vld [vmem:[#allocation14 + $0x240] sm:$0xff]  ;;  %v7156_v45 = vld [vmem:[#allocation14 + $0x248] sm:$0xff]  ;;  %v7162_v61 = vld [vmem:[#allocation14 + $0x298] sm:$0xff]  ;;  %2946 = vmatpush.msrb.mxu0 %v7148_v39 }
 0x665   : > { %8545 = vst [vmem:[#allocation44_spill] sm:$0xff] %v7154_v27  ;;  %2908 = vmatpush.msrb.mxu2 %v7154_v27  ;;  %2928 = vmatpush.msrb.mxu3 %v7156_v45  ;;  %v7191_v27 = vld [vmem:[#allocation14 + $0x230] sm:$0xff] }
 0x666   : > { %v4846_v63 = vmul.f32 -1.442695, %v2479_v4  ;;  %v4847_v19 = vmul.f32 -1.442695, %v2480_v31  ;;  %8546 = vst [vmem:[#allocation45_spill] sm:$0xff] %v7156_v45  ;;  %v7164_v4 = vld [vmem:[#allocation14 + $0x270] sm:$0xff]  ;;  %2966 = vmatpush.msrb.mxu1 %v7162_v61 }
 0x667   : > { %8547 = vst [vmem:[#allocation46_spill] sm:$0xff] %v7162_v61  ;;  %v2326_v31 = vld [vmem:[%s5827_s30 + $0xf8] sm:$0xff]  ;;  %2947 = vmatpush.msrb.mxu0 %v7164_v4  ;;  %v7189_v45 = vld [vmem:[#allocation14 + $0x258] sm:$0xff]  ;;  %s4633_s30 = scalar_lea.sflag [#allocation7], %s5823_s5 }
 0x668   : > { %5117 = vpow2.f32 %v4846_v63  ;;  %8548 = vst [vmem:[#allocation47_spill] sm:$0xff] %v7164_v4  ;;  %v7170_v63 = vld [vmem:[#allocation14 + $0x220] sm:$0xff]  ;;  %v2334_v39 = vadd.f32 %v2326_v31, %v8516_v53  ;;  %v7199_v53 = vld [vmem:[#allocation14 + $0x238] sm:$0xff]  ;;  %v7201_v31 = vld [vmem:[#allocation14 + $0x210] sm:$0xff] }
 0x669   : > { %v5116_v9 = vpop.eup %5115  ;;  %5119 = vpow2.f32 %v4847_v19  ;;  %8549 = vst [vmem:[#allocation48_spill] sm:$0xff] %v7170_v63  ;;  %v7172_v19 = vld [vmem:[#allocation14 + $0x228] sm:$0xff]  ;;  %2909 = vmatpush.msrb.mxu2 %v7170_v63 }
 0x66a   : > { %v7122_v3 = vadd.f32 1.0, %v5116_v9  ;;  %8550 = vst [vmem:[#allocation49_spill] sm:$0xff] %v7172_v19  ;;  %v7176_v9 = vld [vmem:[#allocation14 + $0x278] sm:$0xff]  ;;  %2929 = vmatpush.msrb.mxu3 %v7172_v19 }
 0x66b   : > { %8551 = vst [vmem:[#allocation34_spill] sm:$0xff] %v7176_v9  ;;  %2967 = vmatpush.msrb.mxu1 %v7176_v9  ;;  %2910 = vmatpush.msrb.mxu2 %v7182_v50 }
 0x66c   : > { %5121 = vrcp.f32 %v7122_v3  ;;  %8555 = vst [vmem:[#allocation56_spill] sm:$0xff] %v7191_v27  ;;  %2930 = vmatpush.msrb.mxu3 %v7184_v43  ;;  %vm2530_vm13 = vweird.f32 %v7122_v3 }
 0x66d   : > { %8556 = vst [vmem:[#allocation37_spill] sm:$0xff] %v7201_v31  ;;  %2968 = vmatpush.msrb.mxu1 %v7189_v45  ;;  %3111 = vmatpush.msra.mxu2 %v6987_v17 }
 0x66e   : > { %v5118_v1 = vpop.eup %5117  ;;  %3131 = vmatpush.msra.mxu3 %v6989_v8 }
 0x66f   : > { %v5120_v14 = vpop.eup %5119  ;;  %v7142_v22 = vadd.f32 1.0, %v5118_v1  ;;  %v7178_v1 = vld [vmem:[#allocation14 + $0x250] sm:$0xff]  ;;  %2969 = vmatpush.msrb.mxu1 %v7199_v53  ;;  %3112 = vmatpush.msra.mxu2 %v6991_v32  ;;  %v8559_v32 = vld [vmem:[#allocation33_spill] sm:$0xff] }
 0x670   : > { %v7151_v2 = vadd.f32 1.0, %v5120_v14  ;;  %8552 = vst [vmem:[#allocation53_spill] sm:$0xff] %v7178_v1  ;;  %v2476_v14 = vpop.f32.mrf.mxu1  ;;  %2948 = vmatpush.msrb.mxu0 %v7178_v1  ;;  %v7207_v1 = vld [vmem:[#allocation14 + $0x218] sm:$0xff]  ;;  %3132 = vmatpush.msra.mxu3 %v6995_v5 }
 0x671   : > { %5123 = vrcp.f32 %v7142_v22  ;;  %v2482_v61 = vadd.f32 %v2476_v14, %v2334_v39  ;;  %v2506_v43 = vand.u32 2147483648, %v7142_v22  ;;  %v2504_v17 = vand.u32 2147483647, %v7142_v22  ;;  %2970 = vmatpush.msrb.mxu1 %v7207_v1  ;;  %3113 = vmatpush.msra.mxu2 %v7011_v24 }
 0x672   : > { %5125 = vrcp.f32 %v7151_v2  ;;  %v7193_v23 = vpop.eup %5121  ;;  %2949 = vmatpush.msrb.mxu0 %v7191_v27  ;;  %v2521_v8 = vand.u32 2147483648, %v7151_v2  ;;  %vm2500_vm6 = vweird.f32 %v7142_v22  ;;  %vm2515_vm8 = vweird.f32 %v7151_v2  ;;  %3133 = vmatpush.msra.mxu3 %v7013_v25 }
 0x673   : > { %v2526_v39 = vmul.f32 %v7193_v23, %v7122_v3  ;;  %5127 = vtanh.f32 %v2482_v61  ;;  %3171 = vmatpush.msra.mxu1 %v7019_v30  ;;  %vm2505_vm9 = vcmp.eq.f32.partialorder %v2504_v17, 8.507059e+37  ;;  %3114 = vmatpush.msra.mxu2 %v7037_v46  ;;  %vm2531_vm12 = vweird.f32 %v7193_v23 }
 0x674   : > { %2950 = vmatpush.msrb.mxu0 %v7201_v31  ;;  %v2519_v31 = vand.u32 2147483647, %v7151_v2  ;;  %v2522_v5 = vor.u32 1.1754944e-38, %v2521_v8  ;;  %3134 = vmatpush.msra.mxu3 %v7039_v62  ;;  %v2534_v17 = vand.u32 2147483647, %v7122_v3  ;;  %vm2532_vm14 = vmor %vm2530_vm13, %vm2531_vm12 }
 0x675   : > { %v2527_v61 = vsub.f32 1.0, %v2526_v39  ;;  %3172 = vmatpush.msra.mxu1 %v7026_v36  ;;  %3115 = vmatpush.msra.mxu2 %v7049_v42  ;;  %v5261_v8 = vld [vmem:[%s8286_s3] sm:$0x3] }
 0x676   : > { %3151 = vmatpush.msra.mxu0 %v7017_v28  ;;  %vm2520_vm11 = vcmp.eq.f32.partialorder %v2519_v31, 8.507059e+37  ;;  %3135 = vmatpush.msra.mxu3 %v7051_v20  ;;  %vm2535_vm15 = vcmp.eq.f32.partialorder %v2534_v17, 8.507059e+37  ;;  %v8571_v17 = vld [vmem:[#allocation49_spill] sm:$0xff] }
 0x677   : > { %v5124_v4 = vpop.eup %5123  ;;  %3173 = vmatpush.msra.mxu1 %v7032_v55  ;;  %3116 = vmatpush.msra.mxu2 %v7059_v40 }
 0x678   : > { %v5126_v19 = vpop.eup %5125  ;;  %v2496_v63 = vmul.f32 %v5124_v4, %v7142_v22  ;;  %vm2501_vm4 = vweird.f32 %v5124_v4  ;;  %3152 = vmatpush.msra.mxu0 %v7024_v35  ;;  %3136 = vmatpush.msra.mxu3 %v7061_v58 }
 0x679   : > { %v2511_v9 = vmul.f32 %v5126_v19, %v7151_v2  ;;  %vm2516_vm5 = vweird.f32 %v5126_v19  ;;  %vm7227_vm7 = vmor %vm2500_vm6, %vm2501_vm4  ;;  %v5128_v24 = vpop.eup %5127  ;;  %v2528_v2 = vmul.f32 %v7193_v23, %v2527_v61  ;;  %3174 = vmatpush.msra.mxu1 %v7047_v54  ;;  %3117 = vmatpush.msra.mxu2 %v7065_v6 }
 0x67a   : > { %v2497_v14 = vsub.f32 1.0, %v2496_v63  ;;  %vm2517_vm10 = vmor %vm2515_vm8, %vm2516_vm5  ;;  %3153 = vmatpush.msra.mxu0 %v7030_v37  ;;  %3137 = vmatpush.msra.mxu3 %v7067_v34 }
 0x67b   : > { %v2512_v50 = vsub.f32 1.0, %v2511_v9  ;;  %3175 = vmatpush.msra.mxu1 %v7084_v49  ;;  %v2529_v31 = vadd.f32 %v7193_v23, %v2528_v2  ;;  %3118 = vmatpush.msra.mxu2 %v7072_v15  ;;  %v8566_v2 = vld [vmem:[#allocation34_spill] sm:$0xff] }
 0x67c   : > { %v2498_v27 = vmul.f32 %v5124_v4, %v2497_v14  ;;  %3154 = vmatpush.msra.mxu0 %v7041_v10  ;;  %3138 = vmatpush.msra.mxu3 %v7074_v44 }
 0x67d   : > { %v2513_v63 = vmul.f32 %v5126_v19, %v2512_v50  ;;  %v2507_v50 = vor.u32 1.1754944e-38, %v2506_v43  ;;  %3176 = vmatpush.msra.mxu1 %v7090_v60  ;;  %v2533_v61 = vsel %vm2532_vm14, %v7193_v23, %v2529_v31  ;;  %3119 = vmatpush.msra.mxu2 %v7080_v48  ;;  %v8569_v31 = vld [vmem:[#allocation53_spill] sm:$0xff] }
 0x67e   : > { %v2499_v9 = vadd.f32 %v5124_v4, %v2498_v27  ;;  %3155 = vmatpush.msra.mxu0 %v7054_v38  ;;  %3139 = vmatpush.msra.mxu3 %v7086_v41 }
 0x67f   : > { %v2514_v14 = vadd.f32 %v5126_v19, %v2513_v63  ;;  %v552_v63 = vperm.slane %v5261_v8, 1  ;;  %3177 = vmatpush.msra.mxu1 %v7096_v21  ;;  %3120 = vmatpush.msra.mxu2 %v7098_v59  ;;  %v8572_v8 = vld [vmem:[#allocation56_spill] sm:$0xff] }
 0x680   : > { %v2503_v22 = vsel %vm7227_vm7, %v5124_v4, %v2499_v9  ;;  %3156 = vmatpush.msra.mxu0 %v7076_v26  ;;  %3140 = vmatpush.msra.mxu3 %v7100_v56 }
 0x681   : > { %v2518_v43 = vsel %vm2517_vm10, %v5126_v19, %v2514_v14  ;;  %v2508_v27 = vsel %vm2505_vm9, %v2507_v50, %v2503_v22  ;;  %3178 = vmatpush.msra.mxu1 %v7106_v57  ;;  %v593_v50 = vadd.f32 %v8559_v32, %v552_v63  ;;  %3121 = vmatpush.msra.mxu2 %v7110_v13  ;;  %v8561_v22 = vld [vmem:[#allocation43_spill] sm:$0xff]  ;;  %v8573_v63 = vld [vmem:[#allocation54_spill] sm:$0xff]  ;;  %v2620_v32 = vld [vmem:[#allocation16 + $0x1] ss:$2 sm:$0xf] }
 0x682   : > { %v2523_v25 = vsel %vm2520_vm11, %v2522_v5, %v2518_v43  ;;  %v2542_v39 = vmul.f32 %v5128_v24, %v2508_v27  ;;  %3157 = vmatpush.msra.mxu0 %v7082_v18  ;;  %3141 = vmatpush.msra.mxu3 %v7112_v12  ;;  %v8560_v5 = vld [vmem:[#allocation40_spill] sm:$0xff]  ;;  %v8562_v24 = vld [vmem:[#allocation46_spill] sm:$0xff]  ;;  %v8563_v43 = vld [vmem:[#allocation41_spill] sm:$0xff] }
 0x683   : > { %v2541_v4 = vmul.f32 %v2523_v25, %v6969_v52  ;;  %v2536_v52 = vand.u32 2147483648, %v7122_v3  ;;  %3179 = vmatpush.msra.mxu1 %v7118_v16  ;;  %3122 = vmatpush.msra.mxu2 %v7124_v7  ;;  %v8564_v27 = vld [vmem:[#allocation42_spill] sm:$0xff]  ;;  %v8565_v25 = vld [vmem:[#allocation47_spill] sm:$0xff] }
 0x684   : > { %3158 = vmatpush.msra.mxu0 %v7094_v0  ;;  %3142 = vmatpush.msra.mxu3 %v8560_v5 }
 0x685   : > { %v2543_v19 = vadd.f32 %v2542_v39, %v2541_v4  ;;  %v2537_v3 = vor.u32 1.1754944e-38, %v2536_v52  ;;  %3180 = vmatpush.msra.mxu1 %v7132_v33  ;;  %3123 = vmatpush.msra.mxu2 %v8563_v43  ;;  %v8567_v4 = vld [vmem:[#allocation44_spill] sm:$0xff] }
 0x686   : > { %3159 = vmatpush.msra.mxu0 %v7108_v51  ;;  %3143 = vmatpush.msra.mxu3 %v8564_v27  ;;  %v8570_v52 = vld [vmem:[#allocation48_spill] sm:$0xff] }
 0x687   : > { %5129 = vtanh.f32 %v2543_v19  ;;  %v2538_v14 = vsel %vm2535_vm15, %v2537_v3, %v2533_v61  ;;  %3181 = vmatpush.msra.mxu1 %v7146_v47  ;;  %3124 = vmatpush.msra.mxu2 %v8567_v4  ;;  %v8568_v19 = vld [vmem:[#allocation45_spill] sm:$0xff]  ;;  %v8574_v61 = vld [vmem:[#allocation55_spill] sm:$0xff] }
 0x688   : > { %3160 = vmatpush.msra.mxu0 %v7120_v29  ;;  %5131 = vtanh.f32 %v593_v50  ;;  %3144 = vmatpush.msra.mxu3 %v8568_v19  ;;  %v8575_v3 = vld [vmem:[#allocation37_spill] sm:$0xff] }
 0x689   : > { %3182 = vmatpush.msra.mxu1 %v8562_v24  ;;  %3125 = vmatpush.msra.mxu2 %v8570_v52 }
 0x68a   : > { %3161 = vmatpush.msra.mxu0 %v7134_v11  ;;  %3145 = vmatpush.msra.mxu3 %v8571_v17 }
 0x68b   : > { %3183 = vmatpush.msra.mxu1 %v8566_v2  ;;  %3126 = vmatpush.msra.mxu2 %v8573_v63 }
 0x68c   : > { %3162 = vmatpush.msra.mxu0 %v8561_v22  ;;  %3146 = vmatpush.msra.mxu3 %v8574_v61 }
 0x68d   : > { %v5130_v9 = vpop.eup %5129  ;;  %3184 = vmatpush.msra.mxu1 %v7189_v45 }
 0x68e   : > { %v2545_v23 = vmul.f32 %v5130_v9, %v2538_v14  ;;  %3163 = vmatpush.msra.mxu0 %v8565_v25  ;;  %v5132_v39 = vpop.eup %5131 }
 0x68f   : > { %3185 = vmatpush.msra.mxu1 %v7199_v53 }
 0x690   : > { %2667 = vmatmul.f32.gmra.mxu2 %v2545_v23  ;;  %2708 = vmatmul.f32.gmra.mxu3 %v2545_v23 }
 0x691   : > { %2749 = vmatmul.f32.gmra.mxu0 %v2545_v23  ;;  %2790 = vmatmul.f32.gmra.mxu1 %v2545_v23  ;;  %v7383_v23 = vperm.slane %v2620_v32, 2 }
 0x692   : > { %3164 = vmatpush.msra.mxu0 %v8569_v31  ;;  %3186 = vmatpush.msra.mxu1 %v7207_v1 }
 0x693   : > { %8593 = vst [vmem:[#allocation34_spill] sm:$0xff] %v7383_v23 }
 0x694   : > { %3165 = vmatpush.msra.mxu0 %v8572_v8 }
 0x696   : > { %3166 = vmatpush.msra.mxu0 %v8575_v3 }
 0x698   : > { %2911 = vmatmul.f32.vlgmr.msrb.gmra.mxu2 %v5132_v39  ;;  %2931 = vmatmul.f32.vlgmr.msrb.gmra.mxu3 %v5132_v39 }
 0x699   : > { %2951 = vmatmul.f32.vlgmr.msrb.gmra.mxu0 %v5132_v39  ;;  %2971 = vmatmul.f32.vlgmr.msrb.gmra.mxu1 %v5132_v39  ;;  %v7392_v39 = vperm.slane %v2620_v32, 1 }
 0x69a   : > { %3367 = vmatpush.msrb.mxu0 %v7017_v28  ;;  %3387 = vmatpush.msrb.mxu1 %v7019_v30  ;;  %v2729_v28 = vpop.f32.mrf.mxu0  ;;  %v2647_v30 = vpop.f32.mrf.mxu2 }
 0x69b   : > { %8597 = vst [vmem:[#allocation48_spill] sm:$0xff] %v7392_v39 }
 0x69c   : > { %3368 = vmatpush.msrb.mxu0 %v7024_v35  ;;  %3388 = vmatpush.msrb.mxu1 %v7026_v36  ;;  %v2688_v35 = vpop.f32.mrf.mxu3 }
 0x69e   : > { %3369 = vmatpush.msrb.mxu0 %v7030_v37  ;;  %3389 = vmatpush.msrb.mxu1 %v7032_v55 }
 0x6a0   : > { %3370 = vmatpush.msrb.mxu0 %v7041_v10  ;;  %3390 = vmatpush.msrb.mxu1 %v7047_v54  ;;  %v2770_v10 = vpop.f32.mrf.mxu1 }
 0x6a2   : > { %3371 = vmatpush.msrb.mxu0 %v7054_v38  ;;  %3391 = vmatpush.msrb.mxu1 %v7084_v49  ;;  %v7335_v36 = vpop.f32.mrf.mxu0  ;;  %v7337_v37 = vpop.f32.mrf.mxu2 }
 0x6a4   : > { %3372 = vmatpush.msrb.mxu0 %v7076_v26  ;;  %3392 = vmatpush.msrb.mxu1 %v7090_v60  ;;  %v7339_v55 = vpop.f32.mrf.mxu3 }
 0x6a6   : > { %3373 = vmatpush.msrb.mxu0 %v7082_v18  ;;  %3393 = vmatpush.msrb.mxu1 %v7096_v21 }
 0x6a8   : > { %3374 = vmatpush.msrb.mxu0 %v7094_v0  ;;  %3394 = vmatpush.msrb.mxu1 %v7106_v57  ;;  %v7347_v18 = vpop.f32.mrf.mxu1 }
 0x6aa   : > { %3375 = vmatpush.msrb.mxu0 %v7108_v51  ;;  %3395 = vmatpush.msrb.mxu1 %v7118_v16  ;;  %v7341_v54 = vpop.f32.mrf.mxu0  ;;  %v7343_v38 = vpop.f32.mrf.mxu2 }
 0x6ac   : > { %3376 = vmatpush.msrb.mxu0 %v7120_v29  ;;  %3396 = vmatpush.msrb.mxu1 %v7132_v33  ;;  %v7345_v26 = vpop.f32.mrf.mxu3 }
 0x6ae   : > { %3377 = vmatpush.msrb.mxu0 %v7134_v11  ;;  %3397 = vmatpush.msrb.mxu1 %v7146_v47 }
 0x6b0   : > { %3378 = vmatpush.msrb.mxu0 %v8561_v22  ;;  %3398 = vmatpush.msrb.mxu1 %v8562_v24  ;;  %v7355_v21 = vpop.f32.mrf.mxu1 }
 0x6b1   : > { %8579 = vst [vmem:[#allocation32_spill] sm:$0xff] %v7355_v21 }
 0x6b2   : > { %3379 = vmatpush.msrb.mxu0 %v8565_v25  ;;  %3399 = vmatpush.msrb.mxu1 %v8566_v2  ;;  %v7349_v49 = vpop.f32.mrf.mxu0  ;;  %v7351_v60 = vpop.f32.mrf.mxu2  ;;  %v2730_v25 = vadd.f32 %v2729_v28, %v7383_v23  ;;  %v7390_v2 = vperm.slane %v2620_v32, 0 }
 0x6b3   : > { %8576 = vst [vmem:[#allocation38_spill] sm:$0xff] %v7349_v49 }
 0x6b4   : > { %3380 = vmatpush.msrb.mxu0 %v8569_v31  ;;  %3400 = vmatpush.msrb.mxu1 %v7189_v45  ;;  %8577 = vst [vmem:[#allocation39_spill] sm:$0xff] %v7351_v60  ;;  %v7353_v0 = vpop.f32.mrf.mxu3 }
 0x6b5   : > { %8578 = vst [vmem:[#allocation31_spill] sm:$0xff] %v7353_v0 }
 0x6b6   : > { %3381 = vmatpush.msrb.mxu0 %v8572_v8  ;;  %3401 = vmatpush.msrb.mxu1 %v7199_v53  ;;  %8596 = vst [vmem:[#allocation53_spill] sm:$0xff] %v7390_v2 }
 0x6b8   : > { %3382 = vmatpush.msrb.mxu0 %v8575_v3  ;;  %3402 = vmatpush.msrb.mxu1 %v7207_v1  ;;  %v7363_v29 = vpop.f32.mrf.mxu1 }
 0x6b9   : > { %8583 = vst [vmem:[#allocation50_spill] sm:$0xff] %v7363_v29 }
 0x6ba   : > { %v7357_v57 = vpop.f32.mrf.mxu0  ;;  %v7359_v51 = vpop.f32.mrf.mxu2 }
 0x6bb   : > { %8580 = vst [vmem:[#allocation30_spill] sm:$0xff] %v7357_v57 }
 0x6bc   : > { %8581 = vst [vmem:[#allocation35_spill] sm:$0xff] %v7359_v51  ;;  %v7361_v16 = vpop.f32.mrf.mxu3 }
 0x6bd   : > { %8582 = vst [vmem:[#allocation36_spill] sm:$0xff] %v7361_v16 }
 0x6c0   : > { %v7371_v45 = vpop.f32.mrf.mxu1 }
 0x6c1   : > { %8587 = vst [vmem:[#allocation40_spill] sm:$0xff] %v7371_v45  ;;  %v7400_v45 = vperm.slane %v2620_v32, 3 }
 0x6c2   : > { %v7365_v33 = vpop.f32.mrf.mxu0  ;;  %v7367_v11 = vpop.f32.mrf.mxu2 }
 0x6c3   : > { %8584 = vst [vmem:[#allocation51_spill] sm:$0xff] %v7365_v33 }
 0x6c4   : > { %8585 = vst [vmem:[#allocation52_spill] sm:$0xff] %v7367_v11  ;;  %v7369_v47 = vpop.f32.mrf.mxu3 }
 0x6c5   : > { %8586 = vst [vmem:[#allocation33_spill] sm:$0xff] %v7369_v47 }
 0x6c8   : > { %v7381_v14 = vpop.f32.mrf.mxu1 }
 0x6c9   : > { %8592 = vst [vmem:[#allocation47_spill] sm:$0xff] %v7381_v14 }
 0x6ca   : > { %v7373_v1 = vpop.f32.mrf.mxu0  ;;  %v7375_v53 = vpop.f32.mrf.mxu2 }
 0x6cb   : > { %8588 = vst [vmem:[#allocation43_spill] sm:$0xff] %v7373_v1 }
 0x6cc   : > { %8589 = vst [vmem:[#allocation46_spill] sm:$0xff] %v7375_v53  ;;  %v7377_v9 = vpop.f32.mrf.mxu3 }
 0x6cd   : > { %8590 = vst [vmem:[#allocation41_spill] sm:$0xff] %v7377_v9  ;;  %v2648_v9 = vadd.f32 %v2647_v30, %v7390_v2 }
 0x6d0   : > { %v7396_v53 = vpop.f32.mrf.mxu1 }
 0x6d1   : > { %8598 = vst [vmem:[#allocation49_spill] sm:$0xff] %v7396_v53 }
 0x70e   : > { %v7379_v50 = vpop.f32.mrf.mxu0  ;;  %v7398_v33 = vpop.f32.mrf.mxu1 }
 0x70f   : > { %8591 = vst [vmem:[#allocation42_spill] sm:$0xff] %v7379_v50  ;;  %v2689_v50 = vadd.f32 %v2688_v35, %v7392_v39 }
 0x710   : > { %8599 = vst [vmem:[#allocation56_spill] sm:$0xff] %v7398_v33 }
 0x713   : > { %v7385_v22 = vpop.f32.mrf.mxu2  ;;  %v7387_v24 = vpop.f32.mrf.mxu3 }
 0x714   : > { %8594 = vst [vmem:[#allocation44_spill] sm:$0xff] %v7385_v22 }
 0x715   : > { %8595 = vst [vmem:[#allocation45_spill] sm:$0xff] %v7387_v24 }
 0x716   : > { %v2952_v31 = vpop.f32.mrf.mxu0 }
 0x717   : > { %v2977_v8 = vadd.f32 %v2952_v31, %v2730_v25 }
 0x719   : > { %v4851_v3 = vmul.f32 -1.442695, %v2977_v8 }
 0x71b   : > { %5133 = vpow2.f32 %v4851_v3  ;;  %v2912_v1 = vpop.f32.mrf.mxu2  ;;  %v2932_v22 = vpop.f32.mrf.mxu3 }
 0x71c   : > { %v2975_v14 = vadd.f32 %v2912_v1, %v2648_v9  ;;  %v2976_v24 = vadd.f32 %v2932_v22, %v2689_v50  ;;  %v2972_v3 = vpop.f32.mrf.mxu1  ;;  %v2771_v1 = vadd.f32 %v2770_v10, %v7400_v45 }
 0x71e   : > { %v4849_v47 = vmul.f32 -1.442695, %v2975_v14  ;;  %v4850_v28 = vmul.f32 -1.442695, %v2976_v24 }
 0x720   : > { %5135 = vpow2.f32 %v4849_v47  ;;  %v2978_v47 = vadd.f32 %v2972_v3, %v2771_v1 }
 0x721   : > { %v5134_v11 = vpop.eup %5133  ;;  %5137 = vpow2.f32 %v4850_v28 }
 0x722   : > { %v2990_v25 = vadd.f32 1.0, %v5134_v11 }
 0x724   : > { %5139 = vrcp.f32 %v2990_v25  ;;  %vm3026_vm9 = vweird.f32 %v2990_v25 }
 0x726   : > { %v5136_v31 = vpop.eup %5135 }
 0x727   : > { %v5138_v8 = vpop.eup %5137  ;;  %v2988_v30 = vadd.f32 1.0, %v5136_v31 }
 0x728   : > { %v2989_v35 = vadd.f32 1.0, %v5138_v8 }
 0x729   : > { %5141 = vrcp.f32 %v2988_v30  ;;  %v3002_v33 = vand.u32 2147483648, %v2988_v30  ;;  %v3000_v32 = vand.u32 2147483647, %v2988_v30  ;;  %vm2996_vm2 = vweird.f32 %v2988_v30 }
 0x72a   : > { %5143 = vrcp.f32 %v2989_v35  ;;  %v5140_v9 = vpop.eup %5139  ;;  %v3017_v8 = vand.u32 2147483648, %v2989_v35  ;;  %v3015_v51 = vand.u32 2147483647, %v2989_v35  ;;  %vm3011_vm4 = vweird.f32 %v2989_v35 }
 0x72b   : > { %v3022_v28 = vmul.f32 %v5140_v9, %v2990_v25  ;;  %5145 = vtanh.f32 %v2978_v47  ;;  %v3003_v3 = vor.u32 1.1754944e-38, %v3002_v33  ;;  %vm3001_vm5 = vcmp.eq.f32.partialorder %v3000_v32, 8.507059e+37 }
 0x72c   : > { %v3018_v47 = vor.u32 1.1754944e-38, %v3017_v8  ;;  %vm3016_vm7 = vcmp.eq.f32.partialorder %v3015_v51, 8.507059e+37  ;;  %vm3027_vm8 = vweird.f32 %v5140_v9 }
 0x72d   : > { %v3023_v57 = vsub.f32 1.0, %v3022_v28  ;;  %vm3028_vm10 = vmor %vm3026_vm9, %vm3027_vm8 }
 0x72f   : > { %v5142_v50 = vpop.eup %5141  ;;  %v3024_v0 = vmul.f32 %v5140_v9, %v3023_v57  ;;  %v7420_v57 = vld [vmem:[#allocation14 + $0x3c8] sm:$0xff] }
 0x730   : > { %v5144_v14 = vpop.eup %5143  ;;  %v2992_v22 = vmul.f32 %v5142_v50, %v2988_v30  ;;  %vm2997_vm0 = vweird.f32 %v5142_v50  ;;  %v3032_v30 = vand.u32 2147483648, %v2990_v25 }
 0x731   : > { %v3007_v24 = vmul.f32 %v5144_v14, %v2989_v35  ;;  %vm3012_vm1 = vweird.f32 %v5144_v14  ;;  %vm2998_vm3 = vmor %vm2996_vm2, %vm2997_vm0 }
 0x732   : > { %v2993_v11 = vsub.f32 1.0, %v2992_v22  ;;  %vm3013_vm6 = vmor %vm3011_vm4, %vm3012_vm1  ;;  %v5146_v22 = vpop.eup %5145  ;;  %v3033_v35 = vor.u32 1.1754944e-38, %v3032_v30 }
 0x733   : > { %v3008_v31 = vsub.f32 1.0, %v3007_v24 }
 0x734   : > { %v2994_v53 = vmul.f32 %v5142_v50, %v2993_v11 }
 0x735   : > { %v3009_v16 = vmul.f32 %v5144_v14, %v3008_v31 }
 0x736   : > { %v2995_v10 = vadd.f32 %v5142_v50, %v2994_v53  ;;  %v3025_v53 = vadd.f32 %v5140_v9, %v3024_v0  ;;  %v7418_v0 = vld [vmem:[#allocation14 + $0x3c0] sm:$0xff] }
 0x737   : > { %v3010_v1 = vadd.f32 %v5144_v14, %v3009_v16  ;;  %v3030_v16 = vand.u32 2147483647, %v2990_v25  ;;  %v7424_v25 = vld [vmem:[#allocation14 + $0x3a0] sm:$0xff] }
 0x738   : > { %v2999_v29 = vsel %vm2998_vm3, %v5142_v50, %v2995_v10  ;;  %v3029_v33 = vsel %vm3028_vm10, %v5140_v9, %v3025_v53  ;;  %v7426_v9 = vld [vmem:[#allocation14 + $0x3a8] sm:$0xff] }
 0x739   : > { %v3004_v24 = vsel %vm3001_vm5, %v3003_v3, %v2999_v29  ;;  %v3014_v11 = vsel %vm3013_vm6, %v5144_v14, %v3010_v1  ;;  %vm3031_vm11 = vcmp.eq.f32.partialorder %v3030_v16, 8.507059e+37  ;;  %v2733_v14 = vadd.f32 %v7335_v36, %v7383_v23 }
 0x73a   : > { %v3038_v60 = vmul.f32 %v5146_v22, %v3004_v24  ;;  %v3019_v31 = vsel %vm3016_vm7, %v3018_v47, %v3014_v11  ;;  %v3034_v50 = vsel %vm3031_vm11, %v3033_v35, %v3029_v33 }
 0x73b   : > { %v3037_v49 = vmul.f32 0.0, %v3019_v31 }
 0x73d   : > { %v7403_v21 = vadd.f32 %v3038_v60, %v3037_v49  ;;  %v7412_v49 = vld [vmem:[#allocation14 + $0x3e0] sm:$0xff]  ;;  %v7414_v60 = vld [vmem:[#allocation14 + $0x3e8] sm:$0xff] }
 0x73e   : > { %3327 = vmatpush.msrb.mxu2 %v7412_v49  ;;  %3347 = vmatpush.msrb.mxu3 %v7414_v60 }
 0x73f   : > { %5147 = vtanh.f32 %v7403_v21 }
 0x740   : > { %3328 = vmatpush.msrb.mxu2 %v7418_v0  ;;  %3348 = vmatpush.msrb.mxu3 %v7420_v57 }
 0x742   : > { %3329 = vmatpush.msrb.mxu2 %v7424_v25  ;;  %3349 = vmatpush.msrb.mxu3 %v7426_v9 }
 0x744   : > { %3330 = vmatpush.msrb.mxu2 %v7037_v46  ;;  %3350 = vmatpush.msrb.mxu3 %v7039_v62  ;;  %v2651_v62 = vadd.f32 %v7337_v37, %v7390_v2 }
 0x745   : > { %v5148_v29 = vpop.eup %5147 }
 0x746   : > { %v7406_v51 = vmul.f32 %v5148_v29, %v3034_v50  ;;  %3331 = vmatpush.msrb.mxu2 %v7049_v42  ;;  %3351 = vmatpush.msrb.mxu3 %v7051_v20  ;;  %v2692_v42 = vadd.f32 %v7339_v55, %v7392_v39 }
 0x748   : > { %8600 = vst [vmem:[#allocation54_spill] sm:$0xff] %v7406_v51  ;;  %3127 = vmatmul.f32.vlgmr.msra.gmra.mxu2 %v7406_v51  ;;  %3147 = vmatmul.f32.vlgmr.msra.gmra.mxu3 %v7406_v51 }
 0x749   : > { %3167 = vmatmul.f32.vlgmr.msra.gmra.mxu0 %v7406_v51  ;;  %3187 = vmatmul.f32.vlgmr.msra.gmra.mxu1 %v7406_v51  ;;  %v7635_v51 = vld [vmem:[#allocation14 + $0x258] sm:$0xff] }
 0x74a   : > { %3332 = vmatpush.msrb.mxu2 %v7059_v40  ;;  %3352 = vmatpush.msrb.mxu3 %v7061_v58 }
 0x74c   : > { %3333 = vmatpush.msrb.mxu2 %v7065_v6  ;;  %3353 = vmatpush.msrb.mxu3 %v7067_v34 }
 0x74e   : > { %3334 = vmatpush.msrb.mxu2 %v7072_v15  ;;  %3354 = vmatpush.msrb.mxu3 %v7074_v44 }
 0x750   : > { %3335 = vmatpush.msrb.mxu2 %v7080_v48  ;;  %3355 = vmatpush.msrb.mxu3 %v7086_v41 }
 0x752   : > { %3336 = vmatpush.msrb.mxu2 %v7098_v59  ;;  %3356 = vmatpush.msrb.mxu3 %v7100_v56 }
 0x754   : > { %3337 = vmatpush.msrb.mxu2 %v7110_v13  ;;  %3357 = vmatpush.msrb.mxu3 %v7112_v12 }
 0x756   : > { %3338 = vmatpush.msrb.mxu2 %v7124_v7  ;;  %3358 = vmatpush.msrb.mxu3 %v8560_v5  ;;  %v2774_v7 = vadd.f32 %v7347_v18, %v7400_v45 }
 0x758   : > { %3339 = vmatpush.msrb.mxu2 %v8563_v43  ;;  %3359 = vmatpush.msrb.mxu3 %v8564_v27 }
 0x75a   : > { %3340 = vmatpush.msrb.mxu2 %v8567_v4  ;;  %3360 = vmatpush.msrb.mxu3 %v8568_v19 }
 0x75c   : > { %3341 = vmatpush.msrb.mxu2 %v8570_v52  ;;  %3361 = vmatpush.msrb.mxu3 %v8571_v17 }
 0x75e   : > { %3342 = vmatpush.msrb.mxu2 %v8573_v63  ;;  %3362 = vmatpush.msrb.mxu3 %v8574_v61 }
 0x760   : > { %3543 = vmatpush.msra.mxu2 %v7412_v49  ;;  %3563 = vmatpush.msra.mxu3 %v7414_v60 }
 0x762   : > { %3544 = vmatpush.msra.mxu2 %v7418_v0  ;;  %3564 = vmatpush.msra.mxu3 %v7420_v57 }
 0x764   : > { %3545 = vmatpush.msra.mxu2 %v7424_v25  ;;  %3565 = vmatpush.msra.mxu3 %v7426_v9 }
 0x7c6   : > { %v3168_v28 = vpop.f32.mrf.mxu0  ;;  %v3188_v12 = vpop.f32.mrf.mxu1 }
 0x7c7   : > { %v3193_v32 = vadd.f32 %v3168_v28, %v2733_v14  ;;  %v3194_v27 = vadd.f32 %v3188_v12, %v2774_v7  ;;  %v7519_v12 = vld [vmem:[#allocation14 + $0x368] sm:$0xff]  ;;  %v7521_v7 = vld [vmem:[#allocation14 + $0x370] sm:$0xff] }
 0x7c8   : > { %8606 = vst [vmem:[#allocation60_spill] sm:$0xff] %v7519_v12 }
 0x7c9   : > { %v4854_v46 = vmul.f32 -1.442695, %v3193_v32 }
 0x7cb   : > { %5149 = vpow2.f32 %v4854_v46  ;;  %v3128_v20 = vpop.f32.mrf.mxu2  ;;  %v3148_v40 = vpop.f32.mrf.mxu3 }
 0x7cc   : > { %v3191_v58 = vadd.f32 %v3128_v20, %v2651_v62  ;;  %v3192_v6 = vadd.f32 %v3148_v40, %v2692_v42 }
 0x7ce   : > { %v4852_v34 = vmul.f32 -1.442695, %v3191_v58  ;;  %v4853_v15 = vmul.f32 -1.442695, %v3192_v6  ;;  %v7489_v58 = vld [vmem:[#allocation14 + $0x3f8] sm:$0xff]  ;;  %v7493_v6 = vld [vmem:[#allocation14 + $0x3d0] sm:$0xff] }
 0x7cf   : > { %3603 = vmatpush.msra.mxu1 %v7489_v58  ;;  %8602 = vst [vmem:[#allocation37_spill] sm:$0xff] %v7493_v6 }
 0x7d0   : > { %5151 = vpow2.f32 %v4852_v34  ;;  %v7495_v34 = vld [vmem:[#allocation14 + $0x3d8] sm:$0xff] }
 0x7d1   : > { %v5150_v44 = vpop.eup %5149  ;;  %5153 = vpow2.f32 %v4853_v15  ;;  %8603 = vst [vmem:[#allocation57_spill] sm:$0xff] %v7495_v34  ;;  %3604 = vmatpush.msra.mxu1 %v7495_v34  ;;  %v7499_v15 = vld [vmem:[#allocation14 + $0x3b0] sm:$0xff] }
 0x7d2   : > { %v7458_v48 = vadd.f32 1.0, %v5150_v44  ;;  %v7501_v44 = vld [vmem:[#allocation14 + $0x3b8] sm:$0xff] }
 0x7d3   : > { %3605 = vmatpush.msra.mxu1 %v7501_v44 }
 0x7d4   : > { %5155 = vrcp.f32 %v7458_v48  ;;  %v3248_v28 = vand.u32 2147483648, %v7458_v48  ;;  %vm3242_vm5 = vweird.f32 %v7458_v48  ;;  %v3246_v32 = vand.u32 2147483647, %v7458_v48 }
 0x7d6   : > { %v5152_v41 = vpop.eup %5151  ;;  %v3249_v62 = vor.u32 1.1754944e-38, %v3248_v28  ;;  %vm3247_vm7 = vcmp.eq.f32.partialorder %v3246_v32, 8.507059e+37  ;;  %v7599_v32 = vld [vmem:[#allocation14 + $0x2b0] sm:$0xff] }
 0x7d7   : > { %v5154_v59 = vpop.eup %5153  ;;  %v3204_v56 = vadd.f32 1.0, %v5152_v41  ;;  %v7507_v41 = vld [vmem:[#allocation14 + $0x388] sm:$0xff] }
 0x7d8   : > { %v3205_v13 = vadd.f32 1.0, %v5154_v59  ;;  %8604 = vst [vmem:[#allocation58_spill] sm:$0xff] %v7507_v41  ;;  %v7509_v59 = vld [vmem:[#allocation14 + $0x390] sm:$0xff]  ;;  %3566 = vmatpush.msra.mxu3 %v7507_v41 }
 0x7d9   : > { %5157 = vrcp.f32 %v3204_v56  ;;  %v3218_v61 = vand.u32 2147483648, %v3204_v56  ;;  %v3216_v55 = vand.u32 2147483647, %v3204_v56  ;;  %vm3212_vm14 = vweird.f32 %v3204_v56 }
 0x7da   : > { %5159 = vrcp.f32 %v3205_v13  ;;  %v5156_v5 = vpop.eup %5155  ;;  %v3233_v8 = vand.u32 2147483648, %v3205_v13  ;;  %v3231_v3 = vand.u32 2147483647, %v3205_v13  ;;  %vm3227_vm0 = vweird.f32 %v3205_v13  ;;  %3567 = vmatpush.msra.mxu3 %v7519_v12 }
 0x7db   : > { %v3238_v17 = vmul.f32 %v5156_v5, %v7458_v48  ;;  %5161 = vtanh.f32 %v3194_v27  ;;  %v3219_v47 = vor.u32 1.1754944e-38, %v3218_v61  ;;  %vm3217_vm1 = vcmp.eq.f32.partialorder %v3216_v55, 8.507059e+37  ;;  %v7505_v48 = vld [vmem:[#allocation14 + $0x380] sm:$0xff]  ;;  %v7531_v27 = vld [vmem:[#allocation14 + $0x348] sm:$0xff] }
 0x7dc   : > { %v3234_v11 = vor.u32 1.1754944e-38, %v3233_v8  ;;  %vm3232_vm3 = vcmp.eq.f32.partialorder %v3231_v3, 8.507059e+37  ;;  %vm3243_vm4 = vweird.f32 %v5156_v5  ;;  %3546 = vmatpush.msra.mxu2 %v7505_v48  ;;  %8608 = vst [vmem:[#allocation62_spill] sm:$0xff] %v7531_v27  ;;  %3568 = vmatpush.msra.mxu3 %v7531_v27  ;;  %v2736_v61 = vadd.f32 %v7341_v54, %v7383_v23  ;;  %v7555_v55 = vld [vmem:[#allocation14 + $0x300] sm:$0xff]  ;;  %v7557_v8 = vld [vmem:[#allocation14 + $0x308] sm:$0xff]  ;;  %v7563_v54 = vld [vmem:[#allocation14 + $0x318] sm:$0xff] }
 0x7dd   : > { %v3239_v18 = vsub.f32 1.0, %v3238_v17  ;;  %vm3244_vm6 = vmor %vm3242_vm5, %vm3243_vm4  ;;  %v7543_v17 = vld [vmem:[#allocation14 + $0x328] sm:$0xff] }
 0x7de   : > { %8609 = vst [vmem:[#allocation63_spill] sm:$0xff] %v7543_v17  ;;  %3569 = vmatpush.msra.mxu3 %v7543_v17 }
 0x7df   : > { %v5158_v43 = vpop.eup %5157  ;;  %v3240_v16 = vmul.f32 %v5156_v5, %v3239_v18  ;;  %v7567_v18 = vld [vmem:[#allocation14 + $0x2e0] sm:$0xff] }
 0x7e0   : > { %v5160_v4 = vpop.eup %5159  ;;  %v3208_v19 = vmul.f32 %v5158_v43, %v3204_v56  ;;  %vm3213_vm12 = vweird.f32 %v5158_v43  ;;  %v7513_v56 = vld [vmem:[#allocation14 + $0x398] sm:$0xff]  ;;  %3570 = vmatpush.msra.mxu3 %v7557_v8 }
 0x7e1   : > { %v3223_v52 = vmul.f32 %v5160_v4, %v3205_v13  ;;  %vm3228_vm13 = vweird.f32 %v5160_v4  ;;  %vm3214_vm15 = vmor %vm3212_vm14, %vm3213_vm12  ;;  %v5162_v31 = vpop.eup %5161  ;;  %v3241_v14 = vadd.f32 %v5156_v5, %v3240_v16  ;;  %3606 = vmatpush.msra.mxu1 %v7513_v56  ;;  %v7517_v13 = vld [vmem:[#allocation14 + $0x360] sm:$0xff]  ;;  %v7587_v16 = vld [vmem:[#allocation14 + $0x2d0] sm:$0xff] }
 0x7e2   : > { %v3209_v63 = vsub.f32 1.0, %v3208_v19  ;;  %vm3229_vm2 = vmor %vm3227_vm0, %vm3228_vm13  ;;  %8605 = vst [vmem:[#allocation59_spill] sm:$0xff] %v7517_v13  ;;  %3547 = vmatpush.msra.mxu2 %v7517_v13  ;;  %v7537_v19 = vld [vmem:[#allocation14 + $0x358] sm:$0xff] }
 0x7e3   : > { %v3224_v36 = vsub.f32 1.0, %v3223_v52  ;;  %v3245_v46 = vsel %vm3244_vm6, %v5156_v5, %v3241_v14  ;;  %v7525_v5 = vld [vmem:[#allocation14 + $0x378] sm:$0xff]  ;;  %v7541_v52 = vld [vmem:[#allocation14 + $0x320] sm:$0xff] }
 0x7e4   : > { %v3210_v37 = vmul.f32 %v5158_v43, %v3209_v63  ;;  %v3250_v20 = vsel %vm3247_vm7, %v3249_v62, %v3245_v46  ;;  %3607 = vmatpush.msra.mxu1 %v7525_v5  ;;  %v7545_v63 = vld [vmem:[#allocation14 + $0x330] sm:$0xff]  ;;  %v7601_v46 = vld [vmem:[#allocation14 + $0x2b8] sm:$0xff]  ;;  %v7603_v62 = vld [vmem:[#allocation14 + $0x280] sm:$0xff] }
 0x7e5   : > { %v3225_v10 = vmul.f32 %v5160_v4, %v3224_v36  ;;  %v7551_v36 = vld [vmem:[#allocation14 + $0x338] sm:$0xff] }
 0x7e6   : > { %v3211_v1 = vadd.f32 %v5158_v43, %v3210_v37  ;;  %3608 = vmatpush.msra.mxu1 %v7537_v19 }
 0x7e7   : > { %v3226_v22 = vadd.f32 %v5160_v4, %v3225_v10  ;;  %v7559_v10 = vld [vmem:[#allocation14 + $0x310] sm:$0xff] }
 0x7e8   : > { %v3215_v24 = vsel %vm3214_vm15, %v5158_v43, %v3211_v1  ;;  %v7529_v43 = vld [vmem:[#allocation14 + $0x340] sm:$0xff]  ;;  %3609 = vmatpush.msra.mxu1 %v7551_v36  ;;  %v7569_v1 = vld [vmem:[#allocation14 + $0x2e8] sm:$0xff] }
 0x7e9   : > { %v3220_v53 = vsel %vm3217_vm1, %v3219_v47, %v3215_v24  ;;  %v3230_v30 = vsel %vm3229_vm2, %v5160_v4, %v3226_v22  ;;  %8607 = vst [vmem:[#allocation61_spill] sm:$0xff] %v7529_v43  ;;  %v7533_v4 = vld [vmem:[#allocation14 + $0x350] sm:$0xff]  ;;  %3548 = vmatpush.msra.mxu2 %v7529_v43  ;;  %3571 = vmatpush.msra.mxu3 %v7569_v1  ;;  %v7575_v24 = vld [vmem:[#allocation14 + $0x2f8] sm:$0xff] }
 0x7ea   : > { %v3254_v33 = vmul.f32 %v5162_v31, %v3220_v53  ;;  %v3235_v35 = vsel %vm3232_vm3, %v3234_v11, %v3230_v30  ;;  %3610 = vmatpush.msra.mxu1 %v7563_v54  ;;  %v7571_v47 = vld [vmem:[#allocation14 + $0x2f0] sm:$0xff]  ;;  %v2654_v11 = vadd.f32 %v7343_v38, %v7390_v2  ;;  %v2695_v31 = vadd.f32 %v7345_v26, %v7392_v39  ;;  %v7583_v53 = vld [vmem:[#allocation14 + $0x2c0] sm:$0xff]  ;;  %v7585_v30 = vld [vmem:[#allocation14 + $0x2c8] sm:$0xff] }
 0x7eb   : > { %v3253_v29 = vmul.f32 %v3235_v35, %v7403_v21  ;;  %v7487_v21 = vld [vmem:[#allocation14 + $0x3f0] sm:$0xff]  ;;  %3549 = vmatpush.msra.mxu2 %v7541_v52  ;;  %3572 = vmatpush.msra.mxu3 %v7585_v30  ;;  %v7591_v38 = vld [vmem:[#allocation14 + $0x2d8] sm:$0xff]  ;;  %v7593_v26 = vld [vmem:[#allocation14 + $0x2a0] sm:$0xff] }
 0x7ec   : > { %3583 = vmatpush.msra.mxu0 %v7487_v21  ;;  %3611 = vmatpush.msra.mxu1 %v7575_v24  ;;  %v7641_v39 = vld [vmem:[#allocation14 + $0x228] sm:$0xff]  ;;  %v7647_v2 = vld [vmem:[#allocation14 + $0x238] sm:$0xff] }
 0x7ed   : > { %v7475_v50 = vadd.f32 %v3254_v33, %v3253_v29  ;;  %3550 = vmatpush.msra.mxu2 %v7555_v55  ;;  %v7595_v29 = vld [vmem:[#allocation14 + $0x2a8] sm:$0xff] }
 0x7ee   : > { %3584 = vmatpush.msra.mxu0 %v7493_v6  ;;  %3612 = vmatpush.msra.mxu1 %v7591_v38 }
 0x7ef   : > { %5163 = vtanh.f32 %v7475_v50  ;;  %3551 = vmatpush.msra.mxu2 %v7567_v18  ;;  %3573 = vmatpush.msra.mxu3 %v7595_v29 }
 0x7f0   : > { %3585 = vmatpush.msra.mxu0 %v7499_v15  ;;  %3613 = vmatpush.msra.mxu1 %v7601_v46 }
 0x7f1   : > { %3552 = vmatpush.msra.mxu2 %v7583_v53 }
 0x7f2   : > { %3586 = vmatpush.msra.mxu0 %v7509_v59 }
 0x7f3   : > { %3553 = vmatpush.msra.mxu2 %v7593_v26 }
 0x7f4   : > { %3587 = vmatpush.msra.mxu0 %v7521_v7 }
 0x7f5   : > { %v5164_v42 = vpop.eup %5163  ;;  %3554 = vmatpush.msra.mxu2 %v7603_v62 }
 0x7f6   : > { %v7481_v40 = vmul.f32 %v5164_v42, %v3250_v20  ;;  %3588 = vmatpush.msra.mxu0 %v7533_v4  ;;  %v7607_v42 = vld [vmem:[#allocation14 + $0x288] sm:$0xff]  ;;  %v7609_v20 = vld [vmem:[#allocation14 + $0x290] sm:$0xff] }
 0x7f7   : > { %3574 = vmatpush.msra.mxu3 %v7607_v42 }
 0x7f8   : > { %8601 = vst [vmem:[#allocation55_spill] sm:$0xff] %v7481_v40  ;;  %3343 = vmatmul.f32.vlgmr.msrb.gmra.mxu2 %v7481_v40  ;;  %3363 = vmatmul.f32.vlgmr.msrb.gmra.mxu3 %v7481_v40 }
 0x7f9   : > { %3383 = vmatmul.f32.vlgmr.msrb.gmra.mxu0 %v7481_v40  ;;  %3403 = vmatmul.f32.vlgmr.msrb.gmra.mxu1 %v7481_v40  ;;  %v7633_v40 = vld [vmem:[#allocation14 + $0x250] sm:$0xff] }
 0x7fa   : > { %3589 = vmatpush.msra.mxu0 %v7545_v63  ;;  %8615 = vst [vmem:[#allocation69_spill] sm:$0xff] %v7633_v40 }
 0x7fc   : > { %3590 = vmatpush.msra.mxu0 %v7559_v10 }
 0x7fe   : > { %3591 = vmatpush.msra.mxu0 %v7571_v47 }
 0x800   : > { %3592 = vmatpush.msra.mxu0 %v7587_v16 }
 0x802   : > { %3593 = vmatpush.msra.mxu0 %v7599_v32 }
 0x804   : > { %3594 = vmatpush.msra.mxu0 %v7609_v20 }
 0x876   : > { %v3384_v37 = vpop.f32.mrf.mxu0 }
 0x877   : > { %v3409_v3 = vadd.f32 %v3384_v37, %v2736_v61  ;;  %v7611_v61 = vld [vmem:[#allocation14 + $0x298] sm:$0xff] }
 0x878   : > { %3614 = vmatpush.msra.mxu1 %v7611_v61 }
 0x879   : > { %v4857_v22 = vmul.f32 -1.442695, %v3409_v3 }
 0x87b   : > { %5165 = vpow2.f32 %v4857_v22  ;;  %v3344_v33 = vpop.f32.mrf.mxu2  ;;  %v3364_v35 = vpop.f32.mrf.mxu3  ;;  %v7615_v22 = vld [vmem:[#allocation14 + $0x260] sm:$0xff] }
 0x87c   : > { %v3407_v14 = vadd.f32 %v3344_v33, %v2654_v11  ;;  %v3408_v28 = vadd.f32 %v3364_v35, %v2695_v31  ;;  %v7617_v11 = vld [vmem:[#allocation14 + $0x268] sm:$0xff]  ;;  %v7621_v31 = vld [vmem:[#allocation14 + $0x270] sm:$0xff]  ;;  %v7623_v33 = vld [vmem:[#allocation14 + $0x278] sm:$0xff]  ;;  %3555 = vmatpush.msra.mxu2 %v7615_v22 }
 0x87d   : > { %8610 = vst [vmem:[#allocation64_spill] sm:$0xff] %v7617_v11  ;;  %v7627_v35 = vld [vmem:[#allocation14 + $0x240] sm:$0xff]  ;;  %3575 = vmatpush.msra.mxu3 %v7617_v11  ;;  %3595 = vmatpush.msra.mxu0 %v7621_v31 }
 0x87e   : > { %v4855_v37 = vmul.f32 -1.442695, %v3407_v14  ;;  %v4856_v3 = vmul.f32 -1.442695, %v3408_v28  ;;  %8611 = vst [vmem:[#allocation65_spill] sm:$0xff] %v7621_v31  ;;  %v7629_v14 = vld [vmem:[#allocation14 + $0x248] sm:$0xff]  ;;  %3615 = vmatpush.msra.mxu1 %v7623_v33  ;;  %3556 = vmatpush.msra.mxu2 %v7627_v35 }
 0x87f   : > { %8612 = vst [vmem:[#allocation66_spill] sm:$0xff] %v7623_v33  ;;  %3576 = vmatpush.msra.mxu3 %v7629_v14  ;;  %3596 = vmatpush.msra.mxu0 %v7633_v40  ;;  %v7653_v31 = vld [vmem:[#allocation14 + $0x200] sm:$0xff]  ;;  %v7655_v33 = vld [vmem:[#allocation14 + $0x208] sm:$0xff] }
 0x880   : > { %5167 = vpow2.f32 %v4855_v37  ;;  %8613 = vst [vmem:[#allocation67_spill] sm:$0xff] %v7627_v35  ;;  %v7639_v37 = vld [vmem:[#allocation14 + $0x220] sm:$0xff]  ;;  %3616 = vmatpush.msra.mxu1 %v7635_v51  ;;  %v7659_v35 = vld [vmem:[#allocation14 + $0x210] sm:$0xff] }
 0x881   : > { %8614 = vst [vmem:[#allocation68_spill] sm:$0xff] %v7629_v14  ;;  %v5166_v28 = vpop.eup %5165  ;;  %5169 = vpow2.f32 %v4856_v3  ;;  %v7645_v3 = vld [vmem:[#allocation14 + $0x230] sm:$0xff]  ;;  %3557 = vmatpush.msra.mxu2 %v7639_v37  ;;  %3577 = vmatpush.msra.mxu3 %v7641_v39  ;;  %v7661_v14 = vld [vmem:[#allocation14 + $0x218] sm:$0xff] }
 0x882   : > { %8616 = vst [vmem:[#allocation70_spill] sm:$0xff] %v7639_v37  ;;  %v7649_v23 = vadd.f32 1.0, %v5166_v28  ;;  %3597 = vmatpush.msra.mxu0 %v7645_v3  ;;  %3617 = vmatpush.msra.mxu1 %v7647_v2 }
 0x883   : > { %3558 = vmatpush.msra.mxu2 %v7653_v31  ;;  %3578 = vmatpush.msra.mxu3 %v7655_v33 }
 0x884   : > { %5171 = vrcp.f32 %v7649_v23  ;;  %3598 = vmatpush.msra.mxu0 %v7659_v35  ;;  %3618 = vmatpush.msra.mxu1 %v7661_v14  ;;  %vm3458_vm1 = vweird.f32 %v7649_v23 }
 0x885   : > { %3759 = vmatpush.msrb.mxu2 %v7412_v49  ;;  %3779 = vmatpush.msrb.mxu3 %v7414_v60 }
 0x886   : > { %v5168_v11 = vpop.eup %5167  ;;  %3799 = vmatpush.msrb.mxu0 %v7487_v21  ;;  %3819 = vmatpush.msrb.mxu1 %v7489_v58 }
 0x887   : > { %v5170_v28 = vpop.eup %5169  ;;  %v7665_v40 = vadd.f32 1.0, %v5168_v11  ;;  %3760 = vmatpush.msrb.mxu2 %v7418_v0  ;;  %3780 = vmatpush.msrb.mxu3 %v7420_v57  ;;  %v3404_v11 = vpop.f32.mrf.mxu1 }
 0x888   : > { %v7670_v37 = vadd.f32 1.0, %v5170_v28  ;;  %3800 = vmatpush.msrb.mxu0 %v7493_v6  ;;  %3820 = vmatpush.msrb.mxu1 %v7495_v34  ;;  %v8617_v28 = vld [vmem:[#allocation32_spill] sm:$0xff] }
 0x889   : > { %5173 = vrcp.f32 %v7665_v40  ;;  %v2777_v49 = vadd.f32 %v8617_v28, %v7400_v45  ;;  %3761 = vmatpush.msrb.mxu2 %v7424_v25  ;;  %3781 = vmatpush.msrb.mxu3 %v7426_v9  ;;  %v3434_v28 = vand.u32 2147483648, %v7665_v40  ;;  %vm3428_vm10 = vweird.f32 %v7665_v40 }
 0x88a   : > { %5175 = vrcp.f32 %v7670_v37  ;;  %v7688_v60 = vpop.eup %5171  ;;  %3801 = vmatpush.msrb.mxu0 %v7499_v15  ;;  %3821 = vmatpush.msrb.mxu1 %v7501_v44  ;;  %vm3443_vm12 = vweird.f32 %v7670_v37 }
 0x88b   : > { %v3410_v57 = vadd.f32 %v3404_v11, %v2777_v49  ;;  %3762 = vmatpush.msrb.mxu2 %v7505_v48  ;;  %3782 = vmatpush.msrb.mxu3 %v7507_v41  ;;  %v3454_v9 = vmul.f32 %v7688_v60, %v7649_v23  ;;  %vm3459_vm0 = vweird.f32 %v7688_v60 }
 0x88c   : > { %3802 = vmatpush.msrb.mxu0 %v7509_v59  ;;  %3822 = vmatpush.msrb.mxu1 %v7513_v56  ;;  %vm3460_vm2 = vmor %vm3458_vm1, %vm3459_vm0 }
 0x88d   : > { %3763 = vmatpush.msrb.mxu2 %v7517_v13  ;;  %3783 = vmatpush.msrb.mxu3 %v7519_v12  ;;  %5177 = vtanh.f32 %v3410_v57  ;;  %v3432_v12 = vand.u32 2147483647, %v7665_v40  ;;  %v3449_v13 = vand.u32 2147483648, %v7670_v37  ;;  %v3447_v57 = vand.u32 2147483647, %v7670_v37 }
 0x88e   : > { %3803 = vmatpush.msrb.mxu0 %v7521_v7  ;;  %3823 = vmatpush.msrb.mxu1 %v7525_v5 }
 0x88f   : > { %v5174_v0 = vpop.eup %5173  ;;  %3764 = vmatpush.msrb.mxu2 %v7529_v43  ;;  %3784 = vmatpush.msrb.mxu3 %v7531_v27  ;;  %vm3433_vm13 = vcmp.eq.f32.partialorder %v3432_v12, 8.507059e+37  ;;  %vm3448_vm15 = vcmp.eq.f32.partialorder %v3447_v57, 8.507059e+37  ;;  %v8620_v57 = vld [vmem:[#allocation66_spill] sm:$0xff] }
 0x890   : > { %v5176_v34 = vpop.eup %5175  ;;  %v3424_v6 = vmul.f32 %v5174_v0, %v7665_v40  ;;  %vm3429_vm8 = vweird.f32 %v5174_v0  ;;  %3804 = vmatpush.msrb.mxu0 %v7533_v4  ;;  %3824 = vmatpush.msrb.mxu1 %v7537_v19 }
 0x891   : > { %v3439_v25 = vmul.f32 %v5176_v34, %v7670_v37  ;;  %vm3444_vm9 = vweird.f32 %v5176_v34  ;;  %3765 = vmatpush.msrb.mxu2 %v7541_v52  ;;  %3785 = vmatpush.msrb.mxu3 %v7543_v17  ;;  %vm3430_vm11 = vmor %vm3428_vm10, %vm3429_vm8 }
 0x892   : > { %v3425_v11 = vsub.f32 1.0, %v3424_v6  ;;  %3805 = vmatpush.msrb.mxu0 %v7545_v63  ;;  %3825 = vmatpush.msrb.mxu1 %v7551_v36  ;;  %vm3445_vm14 = vmor %vm3443_vm12, %vm3444_vm9 }
 0x893   : > { %v3440_v49 = vsub.f32 1.0, %v3439_v25  ;;  %v3455_v25 = vsub.f32 1.0, %v3454_v9  ;;  %3766 = vmatpush.msrb.mxu2 %v7555_v55  ;;  %3786 = vmatpush.msrb.mxu3 %v7557_v8  ;;  %v5178_v40 = vpop.eup %5177 }
 0x894   : > { %v3426_v41 = vmul.f32 %v5174_v0, %v3425_v11  ;;  %v3435_v11 = vor.u32 1.1754944e-38, %v3434_v28  ;;  %3806 = vmatpush.msrb.mxu0 %v7559_v10  ;;  %3826 = vmatpush.msrb.mxu1 %v7563_v54 }
 0x895   : > { %v3441_v6 = vmul.f32 %v5176_v34, %v3440_v49  ;;  %3767 = vmatpush.msrb.mxu2 %v7567_v18  ;;  %3787 = vmatpush.msrb.mxu3 %v7569_v1  ;;  %v3456_v37 = vmul.f32 %v7688_v60, %v3455_v25 }
 0x896   : > { %v3427_v27 = vadd.f32 %v5174_v0, %v3426_v41  ;;  %v3450_v41 = vor.u32 1.1754944e-38, %v3449_v13  ;;  %3807 = vmatpush.msrb.mxu0 %v7571_v47  ;;  %3827 = vmatpush.msrb.mxu1 %v7575_v24 }
 0x897   : > { %v3442_v43 = vadd.f32 %v5176_v34, %v3441_v6  ;;  %3768 = vmatpush.msrb.mxu2 %v7583_v53  ;;  %3788 = vmatpush.msrb.mxu3 %v7585_v30  ;;  %v3457_v12 = vadd.f32 %v7688_v60, %v3456_v37  ;;  %v8619_v6 = vld [vmem:[#allocation65_spill] sm:$0xff] }
 0x898   : > { %v3431_v49 = vsel %vm3430_vm11, %v5174_v0, %v3427_v27  ;;  %3808 = vmatpush.msrb.mxu0 %v7587_v16  ;;  %3828 = vmatpush.msrb.mxu1 %v7591_v38  ;;  %v8626_v37 = vld [vmem:[#allocation37_spill] sm:$0xff] }
 0x899   : > { %v3436_v9 = vsel %vm3433_vm13, %v3435_v11, %v3431_v49  ;;  %v3446_v17 = vsel %vm3445_vm14, %v5176_v34, %v3442_v43  ;;  %3769 = vmatpush.msrb.mxu2 %v7593_v26  ;;  %3789 = vmatpush.msrb.mxu3 %v7595_v29  ;;  %v3462_v43 = vand.u32 2147483647, %v7649_v23  ;;  %v3461_v0 = vsel %vm3460_vm2, %v7688_v60, %v3457_v12  ;;  %v8621_v11 = vld [vmem:[#allocation67_spill] sm:$0xff]  ;;  %v8622_v49 = vld [vmem:[#allocation68_spill] sm:$0xff] }
 0x89a   : > { %v3470_v28 = vmul.f32 %v5178_v40, %v3436_v9  ;;  %v3451_v27 = vsel %vm3448_vm15, %v3450_v41, %v3446_v17  ;;  %3809 = vmatpush.msrb.mxu0 %v7599_v32  ;;  %3829 = vmatpush.msrb.mxu1 %v7601_v46  ;;  %v8618_v17 = vld [vmem:[#allocation64_spill] sm:$0xff]  ;;  %v8624_v9 = vld [vmem:[#allocation70_spill] sm:$0xff] }
 0x89b   : > { %v3469_v13 = vmul.f32 %v3451_v27, %v7475_v50  ;;  %v3464_v50 = vand.u32 2147483648, %v7649_v23  ;;  %3770 = vmatpush.msrb.mxu2 %v7603_v62  ;;  %3790 = vmatpush.msrb.mxu3 %v7607_v42  ;;  %vm3463_vm3 = vcmp.eq.f32.partialorder %v3462_v43, 8.507059e+37  ;;  %v8623_v23 = vld [vmem:[#allocation69_spill] sm:$0xff] }
 0x89c   : > { %3810 = vmatpush.msrb.mxu0 %v7609_v20  ;;  %3830 = vmatpush.msrb.mxu1 %v7611_v61 }
 0x89d   : > { %v7734_v34 = vadd.f32 %v3470_v28, %v3469_v13  ;;  %3771 = vmatpush.msrb.mxu2 %v7615_v22  ;;  %3791 = vmatpush.msrb.mxu3 %v8618_v17  ;;  %v3465_v25 = vor.u32 1.1754944e-38, %v3464_v50  ;;  %v8627_v28 = vld [vmem:[#allocation57_spill] sm:$0xff] }
 0x89e   : > { %3811 = vmatpush.msrb.mxu0 %v8619_v6  ;;  %3831 = vmatpush.msrb.mxu1 %v8620_v57 }
 0x89f   : > { %5179 = vtanh.f32 %v7734_v34  ;;  %3772 = vmatpush.msrb.mxu2 %v8621_v11  ;;  %3792 = vmatpush.msrb.mxu3 %v8622_v49  ;;  %v3466_v40 = vsel %vm3463_vm3, %v3465_v25, %v3461_v0 }
 0x8a0   : > { %3812 = vmatpush.msrb.mxu0 %v8623_v23  ;;  %3832 = vmatpush.msrb.mxu1 %v7635_v51 }
 0x8a1   : > { %3773 = vmatpush.msrb.mxu2 %v8624_v9  ;;  %3793 = vmatpush.msrb.mxu3 %v7641_v39 }
 0x8a2   : > { %3813 = vmatpush.msrb.mxu0 %v7645_v3  ;;  %3833 = vmatpush.msrb.mxu1 %v7647_v2 }
 0x8a3   : > { %3774 = vmatpush.msrb.mxu2 %v7653_v31  ;;  %3794 = vmatpush.msrb.mxu3 %v7655_v33 }
 0x8a4   : > { %3814 = vmatpush.msrb.mxu0 %v7659_v35  ;;  %3834 = vmatpush.msrb.mxu1 %v7661_v14 }
 0x8a5   : > { %v5180_v41 = vpop.eup %5179 }
 0x8a6   : > { %v7761_v60 = vmul.f32 %v5180_v41, %v3466_v40 }
 0x8a8   : > { %8625 = vst [vmem:[#allocation32_spill] sm:$0xff] %v7761_v60  ;;  %3559 = vmatmul.f32.vlgmr.msra.gmra.mxu2 %v7761_v60  ;;  %3579 = vmatmul.f32.vlgmr.msra.gmra.mxu3 %v7761_v60 }
 0x8a9   : > { %3599 = vmatmul.f32.vlgmr.msra.gmra.mxu0 %v7761_v60  ;;  %3619 = vmatmul.f32.vlgmr.msra.gmra.mxu1 %v7761_v60  ;;  %v8046_v60 = vld [vmem:[#allocation14 + $0x258] sm:$0xff] }
 0x8aa   : > { %4015 = vmatpush.msra.mxu0 %v7487_v21  ;;  %4035 = vmatpush.msra.mxu1 %v7489_v58  ;;  %v8628_v21 = vld [vmem:[#allocation34_spill] sm:$0xff] }
 0x8ab   : > { %v8629_v58 = vld [vmem:[#allocation38_spill] sm:$0xff] }
 0x8ac   : > { %4016 = vmatpush.msra.mxu0 %v8626_v37  ;;  %4036 = vmatpush.msra.mxu1 %v8627_v28 }
 0x8ae   : > { %4017 = vmatpush.msra.mxu0 %v7499_v15  ;;  %4037 = vmatpush.msra.mxu1 %v7501_v44  ;;  %v2739_v15 = vadd.f32 %v8629_v58, %v8628_v21 }
 0x8b0   : > { %4018 = vmatpush.msra.mxu0 %v7509_v59  ;;  %4038 = vmatpush.msra.mxu1 %v7513_v56 }
 0x8b2   : > { %4019 = vmatpush.msra.mxu0 %v7521_v7  ;;  %4039 = vmatpush.msra.mxu1 %v7525_v5  ;;  %v8630_v7 = vld [vmem:[#allocation53_spill] sm:$0xff]  ;;  %v8631_v5 = vld [vmem:[#allocation39_spill] sm:$0xff] }
 0x8b4   : > { %4020 = vmatpush.msra.mxu0 %v7533_v4  ;;  %4040 = vmatpush.msra.mxu1 %v7537_v19  ;;  %v2657_v4 = vadd.f32 %v8631_v5, %v8630_v7  ;;  %v8632_v19 = vld [vmem:[#allocation48_spill] sm:$0xff] }
 0x8b6   : > { %4021 = vmatpush.msra.mxu0 %v7545_v63  ;;  %4041 = vmatpush.msra.mxu1 %v7551_v36  ;;  %v8633_v63 = vld [vmem:[#allocation31_spill] sm:$0xff] }
 0x8b8   : > { %4022 = vmatpush.msra.mxu0 %v7559_v10  ;;  %4042 = vmatpush.msra.mxu1 %v7563_v54 }
 0x8ba   : > { %4023 = vmatpush.msra.mxu0 %v7571_v47  ;;  %4043 = vmatpush.msra.mxu1 %v7575_v24 }
 0x8bc   : > { %4024 = vmatpush.msra.mxu0 %v7587_v16  ;;  %4044 = vmatpush.msra.mxu1 %v7591_v38 }
 0x8be   : > { %4025 = vmatpush.msra.mxu0 %v7599_v32  ;;  %4045 = vmatpush.msra.mxu1 %v7601_v46 }
 0x8c0   : > { %4026 = vmatpush.msra.mxu0 %v7609_v20  ;;  %4046 = vmatpush.msra.mxu1 %v7611_v61 }
 0x8c2   : > { %4027 = vmatpush.msra.mxu0 %v8619_v6  ;;  %4047 = vmatpush.msra.mxu1 %v8620_v57 }
 0x8c4   : > { %4028 = vmatpush.msra.mxu0 %v8623_v23  ;;  %4048 = vmatpush.msra.mxu1 %v7635_v51  ;;  %v2698_v51 = vadd.f32 %v8633_v63, %v8632_v19 }
 0x8c6   : > { %4029 = vmatpush.msra.mxu0 %v7645_v3  ;;  %4049 = vmatpush.msra.mxu1 %v7647_v2 }
 0x8c8   : > { %4030 = vmatpush.msra.mxu0 %v7659_v35  ;;  %4050 = vmatpush.msra.mxu1 %v7661_v14  ;;  %v8634_v14 = vld [vmem:[#allocation50_spill] sm:$0xff] }
 0x8c9   : > { %v2780_v3 = vadd.f32 %v8634_v14, %v7400_v45 }
 0x926   : > { %v3600_v44 = vpop.f32.mrf.mxu0  ;;  %v3620_v35 = vpop.f32.mrf.mxu1 }
 0x927   : > { %v3625_v59 = vadd.f32 %v3600_v44, %v2739_v15  ;;  %v3626_v12 = vadd.f32 %v3620_v35, %v2780_v3 }
 0x929   : > { %v4860_v56 = vmul.f32 -1.442695, %v3625_v59 }
 0x92b   : > { %5181 = vpow2.f32 %v4860_v56  ;;  %v3560_v36 = vpop.f32.mrf.mxu2  ;;  %v3580_v10 = vpop.f32.mrf.mxu3 }
 0x92c   : > { %v3623_v2 = vadd.f32 %v3560_v36, %v2657_v4  ;;  %v3624_v54 = vadd.f32 %v3580_v10, %v2698_v51 }
 0x92e   : > { %v4858_v47 = vmul.f32 -1.442695, %v3623_v2  ;;  %v4859_v24 = vmul.f32 -1.442695, %v3624_v54 }
 0x930   : > { %5183 = vpow2.f32 %v4858_v47 }
 0x931   : > { %v5182_v16 = vpop.eup %5181  ;;  %5185 = vpow2.f32 %v4859_v24 }
 0x932   : > { %v3638_v38 = vadd.f32 1.0, %v5182_v16 }
 0x934   : > { %5187 = vrcp.f32 %v3638_v38  ;;  %vm3674_vm13 = vweird.f32 %v3638_v38 }
 0x936   : > { %v5184_v32 = vpop.eup %5183 }
 0x937   : > { %v5186_v46 = vpop.eup %5185  ;;  %v3636_v20 = vadd.f32 1.0, %v5184_v32  ;;  %v3680_v32 = vand.u32 2147483648, %v3638_v38 }
 0x938   : > { %v3637_v61 = vadd.f32 1.0, %v5186_v46  ;;  %v3678_v46 = vand.u32 2147483647, %v3638_v38 }
 0x939   : > { %5189 = vrcp.f32 %v3636_v20  ;;  %v3650_v25 = vand.u32 2147483648, %v3636_v20  ;;  %v3648_v40 = vand.u32 2147483647, %v3636_v20  ;;  %vm3644_vm6 = vweird.f32 %v3636_v20 }
 0x93a   : > { %5191 = vrcp.f32 %v3637_v61  ;;  %v5188_v27 = vpop.eup %5187  ;;  %v3665_v37 = vand.u32 2147483648, %v3637_v61  ;;  %v3663_v58 = vand.u32 2147483647, %v3637_v61  ;;  %vm3659_vm8 = vweird.f32 %v3637_v61 }
 0x93b   : > { %v3670_v6 = vmul.f32 %v5188_v27, %v3638_v38  ;;  %5193 = vtanh.f32 %v3626_v12  ;;  %v3651_v59 = vor.u32 1.1754944e-38, %v3650_v25  ;;  %vm3649_vm9 = vcmp.eq.f32.partialorder %v3648_v40, 8.507059e+37  ;;  %v7829_v38 = vld [vmem:[#allocation14 + $0x3c0] sm:$0xff]  ;;  %v8640_v25 = vld [vmem:[#allocation62_spill] sm:$0xff]  ;;  %v8642_v40 = vld [vmem:[#allocation63_spill] sm:$0xff] }
 0x93c   : > { %v3666_v4 = vor.u32 1.1754944e-38, %v3665_v37  ;;  %vm3664_vm11 = vcmp.eq.f32.partialorder %v3663_v58, 8.507059e+37  ;;  %vm3675_vm12 = vweird.f32 %v5188_v27  ;;  %vm3679_vm15 = vcmp.eq.f32.partialorder %v3678_v46, 8.507059e+37  ;;  %v7835_v12 = vld [vmem:[#allocation14 + $0x3a0] sm:$0xff]  ;;  %v8643_v58 = vld [vmem:[#allocation35_spill] sm:$0xff] }
 0x93d   : > { %v3671_v15 = vsub.f32 1.0, %v3670_v6  ;;  %vm3676_vm14 = vmor %vm3674_vm13, %vm3675_vm12  ;;  %v8638_v6 = vld [vmem:[#allocation60_spill] sm:$0xff] }
 0x93f   : > { %v5190_v13 = vpop.eup %5189  ;;  %v3672_v10 = vmul.f32 %v5188_v27, %v3671_v15  ;;  %v2660_v15 = vadd.f32 %v8643_v58, %v8630_v7 }
 0x940   : > { %v5192_v50 = vpop.eup %5191  ;;  %v3640_v43 = vmul.f32 %v5190_v13, %v3636_v20  ;;  %vm3645_vm4 = vweird.f32 %v5190_v13 }
 0x941   : > { %v3655_v0 = vmul.f32 %v5192_v50, %v3637_v61  ;;  %vm3660_vm5 = vweird.f32 %v5192_v50  ;;  %vm3646_vm7 = vmor %vm3644_vm6, %vm3645_vm4  ;;  %v5194_v63 = vpop.eup %5193  ;;  %v3673_v16 = vadd.f32 %v5188_v27, %v3672_v10  ;;  %v3681_v61 = vor.u32 1.1754944e-38, %v3680_v32 }
 0x942   : > { %v3641_v57 = vsub.f32 1.0, %v3640_v43  ;;  %vm3661_vm10 = vmor %vm3659_vm8, %vm3660_vm5  ;;  %v8636_v43 = vld [vmem:[#allocation58_spill] sm:$0xff] }
 0x943   : > { %v3656_v23 = vsub.f32 1.0, %v3655_v0  ;;  %v3677_v20 = vsel %vm3676_vm14, %v5188_v27, %v3673_v16  ;;  %v7831_v27 = vld [vmem:[#allocation14 + $0x3c8] sm:$0xff]  ;;  %v8637_v0 = vld [vmem:[#allocation59_spill] sm:$0xff] }
 0x944   : > { %v3642_v41 = vmul.f32 %v5190_v13, %v3641_v57  ;;  %v3682_v14 = vsel %vm3679_vm15, %v3681_v61, %v3677_v20  ;;  %v8639_v57 = vld [vmem:[#allocation61_spill] sm:$0xff] }
 0x945   : > { %v3657_v28 = vmul.f32 %v5192_v50, %v3656_v23  ;;  %v8641_v23 = vld [vmem:[#allocation30_spill] sm:$0xff] }
 0x946   : > { %v3643_v44 = vadd.f32 %v5190_v13, %v3642_v41  ;;  %v2742_v41 = vadd.f32 %v8641_v23, %v8628_v21 }
 0x947   : > { %v3658_v56 = vadd.f32 %v5192_v50, %v3657_v28 }
 0x948   : > { %v3647_v5 = vsel %vm3646_vm7, %v5190_v13, %v3643_v44  ;;  %v7825_v13 = vld [vmem:[#allocation14 + $0x3e8] sm:$0xff]  ;;  %v8644_v44 = vld [vmem:[#allocation36_spill] sm:$0xff] }
 0x949   : > { %v3652_v51 = vsel %vm3649_vm9, %v3651_v59, %v3647_v5  ;;  %v3662_v36 = vsel %vm3661_vm10, %v5192_v50, %v3658_v56  ;;  %3995 = vmatpush.msra.mxu3 %v7825_v13  ;;  %v7837_v50 = vld [vmem:[#allocation14 + $0x3a8] sm:$0xff]  ;;  %v2701_v59 = vadd.f32 %v8644_v44, %v8632_v19 }
 0x94a   : > { %v3686_v2 = vmul.f32 %v5194_v63, %v3652_v51  ;;  %v3667_v54 = vsel %vm3664_vm11, %v3666_v4, %v3662_v36 }
 0x94b   : > { %v3685_v47 = vmul.f32 %v3667_v54, %v7734_v34  ;;  %v7823_v34 = vld [vmem:[#allocation14 + $0x3e0] sm:$0xff]  ;;  %3996 = vmatpush.msra.mxu3 %v7831_v27 }
 0x94c   : > { %3975 = vmatpush.msra.mxu2 %v7823_v34 }
 0x94d   : > { %v7814_v24 = vadd.f32 %v3686_v2, %v3685_v47  ;;  %3997 = vmatpush.msra.mxu3 %v7837_v50 }
 0x94e   : > { %3976 = vmatpush.msra.mxu2 %v7829_v38 }
 0x94f   : > { %5195 = vtanh.f32 %v7814_v24  ;;  %3998 = vmatpush.msra.mxu3 %v8636_v43 }
 0x950   : > { %3977 = vmatpush.msra.mxu2 %v7835_v12 }
 0x951   : > { %3999 = vmatpush.msra.mxu3 %v8638_v6 }
 0x952   : > { %3978 = vmatpush.msra.mxu2 %v7505_v48 }
 0x953   : > { %4000 = vmatpush.msra.mxu3 %v8640_v25 }
 0x954   : > { %3979 = vmatpush.msra.mxu2 %v8637_v0 }
 0x955   : > { %v5196_v35 = vpop.eup %5195  ;;  %4001 = vmatpush.msra.mxu3 %v8642_v40 }
 0x956   : > { %v7817_v3 = vmul.f32 %v5196_v35, %v3682_v14  ;;  %3980 = vmatpush.msra.mxu2 %v8639_v57 }
 0x957   : > { %4002 = vmatpush.msra.mxu3 %v7557_v8 }
 0x958   : > { %8635 = vst [vmem:[#allocation64_spill] sm:$0xff] %v7817_v3  ;;  %3775 = vmatmul.f32.vlgmr.msrb.gmra.mxu2 %v7817_v3  ;;  %3795 = vmatmul.f32.vlgmr.msrb.gmra.mxu3 %v7817_v3 }
 0x959   : > { %3815 = vmatmul.f32.vlgmr.msrb.gmra.mxu0 %v7817_v3  ;;  %3835 = vmatmul.f32.vlgmr.msrb.gmra.mxu1 %v7817_v3  ;;  %v8044_v3 = vld [vmem:[#allocation14 + $0x250] sm:$0xff] }
 0x95a   : > { %3981 = vmatpush.msra.mxu2 %v7541_v52  ;;  %4003 = vmatpush.msra.mxu3 %v7569_v1  ;;  %8655 = vst [vmem:[#allocation37_spill] sm:$0xff] %v8044_v3 }
 0x95c   : > { %3982 = vmatpush.msra.mxu2 %v7555_v55  ;;  %4004 = vmatpush.msra.mxu3 %v7585_v30 }
 0x95e   : > { %3983 = vmatpush.msra.mxu2 %v7567_v18  ;;  %4005 = vmatpush.msra.mxu3 %v7595_v29 }
 0x960   : > { %3984 = vmatpush.msra.mxu2 %v7583_v53  ;;  %4006 = vmatpush.msra.mxu3 %v7607_v42  ;;  %v8645_v42 = vld [vmem:[#allocation40_spill] sm:$0xff] }
 0x962   : > { %3985 = vmatpush.msra.mxu2 %v7593_v26  ;;  %4007 = vmatpush.msra.mxu3 %v8618_v17 }
 0x964   : > { %3986 = vmatpush.msra.mxu2 %v7603_v62  ;;  %4008 = vmatpush.msra.mxu3 %v8622_v49 }
 0x966   : > { %3987 = vmatpush.msra.mxu2 %v7615_v22  ;;  %4009 = vmatpush.msra.mxu3 %v7641_v39  ;;  %v2783_v22 = vadd.f32 %v8645_v42, %v7400_v45  ;;  %v7936_v42 = vld [vmem:[#allocation14 + $0x378] sm:$0xff] }
 0x968   : > { %3988 = vmatpush.msra.mxu2 %v8621_v11  ;;  %4010 = vmatpush.msra.mxu3 %v7655_v33 }
 0x96a   : > { %3989 = vmatpush.msra.mxu2 %v8624_v9  ;;  %4211 = vmatpush.msrb.mxu3 %v7825_v13 }
 0x96c   : > { %3990 = vmatpush.msra.mxu2 %v7653_v31  ;;  %4212 = vmatpush.msrb.mxu3 %v7831_v27 }
 0x96e   : > { %4191 = vmatpush.msrb.mxu2 %v7823_v34  ;;  %4213 = vmatpush.msrb.mxu3 %v7837_v50 }
 0x970   : > { %4192 = vmatpush.msrb.mxu2 %v7829_v38 }
 0x972   : > { %4193 = vmatpush.msrb.mxu2 %v7835_v12 }
 0x9d6   : > { %v3816_v37 = vpop.f32.mrf.mxu0  ;;  %v3836_v39 = vpop.f32.mrf.mxu1 }
 0x9d7   : > { %v3841_v28 = vadd.f32 %v3816_v37, %v2742_v41  ;;  %v3842_v17 = vadd.f32 %v3836_v39, %v2783_v22  ;;  %v7932_v39 = vld [vmem:[#allocation14 + $0x370] sm:$0xff]  ;;  %v7940_v22 = vld [vmem:[#allocation14 + $0x340] sm:$0xff] }
 0x9d9   : > { %v4863_v48 = vmul.f32 -1.442695, %v3841_v28 }
 0x9db   : > { %5197 = vpow2.f32 %v4863_v48  ;;  %v3776_v52 = vpop.f32.mrf.mxu2  ;;  %v3796_v56 = vpop.f32.mrf.mxu3 }
 0x9dc   : > { %v3839_v55 = vadd.f32 %v3776_v52, %v2660_v15  ;;  %v3840_v8 = vadd.f32 %v3796_v56, %v2701_v59  ;;  %v7900_v56 = vld [vmem:[#allocation14 + $0x3f8] sm:$0xff] }
 0x9dd   : > { %4251 = vmatpush.msrb.mxu1 %v7900_v56 }
 0x9de   : > { %v4861_v18 = vmul.f32 -1.442695, %v3839_v55  ;;  %v4862_v1 = vmul.f32 -1.442695, %v3840_v8  ;;  %v7904_v55 = vld [vmem:[#allocation14 + $0x3d0] sm:$0xff]  ;;  %v7906_v8 = vld [vmem:[#allocation14 + $0x3d8] sm:$0xff] }
 0x9df   : > { %4252 = vmatpush.msrb.mxu1 %v7906_v8 }
 0x9e0   : > { %5199 = vpow2.f32 %v4861_v18  ;;  %v7910_v18 = vld [vmem:[#allocation14 + $0x3b0] sm:$0xff] }
 0x9e1   : > { %v5198_v5 = vpop.eup %5197  ;;  %5201 = vpow2.f32 %v4862_v1  ;;  %v7912_v1 = vld [vmem:[#allocation14 + $0x3b8] sm:$0xff] }
 0x9e2   : > { %v7869_v53 = vadd.f32 1.0, %v5198_v5  ;;  %4253 = vmatpush.msrb.mxu1 %v7912_v1  ;;  %v7916_v5 = vld [vmem:[#allocation14 + $0x380] sm:$0xff] }
 0x9e3   : > { %4194 = vmatpush.msrb.mxu2 %v7916_v5 }
 0x9e4   : > { %5203 = vrcp.f32 %v7869_v53  ;;  %v3896_v28 = vand.u32 2147483648, %v7869_v53  ;;  %vm3890_vm9 = vweird.f32 %v7869_v53  ;;  %v3894_v48 = vand.u32 2147483647, %v7869_v53 }
 0x9e6   : > { %v5200_v30 = vpop.eup %5199  ;;  %v3897_v15 = vor.u32 1.1754944e-38, %v3896_v28  ;;  %vm3895_vm11 = vcmp.eq.f32.partialorder %v3894_v48, 8.507059e+37  ;;  %v8002_v28 = vld [vmem:[#allocation14 + $0x2d8] sm:$0xff]  ;;  %v8004_v48 = vld [vmem:[#allocation14 + $0x2a0] sm:$0xff] }
 0x9e7   : > { %v5202_v26 = vpop.eup %5201  ;;  %v3852_v29 = vadd.f32 1.0, %v5200_v30  ;;  %v7920_v30 = vld [vmem:[#allocation14 + $0x390] sm:$0xff] }
 0x9e8   : > { %v3853_v62 = vadd.f32 1.0, %v5202_v26  ;;  %v7924_v26 = vld [vmem:[#allocation14 + $0x398] sm:$0xff] }
 0x9e9   : > { %5205 = vrcp.f32 %v3852_v29  ;;  %v3866_v51 = vand.u32 2147483648, %v3852_v29  ;;  %v3864_v2 = vand.u32 2147483647, %v3852_v29  ;;  %vm3860_vm2 = vweird.f32 %v3852_v29  ;;  %4254 = vmatpush.msrb.mxu1 %v7924_v26 }
 0x9ea   : > { %5207 = vrcp.f32 %v3853_v62  ;;  %v5204_v31 = vpop.eup %5203  ;;  %v3881_v54 = vand.u32 2147483648, %v3853_v62  ;;  %v3879_v16 = vand.u32 2147483647, %v3853_v62  ;;  %vm3875_vm4 = vweird.f32 %v3853_v62 }
 0x9eb   : > { %v3886_v4 = vmul.f32 %v5204_v31, %v7869_v53  ;;  %5209 = vtanh.f32 %v3842_v17  ;;  %v3867_v20 = vor.u32 1.1754944e-38, %v3866_v51  ;;  %vm3865_vm5 = vcmp.eq.f32.partialorder %v3864_v2, 8.507059e+37  ;;  %v7918_v53 = vld [vmem:[#allocation14 + $0x388] sm:$0xff]  ;;  %4255 = vmatpush.msrb.mxu1 %v7936_v42  ;;  %v7948_v17 = vld [vmem:[#allocation14 + $0x358] sm:$0xff] }
 0x9ec   : > { %v3882_v14 = vor.u32 1.1754944e-38, %v3881_v54  ;;  %vm3880_vm7 = vcmp.eq.f32.partialorder %v3879_v16, 8.507059e+37  ;;  %vm3891_vm8 = vweird.f32 %v5204_v31  ;;  %4214 = vmatpush.msrb.mxu3 %v7918_v53  ;;  %v7962_v51 = vld [vmem:[#allocation14 + $0x338] sm:$0xff]  ;;  %v7968_v2 = vld [vmem:[#allocation14 + $0x308] sm:$0xff]  ;;  %v7970_v54 = vld [vmem:[#allocation14 + $0x310] sm:$0xff] }
 0x9ed   : > { %v3887_v32 = vsub.f32 1.0, %v3886_v4  ;;  %vm3892_vm10 = vmor %vm3890_vm9, %vm3891_vm8  ;;  %4256 = vmatpush.msrb.mxu1 %v7948_v17  ;;  %v8647_v4 = vld [vmem:[#allocation51_spill] sm:$0xff]  ;;  %v7974_v16 = vld [vmem:[#allocation14 + $0x318] sm:$0xff] }
 0x9ef   : > { %v5206_v33 = vpop.eup %5205  ;;  %v3888_v57 = vmul.f32 %v5204_v31, %v3887_v32  ;;  %4257 = vmatpush.msrb.mxu1 %v7962_v51  ;;  %v7978_v32 = vld [vmem:[#allocation14 + $0x2e0] sm:$0xff] }
 0x9f0   : > { %v5208_v11 = vpop.eup %5207  ;;  %v3856_v49 = vmul.f32 %v5206_v33, %v3852_v29  ;;  %vm3861_vm0 = vweird.f32 %v5206_v33  ;;  %v7928_v29 = vld [vmem:[#allocation14 + $0x360] sm:$0xff] }
 0x9f1   : > { %v3871_v9 = vmul.f32 %v5208_v11, %v3853_v62  ;;  %vm3876_vm1 = vweird.f32 %v5208_v11  ;;  %vm3862_vm3 = vmor %vm3860_vm2, %vm3861_vm0  ;;  %v5210_v43 = vpop.eup %5209  ;;  %v3889_v37 = vadd.f32 %v5204_v31, %v3888_v57  ;;  %v7930_v62 = vld [vmem:[#allocation14 + $0x368] sm:$0xff]  ;;  %4195 = vmatpush.msrb.mxu2 %v7928_v29  ;;  %4258 = vmatpush.msrb.mxu1 %v7974_v16  ;;  %v7994_v57 = vld [vmem:[#allocation14 + $0x2c0] sm:$0xff] }
 0x9f2   : > { %v3857_v63 = vsub.f32 1.0, %v3856_v49  ;;  %vm3877_vm6 = vmor %vm3875_vm4, %vm3876_vm1  ;;  %4215 = vmatpush.msrb.mxu3 %v7930_v62  ;;  %v7954_v49 = vld [vmem:[#allocation14 + $0x328] sm:$0xff] }
 0x9f3   : > { %v3872_v36 = vsub.f32 1.0, %v3871_v9  ;;  %v3893_v58 = vsel %vm3892_vm10, %v5204_v31, %v3889_v37  ;;  %v7942_v31 = vld [vmem:[#allocation14 + $0x348] sm:$0xff]  ;;  %4196 = vmatpush.msrb.mxu2 %v7940_v22  ;;  %v7956_v9 = vld [vmem:[#allocation14 + $0x330] sm:$0xff] }
 0x9f4   : > { %v3858_v10 = vmul.f32 %v5206_v33, %v3857_v63  ;;  %v3898_v59 = vsel %vm3895_vm11, %v3897_v15, %v3893_v58  ;;  %4216 = vmatpush.msrb.mxu3 %v7942_v31  ;;  %v2745_v63 = vadd.f32 %v8647_v4, %v8628_v21  ;;  %v8006_v58 = vld [vmem:[#allocation14 + $0x2a8] sm:$0xff]  ;;  %v8012_v4 = vld [vmem:[#allocation14 + $0x2b8] sm:$0xff] }
 0x9f5   : > { %v3873_v47 = vmul.f32 %v5208_v11, %v3872_v36 }
 0x9f6   : > { %v3859_v46 = vadd.f32 %v5206_v33, %v3858_v10  ;;  %4217 = vmatpush.msrb.mxu3 %v7954_v49  ;;  %v7966_v10 = vld [vmem:[#allocation14 + $0x300] sm:$0xff] }
 0x9f7   : > { %v3874_v61 = vadd.f32 %v5208_v11, %v3873_v47 }
 0x9f8   : > { %v3863_v35 = vsel %vm3862_vm3, %v5206_v33, %v3859_v46  ;;  %v7944_v33 = vld [vmem:[#allocation14 + $0x350] sm:$0xff]  ;;  %4218 = vmatpush.msrb.mxu3 %v7968_v2  ;;  %v7980_v46 = vld [vmem:[#allocation14 + $0x2e8] sm:$0xff] }
 0x9f9   : > { %v3868_v0 = vsel %vm3865_vm5, %v3867_v20, %v3863_v35  ;;  %v3878_v6 = vsel %vm3877_vm6, %v5208_v11, %v3874_v61  ;;  %v7952_v11 = vld [vmem:[#allocation14 + $0x320] sm:$0xff]  ;;  %v7982_v20 = vld [vmem:[#allocation14 + $0x2f0] sm:$0xff]  ;;  %v7986_v35 = vld [vmem:[#allocation14 + $0x2f8] sm:$0xff] }
 0x9fa   : > { %v3902_v25 = vmul.f32 %v5210_v43, %v3868_v0  ;;  %v3883_v23 = vsel %vm3880_vm7, %v3882_v14, %v3878_v6  ;;  %4197 = vmatpush.msrb.mxu2 %v7952_v11  ;;  %4219 = vmatpush.msrb.mxu3 %v7980_v46  ;;  %v8648_v14 = vld [vmem:[#allocation52_spill] sm:$0xff]  ;;  %v8649_v0 = vld [vmem:[#allocation33_spill] sm:$0xff] }
 0x9fb   : > { %v3901_v41 = vmul.f32 %v3883_v23, %v7814_v24  ;;  %v7898_v24 = vld [vmem:[#allocation14 + $0x3f0] sm:$0xff]  ;;  %v2663_v43 = vadd.f32 %v8648_v14, %v8630_v7  ;;  %v2704_v6 = vadd.f32 %v8649_v0, %v8632_v19  ;;  %4259 = vmatpush.msrb.mxu1 %v7986_v35  ;;  %v8026_v0 = vld [vmem:[#allocation14 + $0x260] sm:$0xff]  ;;  %v8052_v19 = vld [vmem:[#allocation14 + $0x228] sm:$0xff] }
 0x9fc   : > { %4231 = vmatpush.msrb.mxu0 %v7898_v24  ;;  %4198 = vmatpush.msrb.mxu2 %v7966_v10  ;;  %v7998_v23 = vld [vmem:[#allocation14 + $0x2d0] sm:$0xff]  ;;  %v8058_v7 = vld [vmem:[#allocation14 + $0x238] sm:$0xff] }
 0x9fd   : > { %v7886_v40 = vadd.f32 %v3902_v25, %v3901_v41  ;;  %v7996_v25 = vld [vmem:[#allocation14 + $0x2c8] sm:$0xff]  ;;  %4260 = vmatpush.msrb.mxu1 %v8002_v28 }
 0x9fe   : > { %4232 = vmatpush.msrb.mxu0 %v7904_v55  ;;  %4199 = vmatpush.msrb.mxu2 %v7978_v32 }
 0x9ff   : > { %5211 = vtanh.f32 %v7886_v40  ;;  %4220 = vmatpush.msrb.mxu3 %v7996_v25  ;;  %4261 = vmatpush.msrb.mxu1 %v8012_v4 }
 0xa00   : > { %4233 = vmatpush.msrb.mxu0 %v7910_v18  ;;  %4200 = vmatpush.msrb.mxu2 %v7994_v57 }
 0xa01   : > { %4221 = vmatpush.msrb.mxu3 %v8006_v58 }
 0xa02   : > { %4234 = vmatpush.msrb.mxu0 %v7920_v30  ;;  %4201 = vmatpush.msrb.mxu2 %v8004_v48 }
 0xa04   : > { %4235 = vmatpush.msrb.mxu0 %v7932_v39 }
 0xa05   : > { %v5212_v44 = vpop.eup %5211 }
 0xa06   : > { %v7892_v52 = vmul.f32 %v5212_v44, %v3898_v59  ;;  %4236 = vmatpush.msrb.mxu0 %v7944_v33  ;;  %v8010_v59 = vld [vmem:[#allocation14 + $0x2b0] sm:$0xff] }
 0xa08   : > { %8646 = vst [vmem:[#allocation65_spill] sm:$0xff] %v7892_v52  ;;  %3991 = vmatmul.f32.vlgmr.msra.gmra.mxu2 %v7892_v52  ;;  %4011 = vmatmul.f32.vlgmr.msra.gmra.mxu3 %v7892_v52 }
 0xa09   : > { %4031 = vmatmul.f32.vlgmr.msra.gmra.mxu0 %v7892_v52  ;;  %4051 = vmatmul.f32.vlgmr.msra.gmra.mxu1 %v7892_v52 }
 0xa0a   : > { %4237 = vmatpush.msrb.mxu0 %v7956_v9 }
 0xa0c   : > { %4238 = vmatpush.msrb.mxu0 %v7970_v54 }
 0xa0e   : > { %4239 = vmatpush.msrb.mxu0 %v7982_v20 }
 0xa10   : > { %4240 = vmatpush.msrb.mxu0 %v7998_v23 }
 0xa12   : > { %4241 = vmatpush.msrb.mxu0 %v8010_v59 }
 0xa86   : > { %v4032_v36 = vpop.f32.mrf.mxu0 }
 0xa87   : > { %v4057_v47 = vadd.f32 %v4032_v36, %v2745_v63  ;;  %v8014_v63 = vld [vmem:[#allocation14 + $0x280] sm:$0xff]  ;;  %v8018_v36 = vld [vmem:[#allocation14 + $0x288] sm:$0xff] }
 0xa88   : > { %4202 = vmatpush.msrb.mxu2 %v8014_v63  ;;  %4222 = vmatpush.msrb.mxu3 %v8018_v36 }
 0xa89   : > { %v4866_v61 = vmul.f32 -1.442695, %v4057_v47  ;;  %v8020_v47 = vld [vmem:[#allocation14 + $0x290] sm:$0xff] }
 0xa8a   : > { %4242 = vmatpush.msrb.mxu0 %v8020_v47  ;;  %4203 = vmatpush.msrb.mxu2 %v8026_v0 }
 0xa8b   : > { %5213 = vpow2.f32 %v4866_v61  ;;  %v3992_v41 = vpop.f32.mrf.mxu2  ;;  %v4012_v37 = vpop.f32.mrf.mxu3  ;;  %v8022_v61 = vld [vmem:[#allocation14 + $0x298] sm:$0xff] }
 0xa8c   : > { %v4055_v15 = vadd.f32 %v3992_v41, %v2663_v43  ;;  %v4056_v44 = vadd.f32 %v4012_v37, %v2704_v6  ;;  %v8028_v6 = vld [vmem:[#allocation14 + $0x268] sm:$0xff]  ;;  %v8032_v41 = vld [vmem:[#allocation14 + $0x270] sm:$0xff]  ;;  %v8034_v37 = vld [vmem:[#allocation14 + $0x278] sm:$0xff]  ;;  %4262 = vmatpush.msrb.mxu1 %v8022_v61 }
 0xa8d   : > { %8650 = vst [vmem:[#allocation66_spill] sm:$0xff] %v8028_v6  ;;  %4223 = vmatpush.msrb.mxu3 %v8028_v6  ;;  %4243 = vmatpush.msrb.mxu0 %v8032_v41 }
 0xa8e   : > { %v4864_v14 = vmul.f32 -1.442695, %v4055_v15  ;;  %v4865_v43 = vmul.f32 -1.442695, %v4056_v44  ;;  %8651 = vst [vmem:[#allocation67_spill] sm:$0xff] %v8032_v41  ;;  %v8038_v15 = vld [vmem:[#allocation14 + $0x240] sm:$0xff]  ;;  %4263 = vmatpush.msrb.mxu1 %v8034_v37 }
 0xa8f   : > { %8652 = vst [vmem:[#allocation68_spill] sm:$0xff] %v8034_v37  ;;  %v8040_v44 = vld [vmem:[#allocation14 + $0x248] sm:$0xff]  ;;  %4204 = vmatpush.msrb.mxu2 %v8038_v15  ;;  %4244 = vmatpush.msrb.mxu0 %v8044_v3  ;;  %v8064_v41 = vld [vmem:[#allocation14 + $0x200] sm:$0xff] }
 0xa90   : > { %5215 = vpow2.f32 %v4864_v14  ;;  %8653 = vst [vmem:[#allocation69_spill] sm:$0xff] %v8038_v15  ;;  %v8050_v14 = vld [vmem:[#allocation14 + $0x220] sm:$0xff]  ;;  %4224 = vmatpush.msrb.mxu3 %v8040_v44  ;;  %4264 = vmatpush.msrb.mxu1 %v8046_v60  ;;  %v8066_v37 = vld [vmem:[#allocation14 + $0x208] sm:$0xff]  ;;  %v8070_v15 = vld [vmem:[#allocation14 + $0x210] sm:$0xff] }
 0xa91   : > { %8654 = vst [vmem:[#allocation70_spill] sm:$0xff] %v8040_v44  ;;  %v5214_v52 = vpop.eup %5213  ;;  %5217 = vpow2.f32 %v4865_v43  ;;  %v8056_v43 = vld [vmem:[#allocation14 + $0x230] sm:$0xff]  ;;  %4205 = vmatpush.msrb.mxu2 %v8050_v14  ;;  %v8072_v44 = vld [vmem:[#allocation14 + $0x218] sm:$0xff] }
 0xa92   : > { %8656 = vst [vmem:[#allocation57_spill] sm:$0xff] %v8050_v14  ;;  %v8060_v21 = vadd.f32 1.0, %v5214_v52  ;;  %4225 = vmatpush.msrb.mxu3 %v8052_v19  ;;  %4245 = vmatpush.msrb.mxu0 %v8056_v43 }
 0xa93   : > { %4265 = vmatpush.msrb.mxu1 %v8058_v7  ;;  %4206 = vmatpush.msrb.mxu2 %v8064_v41 }
 0xa94   : > { %4226 = vmatpush.msrb.mxu3 %v8066_v37  ;;  %5219 = vrcp.f32 %v8060_v21  ;;  %4246 = vmatpush.msrb.mxu0 %v8070_v15  ;;  %vm4106_vm5 = vweird.f32 %v8060_v21 }
 0xa95   : > { %4266 = vmatpush.msrb.mxu1 %v8072_v44  ;;  %4407 = vmatpush.msra.mxu2 %v7823_v34 }
 0xa96   : > { %v5216_v6 = vpop.eup %5215  ;;  %4427 = vmatpush.msra.mxu3 %v7825_v13  ;;  %4447 = vmatpush.msra.mxu0 %v7898_v24 }
 0xa97   : > { %v5218_v52 = vpop.eup %5217  ;;  %v8076_v3 = vadd.f32 1.0, %v5216_v6  ;;  %4467 = vmatpush.msra.mxu1 %v7900_v56  ;;  %4408 = vmatpush.msra.mxu2 %v7829_v38  ;;  %v4052_v6 = vpop.f32.mrf.mxu1 }
 0xa98   : > { %v8081_v14 = vadd.f32 1.0, %v5218_v52  ;;  %4428 = vmatpush.msra.mxu3 %v7831_v27  ;;  %4448 = vmatpush.msra.mxu0 %v7904_v55  ;;  %v8657_v52 = vld [vmem:[#allocation47_spill] sm:$0xff] }
 0xa99   : > { %5221 = vrcp.f32 %v8076_v3  ;;  %4468 = vmatpush.msra.mxu1 %v7906_v8  ;;  %v2786_v34 = vadd.f32 %v8657_v52, %v7400_v45  ;;  %4409 = vmatpush.msra.mxu2 %v7835_v12  ;;  %v4082_v8 = vand.u32 2147483648, %v8076_v3  ;;  %vm4076_vm14 = vweird.f32 %v8076_v3  ;;  %v4573_v52 = vld [vmem:[#allocation17 + $0x50] sm:$0xff] }
 0xa9a   : > { %5223 = vrcp.f32 %v8081_v14  ;;  %4429 = vmatpush.msra.mxu3 %v7837_v50  ;;  %v8099_v13 = vpop.eup %5219  ;;  %4449 = vmatpush.msra.mxu0 %v7910_v18  ;;  %vm4091_vm0 = vweird.f32 %v8081_v14 }
 0xa9b   : > { %4469 = vmatpush.msra.mxu1 %v7912_v1  ;;  %v4058_v27 = vadd.f32 %v4052_v6, %v2786_v34  ;;  %4410 = vmatpush.msra.mxu2 %v7916_v5  ;;  %v4102_v50 = vmul.f32 %v8099_v13, %v8060_v21  ;;  %v4080_v5 = vand.u32 2147483647, %v8076_v3  ;;  %vm4107_vm4 = vweird.f32 %v8099_v13 }
 0xa9c   : > { %4430 = vmatpush.msra.mxu3 %v7918_v53  ;;  %4450 = vmatpush.msra.mxu0 %v7920_v30  ;;  %v4097_v53 = vand.u32 2147483648, %v8081_v14  ;;  %vm4108_vm6 = vmor %vm4106_vm5, %vm4107_vm4 }
 0xa9d   : > { %4470 = vmatpush.msra.mxu1 %v7924_v26  ;;  %4411 = vmatpush.msra.mxu2 %v7928_v29  ;;  %5225 = vtanh.f32 %v4058_v27  ;;  %v4095_v26 = vand.u32 2147483647, %v8081_v14  ;;  %v4103_v29 = vsub.f32 1.0, %v4102_v50  ;;  %vm4081_vm1 = vcmp.eq.f32.partialorder %v4080_v5, 8.507059e+37 }
 0xa9e   : > { %4431 = vmatpush.msra.mxu3 %v7930_v62  ;;  %4451 = vmatpush.msra.mxu0 %v7932_v39  ;;  %v4083_v39 = vor.u32 1.1754944e-38, %v4082_v8  ;;  %v4569_v8 = vld [vmem:[#allocation17 + $0x30] sm:$0xff] }
 0xa9f   : > { %v5222_v38 = vpop.eup %5221  ;;  %4471 = vmatpush.msra.mxu1 %v7936_v42  ;;  %4412 = vmatpush.msra.mxu2 %v7940_v22  ;;  %vm4096_vm3 = vcmp.eq.f32.partialorder %v4095_v26, 8.507059e+37 }
 0xaa0   : > { %v5224_v24 = vpop.eup %5223  ;;  %v4072_v56 = vmul.f32 %v5222_v38, %v8076_v3  ;;  %4432 = vmatpush.msra.mxu3 %v7942_v31  ;;  %vm4077_vm12 = vweird.f32 %v5222_v38  ;;  %4452 = vmatpush.msra.mxu0 %v7944_v33  ;;  %v4098_v31 = vor.u32 1.1754944e-38, %v4097_v53  ;;  %v4567_v53 = vld [vmem:[#allocation17 + $0x20] sm:$0xff] }
 0xaa1   : > { %v4087_v12 = vmul.f32 %v5224_v24, %v8081_v14  ;;  %4472 = vmatpush.msra.mxu1 %v7948_v17  ;;  %vm4092_vm13 = vweird.f32 %v5224_v24  ;;  %4413 = vmatpush.msra.mxu2 %v7952_v11  ;;  %vm4078_vm15 = vmor %vm4076_vm14, %vm4077_vm12  ;;  %v4104_v11 = vmul.f32 %v8099_v13, %v4103_v29 }
 0xaa2   : > { %v4073_v55 = vsub.f32 1.0, %v4072_v56  ;;  %4433 = vmatpush.msra.mxu3 %v7954_v49  ;;  %4453 = vmatpush.msra.mxu0 %v7956_v9  ;;  %vm4093_vm2 = vmor %vm4091_vm0, %vm4092_vm13  ;;  %v4571_v56 = vld [vmem:[#allocation17 + $0x40] sm:$0xff] }
 0xaa3   : > { %v4088_v18 = vsub.f32 1.0, %v4087_v12  ;;  %4473 = vmatpush.msra.mxu1 %v7962_v51  ;;  %4414 = vmatpush.msra.mxu2 %v7966_v10  ;;  %v5226_v3 = vpop.eup %5225 }
 0xaa4   : > { %v4074_v1 = vmul.f32 %v5222_v38, %v4073_v55  ;;  %4434 = vmatpush.msra.mxu3 %v7968_v2  ;;  %4454 = vmatpush.msra.mxu0 %v7970_v54  ;;  %v4105_v2 = vadd.f32 %v8099_v13, %v4104_v11  ;;  %v4110_v54 = vand.u32 2147483647, %v8060_v21  ;;  %v4570_v55 = vld [vmem:[#allocation17 + $0x38] sm:$0xff] }
 0xaa5   : > { %v4089_v30 = vmul.f32 %v5224_v24, %v4088_v18  ;;  %4474 = vmatpush.msra.mxu1 %v7974_v16  ;;  %4415 = vmatpush.msra.mxu2 %v7978_v32  ;;  %v8658_v16 = vld [vmem:[#allocation66_spill] sm:$0xff] }
 0xaa6   : > { %v4075_v62 = vadd.f32 %v5222_v38, %v4074_v1  ;;  %4435 = vmatpush.msra.mxu3 %v7980_v46  ;;  %4455 = vmatpush.msra.mxu0 %v7982_v20  ;;  %v4109_v32 = vsel %vm4108_vm6, %v8099_v13, %v4105_v2  ;;  %v8659_v46 = vld [vmem:[#allocation67_spill] sm:$0xff]  ;;  %v8660_v20 = vld [vmem:[#allocation68_spill] sm:$0xff]  ;;  %vm4111_vm7 = vcmp.eq.f32.partialorder %v4110_v54, 8.507059e+37 }
 0xaa7   : > { %v4090_v42 = vadd.f32 %v5224_v24, %v4089_v30  ;;  %4475 = vmatpush.msra.mxu1 %v7986_v35  ;;  %4416 = vmatpush.msra.mxu2 %v7994_v57  ;;  %v8661_v57 = vld [vmem:[#allocation69_spill] sm:$0xff]  ;;  %v4568_v1 = vld [vmem:[#allocation17 + $0x28] sm:$0xff] }
 0xaa8   : > { %v4079_v22 = vsel %vm4078_vm15, %v5222_v38, %v4075_v62  ;;  %4436 = vmatpush.msra.mxu3 %v7996_v25  ;;  %4456 = vmatpush.msra.mxu0 %v7998_v23  ;;  %v8662_v25 = vld [vmem:[#allocation70_spill] sm:$0xff]  ;;  %v4572_v38 = vld [vmem:[#allocation17 + $0x48] sm:$0xff] }
 0xaa9   : > { %v4084_v33 = vsel %vm4081_vm1, %v4083_v39, %v4079_v22  ;;  %v4094_v17 = vsel %vm4093_vm2, %v5224_v24, %v4090_v42  ;;  %4476 = vmatpush.msra.mxu1 %v8002_v28  ;;  %4417 = vmatpush.msra.mxu2 %v8004_v48  ;;  %v8664_v48 = vld [vmem:[#allocation57_spill] sm:$0xff]  ;;  %v4565_v42 = vld [vmem:[#allocation17 + $0x10] sm:$0xff]  ;;  %v4564_v22 = vld [vmem:[#allocation17 + $0x8] sm:$0xff] }
 0xaaa   : > { %v4118_v49 = vmul.f32 %v5226_v3, %v4084_v33  ;;  %v4099_v9 = vsel %vm4096_vm3, %v4098_v31, %v4094_v17  ;;  %4437 = vmatpush.msra.mxu3 %v8006_v58  ;;  %4457 = vmatpush.msra.mxu0 %v8010_v59  ;;  %v8665_v59 = vld [vmem:[#allocation34_spill] sm:$0xff]  ;;  %v4566_v39 = vld [vmem:[#allocation17 + $0x18] sm:$0xff] }
 0xaab   : > { %v4117_v51 = vmul.f32 %v4099_v9, %v7886_v40  ;;  %4477 = vmatpush.msra.mxu1 %v8012_v4  ;;  %v4112_v40 = vand.u32 2147483648, %v8060_v21  ;;  %4418 = vmatpush.msra.mxu2 %v8014_v63  ;;  %v8663_v21 = vld [vmem:[#allocation37_spill] sm:$0xff]  ;;  %v8666_v4 = vld [vmem:[#allocation43_spill] sm:$0xff]  ;;  %v4563_v17 = vld [vmem:[#allocation17] sm:$0xff] }
 0xaac   : > { %4438 = vmatpush.msra.mxu3 %v8018_v36  ;;  %4458 = vmatpush.msra.mxu0 %v8020_v47  ;;  %v2748_v63 = vadd.f32 %v8666_v4, %v8665_v59  ;;  %v4575_v47 = vld [vmem:[#allocation17 + $0x60] sm:$0xff]  ;;  %v8671_v3 = vld [vmem:[#allocation49_spill] sm:$0xff] }
 0xaad   : > { %v8145_v10 = vadd.f32 %v4118_v49, %v4117_v51  ;;  %4478 = vmatpush.msra.mxu1 %v8022_v61  ;;  %4419 = vmatpush.msra.mxu2 %v8026_v0  ;;  %v4113_v35 = vor.u32 1.1754944e-38, %v4112_v40  ;;  %v4574_v0 = vld [vmem:[#allocation17 + $0x58] sm:$0xff]  ;;  %v2789_v33 = vadd.f32 %v8671_v3, %v7400_v45 }
 0xaae   : > { %4439 = vmatpush.msra.mxu3 %v8658_v16  ;;  %4459 = vmatpush.msra.mxu0 %v8659_v46 }
 0xaaf   : > { %5227 = vtanh.f32 %v8145_v10  ;;  %4479 = vmatpush.msra.mxu1 %v8660_v20  ;;  %4420 = vmatpush.msra.mxu2 %v8661_v57  ;;  %v4114_v28 = vsel %vm4111_vm7, %v4113_v35, %v4109_v32 }
 0xab0   : > { %4440 = vmatpush.msra.mxu3 %v8662_v25  ;;  %4460 = vmatpush.msra.mxu0 %v8663_v21 }
 0xab1   : > { %4480 = vmatpush.msra.mxu1 %v8046_v60  ;;  %4421 = vmatpush.msra.mxu2 %v8664_v48  ;;  %v4578_v60 = vld [vmem:[#allocation17 + $0x78] sm:$0xff] }
 0xab2   : > { %4441 = vmatpush.msra.mxu3 %v8052_v19  ;;  %4461 = vmatpush.msra.mxu0 %v8056_v43  ;;  %v4577_v19 = vld [vmem:[#allocation17 + $0x70] sm:$0xff]  ;;  %v8670_v43 = vld [vmem:[#allocation41_spill] sm:$0xff] }
 0xab3   : > { %4481 = vmatpush.msra.mxu1 %v8058_v7  ;;  %4422 = vmatpush.msra.mxu2 %v8064_v41  ;;  %v4576_v7 = vld [vmem:[#allocation17 + $0x68] sm:$0xff] }
 0xab4   : > { %4442 = vmatpush.msra.mxu3 %v8066_v37  ;;  %4462 = vmatpush.msra.mxu0 %v8070_v15  ;;  %v8667_v37 = vld [vmem:[#allocation53_spill] sm:$0xff]  ;;  %v8668_v15 = vld [vmem:[#allocation46_spill] sm:$0xff] }
 0xab5   : > { %v5228_v23 = vpop.eup %5227  ;;  %4482 = vmatpush.msra.mxu1 %v8072_v44  ;;  %v2666_v14 = vadd.f32 %v8668_v15, %v8667_v37  ;;  %v8669_v44 = vld [vmem:[#allocation48_spill] sm:$0xff] }
 0xab6   : > { %v8172_v58 = vmul.f32 %v5228_v23, %v4114_v28  ;;  %v2707_v6 = vadd.f32 %v8670_v43, %v8669_v44 }
 0xab8   : > { %4207 = vmatmul.f32.vlgmr.msrb.gmra.mxu2 %v8172_v58  ;;  %4227 = vmatmul.f32.vlgmr.msrb.gmra.mxu3 %v8172_v58 }
 0xab9   : > { %4247 = vmatmul.f32.vlgmr.msrb.gmra.mxu0 %v8172_v58  ;;  %4267 = vmatmul.f32.vlgmr.msrb.gmra.mxu1 %v8172_v58 }
 0xaba   : > { %4583 = vmatpush.msrb.mxu2 %v4578_v60 }
 0xabc   : > { %4584 = vmatpush.msrb.mxu2 %v4577_v19 }
 0xabe   : > { %4585 = vmatpush.msrb.mxu2 %v4576_v7 }
 0xac0   : > { %4586 = vmatpush.msrb.mxu2 %v4575_v47 }
 0xac2   : > { %4587 = vmatpush.msrb.mxu2 %v4574_v0 }
 0xac4   : > { %4588 = vmatpush.msrb.mxu2 %v4573_v52 }
 0xac6   : > { %4589 = vmatpush.msrb.mxu2 %v4572_v38 }
 0xac8   : > { %4590 = vmatpush.msrb.mxu2 %v4571_v56  ;;  %v8674_v56 = vld [vmem:[#allocation32_spill] sm:$0xff] }
 0xaca   : > { %4591 = vmatpush.msrb.mxu2 %v4570_v55  ;;  %v8677_v55 = vld [vmem:[#allocation42_spill] sm:$0xff] }
 0xacc   : > { %4592 = vmatpush.msrb.mxu2 %v4569_v8  ;;  %v2751_v8 = vadd.f32 %v8677_v55, %v8665_v59  ;;  %v8219_v59 = vld [vmem:[%s8292_s9] ss:$0 sm:$0xff] }
 0xace   : > { %4593 = vmatpush.msrb.mxu2 %v4568_v1 }
 0xad0   : > { %4594 = vmatpush.msrb.mxu2 %v4567_v53  ;;  %v8678_v53 = vld [vmem:[#allocation44_spill] sm:$0xff] }
 0xad2   : > { %4595 = vmatpush.msrb.mxu2 %v4566_v39 }
 0xad4   : > { %4596 = vmatpush.msrb.mxu2 %v4565_v42 }
 0xad6   : > { %4597 = vmatpush.msrb.mxu2 %v4564_v22 }
 0xad8   : > { %4598 = vmatpush.msrb.mxu2 %v4563_v17 }
 0xb36   : > { %v4248_v36 = vpop.f32.mrf.mxu0  ;;  %v4268_v31 = vpop.f32.mrf.mxu1 }
 0xb37   : > { %v4273_v61 = vadd.f32 %v4248_v36, %v2748_v63  ;;  %v4274_v9 = vadd.f32 %v4268_v31, %v2789_v33 }
 0xb39   : > { %v4869_v41 = vmul.f32 -1.442695, %v4273_v61 }
 0xb3b   : > { %5229 = vpow2.f32 %v4869_v41  ;;  %v4208_v34 = vpop.f32.mrf.mxu2  ;;  %v4228_v13 = vpop.f32.mrf.mxu3 }
 0xb3c   : > { %v4271_v27 = vadd.f32 %v4208_v34, %v2666_v14  ;;  %v4272_v24 = vadd.f32 %v4228_v13, %v2707_v6 }
 0xb3e   : > { %v4867_v12 = vmul.f32 -1.442695, %v4271_v27  ;;  %v4868_v50 = vmul.f32 -1.442695, %v4272_v24  ;;  %v8673_v24 = vld [vmem:[#allocation55_spill] sm:$0xff] }
 0xb40   : > { %5231 = vpow2.f32 %v4867_v12  ;;  %v8675_v12 = vld [vmem:[#allocation64_spill] sm:$0xff] }
 0xb41   : > { %v5230_v18 = vpop.eup %5229  ;;  %5233 = vpow2.f32 %v4868_v50  ;;  %v8676_v50 = vld [vmem:[#allocation65_spill] sm:$0xff] }
 0xb42   : > { %v8190_v5 = vadd.f32 1.0, %v5230_v18 }
 0xb44   : > { %5235 = vrcp.f32 %v8190_v5  ;;  %v4328_v43 = vand.u32 2147483648, %v8190_v5  ;;  %vm4322_vm1 = vweird.f32 %v8190_v5  ;;  %v4326_v6 = vand.u32 2147483647, %v8190_v5 }
 0xb46   : > { %v5232_v30 = vpop.eup %5231  ;;  %v4329_v34 = vor.u32 1.1754944e-38, %v4328_v43  ;;  %vm4327_vm3 = vcmp.eq.f32.partialorder %v4326_v6, 8.507059e+37 }
 0xb47   : > { %v5234_v26 = vpop.eup %5233  ;;  %v4284_v29 = vadd.f32 1.0, %v5232_v30  ;;  %v2669_v30 = vadd.f32 %v8678_v53, %v8667_v37 }
 0xb48   : > { %v4285_v62 = vadd.f32 1.0, %v5234_v26  ;;  %v8679_v26 = vld [vmem:[#allocation45_spill] sm:$0xff] }
 0xb49   : > { %5237 = vrcp.f32 %v4284_v29  ;;  %v4298_v32 = vand.u32 2147483648, %v4284_v29  ;;  %v4296_v35 = vand.u32 2147483647, %v4284_v29  ;;  %vm4292_vm10 = vweird.f32 %v4284_v29 }
 0xb4a   : > { %5239 = vrcp.f32 %v4285_v62  ;;  %v5236_v11 = vpop.eup %5235  ;;  %v4313_v57 = vand.u32 2147483648, %v4285_v62  ;;  %v4311_v21 = vand.u32 2147483647, %v4285_v62  ;;  %vm4307_vm12 = vweird.f32 %v4285_v62 }
 0xb4b   : > { %v4318_v54 = vmul.f32 %v5236_v11, %v8190_v5  ;;  %5241 = vtanh.f32 %v4274_v9  ;;  %v4299_v48 = vor.u32 1.1754944e-38, %v4298_v32  ;;  %vm4297_vm13 = vcmp.eq.f32.partialorder %v4296_v35, 8.507059e+37 }
 0xb4c   : > { %v4314_v7 = vor.u32 1.1754944e-38, %v4313_v57  ;;  %vm4312_vm15 = vcmp.eq.f32.partialorder %v4311_v21, 8.507059e+37  ;;  %vm4323_vm0 = vweird.f32 %v5236_v11 }
 0xb4d   : > { %v4319_v23 = vsub.f32 1.0, %v4318_v54  ;;  %vm4324_vm2 = vmor %vm4322_vm1, %vm4323_vm0  ;;  %v8680_v54 = vld [vmem:[#allocation56_spill] sm:$0xff] }
 0xb4f   : > { %v5238_v49 = vpop.eup %5237  ;;  %v4320_v47 = vmul.f32 %v5236_v11, %v4319_v23 }
 0xb50   : > { %v5240_v51 = vpop.eup %5239  ;;  %v4288_v2 = vmul.f32 %v5238_v49, %v4284_v29  ;;  %vm4293_vm8 = vweird.f32 %v5238_v49  ;;  %v2710_v29 = vadd.f32 %v8679_v26, %v8669_v44 }
 0xb51   : > { %v4303_v40 = vmul.f32 %v5240_v51, %v4285_v62  ;;  %vm4308_vm9 = vweird.f32 %v5240_v51  ;;  %vm4294_vm11 = vmor %vm4292_vm10, %vm4293_vm8  ;;  %v5242_v4 = vpop.eup %5241  ;;  %v4321_v14 = vadd.f32 %v5236_v11, %v4320_v47 }
 0xb52   : > { %v4289_v16 = vsub.f32 1.0, %v4288_v2  ;;  %vm4309_vm14 = vmor %vm4307_vm12, %vm4308_vm9 }
 0xb53   : > { %v4304_v46 = vsub.f32 1.0, %v4303_v40  ;;  %v4325_v52 = vsel %vm4324_vm2, %v5236_v11, %v4321_v14 }
 0xb54   : > { %v4290_v20 = vmul.f32 %v5238_v49, %v4289_v16  ;;  %v4330_v38 = vsel %vm4327_vm3, %v4329_v34, %v4325_v52  ;;  %v2792_v16 = vadd.f32 %v8680_v54, %v7400_v45 }
 0xb55   : > { %v4305_v25 = vmul.f32 %v5240_v51, %v4304_v46 }
 0xb56   : > { %v4291_v28 = vadd.f32 %v5238_v49, %v4290_v20 }
 0xb57   : > { %v4306_v60 = vadd.f32 %v5240_v51, %v4305_v25 }
 0xb58   : > { %v4295_v19 = vsel %vm4294_vm11, %v5238_v49, %v4291_v28 }
 0xb59   : > { %v4300_v63 = vsel %vm4297_vm13, %v4299_v48, %v4295_v19  ;;  %v4310_v36 = vsel %vm4309_vm14, %v5240_v51, %v4306_v60 }
 0xb5a   : > { %v4334_v61 = vmul.f32 %v5242_v4, %v4300_v63  ;;  %v4315_v0 = vsel %vm4312_vm15, %v4314_v7, %v4310_v36 }
 0xb5b   : > { %v4333_v41 = vmul.f32 %v4315_v0, %v8145_v10  ;;  %v8672_v10 = vld [vmem:[#allocation54_spill] sm:$0xff] }
 0xb5d   : > { %v8197_v15 = vadd.f32 %v4334_v61, %v4333_v41 }
 0xb5f   : > { %5243 = vtanh.f32 %v8197_v15 }
 0xb65   : > { %v5244_v13 = vpop.eup %5243 }
 0xb66   : > { %v4337_v27 = vmul.f32 %v5244_v13, %v4330_v38 }
 0xb68   : > { %4423 = vmatmul.f32.vlgmr.msra.gmra.mxu2 %v4337_v27  ;;  %4443 = vmatmul.f32.vlgmr.msra.gmra.mxu3 %v4337_v27 }
 0xb69   : > { %4463 = vmatmul.f32.vlgmr.msra.gmra.mxu0 %v4337_v27  ;;  %4483 = vmatmul.f32.vlgmr.msra.gmra.mxu1 %v4337_v27 }
 0xb70   : > { %4599 = vmatmul.f32.vlgmr.msrb.gmra.mxu2 %v8672_v10 }
 0xb78   : > { %4602 = vmatmul.f32.gmra.mxu2 %v8673_v24 }
 0xb80   : > { %4605 = vmatmul.f32.gmra.mxu2 %v8674_v56 }
 0xb88   : > { %4608 = vmatmul.f32.gmra.mxu2 %v8675_v12 }
 0xb90   : > { %4611 = vmatmul.f32.gmra.mxu2 %v8676_v50 }
 0xb98   : > { %4614 = vmatmul.f32.gmra.mxu2 %v8172_v58 }
 0xba0   : > { %4617 = vmatmul.f32.gmra.mxu2 %v4337_v27 }
 0xbe6   : > { %v4464_v18 = vpop.f32.mrf.mxu0  ;;  %v4484_v2 = vpop.f32.mrf.mxu1 }
 0xbe7   : > { %v4489_v1 = vadd.f32 %v4464_v18, %v2751_v8  ;;  %v4490_v20 = vadd.f32 %v4484_v2, %v2792_v16 }
 0xbe9   : > { %v4872_v5 = vmul.f32 -1.442695, %v4489_v1 }
 0xbeb   : > { %5245 = vpow2.f32 %v4872_v5  ;;  %v4424_v62 = vpop.f32.mrf.mxu2  ;;  %v4444_v39 = vpop.f32.mrf.mxu3 }
 0xbec   : > { %v4487_v42 = vadd.f32 %v4424_v62, %v2669_v30  ;;  %v4488_v22 = vadd.f32 %v4444_v39, %v2710_v29 }
 0xbee   : > { %v4870_v58 = vmul.f32 -1.442695, %v4487_v42  ;;  %v4871_v31 = vmul.f32 -1.442695, %v4488_v22 }
 0xbf0   : > { %5247 = vpow2.f32 %v4870_v58 }
 0xbf1   : > { %v5246_v3 = vpop.eup %5245  ;;  %5249 = vpow2.f32 %v4871_v31 }
 0xbf2   : > { %v8221_v33 = vadd.f32 1.0, %v5246_v3 }
 0xbf3   : > { %v4600_v37 = vpop.f32.mrf.mxu2 }
 0xbf4   : > { %v4601_v44 = vadd.f32 %v8219_v59, %v4600_v37  ;;  %5251 = vrcp.f32 %v8221_v33  ;;  %v4544_v55 = vand.u32 2147483648, %v8221_v33  ;;  %vm4538_vm13 = vweird.f32 %v8221_v33 }
 0xbf5   : > { %v4542_v8 = vand.u32 2147483647, %v8221_v33 }
 0xbf6   : > { %v5248_v17 = vpop.eup %5247  ;;  %4624 = vst [vmem:[%s8224_s7] sm:$0xff] %v4601_v44  ;;  %v4545_v1 = vor.u32 1.1754944e-38, %v4544_v55 }
 0xbf7   : > { %v5250_v11 = vpop.eup %5249  ;;  %v4500_v49 = vadd.f32 1.0, %v5248_v17  ;;  %vm4543_vm15 = vcmp.eq.f32.partialorder %v4542_v8, 8.507059e+37 }
 0xbf8   : > { %v4501_v9 = vadd.f32 1.0, %v5250_v11 }
 0xbf9   : > { %5253 = vrcp.f32 %v4500_v49  ;;  %v4512_v28 = vand.u32 2147483647, %v4500_v49  ;;  %v4514_v48 = vand.u32 2147483648, %v4500_v49  ;;  %vm4508_vm6 = vweird.f32 %v4500_v49 }
 0xbfa   : > { %5255 = vrcp.f32 %v4501_v9  ;;  %v5252_v32 = vpop.eup %5251  ;;  %v4529_v4 = vand.u32 2147483648, %v4501_v9  ;;  %v4527_v36 = vand.u32 2147483647, %v4501_v9  ;;  %vm4523_vm8 = vweird.f32 %v4501_v9 }
 0xbfb   : > { %v4603_v51 = vpop.f32.mrf.mxu2  ;;  %v4534_v21 = vmul.f32 %v5252_v32, %v8221_v33  ;;  %5257 = vtanh.f32 %v4490_v20  ;;  %v4515_v0 = vor.u32 1.1754944e-38, %v4514_v48  ;;  %vm4513_vm9 = vcmp.eq.f32.partialorder %v4512_v28, 8.507059e+37 }
 0xbfc   : > { %v4604_v40 = vadd.f32 %v8219_v59, %v4603_v51  ;;  %v4530_v14 = vor.u32 1.1754944e-38, %v4529_v4  ;;  %vm4528_vm11 = vcmp.eq.f32.partialorder %v4527_v36, 8.507059e+37  ;;  %vm4539_vm12 = vweird.f32 %v5252_v32 }
 0xbfd   : > { %v4535_v61 = vsub.f32 1.0, %v4534_v21  ;;  %vm4540_vm14 = vmor %vm4538_vm13, %vm4539_vm12 }
 0xbfe   : > { %4625 = vst [vmem:[%s8224_s7 + $0x8] sm:$0xff] %v4604_v40 }
 0xbff   : > { %v5254_v46 = vpop.eup %5253  ;;  %v4536_v38 = vmul.f32 %v5252_v32, %v4535_v61 }
 0xc00   : > { %v5256_v35 = vpop.eup %5255  ;;  %v4504_v57 = vmul.f32 %v5254_v46, %v4500_v49  ;;  %vm4509_vm4 = vweird.f32 %v5254_v46 }
 0xc01   : > { %v4519_v25 = vmul.f32 %v5256_v35, %v4501_v9  ;;  %vm4524_vm5 = vweird.f32 %v5256_v35  ;;  %vm4510_vm7 = vmor %vm4508_vm6, %vm4509_vm4  ;;  %v5258_v6 = vpop.eup %5257  ;;  %v4537_v50 = vadd.f32 %v5252_v32, %v4536_v38 }
 0xc02   : > { %v4505_v23 = vsub.f32 1.0, %v4504_v57  ;;  %vm4525_vm10 = vmor %vm4523_vm8, %vm4524_vm5 }
 0xc03   : > { %v4520_v60 = vsub.f32 1.0, %v4519_v25  ;;  %v4606_v19 = vpop.f32.mrf.mxu2  ;;  %v4541_v18 = vsel %vm4540_vm14, %v5252_v32, %v4537_v50 }
 0xc04   : > { %v4506_v7 = vmul.f32 %v5254_v46, %v4505_v23  ;;  %v4607_v45 = vadd.f32 %v8219_v59, %v4606_v19  ;;  %v4546_v30 = vsel %vm4543_vm15, %v4545_v1, %v4541_v18 }
 0xc05   : > { %v4521_v63 = vmul.f32 %v5256_v35, %v4520_v60 }
 0xc06   : > { %v4507_v47 = vadd.f32 %v5254_v46, %v4506_v7  ;;  %4626 = vst [vmem:[%s8224_s7 + $0x10] sm:$0xff] %v4607_v45 }
 0xc07   : > { %v4522_v41 = vadd.f32 %v5256_v35, %v4521_v63 }
 0xc08   : > { %v4511_v43 = vsel %vm4510_vm7, %v5254_v46, %v4507_v47 }
 0xc09   : > { %v4516_v52 = vsel %vm4513_vm9, %v4515_v0, %v4511_v43  ;;  %v4526_v34 = vsel %vm4525_vm10, %v5256_v35, %v4522_v41 }
 0xc0a   : > { %v4531_v13 = vsel %vm4528_vm11, %v4530_v14, %v4526_v34  ;;  %v4550_v27 = vmul.f32 %v5258_v6, %v4516_v52 }
 0xc0b   : > { %v4609_v10 = vpop.f32.mrf.mxu2  ;;  %v4549_v24 = vmul.f32 %v4531_v13, %v8197_v15 }
 0xc0c   : > { %v4610_v56 = vadd.f32 %v8219_v59, %v4609_v10 }
 0xc0d   : > { %v4551_v12 = vadd.f32 %v4550_v27, %v4549_v24 }
 0xc0e   : > { %4627 = vst [vmem:[%s8224_s7 + $0x18] sm:$0xff] %v4610_v56 }
 0xc0f   : > { %5259 = vtanh.f32 %v4551_v12 }
 0xc13   : > { %v4612_v15 = vpop.f32.mrf.mxu2 }
 0xc14   : > { %v4613_v5 = vadd.f32 %v8219_v59, %v4612_v15 }
 0xc15   : > { %v5260_v53 = vpop.eup %5259 }
 0xc16   : > { %4628 = vst [vmem:[%s8224_s7 + $0x20] sm:$0xff] %v4613_v5  ;;  %v4553_v26 = vmul.f32 %v5260_v53, %v4546_v30 }
 0xc18   : > { %4620 = vmatmul.f32.gmra.mxu2 %v4553_v26 }
 0xc1b   : > { %v4615_v29 = vpop.f32.mrf.mxu2 }
 0xc1c   : > { %v4616_v62 = vadd.f32 %v8219_v59, %v4615_v29 }
 0xc1e   : > { %4629 = vst [vmem:[%s8224_s7 + $0x28] sm:$0xff] %v4616_v62 }
 0xc23   : > { %v4618_v39 = vpop.f32.mrf.mxu2 }
 0xc24   : > { %v4619_v42 = vadd.f32 %v8219_v59, %v4618_v39 }
 0xc26   : > { %4630 = vst [vmem:[%s8224_s7 + $0x30] sm:$0xff] %v4619_v42 }
 0xc9b   : > { %v4621_v22 = vpop.f32.mrf.mxu2 }
 0xc9c   : > { %v4622_v58 = vadd.f32 %v8219_v59, %v4621_v22 }
 0xc9e   : > { %4631 = vst [vmem:[%s8224_s7 + $0x38] sm:$0xff] %v4622_v58 }
 0xc9f   : > { %5529 = shalt.err (!%p5526_p8)
}
 0xca0   : > { %s5602_s5 = smov 128   ;;  %s5603_s29 = smov 8  }
 0xca1   : > { %4908 = dma.vmem_to_hbm [thread:$0]  (%p5767_p4), %s4646_s6, 1024, %s4648_s11, %s4633_s30, %s5602_s5, %s5602_s5, %s5603_s29  }
 0xca2 PF: > { %s4662_s8 = sand.u32 1, %s5576_s13   ;;  %p8681_p10 = scmp.ge.s32.totalorder %s5588_s16, 2 }
 0xca3   : > { %s4663_s18 = scalar_lea.sflag [#allocation7], %s4662_s8 }
 0xca4   : > { %p4937_p13 = pnand %p8681_p10, %p5771_p6 }
 0xca6   : > { %p4938_p11 = pneg %p4937_p13 }
 0xca8   : > { %5571 = dma.done.wait (%p4938_p11), %s4663_s18, 1024  }
 0xca9   : > { %5573 = vsyncadd (%p4938_p11), %s4663_s18, 4294966272  ;;  %s8682_s16 = sld [smem:[#allocation28_spill]]  ;;  %s8685_s13 = smov %s5580_s14 }
 0xcaa   : > { %s8683_s26 = sld [smem:[#allocation27_spill]] }
 0xcab   : > { %s8684_s15 = sld [smem:[#allocation29_spill]] }
 0xcaf   : > { %p29_p0 = scmp.ge.s32.totalorder %s8682_s16, 4  }
 0xcb0   : > { %s8686_s14 = smov %s8683_s26 }
 0xcb1   :  { %31 = sbr.rel (!%p29_p0) target bundleno = 17 (0x11), region = 144 }
 0xcb6   :  { %4669 = vsyncpa [#allocation6], 1 }
 0xcb7   :  { %4671 = vsyncpa [#allocation6 + $0x1], 1 }
 0xcb8   :  { %4672 = vsyncpa [#allocation9], 1 }
 0xcb9   :  { %4674 = vsyncpa [#allocation9 + $0x1], 1 }
 0xcba   :  { %4675 = vsyncpa [#allocation12], 1 }
 0xcbb   :  { %4676 = vsyncpa [#allocation15], 1 }
 0xcbc   :  { %4677 = vsyncpa [#allocation18], 1 }
 0xcbd   :  { %4678 = vsyncpa [#allocation7], 1 }
 0xcbe   :  { %4680 = vsyncpa [#allocation7 + $0x1], 1 }

</bundles_post_ra>
